<compile_context>
chip_gen: v7x
topology: tpu7x:2x2x1
jax: 0.10.0
libtpu: 0.0.40
codegen_flags: <defaults>
</compile_context>

<pallas_src>
import jax
import jax.numpy as jnp
from jax.experimental import pallas as pl
from jax.experimental.pallas import tpu as pltpu


def _edge_fore_back_kernel(
    feat_ref, pred_ref,
    w1_ref, s1_ref, t1_ref,        # fused 1x1 stems   (C,3C) bf16, (1,3C) f32 x2
    we2_ref, se2_ref, te2_ref,     # edge 3x3          (9C,C) bf16, (1,C) f32 x2
    wf2_ref, sf2_ref, tf2_ref,     # fore 3x3          (9C,Ch) bf16, (1,Ch) f32 x2
    wb2_ref, sb2_ref, tb2_ref,     # back 3x3          (9C,Ch) bf16, (1,Ch) f32 x2
    wh_ref, bh_ref,                # edge head         (C,1) bf16, (1,1) f32
    out_ref,                       # (1, HW, 1+2*Ch) f32  [edge | fore | back]
    pad_ref,                       # VMEM scratch (2, H+2, W+2, C) f32
):
    f32 = jnp.float32
    bf16 = jnp.bfloat16

    _, HW, C = feat_ref.shape
    _, Hp, Wp, _ = pad_ref.shape
    H, W = Hp - 2, Wp - 2
    Ch = wf2_ref.shape[-1]

    x = feat_ref[...].reshape(HW, C)                       # (HW, C) f32
    x_bf = x.astype(bf16)

    # Zero only the 1-pixel border of the padded scratch (done every grid step
    # -> safe under megacore grid splitting); interiors are fully rewritten
    # before each use below.
    pad_ref[:, 0:1, :, :] = jnp.zeros((2, 1, Wp, C), f32)
    pad_ref[:, Hp - 1:Hp, :, :] = jnp.zeros((2, 1, Wp, C), f32)
    pad_ref[:, :, 0:1, :] = jnp.zeros((2, Hp, 1, C), f32)
    pad_ref[:, :, Wp - 1:Wp, :] = jnp.zeros((2, Hp, 1, C), f32)

    # ---- fused 1x1 stems: one (HW,C)@(C,3C) bf16 matmul for e/f/b ---------
    y1 = jnp.dot(x_bf, w1_ref[...], preferred_element_type=f32)
    y1 = jnp.maximum(y1 * s1_ref[...] + t1_ref[...], 0.0)        # (HW, 3C) f32
    e_stem = y1[:, :C]
    f_stem = y1[:, C:2 * C]
    b_stem = y1[:, 2 * C:]

    taps = [(dy, dx) for dy in range(3) for dx in range(3)]

    # ---- edge stream 3x3 conv: 9 shifted-tap matmuls, f32 accumulation ----
    pad_ref[0:1, 1:H + 1, 1:W + 1, :] = e_stem.reshape(1, H, W, C)
    acc_e = jnp.zeros((HW, C), f32)
    for t, (dy, dx) in enumerate(taps):
        tap = pad_ref[0:1, dy:dy + H, dx:dx + W, :].reshape(HW, C).astype(bf16)
        w_t = we2_ref[t * C:(t + 1) * C, :]
        acc_e = acc_e + jnp.dot(tap, w_t, preferred_element_type=f32)
    e2 = jnp.maximum(acc_e * se2_ref[...] + te2_ref[...], 0.0)
    edge_feat = e2 + x                                            # (HW, C) f32

    # ---- fore / back 3x3 convs (two dense weight sets, no zero blocks) ----
    f_in = f_stem * edge_feat + x
    b_in = b_stem * edge_feat + x
    pad_ref[0:1, 1:H + 1, 1:W + 1, :] = f_in.reshape(1, H, W, C)  # reuse plane 0
    pad_ref[1:2, 1:H + 1, 1:W + 1, :] = b_in.reshape(1, H, W, C)

    acc_f = jnp.zeros((HW, Ch), f32)
    acc_b = jnp.zeros((HW, Ch), f32)
    for t, (dy, dx) in enumerate(taps):
        tf = pad_ref[0:1, dy:dy + H, dx:dx + W, :].reshape(HW, C).astype(bf16)
        tb = pad_ref[1:2, dy:dy + H, dx:dx + W, :].reshape(HW, C).astype(bf16)
        wf_t = wf2_ref[t * C:(t + 1) * C, :]
        wb_t = wb2_ref[t * C:(t + 1) * C, :]
        acc_f = acc_f + jnp.dot(tf, wf_t, preferred_element_type=f32)
        acc_b = acc_b + jnp.dot(tb, wb_t, preferred_element_type=f32)
    fore = jnp.maximum(acc_f * sf2_ref[...] + tf2_ref[...], 0.0)
    back = jnp.maximum(acc_b * sb2_ref[...] + tb2_ref[...], 0.0)

    # ---- edge head: 1x1 conv C -> 1 on the MXU (bias, no BN / no ReLU) ----
    edge_col = jnp.dot(edge_feat.astype(bf16), wh_ref[...],
                       preferred_element_type=f32) + bh_ref[...]   # (HW, 1)

    # ---- gating by the (detached) prediction; single fused output slab ----
    pre = jax.nn.sigmoid(pred_ref[...].reshape(HW, 1))             # (HW, 1) f32
    out = jnp.concatenate([edge_col, fore * pre, back * (1.0 - pre)], axis=-1)
    out_ref[...] = out.reshape(1, HW, 1 + 2 * Ch).astype(out_ref.dtype)


def prepare_params(params):
    """One-time fusion of conv weights + folded BN (hoisted out of the call path)."""
    (w_e1, s_e1, t_e1, w_e2, s_e2, t_e2,
     w_f1, s_f1, t_f1, w_f2, s_f2, t_f2,
     w_b1, s_b1, t_b1, w_b2, s_b2, t_b2,
     w_h, b_h) = params
    C = w_e1.shape[0]
    Ch = w_f2.shape[-1]
    f32, bf16 = jnp.float32, jnp.bfloat16

    # Three 1x1 stems fused into one (C, 3C) weight (+ BN scale/shift).
    w1 = jnp.concatenate([w_e1, w_f1, w_b1], axis=1).astype(bf16)
    s1 = jnp.concatenate([s_e1, s_f1, s_b1], axis=1).astype(f32)
    t1 = jnp.concatenate([t_e1, t_f1, t_b1], axis=1).astype(f32)

    # 3x3 weights flattened tap-major for the shifted-matmul accumulation.
    we2 = w_e2.reshape(9 * C, C).astype(bf16)
    wf2 = w_f2.reshape(9 * C, Ch).astype(bf16)
    wb2 = w_b2.reshape(9 * C, Ch).astype(bf16)

    wh = w_h.reshape(C, 1).astype(bf16)           # edge head weight as a column

    return (w1, s1, t1,
            we2, s_e2.astype(f32), t_e2.astype(f32),
            wf2, s_f2.astype(f32), t_f2.astype(f32),
            wb2, s_b2.astype(f32), t_b2.astype(f32),
            wh, b_h.astype(f32))


def edge_fore_back(feat, pred, fused):
    """feat: (N,H,W,C), pred: (N,H,W,1), fused = prepare_params(...).
    Returns (edge, fore, back) in NHWC."""
    N, H, W, C = feat.shape
    HW = H * W
    Ch = fused[6].shape[-1]                        # wf2: (9C, Ch)
    out_w = 1 + 2 * Ch

    feat3 = feat.reshape(N, HW, C)
    pred3 = pred.reshape(N, HW, 1)

    def const_spec(shape):
        nd = len(shape)
        return pl.BlockSpec(shape, lambda n, _nd=nd: (0,) * _nd)

    grid_spec = pltpu.PrefetchScalarGridSpec(
        num_scalar_prefetch=0,
        grid=(N,),                                  # one image per grid step
        in_specs=[pl.BlockSpec((1, HW, C), lambda n: (n, 0, 0)),
                  pl.BlockSpec((1, HW, 1), lambda n: (n, 0, 0)),
                  *[const_spec(p.shape) for p in fused]],
        out_specs=pl.BlockSpec((1, HW, out_w), lambda n: (n, 0, 0)),
        scratch_shapes=[pltpu.VMEM((2, H + 2, W + 2, C), jnp.float32)],
    )

    out = pl.pallas_call(
        _edge_fore_back_kernel,
        out_shape=jax.ShapeDtypeStruct((N, HW, out_w), jnp.float32),
        grid_spec=grid_spec,
        compiler_params=pltpu.CompilerParams(
            dimension_semantics=("parallel",)),     # both TCs on v7x
    )(feat3, pred3, *fused)

    edge = out[..., 0:1].reshape(N, H, W, 1)
    fore = out[..., 1:1 + Ch].reshape(N, H, W, Ch)
    back = out[..., 1 + Ch:].reshape(N, H, W, Ch)
    return edge, fore, back


def init_params(key, C):
    """Deterministic synthetic parameters (BasicConv2d = conv + folded BN + relu)."""
    Ch = C // 2
    ks = iter(jax.random.split(key, 40))

    def conv_w(shape):
        return 0.1 * jax.random.normal(next(ks), shape, jnp.float32)

    def bn(cout):
        gamma = 1.0 + 0.1 * jax.random.normal(next(ks), (cout,), jnp.float32)
        beta = 0.1 * jax.random.normal(next(ks), (cout,), jnp.float32)
        mean = 0.1 * jax.random.normal(next(ks), (cout,), jnp.float32)
        var = 1.0 + 0.1 * jnp.abs(jax.random.normal(next(ks), (cout,), jnp.float32))
        scale = gamma * jax.lax.rsqrt(var + 1e-5)
        shift = beta - mean * scale
        return scale.reshape(1, cout), shift.reshape(1, cout)

    w_e1 = conv_w((C, C)); s_e1, t_e1 = bn(C)
    w_e2 = conv_w((3, 3, C, C)); s_e2, t_e2 = bn(C)
    w_f1 = conv_w((C, C)); s_f1, t_f1 = bn(C)
    w_f2 = conv_w((3, 3, C, Ch)); s_f2, t_f2 = bn(Ch)
    w_b1 = conv_w((C, C)); s_b1, t_b1 = bn(C)
    w_b2 = conv_w((3, 3, C, Ch)); s_b2, t_b2 = bn(Ch)
    w_h = conv_w((1, C))                       # edge_head 1x1 weight (row vector)
    b_h = 0.1 * jax.random.normal(next(ks), (1, 1), jnp.float32)

    return [w_e1, s_e1, t_e1, w_e2, s_e2, t_e2,
            w_f1, s_f1, t_f1, w_f2, s_f2, t_f2,
            w_b1, s_b1, t_b1, w_b2, s_b2, t_b2,
            w_h, b_h]


def reference(feat, pred, params):
    """Pure-JAX f32 reference of the PyTorch forward (NHWC)."""
    (w_e1, s_e1, t_e1, w_e2, s_e2, t_e2,
     w_f1, s_f1, t_f1, w_f2, s_f2, t_f2,
     w_b1, s_b1, t_b1, w_b2, s_b2, t_b2,
     w_h, b_h) = params
    C = feat.shape[-1]

    def conv(x, w, pad):
        return jax.lax.conv_general_dilated(
            x, w, (1, 1), [(pad, pad), (pad, pad)],
            dimension_numbers=('NHWC', 'HWIO', 'NHWC'))

    def basic(x, w, s, t, pad):
        if w.ndim == 2:
            w = w.reshape(1, 1, *w.shape)
        y = conv(x, w, pad)
        return jnp.maximum(y * s.reshape(1, 1, 1, -1) + t.reshape(1, 1, 1, -1), 0.0)

    pre = jax.nn.sigmoid(pred)
    edge_feat = basic(basic(feat, w_e1, s_e1, t_e1, 0), w_e2, s_e2, t_e2, 1) + feat
    fore = basic(basic(feat, w_f1, s_f1, t_f1, 0) * edge_feat + feat,
                 w_f2, s_f2, t_f2, 1)
    back = basic(basic(feat, w_b1, s_b1, t_b1, 0) * edge_feat + feat,
                 w_b2, s_b2, t_b2, 1)
    edge = conv(edge_feat, w_h.reshape(1, 1, C, 1), 0) + b_h.reshape(1, 1, 1, 1)
    fore = fore * pre
    back = back * (1 - pre)
    return edge, fore, back


if __name__ == "__main__":
    key = jax.random.PRNGKey(0)
    k_feat, k_pred, k_par = jax.random.split(key, 3)

    N, C, H, W = 2, 8, 16, 16              # Feature_Map NCHW=(2,8,16,16) -> NHWC
    feat = jax.random.normal(k_feat, (N, H, W, C), jnp.float32)
    pred = jax.random.normal(k_pred, (N, H, W, 1), jnp.float32)
    params = init_params(k_par, C)

    fused = prepare_params(params)          # hoisted: constant across calls
    run = jax.jit(edge_fore_back)
    edge, fore, back = jax.block_until_ready(run(feat, pred, fused))

    r_edge, r_fore, r_back = reference(feat, pred, params)
    # bf16 MXU operands -> loosened tolerance vs. the f32 reference.
    for name, got, want in (("edge", edge, r_edge),
                            ("fore", fore, r_fore),
                            ("back", back, r_back)):
        err = float(jnp.max(jnp.abs(got - want)))
        assert err < 1e-1, f"{name}: max abs err {err}"

    print("KERNEL_OK")
</pallas_src>

<mosaic_0001>
module attributes {stable_mosaic.version = 11 : i64} {
  func.func @_edge_fore_back_kernel(%arg0: i32, %arg1: memref<1x256x8xf32, #tpu.memory_space<vmem>>, %arg2: memref<1x256x1xf32, #tpu.memory_space<vmem>>, %arg3: memref<8x24xbf16, #tpu.memory_space<vmem>>, %arg4: memref<1x24xf32, #tpu.memory_space<vmem>>, %arg5: memref<1x24xf32, #tpu.memory_space<vmem>>, %arg6: memref<72x8xbf16, #tpu.memory_space<vmem>>, %arg7: memref<1x8xf32, #tpu.memory_space<vmem>>, %arg8: memref<1x8xf32, #tpu.memory_space<vmem>>, %arg9: memref<72x4xbf16, #tpu.memory_space<vmem>>, %arg10: memref<1x4xf32, #tpu.memory_space<vmem>>, %arg11: memref<1x4xf32, #tpu.memory_space<vmem>>, %arg12: memref<72x4xbf16, #tpu.memory_space<vmem>>, %arg13: memref<1x4xf32, #tpu.memory_space<vmem>>, %arg14: memref<1x4xf32, #tpu.memory_space<vmem>>, %arg15: memref<8x1xbf16, #tpu.memory_space<vmem>>, %arg16: memref<1x1xf32, #tpu.memory_space<vmem>>, %arg17: memref<1x256x9xf32, #tpu.memory_space<vmem>>, %arg18: memref<2x18x18x8xf32, #tpu.memory_space<vmem>>) attributes {dimension_semantics = [#tpu.dimension_semantics<parallel>], iteration_bounds = array<i64: 2>, scalar_prefetch = 0 : i64, scratch_operands = 1 : i64, tpu.core_type = #tpu.core_type<tc>, window_params = [{transform_indices = @transform_0, window_bounds = array<i64: 1, 256, 8>}, {transform_indices = @transform_1, window_bounds = array<i64: 1, 256, 1>}, {pipeline_mode = #tpu.pipeline_mode<synchronous>, transform_indices = @transform_2, window_bounds = array<i64: 8, 24>}, {pipeline_mode = #tpu.pipeline_mode<synchronous>, transform_indices = @transform_3, window_bounds = array<i64: 1, 24>}, {pipeline_mode = #tpu.pipeline_mode<synchronous>, transform_indices = @transform_4, window_bounds = array<i64: 1, 24>}, {pipeline_mode = #tpu.pipeline_mode<synchronous>, transform_indices = @transform_5, window_bounds = array<i64: 72, 8>}, {pipeline_mode = #tpu.pipeline_mode<synchronous>, transform_indices = @transform_6, window_bounds = array<i64: 1, 8>}, {pipeline_mode = #tpu.pipeline_mode<synchronous>, transform_indices = @transform_7, window_bounds = array<i64: 1, 8>}, {pipeline_mode = #tpu.pipeline_mode<synchronous>, transform_indices = @transform_8, window_bounds = array<i64: 72, 4>}, {pipeline_mode = #tpu.pipeline_mode<synchronous>, transform_indices = @transform_9, window_bounds = array<i64: 1, 4>}, {pipeline_mode = #tpu.pipeline_mode<synchronous>, transform_indices = @transform_10, window_bounds = array<i64: 1, 4>}, {pipeline_mode = #tpu.pipeline_mode<synchronous>, transform_indices = @transform_11, window_bounds = array<i64: 72, 4>}, {pipeline_mode = #tpu.pipeline_mode<synchronous>, transform_indices = @transform_12, window_bounds = array<i64: 1, 4>}, {pipeline_mode = #tpu.pipeline_mode<synchronous>, transform_indices = @transform_13, window_bounds = array<i64: 1, 4>}, {pipeline_mode = #tpu.pipeline_mode<synchronous>, transform_indices = @transform_14, window_bounds = array<i64: 8, 1>}, {pipeline_mode = #tpu.pipeline_mode<synchronous>, transform_indices = @transform_15, window_bounds = array<i64: 1, 1>}, {transform_indices = @transform_16, window_bounds = array<i64: 1, 256, 9>}]} {
    %c0 = arith.constant 0 : index
    %c0_0 = arith.constant 0 : index
    %c0_1 = arith.constant 0 : index
    %0 = vector.load %arg1[%c0, %c0_0, %c0_1] : memref<1x256x8xf32, #tpu.memory_space<vmem>>, vector<1x256x8xf32>
    %1 = vector.shape_cast %0 : vector<1x256x8xf32> to vector<256x8xf32>
    %2 = arith.truncf %1 : vector<256x8xf32> to vector<256x8xbf16>
    %cst = arith.constant 0.000000e+00 : f32
    %3 = vector.broadcast %cst : f32 to vector<2x1x18x8xf32>
    %c0_2 = arith.constant 0 : index
    %c0_3 = arith.constant 0 : index
    %c0_4 = arith.constant 0 : index
    %c0_5 = arith.constant 0 : index
    %4 = vector.load %arg18[%c0_2, %c0_3, %c0_4, %c0_5] : memref<2x18x18x8xf32, #tpu.memory_space<vmem>>, vector<2x1x18x8xf32>
    tpu.vector_store %arg18[%c0_2, %c0_3, %c0_4, %c0_5], %3 {strides = array<i32>} : memref<2x18x18x8xf32, #tpu.memory_space<vmem>>, vector<2x1x18x8xf32>,
    %cst_6 = arith.constant 0.000000e+00 : f32
    %5 = vector.broadcast %cst_6 : f32 to vector<2x1x18x8xf32>
    %c0_7 = arith.constant 0 : index
    %c17 = arith.constant 17 : index
    %c0_8 = arith.constant 0 : index
    %c0_9 = arith.constant 0 : index
    %6 = vector.load %arg18[%c0_7, %c17, %c0_8, %c0_9] : memref<2x18x18x8xf32, #tpu.memory_space<vmem>>, vector<2x1x18x8xf32>
    tpu.vector_store %arg18[%c0_7, %c17, %c0_8, %c0_9], %5 {strides = array<i32>} : memref<2x18x18x8xf32, #tpu.memory_space<vmem>>, vector<2x1x18x8xf32>,
    %cst_10 = arith.constant 0.000000e+00 : f32
    %7 = vector.broadcast %cst_10 : f32 to vector<2x18x1x8xf32>
    %c0_11 = arith.constant 0 : index
    %c0_12 = arith.constant 0 : index
    %c0_13 = arith.constant 0 : index
    %c0_14 = arith.constant 0 : index
    %8 = vector.load %arg18[%c0_11, %c0_12, %c0_13, %c0_14] : memref<2x18x18x8xf32, #tpu.memory_space<vmem>>, vector<2x18x1x8xf32>
    tpu.vector_store %arg18[%c0_11, %c0_12, %c0_13, %c0_14], %7 {strides = array<i32>} : memref<2x18x18x8xf32, #tpu.memory_space<vmem>>, vector<2x18x1x8xf32>,
    %cst_15 = arith.constant 0.000000e+00 : f32
    %9 = vector.broadcast %cst_15 : f32 to vector<2x18x1x8xf32>
    %c0_16 = arith.constant 0 : index
    %c0_17 = arith.constant 0 : index
    %c17_18 = arith.constant 17 : index
    %c0_19 = arith.constant 0 : index
    %10 = vector.load %arg18[%c0_16, %c0_17, %c17_18, %c0_19] : memref<2x18x18x8xf32, #tpu.memory_space<vmem>>, vector<2x18x1x8xf32>
    tpu.vector_store %arg18[%c0_16, %c0_17, %c17_18, %c0_19], %9 {strides = array<i32>} : memref<2x18x18x8xf32, #tpu.memory_space<vmem>>, vector<2x18x1x8xf32>,
    %c0_20 = arith.constant 0 : index
    %c0_21 = arith.constant 0 : index
    %11 = vector.load %arg3[%c0_20, %c0_21] : memref<8x24xbf16, #tpu.memory_space<vmem>>, vector<8x24xbf16>
    %cst_22 = arith.constant dense<0.000000e+00> : vector<256x24xf32>
    %12 = tpu.matmul %2, %11, %cst_22 {dimension_numbers = #tpu.dot_dimension_numbers<[1], [0], [0], [1], [0, 0, 1, 1], [], []>} : vector<256x8xbf16>, vector<8x24xbf16>, vector<256x24xf32> -> vector<256x24xf32>
    %c0_23 = arith.constant 0 : index
    %c0_24 = arith.constant 0 : index
    %13 = vector.load %arg4[%c0_23, %c0_24] : memref<1x24xf32, #tpu.memory_space<vmem>>, vector<1x24xf32>
    %14 = vector.broadcast %13 : vector<1x24xf32> to vector<256x24xf32>
    %15 = arith.mulf %12, %14 : vector<256x24xf32>
    %c0_25 = arith.constant 0 : index
    %c0_26 = arith.constant 0 : index
    %16 = vector.load %arg5[%c0_25, %c0_26] : memref<1x24xf32, #tpu.memory_space<vmem>>, vector<1x24xf32>
    %17 = vector.broadcast %16 : vector<1x24xf32> to vector<256x24xf32>
    %18 = arith.addf %15, %17 : vector<256x24xf32>
    %cst_27 = arith.constant 0.000000e+00 : f32
    %19 = vector.broadcast %cst_27 : f32 to vector<256x24xf32>
    %20 = arith.maximumf %18, %19 : vector<256x24xf32>
    %21 = vector.extract_strided_slice %20 {offsets = [0, 0], sizes = [256, 8], strides = [1, 1]} : vector<256x24xf32> to vector<256x8xf32>
    %22 = vector.extract_strided_slice %20 {offsets = [0, 8], sizes = [256, 8], strides = [1, 1]} : vector<256x24xf32> to vector<256x8xf32>
    %23 = vector.extract_strided_slice %20 {offsets = [0, 16], sizes = [256, 8], strides = [1, 1]} : vector<256x24xf32> to vector<256x8xf32>
    %24 = vector.shape_cast %21 : vector<256x8xf32> to vector<1x16x16x8xf32>
    %c0_28 = arith.constant 0 : index
    %c1 = arith.constant 1 : index
    %c1_29 = arith.constant 1 : index
    %c0_30 = arith.constant 0 : index
    %25 = vector.load %arg18[%c0_28, %c1, %c1_29, %c0_30] : memref<2x18x18x8xf32, #tpu.memory_space<vmem>>, vector<1x16x16x8xf32>
    tpu.vector_store %arg18[%c0_28, %c1, %c1_29, %c0_30], %24 {strides = array<i32>} : memref<2x18x18x8xf32, #tpu.memory_space<vmem>>, vector<1x16x16x8xf32>,
    %cst_31 = arith.constant 0.000000e+00 : f32
    %26 = vector.broadcast %cst_31 : f32 to vector<256x8xf32>
    %c0_32 = arith.constant 0 : index
    %c0_33 = arith.constant 0 : index
    %c0_34 = arith.constant 0 : index
    %c0_35 = arith.constant 0 : index
    %27 = vector.load %arg18[%c0_32, %c0_33, %c0_34, %c0_35] : memref<2x18x18x8xf32, #tpu.memory_space<vmem>>, vector<1x16x16x8xf32>
    %28 = vector.shape_cast %27 : vector<1x16x16x8xf32> to vector<256x8xf32>
    %29 = arith.truncf %28 : vector<256x8xf32> to vector<256x8xbf16>
    %c0_36 = arith.constant 0 : index
    %c0_37 = arith.constant 0 : index
    %30 = vector.load %arg6[%c0_36, %c0_37] : memref<72x8xbf16, #tpu.memory_space<vmem>>, vector<8x8xbf16>
    %cst_38 = arith.constant dense<0.000000e+00> : vector<256x8xf32>
    %31 = tpu.matmul %29, %30, %cst_38 {dimension_numbers = #tpu.dot_dimension_numbers<[1], [0], [0], [1], [0, 0, 1, 1], [], []>} : vector<256x8xbf16>, vector<8x8xbf16>, vector<256x8xf32> -> vector<256x8xf32>
    %32 = arith.addf %26, %31 : vector<256x8xf32>
    %c0_39 = arith.constant 0 : index
    %c0_40 = arith.constant 0 : index
    %c1_41 = arith.constant 1 : index
    %c0_42 = arith.constant 0 : index
    %33 = vector.load %arg18[%c0_39, %c0_40, %c1_41, %c0_42] : memref<2x18x18x8xf32, #tpu.memory_space<vmem>>, vector<1x16x16x8xf32>
    %34 = vector.shape_cast %33 : vector<1x16x16x8xf32> to vector<256x8xf32>
    %35 = arith.truncf %34 : vector<256x8xf32> to vector<256x8xbf16>
    %c8 = arith.constant 8 : index
    %c0_43 = arith.constant 0 : index
    %36 = vector.load %arg6[%c8, %c0_43] : memref<72x8xbf16, #tpu.memory_space<vmem>>, vector<8x8xbf16>
    %cst_44 = arith.constant dense<0.000000e+00> : vector<256x8xf32>
    %37 = tpu.matmul %35, %36, %cst_44 {dimension_numbers = #tpu.dot_dimension_numbers<[1], [0], [0], [1], [0, 0, 1, 1], [], []>} : vector<256x8xbf16>, vector<8x8xbf16>, vector<256x8xf32> -> vector<256x8xf32>
    %38 = arith.addf %32, %37 : vector<256x8xf32>
    %c0_45 = arith.constant 0 : index
    %c0_46 = arith.constant 0 : index
    %c2 = arith.constant 2 : index
    %c0_47 = arith.constant 0 : index
    %39 = vector.load %arg18[%c0_45, %c0_46, %c2, %c0_47] : memref<2x18x18x8xf32, #tpu.memory_space<vmem>>, vector<1x16x16x8xf32>
    %40 = vector.shape_cast %39 : vector<1x16x16x8xf32> to vector<256x8xf32>
    %41 = arith.truncf %40 : vector<256x8xf32> to vector<256x8xbf16>
    %c16 = arith.constant 16 : index
    %c0_48 = arith.constant 0 : index
    %42 = vector.load %arg6[%c16, %c0_48] : memref<72x8xbf16, #tpu.memory_space<vmem>>, vector<8x8xbf16>
    %cst_49 = arith.constant dense<0.000000e+00> : vector<256x8xf32>
    %43 = tpu.matmul %41, %42, %cst_49 {dimension_numbers = #tpu.dot_dimension_numbers<[1], [0], [0], [1], [0, 0, 1, 1], [], []>} : vector<256x8xbf16>, vector<8x8xbf16>, vector<256x8xf32> -> vector<256x8xf32>
    %44 = arith.addf %38, %43 : vector<256x8xf32>
    %c0_50 = arith.constant 0 : index
    %c1_51 = arith.constant 1 : index
    %c0_52 = arith.constant 0 : index
    %c0_53 = arith.constant 0 : index
    %45 = vector.load %arg18[%c0_50, %c1_51, %c0_52, %c0_53] : memref<2x18x18x8xf32, #tpu.memory_space<vmem>>, vector<1x16x16x8xf32>
    %46 = vector.shape_cast %45 : vector<1x16x16x8xf32> to vector<256x8xf32>
    %47 = arith.truncf %46 : vector<256x8xf32> to vector<256x8xbf16>
    %c24 = arith.constant 24 : index
    %c0_54 = arith.constant 0 : index
    %48 = vector.load %arg6[%c24, %c0_54] : memref<72x8xbf16, #tpu.memory_space<vmem>>, vector<8x8xbf16>
    %cst_55 = arith.constant dense<0.000000e+00> : vector<256x8xf32>
    %49 = tpu.matmul %47, %48, %cst_55 {dimension_numbers = #tpu.dot_dimension_numbers<[1], [0], [0], [1], [0, 0, 1, 1], [], []>} : vector<256x8xbf16>, vector<8x8xbf16>, vector<256x8xf32> -> vector<256x8xf32>
    %50 = arith.addf %44, %49 : vector<256x8xf32>
    %c0_56 = arith.constant 0 : index
    %c1_57 = arith.constant 1 : index
    %c1_58 = arith.constant 1 : index
    %c0_59 = arith.constant 0 : index
    %51 = vector.load %arg18[%c0_56, %c1_57, %c1_58, %c0_59] : memref<2x18x18x8xf32, #tpu.memory_space<vmem>>, vector<1x16x16x8xf32>
    %52 = vector.shape_cast %51 : vector<1x16x16x8xf32> to vector<256x8xf32>
    %53 = arith.truncf %52 : vector<256x8xf32> to vector<256x8xbf16>
    %c32 = arith.constant 32 : index
    %c0_60 = arith.constant 0 : index
    %54 = vector.load %arg6[%c32, %c0_60] : memref<72x8xbf16, #tpu.memory_space<vmem>>, vector<8x8xbf16>
    %cst_61 = arith.constant dense<0.000000e+00> : vector<256x8xf32>
    %55 = tpu.matmul %53, %54, %cst_61 {dimension_numbers = #tpu.dot_dimension_numbers<[1], [0], [0], [1], [0, 0, 1, 1], [], []>} : vector<256x8xbf16>, vector<8x8xbf16>, vector<256x8xf32> -> vector<256x8xf32>
    %56 = arith.addf %50, %55 : vector<256x8xf32>
    %c0_62 = arith.constant 0 : index
    %c1_63 = arith.constant 1 : index
    %c2_64 = arith.constant 2 : index
    %c0_65 = arith.constant 0 : index
    %57 = vector.load %arg18[%c0_62, %c1_63, %c2_64, %c0_65] : memref<2x18x18x8xf32, #tpu.memory_space<vmem>>, vector<1x16x16x8xf32>
    %58 = vector.shape_cast %57 : vector<1x16x16x8xf32> to vector<256x8xf32>
    %59 = arith.truncf %58 : vector<256x8xf32> to vector<256x8xbf16>
    %c40 = arith.constant 40 : index
    %c0_66 = arith.constant 0 : index
    %60 = vector.load %arg6[%c40, %c0_66] : memref<72x8xbf16, #tpu.memory_space<vmem>>, vector<8x8xbf16>
    %cst_67 = arith.constant dense<0.000000e+00> : vector<256x8xf32>
    %61 = tpu.matmul %59, %60, %cst_67 {dimension_numbers = #tpu.dot_dimension_numbers<[1], [0], [0], [1], [0, 0, 1, 1], [], []>} : vector<256x8xbf16>, vector<8x8xbf16>, vector<256x8xf32> -> vector<256x8xf32>
    %62 = arith.addf %56, %61 : vector<256x8xf32>
    %c0_68 = arith.constant 0 : index
    %c2_69 = arith.constant 2 : index
    %c0_70 = arith.constant 0 : index
    %c0_71 = arith.constant 0 : index
    %63 = vector.load %arg18[%c0_68, %c2_69, %c0_70, %c0_71] : memref<2x18x18x8xf32, #tpu.memory_space<vmem>>, vector<1x16x16x8xf32>
    %64 = vector.shape_cast %63 : vector<1x16x16x8xf32> to vector<256x8xf32>
    %65 = arith.truncf %64 : vector<256x8xf32> to vector<256x8xbf16>
    %c48 = arith.constant 48 : index
    %c0_72 = arith.constant 0 : index
    %66 = vector.load %arg6[%c48, %c0_72] : memref<72x8xbf16, #tpu.memory_space<vmem>>, vector<8x8xbf16>
    %cst_73 = arith.constant dense<0.000000e+00> : vector<256x8xf32>
    %67 = tpu.matmul %65, %66, %cst_73 {dimension_numbers = #tpu.dot_dimension_numbers<[1], [0], [0], [1], [0, 0, 1, 1], [], []>} : vector<256x8xbf16>, vector<8x8xbf16>, vector<256x8xf32> -> vector<256x8xf32>
    %68 = arith.addf %62, %67 : vector<256x8xf32>
    %c0_74 = arith.constant 0 : index
    %c2_75 = arith.constant 2 : index
    %c1_76 = arith.constant 1 : index
    %c0_77 = arith.constant 0 : index
    %69 = vector.load %arg18[%c0_74, %c2_75, %c1_76, %c0_77] : memref<2x18x18x8xf32, #tpu.memory_space<vmem>>, vector<1x16x16x8xf32>
    %70 = vector.shape_cast %69 : vector<1x16x16x8xf32> to vector<256x8xf32>
    %71 = arith.truncf %70 : vector<256x8xf32> to vector<256x8xbf16>
    %c56 = arith.constant 56 : index
    %c0_78 = arith.constant 0 : index
    %72 = vector.load %arg6[%c56, %c0_78] : memref<72x8xbf16, #tpu.memory_space<vmem>>, vector<8x8xbf16>
    %cst_79 = arith.constant dense<0.000000e+00> : vector<256x8xf32>
    %73 = tpu.matmul %71, %72, %cst_79 {dimension_numbers = #tpu.dot_dimension_numbers<[1], [0], [0], [1], [0, 0, 1, 1], [], []>} : vector<256x8xbf16>, vector<8x8xbf16>, vector<256x8xf32> -> vector<256x8xf32>
    %74 = arith.addf %68, %73 : vector<256x8xf32>
    %c0_80 = arith.constant 0 : index
    %c2_81 = arith.constant 2 : index
    %c2_82 = arith.constant 2 : index
    %c0_83 = arith.constant 0 : index
    %75 = vector.load %arg18[%c0_80, %c2_81, %c2_82, %c0_83] : memref<2x18x18x8xf32, #tpu.memory_space<vmem>>, vector<1x16x16x8xf32>
    %76 = vector.shape_cast %75 : vector<1x16x16x8xf32> to vector<256x8xf32>
    %77 = arith.truncf %76 : vector<256x8xf32> to vector<256x8xbf16>
    %c64 = arith.constant 64 : index
    %c0_84 = arith.constant 0 : index
    %78 = vector.load %arg6[%c64, %c0_84] : memref<72x8xbf16, #tpu.memory_space<vmem>>, vector<8x8xbf16>
    %cst_85 = arith.constant dense<0.000000e+00> : vector<256x8xf32>
    %79 = tpu.matmul %77, %78, %cst_85 {dimension_numbers = #tpu.dot_dimension_numbers<[1], [0], [0], [1], [0, 0, 1, 1], [], []>} : vector<256x8xbf16>, vector<8x8xbf16>, vector<256x8xf32> -> vector<256x8xf32>
    %80 = arith.addf %74, %79 : vector<256x8xf32>
    %c0_86 = arith.constant 0 : index
    %c0_87 = arith.constant 0 : index
    %81 = vector.load %arg7[%c0_86, %c0_87] : memref<1x8xf32, #tpu.memory_space<vmem>>, vector<1x8xf32>
    %82 = vector.broadcast %81 : vector<1x8xf32> to vector<256x8xf32>
    %83 = arith.mulf %80, %82 : vector<256x8xf32>
    %c0_88 = arith.constant 0 : index
    %c0_89 = arith.constant 0 : index
    %84 = vector.load %arg8[%c0_88, %c0_89] : memref<1x8xf32, #tpu.memory_space<vmem>>, vector<1x8xf32>
    %85 = vector.broadcast %84 : vector<1x8xf32> to vector<256x8xf32>
    %86 = arith.addf %83, %85 : vector<256x8xf32>
    %cst_90 = arith.constant 0.000000e+00 : f32
    %87 = vector.broadcast %cst_90 : f32 to vector<256x8xf32>
    %88 = arith.maximumf %86, %87 : vector<256x8xf32>
    %89 = arith.addf %88, %1 : vector<256x8xf32>
    %90 = arith.mulf %22, %89 : vector<256x8xf32>
    %91 = arith.addf %90, %1 : vector<256x8xf32>
    %92 = arith.mulf %23, %89 : vector<256x8xf32>
    %93 = arith.addf %92, %1 : vector<256x8xf32>
    %94 = vector.shape_cast %91 : vector<256x8xf32> to vector<1x16x16x8xf32>
    %c0_91 = arith.constant 0 : index
    %c1_92 = arith.constant 1 : index
    %c1_93 = arith.constant 1 : index
    %c0_94 = arith.constant 0 : index
    %95 = vector.load %arg18[%c0_91, %c1_92, %c1_93, %c0_94] : memref<2x18x18x8xf32, #tpu.memory_space<vmem>>, vector<1x16x16x8xf32>
    tpu.vector_store %arg18[%c0_91, %c1_92, %c1_93, %c0_94], %94 {strides = array<i32>} : memref<2x18x18x8xf32, #tpu.memory_space<vmem>>, vector<1x16x16x8xf32>,
    %96 = vector.shape_cast %93 : vector<256x8xf32> to vector<1x16x16x8xf32>
    %c1_95 = arith.constant 1 : index
    %c1_96 = arith.constant 1 : index
    %c1_97 = arith.constant 1 : index
    %c0_98 = arith.constant 0 : index
    %97 = vector.load %arg18[%c1_95, %c1_96, %c1_97, %c0_98] : memref<2x18x18x8xf32, #tpu.memory_space<vmem>>, vector<1x16x16x8xf32>
    tpu.vector_store %arg18[%c1_95, %c1_96, %c1_97, %c0_98], %96 {strides = array<i32>} : memref<2x18x18x8xf32, #tpu.memory_space<vmem>>, vector<1x16x16x8xf32>,
    %cst_99 = arith.constant 0.000000e+00 : f32
    %98 = vector.broadcast %cst_99 : f32 to vector<256x4xf32>
    %cst_100 = arith.constant 0.000000e+00 : f32
    %99 = vector.broadcast %cst_100 : f32 to vector<256x4xf32>
    %c0_101 = arith.constant 0 : index
    %c0_102 = arith.constant 0 : index
    %c0_103 = arith.constant 0 : index
    %c0_104 = arith.constant 0 : index
    %100 = vector.load %arg18[%c0_101, %c0_102, %c0_103, %c0_104] : memref<2x18x18x8xf32, #tpu.memory_space<vmem>>, vector<1x16x16x8xf32>
    %101 = vector.shape_cast %100 : vector<1x16x16x8xf32> to vector<256x8xf32>
    %102 = arith.truncf %101 : vector<256x8xf32> to vector<256x8xbf16>
    %c1_105 = arith.constant 1 : index
    %c0_106 = arith.constant 0 : index
    %c0_107 = arith.constant 0 : index
    %c0_108 = arith.constant 0 : index
    %103 = vector.load %arg18[%c1_105, %c0_106, %c0_107, %c0_108] : memref<2x18x18x8xf32, #tpu.memory_space<vmem>>, vector<1x16x16x8xf32>
    %104 = vector.shape_cast %103 : vector<1x16x16x8xf32> to vector<256x8xf32>
    %105 = arith.truncf %104 : vector<256x8xf32> to vector<256x8xbf16>
    %c0_109 = arith.constant 0 : index
    %c0_110 = arith.constant 0 : index
    %106 = vector.load %arg9[%c0_109, %c0_110] : memref<72x4xbf16, #tpu.memory_space<vmem>>, vector<8x4xbf16>
    %c0_111 = arith.constant 0 : index
    %c0_112 = arith.constant 0 : index
    %107 = vector.load %arg12[%c0_111, %c0_112] : memref<72x4xbf16, #tpu.memory_space<vmem>>, vector<8x4xbf16>
    %cst_113 = arith.constant dense<0.000000e+00> : vector<256x4xf32>
    %108 = tpu.matmul %102, %106, %cst_113 {dimension_numbers = #tpu.dot_dimension_numbers<[1], [0], [0], [1], [0, 0, 1, 1], [], []>} : vector<256x8xbf16>, vector<8x4xbf16>, vector<256x4xf32> -> vector<256x4xf32>
    %109 = arith.addf %98, %108 : vector<256x4xf32>
    %cst_114 = arith.constant dense<0.000000e+00> : vector<256x4xf32>
    %110 = tpu.matmul %105, %107, %cst_114 {dimension_numbers = #tpu.dot_dimension_numbers<[1], [0], [0], [1], [0, 0, 1, 1], [], []>} : vector<256x8xbf16>, vector<8x4xbf16>, vector<256x4xf32> -> vector<256x4xf32>
    %111 = arith.addf %99, %110 : vector<256x4xf32>
    %c0_115 = arith.constant 0 : index
    %c0_116 = arith.constant 0 : index
    %c1_117 = arith.constant 1 : index
    %c0_118 = arith.constant 0 : index
    %112 = vector.load %arg18[%c0_115, %c0_116, %c1_117, %c0_118] : memref<2x18x18x8xf32, #tpu.memory_space<vmem>>, vector<1x16x16x8xf32>
    %113 = vector.shape_cast %112 : vector<1x16x16x8xf32> to vector<256x8xf32>
    %114 = arith.truncf %113 : vector<256x8xf32> to vector<256x8xbf16>
    %c1_119 = arith.constant 1 : index
    %c0_120 = arith.constant 0 : index
    %c1_121 = arith.constant 1 : index
    %c0_122 = arith.constant 0 : index
    %115 = vector.load %arg18[%c1_119, %c0_120, %c1_121, %c0_122] : memref<2x18x18x8xf32, #tpu.memory_space<vmem>>, vector<1x16x16x8xf32>
    %116 = vector.shape_cast %115 : vector<1x16x16x8xf32> to vector<256x8xf32>
    %117 = arith.truncf %116 : vector<256x8xf32> to vector<256x8xbf16>
    %c8_123 = arith.constant 8 : index
    %c0_124 = arith.constant 0 : index
    %118 = vector.load %arg9[%c8_123, %c0_124] : memref<72x4xbf16, #tpu.memory_space<vmem>>, vector<8x4xbf16>
    %c8_125 = arith.constant 8 : index
    %c0_126 = arith.constant 0 : index
    %119 = vector.load %arg12[%c8_125, %c0_126] : memref<72x4xbf16, #tpu.memory_space<vmem>>, vector<8x4xbf16>
    %cst_127 = arith.constant dense<0.000000e+00> : vector<256x4xf32>
    %120 = tpu.matmul %114, %118, %cst_127 {dimension_numbers = #tpu.dot_dimension_numbers<[1], [0], [0], [1], [0, 0, 1, 1], [], []>} : vector<256x8xbf16>, vector<8x4xbf16>, vector<256x4xf32> -> vector<256x4xf32>
    %121 = arith.addf %109, %120 : vector<256x4xf32>
    %cst_128 = arith.constant dense<0.000000e+00> : vector<256x4xf32>
    %122 = tpu.matmul %117, %119, %cst_128 {dimension_numbers = #tpu.dot_dimension_numbers<[1], [0], [0], [1], [0, 0, 1, 1], [], []>} : vector<256x8xbf16>, vector<8x4xbf16>, vector<256x4xf32> -> vector<256x4xf32>
    %123 = arith.addf %111, %122 : vector<256x4xf32>
    %c0_129 = arith.constant 0 : index
    %c0_130 = arith.constant 0 : index
    %c2_131 = arith.constant 2 : index
    %c0_132 = arith.constant 0 : index
    %124 = vector.load %arg18[%c0_129, %c0_130, %c2_131, %c0_132] : memref<2x18x18x8xf32, #tpu.memory_space<vmem>>, vector<1x16x16x8xf32>
    %125 = vector.shape_cast %124 : vector<1x16x16x8xf32> to vector<256x8xf32>
    %126 = arith.truncf %125 : vector<256x8xf32> to vector<256x8xbf16>
    %c1_133 = arith.constant 1 : index
    %c0_134 = arith.constant 0 : index
    %c2_135 = arith.constant 2 : index
    %c0_136 = arith.constant 0 : index
    %127 = vector.load %arg18[%c1_133, %c0_134, %c2_135, %c0_136] : memref<2x18x18x8xf32, #tpu.memory_space<vmem>>, vector<1x16x16x8xf32>
    %128 = vector.shape_cast %127 : vector<1x16x16x8xf32> to vector<256x8xf32>
    %129 = arith.truncf %128 : vector<256x8xf32> to vector<256x8xbf16>
    %c16_137 = arith.constant 16 : index
    %c0_138 = arith.constant 0 : index
    %130 = vector.load %arg9[%c16_137, %c0_138] : memref<72x4xbf16, #tpu.memory_space<vmem>>, vector<8x4xbf16>
    %c16_139 = arith.constant 16 : index
    %c0_140 = arith.constant 0 : index
    %131 = vector.load %arg12[%c16_139, %c0_140] : memref<72x4xbf16, #tpu.memory_space<vmem>>, vector<8x4xbf16>
    %cst_141 = arith.constant dense<0.000000e+00> : vector<256x4xf32>
    %132 = tpu.matmul %126, %130, %cst_141 {dimension_numbers = #tpu.dot_dimension_numbers<[1], [0], [0], [1], [0, 0, 1, 1], [], []>} : vector<256x8xbf16>, vector<8x4xbf16>, vector<256x4xf32> -> vector<256x4xf32>
    %133 = arith.addf %121, %132 : vector<256x4xf32>
    %cst_142 = arith.constant dense<0.000000e+00> : vector<256x4xf32>
    %134 = tpu.matmul %129, %131, %cst_142 {dimension_numbers = #tpu.dot_dimension_numbers<[1], [0], [0], [1], [0, 0, 1, 1], [], []>} : vector<256x8xbf16>, vector<8x4xbf16>, vector<256x4xf32> -> vector<256x4xf32>
    %135 = arith.addf %123, %134 : vector<256x4xf32>
    %c0_143 = arith.constant 0 : index
    %c1_144 = arith.constant 1 : index
    %c0_145 = arith.constant 0 : index
    %c0_146 = arith.constant 0 : index
    %136 = vector.load %arg18[%c0_143, %c1_144, %c0_145, %c0_146] : memref<2x18x18x8xf32, #tpu.memory_space<vmem>>, vector<1x16x16x8xf32>
    %137 = vector.shape_cast %136 : vector<1x16x16x8xf32> to vector<256x8xf32>
    %138 = arith.truncf %137 : vector<256x8xf32> to vector<256x8xbf16>
    %c1_147 = arith.constant 1 : index
    %c1_148 = arith.constant 1 : index
    %c0_149 = arith.constant 0 : index
    %c0_150 = arith.constant 0 : index
    %139 = vector.load %arg18[%c1_147, %c1_148, %c0_149, %c0_150] : memref<2x18x18x8xf32, #tpu.memory_space<vmem>>, vector<1x16x16x8xf32>
    %140 = vector.shape_cast %139 : vector<1x16x16x8xf32> to vector<256x8xf32>
    %141 = arith.truncf %140 : vector<256x8xf32> to vector<256x8xbf16>
    %c24_151 = arith.constant 24 : index
    %c0_152 = arith.constant 0 : index
    %142 = vector.load %arg9[%c24_151, %c0_152] : memref<72x4xbf16, #tpu.memory_space<vmem>>, vector<8x4xbf16>
    %c24_153 = arith.constant 24 : index
    %c0_154 = arith.constant 0 : index
    %143 = vector.load %arg12[%c24_153, %c0_154] : memref<72x4xbf16, #tpu.memory_space<vmem>>, vector<8x4xbf16>
    %cst_155 = arith.constant dense<0.000000e+00> : vector<256x4xf32>
    %144 = tpu.matmul %138, %142, %cst_155 {dimension_numbers = #tpu.dot_dimension_numbers<[1], [0], [0], [1], [0, 0, 1, 1], [], []>} : vector<256x8xbf16>, vector<8x4xbf16>, vector<256x4xf32> -> vector<256x4xf32>
    %145 = arith.addf %133, %144 : vector<256x4xf32>
    %cst_156 = arith.constant dense<0.000000e+00> : vector<256x4xf32>
    %146 = tpu.matmul %141, %143, %cst_156 {dimension_numbers = #tpu.dot_dimension_numbers<[1], [0], [0], [1], [0, 0, 1, 1], [], []>} : vector<256x8xbf16>, vector<8x4xbf16>, vector<256x4xf32> -> vector<256x4xf32>
    %147 = arith.addf %135, %146 : vector<256x4xf32>
    %c0_157 = arith.constant 0 : index
    %c1_158 = arith.constant 1 : index
    %c1_159 = arith.constant 1 : index
    %c0_160 = arith.constant 0 : index
    %148 = vector.load %arg18[%c0_157, %c1_158, %c1_159, %c0_160] : memref<2x18x18x8xf32, #tpu.memory_space<vmem>>, vector<1x16x16x8xf32>
    %149 = vector.shape_cast %148 : vector<1x16x16x8xf32> to vector<256x8xf32>
    %150 = arith.truncf %149 : vector<256x8xf32> to vector<256x8xbf16>
    %c1_161 = arith.constant 1 : index
    %c1_162 = arith.constant 1 : index
    %c1_163 = arith.constant 1 : index
    %c0_164 = arith.constant 0 : index
    %151 = vector.load %arg18[%c1_161, %c1_162, %c1_163, %c0_164] : memref<2x18x18x8xf32, #tpu.memory_space<vmem>>, vector<1x16x16x8xf32>
    %152 = vector.shape_cast %151 : vector<1x16x16x8xf32> to vector<256x8xf32>
    %153 = arith.truncf %152 : vector<256x8xf32> to vector<256x8xbf16>
    %c32_165 = arith.constant 32 : index
    %c0_166 = arith.constant 0 : index
    %154 = vector.load %arg9[%c32_165, %c0_166] : memref<72x4xbf16, #tpu.memory_space<vmem>>, vector<8x4xbf16>
    %c32_167 = arith.constant 32 : index
    %c0_168 = arith.constant 0 : index
    %155 = vector.load %arg12[%c32_167, %c0_168] : memref<72x4xbf16, #tpu.memory_space<vmem>>, vector<8x4xbf16>
    %cst_169 = arith.constant dense<0.000000e+00> : vector<256x4xf32>
    %156 = tpu.matmul %150, %154, %cst_169 {dimension_numbers = #tpu.dot_dimension_numbers<[1], [0], [0], [1], [0, 0, 1, 1], [], []>} : vector<256x8xbf16>, vector<8x4xbf16>, vector<256x4xf32> -> vector<256x4xf32>
    %157 = arith.addf %145, %156 : vector<256x4xf32>
    %cst_170 = arith.constant dense<0.000000e+00> : vector<256x4xf32>
    %158 = tpu.matmul %153, %155, %cst_170 {dimension_numbers = #tpu.dot_dimension_numbers<[1], [0], [0], [1], [0, 0, 1, 1], [], []>} : vector<256x8xbf16>, vector<8x4xbf16>, vector<256x4xf32> -> vector<256x4xf32>
    %159 = arith.addf %147, %158 : vector<256x4xf32>
    %c0_171 = arith.constant 0 : index
    %c1_172 = arith.constant 1 : index
    %c2_173 = arith.constant 2 : index
    %c0_174 = arith.constant 0 : index
    %160 = vector.load %arg18[%c0_171, %c1_172, %c2_173, %c0_174] : memref<2x18x18x8xf32, #tpu.memory_space<vmem>>, vector<1x16x16x8xf32>
    %161 = vector.shape_cast %160 : vector<1x16x16x8xf32> to vector<256x8xf32>
    %162 = arith.truncf %161 : vector<256x8xf32> to vector<256x8xbf16>
    %c1_175 = arith.constant 1 : index
    %c1_176 = arith.constant 1 : index
    %c2_177 = arith.constant 2 : index
    %c0_178 = arith.constant 0 : index
    %163 = vector.load %arg18[%c1_175, %c1_176, %c2_177, %c0_178] : memref<2x18x18x8xf32, #tpu.memory_space<vmem>>, vector<1x16x16x8xf32>
    %164 = vector.shape_cast %163 : vector<1x16x16x8xf32> to vector<256x8xf32>
    %165 = arith.truncf %164 : vector<256x8xf32> to vector<256x8xbf16>
    %c40_179 = arith.constant 40 : index
    %c0_180 = arith.constant 0 : index
    %166 = vector.load %arg9[%c40_179, %c0_180] : memref<72x4xbf16, #tpu.memory_space<vmem>>, vector<8x4xbf16>
    %c40_181 = arith.constant 40 : index
    %c0_182 = arith.constant 0 : index
    %167 = vector.load %arg12[%c40_181, %c0_182] : memref<72x4xbf16, #tpu.memory_space<vmem>>, vector<8x4xbf16>
    %cst_183 = arith.constant dense<0.000000e+00> : vector<256x4xf32>
    %168 = tpu.matmul %162, %166, %cst_183 {dimension_numbers = #tpu.dot_dimension_numbers<[1], [0], [0], [1], [0, 0, 1, 1], [], []>} : vector<256x8xbf16>, vector<8x4xbf16>, vector<256x4xf32> -> vector<256x4xf32>
    %169 = arith.addf %157, %168 : vector<256x4xf32>
    %cst_184 = arith.constant dense<0.000000e+00> : vector<256x4xf32>
    %170 = tpu.matmul %165, %167, %cst_184 {dimension_numbers = #tpu.dot_dimension_numbers<[1], [0], [0], [1], [0, 0, 1, 1], [], []>} : vector<256x8xbf16>, vector<8x4xbf16>, vector<256x4xf32> -> vector<256x4xf32>
    %171 = arith.addf %159, %170 : vector<256x4xf32>
    %c0_185 = arith.constant 0 : index
    %c2_186 = arith.constant 2 : index
    %c0_187 = arith.constant 0 : index
    %c0_188 = arith.constant 0 : index
    %172 = vector.load %arg18[%c0_185, %c2_186, %c0_187, %c0_188] : memref<2x18x18x8xf32, #tpu.memory_space<vmem>>, vector<1x16x16x8xf32>
    %173 = vector.shape_cast %172 : vector<1x16x16x8xf32> to vector<256x8xf32>
    %174 = arith.truncf %173 : vector<256x8xf32> to vector<256x8xbf16>
    %c1_189 = arith.constant 1 : index
    %c2_190 = arith.constant 2 : index
    %c0_191 = arith.constant 0 : index
    %c0_192 = arith.constant 0 : index
    %175 = vector.load %arg18[%c1_189, %c2_190, %c0_191, %c0_192] : memref<2x18x18x8xf32, #tpu.memory_space<vmem>>, vector<1x16x16x8xf32>
    %176 = vector.shape_cast %175 : vector<1x16x16x8xf32> to vector<256x8xf32>
    %177 = arith.truncf %176 : vector<256x8xf32> to vector<256x8xbf16>
    %c48_193 = arith.constant 48 : index
    %c0_194 = arith.constant 0 : index
    %178 = vector.load %arg9[%c48_193, %c0_194] : memref<72x4xbf16, #tpu.memory_space<vmem>>, vector<8x4xbf16>
    %c48_195 = arith.constant 48 : index
    %c0_196 = arith.constant 0 : index
    %179 = vector.load %arg12[%c48_195, %c0_196] : memref<72x4xbf16, #tpu.memory_space<vmem>>, vector<8x4xbf16>
    %cst_197 = arith.constant dense<0.000000e+00> : vector<256x4xf32>
    %180 = tpu.matmul %174, %178, %cst_197 {dimension_numbers = #tpu.dot_dimension_numbers<[1], [0], [0], [1], [0, 0, 1, 1], [], []>} : vector<256x8xbf16>, vector<8x4xbf16>, vector<256x4xf32> -> vector<256x4xf32>
    %181 = arith.addf %169, %180 : vector<256x4xf32>
    %cst_198 = arith.constant dense<0.000000e+00> : vector<256x4xf32>
    %182 = tpu.matmul %177, %179, %cst_198 {dimension_numbers = #tpu.dot_dimension_numbers<[1], [0], [0], [1], [0, 0, 1, 1], [], []>} : vector<256x8xbf16>, vector<8x4xbf16>, vector<256x4xf32> -> vector<256x4xf32>
    %183 = arith.addf %171, %182 : vector<256x4xf32>
    %c0_199 = arith.constant 0 : index
    %c2_200 = arith.constant 2 : index
    %c1_201 = arith.constant 1 : index
    %c0_202 = arith.constant 0 : index
    %184 = vector.load %arg18[%c0_199, %c2_200, %c1_201, %c0_202] : memref<2x18x18x8xf32, #tpu.memory_space<vmem>>, vector<1x16x16x8xf32>
    %185 = vector.shape_cast %184 : vector<1x16x16x8xf32> to vector<256x8xf32>
    %186 = arith.truncf %185 : vector<256x8xf32> to vector<256x8xbf16>
    %c1_203 = arith.constant 1 : index
    %c2_204 = arith.constant 2 : index
    %c1_205 = arith.constant 1 : index
    %c0_206 = arith.constant 0 : index
    %187 = vector.load %arg18[%c1_203, %c2_204, %c1_205, %c0_206] : memref<2x18x18x8xf32, #tpu.memory_space<vmem>>, vector<1x16x16x8xf32>
    %188 = vector.shape_cast %187 : vector<1x16x16x8xf32> to vector<256x8xf32>
    %189 = arith.truncf %188 : vector<256x8xf32> to vector<256x8xbf16>
    %c56_207 = arith.constant 56 : index
    %c0_208 = arith.constant 0 : index
    %190 = vector.load %arg9[%c56_207, %c0_208] : memref<72x4xbf16, #tpu.memory_space<vmem>>, vector<8x4xbf16>
    %c56_209 = arith.constant 56 : index
    %c0_210 = arith.constant 0 : index
    %191 = vector.load %arg12[%c56_209, %c0_210] : memref<72x4xbf16, #tpu.memory_space<vmem>>, vector<8x4xbf16>
    %cst_211 = arith.constant dense<0.000000e+00> : vector<256x4xf32>
    %192 = tpu.matmul %186, %190, %cst_211 {dimension_numbers = #tpu.dot_dimension_numbers<[1], [0], [0], [1], [0, 0, 1, 1], [], []>} : vector<256x8xbf16>, vector<8x4xbf16>, vector<256x4xf32> -> vector<256x4xf32>
    %193 = arith.addf %181, %192 : vector<256x4xf32>
    %cst_212 = arith.constant dense<0.000000e+00> : vector<256x4xf32>
    %194 = tpu.matmul %189, %191, %cst_212 {dimension_numbers = #tpu.dot_dimension_numbers<[1], [0], [0], [1], [0, 0, 1, 1], [], []>} : vector<256x8xbf16>, vector<8x4xbf16>, vector<256x4xf32> -> vector<256x4xf32>
    %195 = arith.addf %183, %194 : vector<256x4xf32>
    %c0_213 = arith.constant 0 : index
    %c2_214 = arith.constant 2 : index
    %c2_215 = arith.constant 2 : index
    %c0_216 = arith.constant 0 : index
    %196 = vector.load %arg18[%c0_213, %c2_214, %c2_215, %c0_216] : memref<2x18x18x8xf32, #tpu.memory_space<vmem>>, vector<1x16x16x8xf32>
    %197 = vector.shape_cast %196 : vector<1x16x16x8xf32> to vector<256x8xf32>
    %198 = arith.truncf %197 : vector<256x8xf32> to vector<256x8xbf16>
    %c1_217 = arith.constant 1 : index
    %c2_218 = arith.constant 2 : index
    %c2_219 = arith.constant 2 : index
    %c0_220 = arith.constant 0 : index
    %199 = vector.load %arg18[%c1_217, %c2_218, %c2_219, %c0_220] : memref<2x18x18x8xf32, #tpu.memory_space<vmem>>, vector<1x16x16x8xf32>
    %200 = vector.shape_cast %199 : vector<1x16x16x8xf32> to vector<256x8xf32>
    %201 = arith.truncf %200 : vector<256x8xf32> to vector<256x8xbf16>
    %c64_221 = arith.constant 64 : index
    %c0_222 = arith.constant 0 : index
    %202 = vector.load %arg9[%c64_221, %c0_222] : memref<72x4xbf16, #tpu.memory_space<vmem>>, vector<8x4xbf16>
    %c64_223 = arith.constant 64 : index
    %c0_224 = arith.constant 0 : index
    %203 = vector.load %arg12[%c64_223, %c0_224] : memref<72x4xbf16, #tpu.memory_space<vmem>>, vector<8x4xbf16>
    %cst_225 = arith.constant dense<0.000000e+00> : vector<256x4xf32>
    %204 = tpu.matmul %198, %202, %cst_225 {dimension_numbers = #tpu.dot_dimension_numbers<[1], [0], [0], [1], [0, 0, 1, 1], [], []>} : vector<256x8xbf16>, vector<8x4xbf16>, vector<256x4xf32> -> vector<256x4xf32>
    %205 = arith.addf %193, %204 : vector<256x4xf32>
    %cst_226 = arith.constant dense<0.000000e+00> : vector<256x4xf32>
    %206 = tpu.matmul %201, %203, %cst_226 {dimension_numbers = #tpu.dot_dimension_numbers<[1], [0], [0], [1], [0, 0, 1, 1], [], []>} : vector<256x8xbf16>, vector<8x4xbf16>, vector<256x4xf32> -> vector<256x4xf32>
    %207 = arith.addf %195, %206 : vector<256x4xf32>
    %c0_227 = arith.constant 0 : index
    %c0_228 = arith.constant 0 : index
    %208 = vector.load %arg10[%c0_227, %c0_228] : memref<1x4xf32, #tpu.memory_space<vmem>>, vector<1x4xf32>
    %209 = vector.broadcast %208 : vector<1x4xf32> to vector<256x4xf32>
    %210 = arith.mulf %205, %209 : vector<256x4xf32>
    %c0_229 = arith.constant 0 : index
    %c0_230 = arith.constant 0 : index
    %211 = vector.load %arg11[%c0_229, %c0_230] : memref<1x4xf32, #tpu.memory_space<vmem>>, vector<1x4xf32>
    %212 = vector.broadcast %211 : vector<1x4xf32> to vector<256x4xf32>
    %213 = arith.addf %210, %212 : vector<256x4xf32>
    %cst_231 = arith.constant 0.000000e+00 : f32
    %214 = vector.broadcast %cst_231 : f32 to vector<256x4xf32>
    %215 = arith.maximumf %213, %214 : vector<256x4xf32>
    %c0_232 = arith.constant 0 : index
    %c0_233 = arith.constant 0 : index
    %216 = vector.load %arg13[%c0_232, %c0_233] : memref<1x4xf32, #tpu.memory_space<vmem>>, vector<1x4xf32>
    %217 = vector.broadcast %216 : vector<1x4xf32> to vector<256x4xf32>
    %218 = arith.mulf %207, %217 : vector<256x4xf32>
    %c0_234 = arith.constant 0 : index
    %c0_235 = arith.constant 0 : index
    %219 = vector.load %arg14[%c0_234, %c0_235] : memref<1x4xf32, #tpu.memory_space<vmem>>, vector<1x4xf32>
    %220 = vector.broadcast %219 : vector<1x4xf32> to vector<256x4xf32>
    %221 = arith.addf %218, %220 : vector<256x4xf32>
    %cst_236 = arith.constant 0.000000e+00 : f32
    %222 = vector.broadcast %cst_236 : f32 to vector<256x4xf32>
    %223 = arith.maximumf %221, %222 : vector<256x4xf32>
    %224 = arith.truncf %89 : vector<256x8xf32> to vector<256x8xbf16>
    %c0_237 = arith.constant 0 : index
    %c0_238 = arith.constant 0 : index
    %225 = vector.load %arg15[%c0_237, %c0_238] : memref<8x1xbf16, #tpu.memory_space<vmem>>, vector<8x1xbf16>
    %cst_239 = arith.constant dense<0.000000e+00> : vector<256x1xf32>
    %226 = tpu.matmul %224, %225, %cst_239 {dimension_numbers = #tpu.dot_dimension_numbers<[1], [0], [0], [1], [0, 0, 1, 1], [], []>} : vector<256x8xbf16>, vector<8x1xbf16>, vector<256x1xf32> -> vector<256x1xf32>
    %c0_240 = arith.constant 0 : index
    %c0_241 = arith.constant 0 : index
    %227 = vector.load %arg16[%c0_240, %c0_241] : memref<1x1xf32, #tpu.memory_space<vmem>>, vector<1x1xf32>
    %228 = vector.broadcast %227 : vector<1x1xf32> to vector<256x1xf32>
    %229 = arith.addf %226, %228 : vector<256x1xf32>
    %c0_242 = arith.constant 0 : index
    %c0_243 = arith.constant 0 : index
    %c0_244 = arith.constant 0 : index
    %230 = vector.load %arg2[%c0_242, %c0_243, %c0_244] : memref<1x256x1xf32, #tpu.memory_space<vmem>>, vector<1x256x1xf32>
    %231 = vector.shape_cast %230 : vector<1x256x1xf32> to vector<256x1xf32>
    %232 = arith.negf %231 : vector<256x1xf32>
    %233 = math.exp %232 : vector<256x1xf32>
    %cst_245 = arith.constant 1.000000e+00 : f32
    %234 = vector.broadcast %cst_245 : f32 to vector<256x1xf32>
    %235 = arith.addf %234, %233 : vector<256x1xf32>
    %236 = arith.divf %234, %235 : vector<256x1xf32>
    %237 = vector.broadcast %236 : vector<256x1xf32> to vector<256x4xf32>
    %238 = arith.mulf %215, %237 : vector<256x4xf32>
    %cst_246 = arith.constant 1.000000e+00 : f32
    %239 = vector.broadcast %cst_246 : f32 to vector<256x1xf32>
    %240 = arith.subf %239, %236 : vector<256x1xf32>
    %241 = vector.broadcast %240 : vector<256x1xf32> to vector<256x4xf32>
    %242 = arith.mulf %223, %241 : vector<256x4xf32>
    %243 = tpu.concatenate %229, %238, %242 in 1 : vector<256x1xf32>, vector<256x4xf32>, vector<256x4xf32> -> vector<256x9xf32>
    %244 = vector.shape_cast %243 : vector<256x9xf32> to vector<1x256x9xf32>
    %c0_247 = arith.constant 0 : index
    %c0_248 = arith.constant 0 : index
    %c0_249 = arith.constant 0 : index
    %245 = vector.load %arg17[%c0_247, %c0_248, %c0_249] : memref<1x256x9xf32, #tpu.memory_space<vmem>>, vector<1x256x9xf32>
    tpu.vector_store %arg17[%c0_247, %c0_248, %c0_249], %244 {strides = array<i32>} : memref<1x256x9xf32, #tpu.memory_space<vmem>>, vector<1x256x9xf32>,
    return
  }
  func.func @transform_0(%arg0: i32) -> (i32, i32, i32) {
    %c0_i32 = arith.constant 0 : i32
    %c0_i32_0 = arith.constant 0 : i32
    %c0_i32_1 = arith.constant 0 : i32
    return %arg0, %c0_i32, %c0_i32_0 : i32, i32, i32
  }
  func.func @transform_1(%arg0: i32) -> (i32, i32, i32) {
    %c0_i32 = arith.constant 0 : i32
    %c0_i32_0 = arith.constant 0 : i32
    %c0_i32_1 = arith.constant 0 : i32
    return %arg0, %c0_i32, %c0_i32_0 : i32, i32, i32
  }
  func.func @transform_2(%arg0: i32) -> (i32, i32) {
    %c0_i32 = arith.constant 0 : i32
    %c0_i32_0 = arith.constant 0 : i32
    %c0_i32_1 = arith.constant 0 : i32
    return %c0_i32, %c0_i32_0 : i32, i32
  }
  func.func @transform_3(%arg0: i32) -> (i32, i32) {
    %c0_i32 = arith.constant 0 : i32
    %c0_i32_0 = arith.constant 0 : i32
    %c0_i32_1 = arith.constant 0 : i32
    return %c0_i32, %c0_i32_0 : i32, i32
  }
  func.func @transform_4(%arg0: i32) -> (i32, i32) {
    %c0_i32 = arith.constant 0 : i32
    %c0_i32_0 = arith.constant 0 : i32
    %c0_i32_1 = arith.constant 0 : i32
    return %c0_i32, %c0_i32_0 : i32, i32
  }
  func.func @transform_5(%arg0: i32) -> (i32, i32) {
    %c0_i32 = arith.constant 0 : i32
    %c0_i32_0 = arith.constant 0 : i32
    %c0_i32_1 = arith.constant 0 : i32
    return %c0_i32, %c0_i32_0 : i32, i32
  }
  func.func @transform_6(%arg0: i32) -> (i32, i32) {
    %c0_i32 = arith.constant 0 : i32
    %c0_i32_0 = arith.constant 0 : i32
    %c0_i32_1 = arith.constant 0 : i32
    return %c0_i32, %c0_i32_0 : i32, i32
  }
  func.func @transform_7(%arg0: i32) -> (i32, i32) {
    %c0_i32 = arith.constant 0 : i32
    %c0_i32_0 = arith.constant 0 : i32
    %c0_i32_1 = arith.constant 0 : i32
    return %c0_i32, %c0_i32_0 : i32, i32
  }
  func.func @transform_8(%arg0: i32) -> (i32, i32) {
    %c0_i32 = arith.constant 0 : i32
    %c0_i32_0 = arith.constant 0 : i32
    %c0_i32_1 = arith.constant 0 : i32
    return %c0_i32, %c0_i32_0 : i32, i32
  }
  func.func @transform_9(%arg0: i32) -> (i32, i32) {
    %c0_i32 = arith.constant 0 : i32
    %c0_i32_0 = arith.constant 0 : i32
    %c0_i32_1 = arith.constant 0 : i32
    return %c0_i32, %c0_i32_0 : i32, i32
  }
  func.func @transform_10(%arg0: i32) -> (i32, i32) {
    %c0_i32 = arith.constant 0 : i32
    %c0_i32_0 = arith.constant 0 : i32
    %c0_i32_1 = arith.constant 0 : i32
    return %c0_i32, %c0_i32_0 : i32, i32
  }
  func.func @transform_11(%arg0: i32) -> (i32, i32) {
    %c0_i32 = arith.constant 0 : i32
    %c0_i32_0 = arith.constant 0 : i32
    %c0_i32_1 = arith.constant 0 : i32
    return %c0_i32, %c0_i32_0 : i32, i32
  }
  func.func @transform_12(%arg0: i32) -> (i32, i32) {
    %c0_i32 = arith.constant 0 : i32
    %c0_i32_0 = arith.constant 0 : i32
    %c0_i32_1 = arith.constant 0 : i32
    return %c0_i32, %c0_i32_0 : i32, i32
  }
  func.func @transform_13(%arg0: i32) -> (i32, i32) {
    %c0_i32 = arith.constant 0 : i32
    %c0_i32_0 = arith.constant 0 : i32
    %c0_i32_1 = arith.constant 0 : i32
    return %c0_i32, %c0_i32_0 : i32, i32
  }
  func.func @transform_14(%arg0: i32) -> (i32, i32) {
    %c0_i32 = arith.constant 0 : i32
    %c0_i32_0 = arith.constant 0 : i32
    %c0_i32_1 = arith.constant 0 : i32
    return %c0_i32, %c0_i32_0 : i32, i32
  }
  func.func @transform_15(%arg0: i32) -> (i32, i32) {
    %c0_i32 = arith.constant 0 : i32
    %c0_i32_0 = arith.constant 0 : i32
    %c0_i32_1 = arith.constant 0 : i32
    return %c0_i32, %c0_i32_0 : i32, i32
  }
  func.func @transform_16(%arg0: i32) -> (i32, i32, i32) {
    %c0_i32 = arith.constant 0 : i32
    %c0_i32_0 = arith.constant 0 : i32
    %c0_i32_1 = arith.constant 0 : i32
    return %arg0, %c0_i32, %c0_i32_0 : i32, i32, i32
  }
}

</mosaic_0001>

<bundles_post_ra>
// kernel: edge_fore_back.1
= control target key start
LH: loop header
LB: loop body
LE: loop exit
PB: predicated region body
PF: predicated region fallthrough
CT: control target
= control target key end

     0   :  { %s14404_s23 = smov 0   ;;  %s18003_s0 = inlined_call_operand.vmem [shape: f32[2,256,8], index: 0, kind: input, shape index: {}]   ;;  %s18004_s1 = inlined_call_operand.vmem [shape: f32[2,256,1], index: 1, kind: input, shape index: {}]   ;;  %s18005_s2 = inlined_call_operand.vmem [shape: bf16[8,24], index: 2, kind: input, shape index: {}]   ;;  %s18006_s3 = inlined_call_operand.vmem [shape: f32[1,24], index: 3, kind: input, shape index: {}]   ;;  %s18007_s4 = inlined_call_operand.vmem [shape: f32[1,24], index: 4, kind: input, shape index: {}]   ;;  %s18008_s5 = inlined_call_operand.vmem [shape: bf16[72,8], index: 5, kind: input, shape index: {}]   ;;  %s18009_s6 = inlined_call_operand.vmem [shape: f32[1,8], index: 6, kind: input, shape index: {}]   ;;  %s18010_s7 = inlined_call_operand.vmem [shape: f32[1,8], index: 7, kind: input, shape index: {}]   ;;  %s18011_s8 = inlined_call_operand.vmem [shape: bf16[72,4], index: 8, kind: input, shape index: {}]   ;;  %s18012_s9 = inlined_call_operand.vmem [shape: f32[1,4], index: 9, kind: input, shape index: {}]   ;;  %s18013_s10 = inlined_call_operand.vmem [shape: f32[1,4], index: 10, kind: input, shape index: {}]   ;;  %s18014_s11 = inlined_call_operand.vmem [shape: bf16[72,4], index: 11, kind: input, shape index: {}]   ;;  %s18015_s12 = inlined_call_operand.vmem [shape: f32[1,4], index: 12, kind: input, shape index: {}]   ;;  %s18016_s13 = inlined_call_operand.vmem [shape: f32[1,4], index: 13, kind: input, shape index: {}]   ;;  %s18017_s14 = inlined_call_operand.vmem [shape: bf16[8,1], index: 14, kind: input, shape index: {}]   ;;  %s18018_s15 = inlined_call_operand.<no memory space> [shape: f32[1,1], index: 15, kind: input, shape index: {}]   ;;  %s18019_s16 = inlined_call_operand.vmem [shape: f32[2,256,9], index: 16, kind: output, shape index: {}]  }
   0x1   :  { %18092 = sst [smem:[#allocation89_spill]] %s18003_s0  ;;  %v21_v0 = vstv %s18018_s15 }
   0x2   :  { %22 = vst [vmem:[#allocation3] sm:$0x1] %v21_v0 }
   0x3 LB: > { %s11317_s24 = sadd.s32 4294967295, %s14306_s23   ;;  %p11321_p0 = scmp.ge.s32.totalorder %s14306_s23, 1  ;;  %s14306_s23 = sphi %s14404_s23, %s28_s23  }
   0x4   : > { %p474_p1 = scmp.lt.s32.totalorder %s14306_s23, 3 }
   0x6   : > { %p475_p2 = pnand %p11321_p0, %p474_p1 }
   0x8   : > { %478 = sbr.rel (%p475_p2) target bundleno = 2715 (0xa9b), region = 84 }
   0xf   : > { %v681_v1 = vld [vmem:[%s18005_s2] sm:$0xf]  ;;  %vm730_vm0 = vcmask 1043456   ;;  %p529_p3 = scmp.lt.s32.totalorder %s11317_s24, 1  ;;  %v1135_v3 = vld [vmem:[%s18008_s5 + $0x4] sm:$0xf] }
  0x10   : > { %14087 = vmatprep.subr.msk.bf16.mxu1 %vm730_vm0, %v681_v1  ;;  %v732_v2 = vsel %vm730_vm0, %v681_v1, 0  ;;  %s18093_s0 = sld [smem:[#allocation89_spill]]  ;;  %vm593_vm1 = vcmask 64512   ;;  %v1185_v13 = vsel %vm730_vm0, %v1135_v3, 0  ;;  %vm608_vm2 = vcmask 57344   ;;  %s14309_s26 = smov 16  }
  0x11   : > { %12332 = vmatpush3.bf16.msra.mxu1 %v732_v2  ;;  %s18410_s24 = smov (!%p529_p3, %s11317_s24), 1  ;;  %v14308_v53 = vmov 0.0   ;;  %vm596_vm3 = vcmask 58368   ;;  %v1086_v57 = vld [vmem:[%s18008_s5] sm:$0xf]  ;;  %s14310_s15 = smov 8  }
  0x12   : > { %14088 = vmatprep.subr.msk.bf16.mxu1 %vm730_vm0, %v1135_v3  ;;  %s14421_s28 = sshll.u32 %s18410_s24, 8  ;;  %594 = vst.msk [vmem:[#allocation2] sm:$0xff] %vm593_vm1, %v14308_v53  ;;  %595 = vst.msk [vmem:[#allocation2 + $0x8] sm:$0xff] %vm593_vm1, %v14308_v53  ;;  %v14650_v58 = vld [vmem:[%s18006_s3] ss:$0 sm:$0xff]  ;;  %s14311_s18 = smov 112  }
  0x13   : > { %598 = vst.msk [vmem:[#allocation2 + $0x1b0] sm:$0xff] %vm593_vm1, %v14308_v53  ;;  %599 = vst.msk [vmem:[#allocation2 + $0x1b8] sm:$0xff] %vm593_vm1, %v14308_v53  ;;  %v14655_v60 = vld [vmem:[%s18007_s4] ss:$0 sm:$0xff]  ;;  %s14312_s19 = smov 120   ;;  %s16989_s21 = scalar_lea.vmem %s18004_s1, %s14421_s28  ;;  %vm11151_vm4 = vcmask 7168  }
  0x14   : > { %602 = vst.msk [vmem:[#allocation2 + $0x198] sm:$0xff] %vm593_vm1, %v14308_v53  ;;  %603 = vst.msk [vmem:[#allocation2 + $0x1a0] sm:$0xff] %vm593_vm1, %v14308_v53  ;;  %vm11184_vm5 = vcmask 39936   ;;  %vm11217_vm6 = vcmask 72704  }
  0x15   : > { %605 = vst.msk [vmem:[#allocation2 + $0x348] sm:$0xff] %vm593_vm1, %v14308_v53  ;;  %606 = vst.msk [vmem:[#allocation2 + $0x350] sm:$0xff] %vm593_vm1, %v14308_v53 }
  0x16   : > { %s14427_s17 = scalar_lea.vmem %s18093_s0, %s14421_s28  ;;  %610 = vst.msk [vmem:[#allocation2 + $0x18] sm:$0x1] %vm608_vm2, %v14308_v53  ;;  %611 = vst.msk [vmem:[#allocation2 + $0x30] sm:$0x1] %vm608_vm2, %v14308_v53  ;;  %s14314_s0 = smov 1  }
  0x17   : > { %v545_v4 = vld [vmem:[%s14427_s17] sm:$0xff]  ;;  %v546_v5 = vld [vmem:[%s14427_s17 + $0x8] sm:$0xff]  ;;  %v547_v6 = vld [vmem:[%s14427_s17 + $0x10] sm:$0xff]  ;;  %612 = vst.msk [vmem:[#allocation2 + $0x48] sm:$0x1] %vm608_vm2, %v14308_v53 }
  0x18   : > { %v577_v7 = vpack.c.bf16 %v546_v5, %v545_v4  ;;  %v548_v8 = vld [vmem:[%s14427_s17 + $0x18] sm:$0xff]  ;;  %v549_v9 = vld [vmem:[%s14427_s17 + $0x20] sm:$0xff]  ;;  %v550_v10 = vld [vmem:[%s14427_s17 + $0x28] sm:$0xff]  ;;  %613 = vst.msk [vmem:[#allocation2 + $0x60] sm:$0x1] %vm608_vm2, %v14308_v53 }
  0x19   : > { %v578_v11 = vpack.c.bf16 %v548_v8, %v547_v6  ;;  %v579_v12 = vpack.c.bf16 %v550_v10, %v549_v9  ;;  %v551_v14 = vld [vmem:[%s14427_s17 + $0x30] sm:$0xff]  ;;  %v552_v15 = vld [vmem:[%s14427_s17 + $0x38] sm:$0xff]  ;;  %v553_v16 = vld [vmem:[%s14427_s17 + $0x40] sm:$0xff]  ;;  %614 = vst.msk [vmem:[#allocation2 + $0x78] sm:$0x1] %vm608_vm2, %v14308_v53 }
  0x1a   : > { %12333 = vmatprep.mubr.msk.bf16.mxu1 %vm593_vm1, %v577_v7  ;;  %v554_v17 = vld [vmem:[%s14427_s17 + $0x48] sm:$0xff]  ;;  %v580_v18 = vpack.c.bf16 %v552_v15, %v551_v14  ;;  %v555_v20 = vld [vmem:[%s14427_s17 + $0x50] sm:$0xff]  ;;  %v556_v21 = vld [vmem:[%s14427_s17 + $0x58] sm:$0xff]  ;;  %615 = vst.msk [vmem:[#allocation2 + $0x90] sm:$0x1] %vm608_vm2, %v14308_v53 }
  0x1b   : > { %12334 = vmatmul.mubr.msk.bf16.vlgmr.msra.gmra.mrb[0].mxu1 %vm593_vm1, %v578_v11  ;;  %v581_v19 = vpack.c.bf16 %v554_v17, %v553_v16  ;;  %v557_v22 = vld [vmem:[%s14427_s17 + $0x60] sm:$0xff]  ;;  %v558_v23 = vld [vmem:[%s14427_s17 + $0x68] sm:$0xff]  ;;  %v582_v24 = vpack.c.bf16 %v556_v21, %v555_v20  ;;  %v559_v26 = vld [vmem:[%s14427_s17 + $0x70] sm:$0xff]  ;;  %616 = vst.msk [vmem:[#allocation2 + $0xa8] sm:$0x1] %vm608_vm2, %v14308_v53 }
  0x1c   : > { %12337 = vmatprep.mubr.msk.bf16.mxu1 %vm593_vm1, %v579_v12  ;;  %12366 = vmatpush3.bf16.msra.mxu1 %v1185_v13  ;;  %v583_v25 = vpack.c.bf16 %v558_v23, %v557_v22  ;;  %v560_v27 = vld [vmem:[%s14427_s17 + $0x78] sm:$0xff]  ;;  %v561_v28 = vld [vmem:[%s14427_s17 + $0x80] sm:$0xff]  ;;  %v562_v29 = vld [vmem:[%s14427_s17 + $0x88] sm:$0xff]  ;;  %617 = vst.msk [vmem:[#allocation2 + $0xc0] sm:$0x1] %vm608_vm2, %v14308_v53 }
  0x1d   : > { %v584_v30 = vpack.c.bf16 %v560_v27, %v559_v26  ;;  %v585_v31 = vpack.c.bf16 %v562_v29, %v561_v28  ;;  %v563_v32 = vld [vmem:[%s14427_s17 + $0x90] sm:$0xff]  ;;  %v564_v33 = vld [vmem:[%s14427_s17 + $0x98] sm:$0xff]  ;;  %v565_v34 = vld [vmem:[%s14427_s17 + $0xa0] sm:$0xff]  ;;  %618 = vst.msk [vmem:[#allocation2 + $0xd8] sm:$0x1] %vm608_vm2, %v14308_v53  ;;  %14089 = vmatprep.subr.msk.bf16.mxu1 %vm730_vm0, %v1086_v57 }
  0x1e   : > { %v566_v35 = vld [vmem:[%s14427_s17 + $0xa8] sm:$0xff]  ;;  %v586_v36 = vpack.c.bf16 %v564_v33, %v563_v32  ;;  %v567_v38 = vld [vmem:[%s14427_s17 + $0xb0] sm:$0xff]  ;;  %v568_v39 = vld [vmem:[%s14427_s17 + $0xb8] sm:$0xff]  ;;  %619 = vst.msk [vmem:[#allocation2 + $0xf0] sm:$0x1] %vm608_vm2, %v14308_v53 }
  0x1f   : > { %v587_v37 = vpack.c.bf16 %v566_v35, %v565_v34  ;;  %v569_v40 = vld [vmem:[%s14427_s17 + $0xc0] sm:$0xff]  ;;  %v570_v41 = vld [vmem:[%s14427_s17 + $0xc8] sm:$0xff]  ;;  %v588_v42 = vpack.c.bf16 %v568_v39, %v567_v38  ;;  %v571_v44 = vld [vmem:[%s14427_s17 + $0xd0] sm:$0xff]  ;;  %620 = vst.msk [vmem:[#allocation2 + $0x108] sm:$0x1] %vm608_vm2, %v14308_v53 }
  0x20   : > { %v589_v43 = vpack.c.bf16 %v570_v41, %v569_v40  ;;  %v572_v45 = vld [vmem:[%s14427_s17 + $0xd8] sm:$0xff]  ;;  %v573_v46 = vld [vmem:[%s14427_s17 + $0xe0] sm:$0xff]  ;;  %v574_v47 = vld [vmem:[%s14427_s17 + $0xe8] sm:$0xff]  ;;  %621 = vst.msk [vmem:[#allocation2 + $0x120] sm:$0x1] %vm608_vm2, %v14308_v53 }
  0x21   : > { %v590_v48 = vpack.c.bf16 %v572_v45, %v571_v44  ;;  %v591_v49 = vpack.c.bf16 %v574_v47, %v573_v46  ;;  %v575_v50 = vld [vmem:[%s14427_s17 + $0xf0] sm:$0xff]  ;;  %v576_v51 = vld [vmem:[%s14427_s17 + $0xf8] sm:$0xff]  ;;  %622 = vst.msk [vmem:[#allocation2 + $0x138] sm:$0x1] %vm608_vm2, %v14308_v53  ;;  %623 = vst.msk [vmem:[#allocation2 + $0x150] sm:$0x1] %vm608_vm2, %v14308_v53 }
  0x22   : > { %v592_v52 = vpack.c.bf16 %v576_v51, %v575_v50  ;;  %624 = vst.msk [vmem:[#allocation2 + $0x168] sm:$0x1] %vm608_vm2, %v14308_v53  ;;  %625 = vst.msk [vmem:[#allocation2 + $0x180] sm:$0x1] %vm608_vm2, %v14308_v53  ;;  %v1087_v54 = vld [vmem:[#allocation2 + $0x1] sm:$0xff] }
  0x23   : > { %12338 = vmatmul.mubr.msk.bf16.gmra.mrb[4].mxu1 %vm593_vm1, %v580_v18  ;;  %628 = vst.msk [vmem:[#allocation2 + $0x1c8] sm:$0x1] %vm608_vm2, %v14308_v53  ;;  %629 = vst.msk [vmem:[#allocation2 + $0x1e0] sm:$0x1] %vm608_vm2, %v14308_v53 }
  0x24   : > { %12341 = vmatprep.mubr.msk.bf16.mxu1 %vm593_vm1, %v581_v19  ;;  %630 = vst.msk [vmem:[#allocation2 + $0x1f8] sm:$0x1] %vm608_vm2, %v14308_v53  ;;  %631 = vst.msk [vmem:[#allocation2 + $0x210] sm:$0x1] %vm608_vm2, %v14308_v53 }
  0x25   : > { %632 = vst.msk [vmem:[#allocation2 + $0x228] sm:$0x1] %vm608_vm2, %v14308_v53  ;;  %633 = vst.msk [vmem:[#allocation2 + $0x240] sm:$0x1] %vm608_vm2, %v14308_v53 }
  0x26   : > { %634 = vst.msk [vmem:[#allocation2 + $0x258] sm:$0x1] %vm608_vm2, %v14308_v53  ;;  %635 = vst.msk [vmem:[#allocation2 + $0x270] sm:$0x1] %vm608_vm2, %v14308_v53 }
  0x27   : > { %636 = vst.msk [vmem:[#allocation2 + $0x288] sm:$0x1] %vm608_vm2, %v14308_v53  ;;  %637 = vst.msk [vmem:[#allocation2 + $0x2a0] sm:$0x1] %vm608_vm2, %v14308_v53 }
  0x28   : > { %638 = vst.msk [vmem:[#allocation2 + $0x2b8] sm:$0x1] %vm608_vm2, %v14308_v53  ;;  %639 = vst.msk [vmem:[#allocation2 + $0x2d0] sm:$0x1] %vm608_vm2, %v14308_v53 }
  0x29   : > { %640 = vst.msk [vmem:[#allocation2 + $0x2e8] sm:$0x1] %vm608_vm2, %v14308_v53  ;;  %641 = vst.msk [vmem:[#allocation2 + $0x300] sm:$0x1] %vm608_vm2, %v14308_v53 }
  0x2a   : > { %642 = vst.msk [vmem:[#allocation2 + $0x318] sm:$0x1] %vm608_vm2, %v14308_v53  ;;  %643 = vst.msk [vmem:[#allocation2 + $0x330] sm:$0x1] %vm608_vm2, %v14308_v53 }
  0x2b   : > { %12342 = vmatmul.mubr.msk.bf16.gmra.mrb[8].mxu1 %vm593_vm1, %v582_v24  ;;  %646 = vst.msk [vmem:[#allocation2 + $0x29] sm:$0x1] %vm608_vm2, %v14308_v53  ;;  %647 = vst.msk [vmem:[#allocation2 + $0x41] sm:$0x1] %vm608_vm2, %v14308_v53 }
  0x2c   : > { %12345 = vmatprep.mubr.msk.bf16.mxu1 %vm593_vm1, %v583_v25  ;;  %648 = vst.msk [vmem:[#allocation2 + $0x59] sm:$0x1] %vm608_vm2, %v14308_v53  ;;  %649 = vst.msk [vmem:[#allocation2 + $0x71] sm:$0x1] %vm608_vm2, %v14308_v53 }
  0x2d   : > { %650 = vst.msk [vmem:[#allocation2 + $0x89] sm:$0x1] %vm608_vm2, %v14308_v53  ;;  %651 = vst.msk [vmem:[#allocation2 + $0xa1] sm:$0x1] %vm608_vm2, %v14308_v53 }
  0x2e   : > { %652 = vst.msk [vmem:[#allocation2 + $0xb9] sm:$0x1] %vm608_vm2, %v14308_v53  ;;  %653 = vst.msk [vmem:[#allocation2 + $0xd1] sm:$0x1] %vm608_vm2, %v14308_v53 }
  0x2f   : > { %654 = vst.msk [vmem:[#allocation2 + $0xe9] sm:$0x1] %vm608_vm2, %v14308_v53  ;;  %655 = vst.msk [vmem:[#allocation2 + $0x101] sm:$0x1] %vm608_vm2, %v14308_v53 }
  0x30   : > { %656 = vst.msk [vmem:[#allocation2 + $0x119] sm:$0x1] %vm608_vm2, %v14308_v53  ;;  %657 = vst.msk [vmem:[#allocation2 + $0x131] sm:$0x1] %vm608_vm2, %v14308_v53 }
  0x31   : > { %658 = vst.msk [vmem:[#allocation2 + $0x149] sm:$0x1] %vm608_vm2, %v14308_v53  ;;  %659 = vst.msk [vmem:[#allocation2 + $0x161] sm:$0x1] %vm608_vm2, %v14308_v53 }
  0x32   : > { %660 = vst.msk [vmem:[#allocation2 + $0x179] sm:$0x1] %vm608_vm2, %v14308_v53  ;;  %661 = vst.msk [vmem:[#allocation2 + $0x191] sm:$0x1] %vm608_vm2, %v14308_v53 }
  0x33   : > { %12346 = vmatmul.mubr.msk.bf16.gmra.mrb[12].mxu1 %vm593_vm1, %v584_v30  ;;  %664 = vst.msk [vmem:[#allocation2 + $0x1d9] sm:$0x1] %vm608_vm2, %v14308_v53  ;;  %665 = vst.msk [vmem:[#allocation2 + $0x1f1] sm:$0x1] %vm608_vm2, %v14308_v53 }
  0x34   : > { %12349 = vmatprep.mubr.msk.bf16.mxu1 %vm593_vm1, %v585_v31  ;;  %666 = vst.msk [vmem:[#allocation2 + $0x209] sm:$0x1] %vm608_vm2, %v14308_v53  ;;  %667 = vst.msk [vmem:[#allocation2 + $0x221] sm:$0x1] %vm608_vm2, %v14308_v53 }
  0x35   : > { %668 = vst.msk [vmem:[#allocation2 + $0x239] sm:$0x1] %vm608_vm2, %v14308_v53  ;;  %669 = vst.msk [vmem:[#allocation2 + $0x251] sm:$0x1] %vm608_vm2, %v14308_v53 }
  0x36   : > { %670 = vst.msk [vmem:[#allocation2 + $0x269] sm:$0x1] %vm608_vm2, %v14308_v53  ;;  %671 = vst.msk [vmem:[#allocation2 + $0x281] sm:$0x1] %vm608_vm2, %v14308_v53 }
  0x37   : > { %672 = vst.msk [vmem:[#allocation2 + $0x299] sm:$0x1] %vm608_vm2, %v14308_v53  ;;  %673 = vst.msk [vmem:[#allocation2 + $0x2b1] sm:$0x1] %vm608_vm2, %v14308_v53 }
  0x38   : > { %674 = vst.msk [vmem:[#allocation2 + $0x2c9] sm:$0x1] %vm608_vm2, %v14308_v53  ;;  %675 = vst.msk [vmem:[#allocation2 + $0x2e1] sm:$0x1] %vm608_vm2, %v14308_v53 }
  0x39   : > { %676 = vst.msk [vmem:[#allocation2 + $0x2f9] sm:$0x1] %vm608_vm2, %v14308_v53  ;;  %677 = vst.msk [vmem:[#allocation2 + $0x311] sm:$0x1] %vm608_vm2, %v14308_v53 }
  0x3a   : > { %678 = vst.msk [vmem:[#allocation2 + $0x329] sm:$0x1] %vm608_vm2, %v14308_v53  ;;  %679 = vst.msk [vmem:[#allocation2 + $0x341] sm:$0x1] %vm608_vm2, %v14308_v53 }
  0x3b   : > { %12350 = vmatmul.mubr.msk.bf16.gmra.mrb[16].mxu1 %vm593_vm1, %v586_v36  ;;  %609 = vst.msk [vmem:[#allocation2] sm:$0x1] %vm608_vm2, %v14308_v53  ;;  %626 = vst.msk [vmem:[#allocation2 + $0x198] sm:$0x1] %vm608_vm2, %v14308_v53 }
  0x3c   : > { %12353 = vmatprep.mubr.msk.bf16.mxu1 %vm593_vm1, %v587_v37  ;;  %627 = vst.msk [vmem:[#allocation2 + $0x1b0] sm:$0x1] %vm608_vm2, %v14308_v53  ;;  %644 = vst.msk [vmem:[#allocation2 + $0x348] sm:$0x1] %vm608_vm2, %v14308_v53  ;;  %v1397_v37 = vsel %vm730_vm0, %v1086_v57, 0 }
  0x3d   : > { %597 = vst.msk [vmem:[#allocation2 + $0x10] sm:$0x3] %vm596_vm3, %v14308_v53  ;;  %600 = vst.msk [vmem:[#allocation2 + $0x1c0] sm:$0x3] %vm596_vm3, %v14308_v53 }
  0x3e   : > { %604 = vst.msk [vmem:[#allocation2 + $0x1a8] sm:$0x3] %vm596_vm3, %v14308_v53  ;;  %607 = vst.msk [vmem:[#allocation2 + $0x358] sm:$0x3] %vm596_vm3, %v14308_v53 }
  0x3f   : > { %645 = vst.msk [vmem:[#allocation2 + $0x11] sm:$0x1] %vm608_vm2, %v14308_v53  ;;  %662 = vst.msk [vmem:[#allocation2 + $0x1a9] sm:$0x1] %vm608_vm2, %v14308_v53 }
  0x40   : > { %663 = vst.msk [vmem:[#allocation2 + $0x1c1] sm:$0x1] %vm608_vm2, %v14308_v53  ;;  %680 = vst.msk [vmem:[#allocation2 + $0x359] sm:$0x1] %vm608_vm2, %v14308_v53 }
  0x43   : > { %12354 = vmatmul.mubr.msk.bf16.gmra.mrb[20].mxu1 %vm593_vm1, %v588_v42 }
  0x44   : > { %12357 = vmatprep.mubr.msk.bf16.mxu1 %vm593_vm1, %v589_v43  ;;  %v1088_v55 = vld [vmem:[#allocation2 + $0x9] sm:$0xff] }
  0x45   : > { %v1119_v56 = vpack.c.bf16 %v1088_v55, %v1087_v54  ;;  %v14717_v43 = vld [vmem:[%s18008_s5 + $0x8] sm:$0xf] }
  0x4b   : > { %12358 = vmatmul.mubr.msk.bf16.gmra.mrb[24].mxu1 %vm593_vm1, %v590_v48 }
  0x4c   : > { %12361 = vmatprep.mubr.msk.bf16.mxu1 %vm593_vm1, %v591_v49 }
  0x53   : > { %12362 = vmatmul.mubr.msk.bf16.gmra.mrb[28].mxu1 %vm593_vm1, %v592_v52 }
  0x54   : > { %12367 = vmatprep.mubr.msk.bf16.mxu1 %vm593_vm1, %v1119_v56 }
  0xee   : > { %v12335_v59 = vpop.f32.mrb[0].mxu1 }
  0xef   : > { %v904_v61 = vmul.f32 %v12335_v59, %v14650_v58  ;;  %v768_v62 = vpop.f32.mrb[1].mxu1 }
  0xf0   : > { %v902_v63 = vmul.f32 %v14650_v58, %v768_v62  ;;  %v12336_v0 = vpop.f32.mrb[2].mxu1 }
  0xf1   : > { %v943_v1 = vadd.f32 %v14655_v60, %v904_v61  ;;  %v905_v2 = vmul.f32 %v12336_v0, %v14650_v58  ;;  %v771_v3 = vpop.f32.mrb[3].mxu1 }
  0xf2   : > { %v941_v4 = vadd.f32 %v14655_v60, %v902_v63  ;;  %v903_v5 = vmul.f32 %v14650_v58, %v771_v3 }
  0xf3   : > { %v14663_v6 = vmax.f32 %v943_v1, 0.0  ;;  %v944_v7 = vadd.f32 %v14655_v60, %v905_v2 }
  0xf4   : > { %v14666_v8 = vmax.f32 %v941_v4, 0.0  ;;  %v942_v9 = vadd.f32 %v14655_v60, %v903_v5 }
  0xf5   : > { %1008 = vst.msk [vmem:[#allocation2 + $0x31] sm:$0xff] %vm593_vm1, %v14663_v6  ;;  %v14671_v10 = vmax.f32 %v944_v7, 0.0 }
  0xf6   : > { %1006 = vst.msk [vmem:[#allocation2 + $0x19] sm:$0xff] %vm593_vm1, %v14666_v8  ;;  %v14675_v11 = vmax.f32 %v942_v9, 0.0  ;;  %v12339_v12 = vpop.f32.mrb[4].mxu1 }
  0xf7   : > { %1009 = vst.msk [vmem:[#allocation2 + $0x39] sm:$0xff] %vm593_vm1, %v14671_v10  ;;  %v908_v13 = vmul.f32 %v12339_v12, %v14650_v58  ;;  %v784_v14 = vpop.f32.mrb[5].mxu1 }
  0xf8   : > { %1007 = vst.msk [vmem:[#allocation2 + $0x21] sm:$0xff] %vm593_vm1, %v14675_v11  ;;  %v906_v15 = vmul.f32 %v14650_v58, %v784_v14  ;;  %v12340_v16 = vpop.f32.mrb[6].mxu1 }
  0xf9   : > { %v947_v17 = vadd.f32 %v14655_v60, %v908_v13  ;;  %v909_v18 = vmul.f32 %v12340_v16, %v14650_v58  ;;  %v787_v19 = vpop.f32.mrb[7].mxu1 }
  0xfa   : > { %v945_v20 = vadd.f32 %v14655_v60, %v906_v15  ;;  %v907_v21 = vmul.f32 %v14650_v58, %v787_v19 }
  0xfb   : > { %v14687_v22 = vmax.f32 %v947_v17, 0.0  ;;  %v948_v23 = vadd.f32 %v14655_v60, %v909_v18 }
  0xfc   : > { %v14690_v24 = vmax.f32 %v945_v20, 0.0  ;;  %v946_v25 = vadd.f32 %v14655_v60, %v907_v21  ;;  %v1091_v38 = vld [vmem:[#allocation2 + $0x31] sm:$0xff] }
  0xfd   : > { %1012 = vst.msk [vmem:[#allocation2 + $0x61] sm:$0xff] %vm593_vm1, %v14687_v22  ;;  %v14695_v26 = vmax.f32 %v948_v23, 0.0  ;;  %v1089_v32 = vld [vmem:[#allocation2 + $0x19] sm:$0xff] }
  0xfe   : > { %1010 = vst.msk [vmem:[#allocation2 + $0x49] sm:$0xff] %vm593_vm1, %v14690_v24  ;;  %v14699_v27 = vmax.f32 %v946_v25, 0.0  ;;  %v12343_v28 = vpop.f32.mrb[8].mxu1  ;;  %v1092_v29 = vld [vmem:[#allocation2 + $0x39] sm:$0xff] }
  0xff   : > { %1013 = vst.msk [vmem:[#allocation2 + $0x69] sm:$0xff] %vm593_vm1, %v14695_v26  ;;  %v912_v30 = vmul.f32 %v12343_v28, %v14650_v58  ;;  %v800_v31 = vpop.f32.mrb[9].mxu1  ;;  %v1090_v33 = vld [vmem:[#allocation2 + $0x21] sm:$0xff]  ;;  %v14712_v42 = vpack.c.bf16 %v1092_v29, %v1091_v38 }
 0x100   : > { %1011 = vst.msk [vmem:[#allocation2 + $0x51] sm:$0xff] %vm593_vm1, %v14699_v27  ;;  %v910_v34 = vmul.f32 %v14650_v58, %v800_v31  ;;  %v12344_v35 = vpop.f32.mrb[10].mxu1  ;;  %v14707_v36 = vpack.c.bf16 %v1090_v33, %v1089_v32 }
 0x101   : > { %v951_v39 = vadd.f32 %v14655_v60, %v912_v30  ;;  %v913_v40 = vmul.f32 %v12344_v35, %v14650_v58  ;;  %v803_v41 = vpop.f32.mrb[11].mxu1 }
 0x102   : > { %v949_v44 = vadd.f32 %v14655_v60, %v910_v34  ;;  %v911_v45 = vmul.f32 %v14650_v58, %v803_v41  ;;  %12368 = vmatmul.mubr.msk.bf16.vlgmr.msra.gmra.mrb[32].mxu1 %vm593_vm1, %v14707_v36 }
 0x103   : > { %v14723_v46 = vmax.f32 %v951_v39, 0.0  ;;  %v952_v47 = vadd.f32 %v14655_v60, %v913_v40  ;;  %12400 = vmatpush3.bf16.msra.mxu1 %v1397_v37  ;;  %12371 = vmatprep.mubr.msk.bf16.mxu1 %vm593_vm1, %v14712_v42 }
 0x104   : > { %v14728_v48 = vmax.f32 %v949_v44, 0.0  ;;  %v950_v49 = vadd.f32 %v14655_v60, %v911_v45  ;;  %14090 = vmatprep.subr.msk.bf16.mxu1 %vm730_vm0, %v14717_v43  ;;  %v1095_v63 = vld [vmem:[#allocation2 + $0x61] sm:$0xff] }
 0x105   : > { %18094 = vst [vmem:[#allocation4_spill] sm:$0xff] %v14723_v46  ;;  %1016 = vst.msk [vmem:[#allocation2 + $0x91] sm:$0xff] %vm593_vm1, %v14723_v46  ;;  %v14735_v50 = vmax.f32 %v952_v47, 0.0  ;;  %v1093_v56 = vld [vmem:[#allocation2 + $0x49] sm:$0xff] }
 0x106   : > { %18095 = vst [vmem:[#allocation5_spill] sm:$0xff] %v14728_v48  ;;  %1014 = vst.msk [vmem:[#allocation2 + $0x79] sm:$0xff] %vm593_vm1, %v14728_v48  ;;  %v14739_v51 = vmax.f32 %v950_v49, 0.0  ;;  %v12347_v52 = vpop.f32.mrb[12].mxu1  ;;  %v1096_v53 = vld [vmem:[#allocation2 + $0x69] sm:$0xff] }
 0x107   : > { %18096 = vst [vmem:[#allocation6_spill] sm:$0xff] %v14735_v50  ;;  %1017 = vst.msk [vmem:[#allocation2 + $0x99] sm:$0xff] %vm593_vm1, %v14735_v50  ;;  %v916_v54 = vmul.f32 %v12347_v52, %v14650_v58  ;;  %v816_v55 = vpop.f32.mrb[13].mxu1  ;;  %v1094_v57 = vld [vmem:[#allocation2 + $0x51] sm:$0xff]  ;;  %v14751_v3 = vpack.c.bf16 %v1096_v53, %v1095_v63 }
 0x108   : > { %18097 = vst [vmem:[#allocation7_spill] sm:$0xff] %v14739_v51  ;;  %1015 = vst.msk [vmem:[#allocation2 + $0x81] sm:$0xff] %vm593_vm1, %v14739_v51  ;;  %v914_v59 = vmul.f32 %v14650_v58, %v816_v55  ;;  %v12348_v61 = vpop.f32.mrb[14].mxu1  ;;  %v14747_v62 = vpack.c.bf16 %v1094_v57, %v1093_v56 }
 0x109   : > { %v955_v0 = vadd.f32 %v14655_v60, %v916_v54  ;;  %v917_v1 = vmul.f32 %v12348_v61, %v14650_v58  ;;  %v819_v2 = vpop.f32.mrb[15].mxu1 }
 0x10a   : > { %v953_v4 = vadd.f32 %v14655_v60, %v914_v59  ;;  %v915_v5 = vmul.f32 %v14650_v58, %v819_v2  ;;  %12372 = vmatmul.mubr.msk.bf16.gmra.mrb[36].mxu1 %vm593_vm1, %v14747_v62 }
 0x10b   : > { %v14757_v7 = vmax.f32 %v955_v0, 0.0  ;;  %v956_v9 = vadd.f32 %v14655_v60, %v917_v1  ;;  %12375 = vmatprep.mubr.msk.bf16.mxu1 %vm593_vm1, %v14751_v3 }
 0x10c   : > { %v14762_v12 = vmax.f32 %v953_v4, 0.0  ;;  %v954_v13 = vadd.f32 %v14655_v60, %v915_v5  ;;  %v1099_v29 = vld [vmem:[#allocation2 + $0x91] sm:$0xff] }
 0x10d   : > { %18098 = vst [vmem:[#allocation8_spill] sm:$0xff] %v14757_v7  ;;  %1020 = vst.msk [vmem:[#allocation2 + $0xc1] sm:$0xff] %vm593_vm1, %v14757_v7  ;;  %v14767_v14 = vmax.f32 %v956_v9, 0.0  ;;  %v1097_v20 = vld [vmem:[#allocation2 + $0x79] sm:$0xff] }
 0x10e   : > { %18099 = vst [vmem:[#allocation9_spill] sm:$0xff] %v14762_v12  ;;  %1018 = vst.msk [vmem:[#allocation2 + $0xa9] sm:$0xff] %vm593_vm1, %v14762_v12  ;;  %v14771_v15 = vmax.f32 %v954_v13, 0.0  ;;  %v12351_v16 = vpop.f32.mrb[16].mxu1  ;;  %v1100_v17 = vld [vmem:[#allocation2 + $0x99] sm:$0xff] }
 0x10f   : > { %18100 = vst [vmem:[#allocation10_spill] sm:$0xff] %v14767_v14  ;;  %1021 = vst.msk [vmem:[#allocation2 + $0xc9] sm:$0xff] %vm593_vm1, %v14767_v14  ;;  %v920_v18 = vmul.f32 %v12351_v16, %v14650_v58  ;;  %v832_v19 = vpop.f32.mrb[17].mxu1  ;;  %v1098_v21 = vld [vmem:[#allocation2 + $0x81] sm:$0xff]  ;;  %v14783_v33 = vpack.c.bf16 %v1100_v17, %v1099_v29 }
 0x110   : > { %18101 = vst [vmem:[#allocation11_spill] sm:$0xff] %v14771_v15  ;;  %1019 = vst.msk [vmem:[#allocation2 + $0xb1] sm:$0xff] %vm593_vm1, %v14771_v15  ;;  %v918_v23 = vmul.f32 %v14650_v58, %v832_v19  ;;  %v12352_v25 = vpop.f32.mrb[18].mxu1  ;;  %v14779_v28 = vpack.c.bf16 %v1098_v21, %v1097_v20 }
 0x111   : > { %v959_v30 = vadd.f32 %v14655_v60, %v920_v18  ;;  %v921_v31 = vmul.f32 %v12352_v25, %v14650_v58  ;;  %v835_v32 = vpop.f32.mrb[19].mxu1 }
 0x112   : > { %v957_v34 = vadd.f32 %v14655_v60, %v918_v23  ;;  %v919_v35 = vmul.f32 %v14650_v58, %v835_v32  ;;  %12376 = vmatmul.mubr.msk.bf16.gmra.mrb[40].mxu1 %vm593_vm1, %v14779_v28 }
 0x113   : > { %v14789_v37 = vmax.f32 %v959_v30, 0.0  ;;  %v960_v38 = vadd.f32 %v14655_v60, %v921_v31  ;;  %12379 = vmatprep.mubr.msk.bf16.mxu1 %vm593_vm1, %v14783_v33 }
 0x114   : > { %v14794_v39 = vmax.f32 %v957_v34, 0.0  ;;  %v958_v40 = vadd.f32 %v14655_v60, %v919_v35  ;;  %v1103_v59 = vld [vmem:[#allocation2 + $0xc1] sm:$0xff] }
 0x115   : > { %18102 = vst [vmem:[#allocation12_spill] sm:$0xff] %v14789_v37  ;;  %1024 = vst.msk [vmem:[#allocation2 + $0xf1] sm:$0xff] %vm593_vm1, %v14789_v37  ;;  %v14799_v41 = vmax.f32 %v960_v38, 0.0  ;;  %v1101_v53 = vld [vmem:[#allocation2 + $0xa9] sm:$0xff] }
 0x116   : > { %18103 = vst [vmem:[#allocation13_spill] sm:$0xff] %v14794_v39  ;;  %1022 = vst.msk [vmem:[#allocation2 + $0xd9] sm:$0xff] %vm593_vm1, %v14794_v39  ;;  %v14803_v44 = vmax.f32 %v958_v40, 0.0  ;;  %v12355_v45 = vpop.f32.mrb[20].mxu1  ;;  %v1104_v47 = vld [vmem:[#allocation2 + $0xc9] sm:$0xff] }
 0x117   : > { %18104 = vst [vmem:[#allocation14_spill] sm:$0xff] %v14799_v41  ;;  %1025 = vst.msk [vmem:[#allocation2 + $0xf9] sm:$0xff] %vm593_vm1, %v14799_v41  ;;  %v924_v49 = vmul.f32 %v12355_v45, %v14650_v58  ;;  %v848_v52 = vpop.f32.mrb[21].mxu1  ;;  %v1102_v54 = vld [vmem:[#allocation2 + $0xb1] sm:$0xff]  ;;  %v14815_v1 = vpack.c.bf16 %v1104_v47, %v1103_v59 }
 0x118   : > { %18105 = vst [vmem:[#allocation15_spill] sm:$0xff] %v14803_v44  ;;  %1023 = vst.msk [vmem:[#allocation2 + $0xe1] sm:$0xff] %vm593_vm1, %v14803_v44  ;;  %v922_v55 = vmul.f32 %v14650_v58, %v848_v52  ;;  %v12356_v56 = vpop.f32.mrb[22].mxu1  ;;  %v14811_v57 = vpack.c.bf16 %v1102_v54, %v1101_v53 }
 0x119   : > { %v963_v61 = vadd.f32 %v14655_v60, %v924_v49  ;;  %v925_v63 = vmul.f32 %v12356_v56, %v14650_v58  ;;  %v851_v0 = vpop.f32.mrb[23].mxu1 }
 0x11a   : > { %v961_v2 = vadd.f32 %v14655_v60, %v922_v55  ;;  %v923_v4 = vmul.f32 %v14650_v58, %v851_v0  ;;  %12380 = vmatmul.mubr.msk.bf16.gmra.mrb[44].mxu1 %vm593_vm1, %v14811_v57 }
 0x11b   : > { %v14821_v5 = vmax.f32 %v963_v61, 0.0  ;;  %v964_v9 = vadd.f32 %v14655_v60, %v925_v63  ;;  %12383 = vmatprep.mubr.msk.bf16.mxu1 %vm593_vm1, %v14815_v1 }
 0x11c   : > { %v14826_v13 = vmax.f32 %v961_v2, 0.0  ;;  %v962_v16 = vadd.f32 %v14655_v60, %v923_v4  ;;  %v1107_v34 = vld [vmem:[#allocation2 + $0xf1] sm:$0xff] }
 0x11d   : > { %18106 = vst [vmem:[#allocation16_spill] sm:$0xff] %v14821_v5  ;;  %1028 = vst.msk [vmem:[#allocation2 + $0x121] sm:$0xff] %vm593_vm1, %v14821_v5  ;;  %v14831_v17 = vmax.f32 %v964_v9, 0.0  ;;  %v1105_v25 = vld [vmem:[#allocation2 + $0xd9] sm:$0xff] }
 0x11e   : > { %18107 = vst [vmem:[#allocation17_spill] sm:$0xff] %v14826_v13  ;;  %1026 = vst.msk [vmem:[#allocation2 + $0x109] sm:$0xff] %vm593_vm1, %v14826_v13  ;;  %v14835_v18 = vmax.f32 %v962_v16, 0.0  ;;  %v12359_v19 = vpop.f32.mrb[24].mxu1  ;;  %v1108_v20 = vld [vmem:[#allocation2 + $0xf9] sm:$0xff] }
 0x11f   : > { %18108 = vst [vmem:[#allocation18_spill] sm:$0xff] %v14831_v17  ;;  %1029 = vst.msk [vmem:[#allocation2 + $0x129] sm:$0xff] %vm593_vm1, %v14831_v17  ;;  %v928_v21 = vmul.f32 %v12359_v19, %v14650_v58  ;;  %v864_v23 = vpop.f32.mrb[25].mxu1  ;;  %v1106_v29 = vld [vmem:[#allocation2 + $0xe1] sm:$0xff]  ;;  %v14847_v45 = vpack.c.bf16 %v1108_v20, %v1107_v34 }
 0x120   : > { %18109 = vst [vmem:[#allocation19_spill] sm:$0xff] %v14835_v18  ;;  %1027 = vst.msk [vmem:[#allocation2 + $0x111] sm:$0xff] %vm593_vm1, %v14835_v18  ;;  %v926_v30 = vmul.f32 %v14650_v58, %v864_v23  ;;  %v12360_v31 = vpop.f32.mrb[26].mxu1  ;;  %v14843_v32 = vpack.c.bf16 %v1106_v29, %v1105_v25 }
 0x121   : > { %v967_v35 = vadd.f32 %v14655_v60, %v928_v21  ;;  %v929_v38 = vmul.f32 %v12360_v31, %v14650_v58  ;;  %v867_v40 = vpop.f32.mrb[27].mxu1 }
 0x122   : > { %v965_v47 = vadd.f32 %v14655_v60, %v926_v30  ;;  %v927_v49 = vmul.f32 %v14650_v58, %v867_v40  ;;  %12384 = vmatmul.mubr.msk.bf16.gmra.mrb[48].mxu1 %vm593_vm1, %v14843_v32 }
 0x123   : > { %v14853_v52 = vmax.f32 %v967_v35, 0.0  ;;  %v968_v53 = vadd.f32 %v14655_v60, %v929_v38  ;;  %12387 = vmatprep.mubr.msk.bf16.mxu1 %vm593_vm1, %v14847_v45 }
 0x124   : > { %v14858_v54 = vmax.f32 %v965_v47, 0.0  ;;  %v966_v55 = vadd.f32 %v14655_v60, %v927_v49  ;;  %v1111_v21 = vld [vmem:[#allocation2 + $0x121] sm:$0xff] }
 0x125   : > { %18110 = vst [vmem:[#allocation20_spill] sm:$0xff] %v14853_v52  ;;  %1032 = vst.msk [vmem:[#allocation2 + $0x151] sm:$0xff] %vm593_vm1, %v14853_v52  ;;  %v14863_v56 = vmax.f32 %v968_v53, 0.0  ;;  %v1109_v4 = vld [vmem:[#allocation2 + $0x109] sm:$0xff] }
 0x126   : > { %18111 = vst [vmem:[#allocation21_spill] sm:$0xff] %v14858_v54  ;;  %1030 = vst.msk [vmem:[#allocation2 + $0x139] sm:$0xff] %vm593_vm1, %v14858_v54  ;;  %v14867_v59 = vmax.f32 %v966_v55, 0.0  ;;  %v12363_v61 = vpop.f32.mrb[28].mxu1  ;;  %v1112_v63 = vld [vmem:[#allocation2 + $0x129] sm:$0xff] }
 0x127   : > { %18112 = vst [vmem:[#allocation22_spill] sm:$0xff] %v14863_v56  ;;  %1033 = vst.msk [vmem:[#allocation2 + $0x159] sm:$0xff] %vm593_vm1, %v14863_v56  ;;  %v932_v0 = vmul.f32 %v12363_v61, %v14650_v58  ;;  %v880_v2 = vpop.f32.mrb[29].mxu1  ;;  %v1110_v9 = vld [vmem:[#allocation2 + $0x111] sm:$0xff]  ;;  %v14879_v30 = vpack.c.bf16 %v1112_v63, %v1111_v21 }
 0x128   : > { %18113 = vst [vmem:[#allocation23_spill] sm:$0xff] %v14867_v59  ;;  %1031 = vst.msk [vmem:[#allocation2 + $0x141] sm:$0xff] %vm593_vm1, %v14867_v59  ;;  %v930_v16 = vmul.f32 %v14650_v58, %v880_v2  ;;  %v12364_v19 = vpop.f32.mrb[30].mxu1  ;;  %v14875_v20 = vpack.c.bf16 %v1110_v9, %v1109_v4  ;;  %v1038_v2 = vld [vmem:[#allocation2] sm:$0xff]  ;;  %v1039_v4 = vld [vmem:[#allocation2 + $0x8] sm:$0xff] }
 0x129   : > { %v971_v23 = vadd.f32 %v14655_v60, %v932_v0  ;;  %v933_v25 = vmul.f32 %v12364_v19, %v14650_v58  ;;  %v883_v29 = vpop.f32.mrb[31].mxu1  ;;  %v1070_v19 = vpack.c.bf16 %v1039_v4, %v1038_v2  ;;  %v1046_v2 = vld [vmem:[#allocation2 + $0x60] sm:$0xff] }
 0x12a   : > { %v969_v31 = vadd.f32 %v14655_v60, %v930_v16  ;;  %v931_v34 = vmul.f32 %v14650_v58, %v883_v29  ;;  %12388 = vmatmul.mubr.msk.bf16.gmra.mrb[52].mxu1 %vm593_vm1, %v14875_v20  ;;  %v1040_v29 = vld [vmem:[#allocation2 + $0x18] sm:$0xff] }
 0x12b   : > { %v14885_v35 = vmax.f32 %v971_v23, 0.0  ;;  %v972_v38 = vadd.f32 %v14655_v60, %v933_v25  ;;  %12391 = vmatprep.mubr.msk.bf16.mxu1 %vm593_vm1, %v14879_v30  ;;  %v1041_v23 = vld [vmem:[#allocation2 + $0x20] sm:$0xff]  ;;  %v1043_v25 = vld [vmem:[#allocation2 + $0x38] sm:$0xff] }
 0x12c   : > { %v14890_v40 = vmax.f32 %v969_v31, 0.0  ;;  %v970_v47 = vadd.f32 %v14655_v60, %v931_v34  ;;  %v1115_v63 = vld [vmem:[#allocation2 + $0x151] sm:$0xff]  ;;  %v14918_v31 = vpack.c.bf16 %v1041_v23, %v1040_v29  ;;  %v1658_v34 = vsel %vm730_vm0, %v14717_v43, 0  ;;  %v1047_v43 = vld [vmem:[#allocation2 + $0x68] sm:$0xff] }
 0x12d   : > { %18114 = vst [vmem:[#allocation24_spill] sm:$0xff] %v14885_v35  ;;  %1036 = vst.msk [vmem:[#allocation2 + $0x181] sm:$0xff] %vm593_vm1, %v14885_v35  ;;  %v14895_v49 = vmax.f32 %v972_v38, 0.0  ;;  %v1113_v55 = vld [vmem:[#allocation2 + $0x139] sm:$0xff]  ;;  %v1042_v38 = vld [vmem:[#allocation2 + $0x30] sm:$0xff]  ;;  %v14937_v4 = vpack.c.bf16 %v1047_v43, %v1046_v2 }
 0x12e   : > { %18115 = vst [vmem:[#allocation25_spill] sm:$0xff] %v14890_v40  ;;  %1034 = vst.msk [vmem:[#allocation2 + $0x169] sm:$0xff] %vm593_vm1, %v14890_v40  ;;  %v14899_v58 = vmax.f32 %v970_v47, 0.0  ;;  %v1116_v53 = vld [vmem:[#allocation2 + $0x159] sm:$0xff]  ;;  %v14922_v47 = vpack.c.bf16 %v1043_v25, %v1042_v38  ;;  %v1050_v25 = vld [vmem:[#allocation2 + $0x90] sm:$0xff] }
 0x12f   : > { %18116 = vst [vmem:[#allocation26_spill] sm:$0xff] %v14895_v49  ;;  %1037 = vst.msk [vmem:[#allocation2 + $0x189] sm:$0xff] %vm593_vm1, %v14895_v49  ;;  %v1114_v61 = vld [vmem:[#allocation2 + $0x141] sm:$0xff]  ;;  %v14907_v0 = vpack.c.bf16 %v1116_v53, %v1115_v63  ;;  %v14927_v53 = vld [vmem:[%s18008_s5 + $0xc] sm:$0xf] }
 0x130   : > { %18117 = vst [vmem:[#allocation27_spill] sm:$0xff] %v14899_v58  ;;  %1035 = vst.msk [vmem:[#allocation2 + $0x171] sm:$0xff] %vm593_vm1, %v14899_v58  ;;  %v14905_v60 = vpack.c.bf16 %v1114_v61, %v1113_v55  ;;  %v1045_v55 = vld [vmem:[#allocation2 + $0x50] sm:$0xff]  ;;  %v1044_v61 = vld [vmem:[#allocation2 + $0x48] sm:$0xff]  ;;  %v1951_v18 = vsel %vm730_vm0, %v14927_v53, 0 }
 0x131   : > { %v14935_v63 = vpack.c.bf16 %v1045_v55, %v1044_v61  ;;  %v1055_v38 = vld [vmem:[#allocation2 + $0xc8] sm:$0xff]  ;;  %v1054_v61 = vld [vmem:[#allocation2 + $0xc0] sm:$0xff]  ;;  %v1058_v35 = vld [vmem:[#allocation2 + $0xf0] sm:$0xff] }
 0x132   : > { %12392 = vmatmul.mubr.msk.bf16.gmra.mrb[56].mxu1 %vm593_vm1, %v14905_v60  ;;  %v1052_v55 = vld [vmem:[#allocation2 + $0xa8] sm:$0xff]  ;;  %v14953_v2 = vpack.c.bf16 %v1055_v38, %v1054_v61  ;;  %v1062_v40 = vld [vmem:[#allocation2 + $0x120] sm:$0xff]  ;;  %v1066_v54 = vld [vmem:[#allocation2 + $0x150] sm:$0xff] }
 0x133   : > { %12395 = vmatprep.mubr.msk.bf16.mxu1 %vm593_vm1, %v14907_v0  ;;  %v1063_v38 = vld [vmem:[#allocation2 + $0x128] sm:$0xff] }
 0x134   : > { %v14969_v58 = vpack.c.bf16 %v1063_v38, %v1062_v40  ;;  %v1560_v40 = vld [vmem:[#allocation2 + $0x2] sm:$0xff] }
 0x135   : > { %v1117_v9 = vld [vmem:[#allocation2 + $0x169] sm:$0xff] }
 0x137   : > { %v1118_v16 = vld [vmem:[#allocation2 + $0x171] sm:$0xff] }
 0x138   : > { %v14913_v21 = vpack.c.bf16 %v1118_v16, %v1117_v9  ;;  %v1049_v9 = vld [vmem:[#allocation2 + $0x80] sm:$0xff]  ;;  %v1051_v16 = vld [vmem:[#allocation2 + $0x98] sm:$0xff]  ;;  %v1069_v38 = vld [vmem:[#allocation2 + $0x170] sm:$0xff] }
 0x139   : > { %v14945_v29 = vpack.c.bf16 %v1051_v16, %v1050_v25  ;;  %v1059_v16 = vld [vmem:[#allocation2 + $0xf8] sm:$0xff] }
 0x13a   : > { %12396 = vmatmul.mubr.msk.bf16.gmra.mrb[60].mxu1 %vm593_vm1, %v14913_v21  ;;  %v14961_v49 = vpack.c.bf16 %v1059_v16, %v1058_v35  ;;  %v1065_v35 = vld [vmem:[#allocation2 + $0x140] sm:$0xff]  ;;  %v1064_v16 = vld [vmem:[#allocation2 + $0x138] sm:$0xff] }
 0x13b   : > { %12401 = vmatprep.mubr.msk.bf16.mxu1 %vm593_vm1, %v1070_v19  ;;  %v1048_v19 = vld [vmem:[#allocation2 + $0x78] sm:$0xff] }
 0x13c   : > { %v14943_v23 = vpack.c.bf16 %v1049_v9, %v1048_v19  ;;  %v1057_v9 = vld [vmem:[#allocation2 + $0xe0] sm:$0xff]  ;;  %v1056_v19 = vld [vmem:[#allocation2 + $0xd8] sm:$0xff] }
 0x13d   : > { %v14959_v25 = vpack.c.bf16 %v1057_v9, %v1056_v19  ;;  %v1067_v9 = vld [vmem:[#allocation2 + $0x158] sm:$0xff]  ;;  %v14975_v19 = vpack.c.bf16 %v1065_v35, %v1064_v16  ;;  %v1563_v35 = vld [vmem:[#allocation2 + $0x22] sm:$0xff] }
 0x13e   : > { %v14977_v59 = vpack.c.bf16 %v1067_v9, %v1066_v54  ;;  %v1562_v54 = vld [vmem:[#allocation2 + $0x1a] sm:$0xff]  ;;  %v1564_v9 = vld [vmem:[#allocation2 + $0x32] sm:$0xff] }
 0x13f   : > { %v1565_v16 = vld [vmem:[#allocation2 + $0x3a] sm:$0xff]  ;;  %v14988_v13 = vpack.c.bf16 %v1563_v35, %v1562_v54  ;;  %v1571_v35 = vld [vmem:[#allocation2 + $0x82] sm:$0xff] }
 0x140   : > { %v14992_v5 = vpack.c.bf16 %v1565_v16, %v1564_v9  ;;  %v1572_v9 = vld [vmem:[#allocation2 + $0x92] sm:$0xff]  ;;  %v1573_v16 = vld [vmem:[#allocation2 + $0x9a] sm:$0xff] }
 0x141   : > { %v15012_v39 = vpack.c.bf16 %v1573_v16, %v1572_v9  ;;  %v1580_v9 = vld [vmem:[#allocation2 + $0xf2] sm:$0xff]  ;;  %v1581_v16 = vld [vmem:[#allocation2 + $0xfa] sm:$0xff] }
 0x142   : > { %12402 = vmatmul.mubr.msk.bf16.vlgmr.msra.gmra.mrb[32].mxu1 %vm593_vm1, %v14918_v31  ;;  %v15028_v12 = vpack.c.bf16 %v1581_v16, %v1580_v9  ;;  %v1588_v9 = vld [vmem:[#allocation2 + $0x152] sm:$0xff]  ;;  %v1589_v16 = vld [vmem:[#allocation2 + $0x15a] sm:$0xff] }
 0x143   : > { %12434 = vmatpush3.bf16.msra.mxu1 %v1658_v34  ;;  %12405 = vmatprep.mubr.msk.bf16.mxu1 %vm593_vm1, %v14922_v47  ;;  %v1053_v34 = vld [vmem:[#allocation2 + $0xb0] sm:$0xff]  ;;  %v15044_v51 = vpack.c.bf16 %v1589_v16, %v1588_v9  ;;  %v2781_v16 = vld [vmem:[%s18008_s5 + $0x18] sm:$0xf] }
 0x144   : > { %14091 = vmatprep.subr.msk.bf16.mxu1 %vm730_vm0, %v14927_v53  ;;  %v14951_v43 = vpack.c.bf16 %v1053_v34, %v1052_v55  ;;  %v1061_v34 = vld [vmem:[#allocation2 + $0x110] sm:$0xff]  ;;  %v1060_v55 = vld [vmem:[#allocation2 + $0x108] sm:$0xff] }
 0x145   : > { %v14967_v61 = vpack.c.bf16 %v1061_v34, %v1060_v55  ;;  %v1561_v34 = vld [vmem:[#allocation2 + $0xa] sm:$0xff] }
 0x146   : > { %v1068_v55 = vld [vmem:[#allocation2 + $0x168] sm:$0xff]  ;;  %v1592_v52 = vpack.c.bf16 %v1561_v34, %v1560_v40  ;;  %v2194_v40 = vld [vmem:[%s18008_s5 + $0x10] sm:$0xf] }
 0x147   : > { %v14983_v56 = vpack.c.bf16 %v1069_v38, %v1068_v55  ;;  %v1567_v34 = vld [vmem:[#allocation2 + $0x52] sm:$0xff]  ;;  %v1568_v38 = vld [vmem:[#allocation2 + $0x62] sm:$0xff]  ;;  %v1569_v55 = vld [vmem:[#allocation2 + $0x6a] sm:$0xff] }
 0x148   : > { %v15004_v54 = vpack.c.bf16 %v1569_v55, %v1568_v38  ;;  %v1576_v38 = vld [vmem:[#allocation2 + $0xc2] sm:$0xff]  ;;  %v1577_v55 = vld [vmem:[#allocation2 + $0xca] sm:$0xff] }
 0x149   : > { %v15020_v37 = vpack.c.bf16 %v1577_v55, %v1576_v38  ;;  %v1584_v38 = vld [vmem:[#allocation2 + $0x122] sm:$0xff]  ;;  %v1585_v55 = vld [vmem:[#allocation2 + $0x12a] sm:$0xff] }
 0x14a   : > { %12406 = vmatmul.mubr.msk.bf16.gmra.mrb[36].mxu1 %vm593_vm1, %v14935_v63  ;;  %v15036_v14 = vpack.c.bf16 %v1585_v55, %v1584_v38  ;;  %v2244_v55 = vsel %vm730_vm0, %v2194_v40, 0 }
 0x14b   : > { %12409 = vmatprep.mubr.msk.bf16.mxu1 %vm593_vm1, %v14937_v4 }
 0x152   : > { %12410 = vmatmul.mubr.msk.bf16.gmra.mrb[40].mxu1 %vm593_vm1, %v14943_v23 }
 0x153   : > { %12413 = vmatprep.mubr.msk.bf16.mxu1 %vm593_vm1, %v14945_v29 }
 0x15a   : > { %12414 = vmatmul.mubr.msk.bf16.gmra.mrb[44].mxu1 %vm593_vm1, %v14951_v43 }
 0x15b   : > { %12417 = vmatprep.mubr.msk.bf16.mxu1 %vm593_vm1, %v14953_v2 }
 0x162   : > { %12418 = vmatmul.mubr.msk.bf16.gmra.mrb[48].mxu1 %vm593_vm1, %v14959_v25 }
 0x163   : > { %12421 = vmatprep.mubr.msk.bf16.mxu1 %vm593_vm1, %v14961_v49 }
 0x16a   : > { %12422 = vmatmul.mubr.msk.bf16.gmra.mrb[52].mxu1 %vm593_vm1, %v14967_v61 }
 0x16b   : > { %12425 = vmatprep.mubr.msk.bf16.mxu1 %vm593_vm1, %v14969_v58 }
 0x172   : > { %12426 = vmatmul.mubr.msk.bf16.gmra.mrb[56].mxu1 %vm593_vm1, %v14975_v19 }
 0x173   : > { %12429 = vmatprep.mubr.msk.bf16.mxu1 %vm593_vm1, %v14977_v59 }
 0x17a   : > { %12430 = vmatmul.mubr.msk.bf16.gmra.mrb[60].mxu1 %vm593_vm1, %v14983_v56 }
 0x17b   : > { %12435 = vmatprep.mubr.msk.bf16.mxu1 %vm593_vm1, %v1592_v52  ;;  %v1566_v52 = vld [vmem:[#allocation2 + $0x4a] sm:$0xff] }
 0x17c   : > { %v15002_v53 = vpack.c.bf16 %v1567_v34, %v1566_v52  ;;  %v1574_v52 = vld [vmem:[#allocation2 + $0xaa] sm:$0xff]  ;;  %v1575_v34 = vld [vmem:[#allocation2 + $0xb2] sm:$0xff] }
 0x17d   : > { %v15018_v44 = vpack.c.bf16 %v1575_v34, %v1574_v52  ;;  %v1582_v52 = vld [vmem:[#allocation2 + $0x10a] sm:$0xff]  ;;  %v1583_v34 = vld [vmem:[#allocation2 + $0x112] sm:$0xff] }
 0x17e   : > { %v15034_v15 = vpack.c.bf16 %v1583_v34, %v1582_v52  ;;  %v1590_v52 = vld [vmem:[#allocation2 + $0x16a] sm:$0xff]  ;;  %v1591_v34 = vld [vmem:[#allocation2 + $0x172] sm:$0xff] }
 0x17f   : > { %v15050_v38 = vpack.c.bf16 %v1591_v34, %v1590_v52  ;;  %v3035_v52 = vld [vmem:[#allocation2 + $0x99] sm:$0xff] }
 0x180   : > { %v3032_v34 = vld [vmem:[#allocation2 + $0x79] sm:$0xff] }
 0x182   : > { %12436 = vmatmul.mubr.msk.bf16.vlgmr.msra.gmra.mrb[32].mxu1 %vm593_vm1, %v14988_v13 }
 0x183   : > { %12468 = vmatpush3.bf16.msra.mxu1 %v1951_v18  ;;  %12439 = vmatprep.mubr.msk.bf16.mxu1 %vm593_vm1, %v14992_v5  ;;  %v1570_v18 = vld [vmem:[#allocation2 + $0x7a] sm:$0xff] }
 0x184   : > { %14092 = vmatprep.subr.msk.bf16.mxu1 %vm730_vm0, %v2194_v40  ;;  %v15010_v17 = vpack.c.bf16 %v1571_v35, %v1570_v18  ;;  %v1578_v18 = vld [vmem:[#allocation2 + $0xda] sm:$0xff]  ;;  %v1579_v35 = vld [vmem:[#allocation2 + $0xe2] sm:$0xff] }
 0x185   : > { %v15026_v41 = vpack.c.bf16 %v1579_v35, %v1578_v18  ;;  %v1586_v18 = vld [vmem:[#allocation2 + $0x13a] sm:$0xff]  ;;  %v1587_v35 = vld [vmem:[#allocation2 + $0x142] sm:$0xff] }
 0x186   : > { %v15042_v7 = vpack.c.bf16 %v1587_v35, %v1586_v18  ;;  %v2487_v18 = vld [vmem:[%s18008_s5 + $0x14] sm:$0xf]  ;;  %v1883_v40 = vld [vmem:[#allocation2 + $0x180] sm:$0xff] }
 0x187   : > { %v2537_v9 = vsel %vm730_vm0, %v2487_v18, 0 }
 0x18a   : > { %12440 = vmatmul.mubr.msk.bf16.gmra.mrb[36].mxu1 %vm593_vm1, %v15002_v53 }
 0x18b   : > { %12443 = vmatprep.mubr.msk.bf16.mxu1 %vm593_vm1, %v15004_v54 }
 0x192   : > { %12444 = vmatmul.mubr.msk.bf16.gmra.mrb[40].mxu1 %vm593_vm1, %v15010_v17 }
 0x193   : > { %12447 = vmatprep.mubr.msk.bf16.mxu1 %vm593_vm1, %v15012_v39 }
 0x19a   : > { %12448 = vmatmul.mubr.msk.bf16.gmra.mrb[44].mxu1 %vm593_vm1, %v15018_v44 }
 0x19b   : > { %12451 = vmatprep.mubr.msk.bf16.mxu1 %vm593_vm1, %v15020_v37 }
 0x1a2   : > { %12452 = vmatmul.mubr.msk.bf16.gmra.mrb[48].mxu1 %vm593_vm1, %v15026_v41 }
 0x1a3   : > { %12455 = vmatprep.mubr.msk.bf16.mxu1 %vm593_vm1, %v15028_v12 }
 0x1aa   : > { %12456 = vmatmul.mubr.msk.bf16.gmra.mrb[52].mxu1 %vm593_vm1, %v15034_v15 }
 0x1ab   : > { %12459 = vmatprep.mubr.msk.bf16.mxu1 %vm593_vm1, %v15036_v14 }
 0x1b2   : > { %12460 = vmatmul.mubr.msk.bf16.gmra.mrb[56].mxu1 %vm593_vm1, %v15042_v7 }
 0x1b3   : > { %12463 = vmatprep.mubr.msk.bf16.mxu1 %vm593_vm1, %v15044_v51 }
 0x1ba   : > { %12464 = vmatmul.mubr.msk.bf16.gmra.mrb[60].mxu1 %vm593_vm1, %v15050_v38 }
 0x1bb   : > { %12469 = vmatprep.mubr.msk.bf16.mxu1 %vm593_vm1, %v14918_v31  ;;  %v1884_v31 = vld [vmem:[#allocation2 + $0x188] sm:$0xff] }
 0x1bc   : > { %v15089_v35 = vpack.c.bf16 %v1884_v31, %v1883_v40  ;;  %v15242_v31 = vld [vmem:[%s14427_s17 + $0x28] sm:$0xff]  ;;  %v15247_v40 = vld [vmem:[%s14427_s17 + $0x40] sm:$0xff] }
 0x1c2   : > { %12470 = vmatmul.mubr.msk.bf16.vlgmr.msra.gmra.mrb[32].mxu1 %vm593_vm1, %v14922_v47 }
 0x1c3   : > { %12502 = vmatpush3.bf16.msra.mxu1 %v2244_v55  ;;  %12473 = vmatprep.mubr.msk.bf16.mxu1 %vm593_vm1, %v14935_v63 }
 0x1c4   : > { %14093 = vmatprep.subr.msk.bf16.mxu1 %vm730_vm0, %v2487_v18  ;;  %v3034_v18 = vld [vmem:[#allocation2 + $0x91] sm:$0xff] }
 0x1ca   : > { %12474 = vmatmul.mubr.msk.bf16.gmra.mrb[36].mxu1 %vm593_vm1, %v14937_v4 }
 0x1cb   : > { %12477 = vmatprep.mubr.msk.bf16.mxu1 %vm593_vm1, %v14943_v23 }
 0x1d2   : > { %12478 = vmatmul.mubr.msk.bf16.gmra.mrb[40].mxu1 %vm593_vm1, %v14945_v29 }
 0x1d3   : > { %12481 = vmatprep.mubr.msk.bf16.mxu1 %vm593_vm1, %v14951_v43 }
 0x1da   : > { %12482 = vmatmul.mubr.msk.bf16.gmra.mrb[44].mxu1 %vm593_vm1, %v14953_v2 }
 0x1db   : > { %12485 = vmatprep.mubr.msk.bf16.mxu1 %vm593_vm1, %v14959_v25 }
 0x1e2   : > { %12486 = vmatmul.mubr.msk.bf16.gmra.mrb[48].mxu1 %vm593_vm1, %v14961_v49 }
 0x1e3   : > { %12489 = vmatprep.mubr.msk.bf16.mxu1 %vm593_vm1, %v14967_v61 }
 0x1ea   : > { %12490 = vmatmul.mubr.msk.bf16.gmra.mrb[52].mxu1 %vm593_vm1, %v14969_v58 }
 0x1eb   : > { %12493 = vmatprep.mubr.msk.bf16.mxu1 %vm593_vm1, %v14975_v19 }
 0x1f2   : > { %12494 = vmatmul.mubr.msk.bf16.gmra.mrb[56].mxu1 %vm593_vm1, %v14977_v59 }
 0x1f3   : > { %12497 = vmatprep.mubr.msk.bf16.mxu1 %vm593_vm1, %v14983_v56 }
 0x1fa   : > { %12498 = vmatmul.mubr.msk.bf16.gmra.mrb[60].mxu1 %vm593_vm1, %v15089_v35 }
 0x1fb   : > { %12503 = vmatprep.mubr.msk.bf16.mxu1 %vm593_vm1, %v14707_v36  ;;  %v2177_v36 = vld [vmem:[#allocation2 + $0x189] sm:$0xff] }
 0x202   : > { %12504 = vmatmul.mubr.msk.bf16.vlgmr.msra.gmra.mrb[32].mxu1 %vm593_vm1, %v14712_v42  ;;  %v2176_v42 = vld [vmem:[#allocation2 + $0x181] sm:$0xff] }
 0x203   : > { %12536 = vmatpush3.bf16.msra.mxu1 %v2537_v9  ;;  %12507 = vmatprep.mubr.msk.bf16.mxu1 %vm593_vm1, %v14747_v62  ;;  %v15128_v62 = vpack.c.bf16 %v2177_v36, %v2176_v42  ;;  %v15254_v9 = vld [vmem:[%s14427_s17 + $0x38] sm:$0xff]  ;;  %v3039_v42 = vld [vmem:[#allocation2 + $0xc9] sm:$0xff] }
 0x204   : > { %14094 = vmatprep.subr.msk.bf16.mxu1 %vm730_vm0, %v2781_v16  ;;  %v3037_v36 = vld [vmem:[#allocation2 + $0xb1] sm:$0xff] }
 0x20a   : > { %12508 = vmatmul.mubr.msk.bf16.gmra.mrb[36].mxu1 %vm593_vm1, %v14751_v3  ;;  %v2831_v3 = vsel %vm730_vm0, %v2781_v16, 0  ;;  %v15259_v16 = vld [vmem:[%s14427_s17 + $0x50] sm:$0xff] }
 0x20b   : > { %12511 = vmatprep.mubr.msk.bf16.mxu1 %vm593_vm1, %v14779_v28  ;;  %v3074_v28 = vld [vmem:[%s18008_s5 + $0x1c] sm:$0xf] }
 0x212   : > { %12512 = vmatmul.mubr.msk.bf16.gmra.mrb[40].mxu1 %vm593_vm1, %v14783_v33  ;;  %v2469_v33 = vld [vmem:[#allocation2 + $0x182] sm:$0xff] }
 0x213   : > { %12515 = vmatprep.mubr.msk.bf16.mxu1 %vm593_vm1, %v14811_v57  ;;  %v2470_v57 = vld [vmem:[#allocation2 + $0x18a] sm:$0xff] }
 0x21a   : > { %12516 = vmatmul.mubr.msk.bf16.gmra.mrb[44].mxu1 %vm593_vm1, %v14815_v1  ;;  %v15167_v1 = vpack.c.bf16 %v2470_v57, %v2469_v33  ;;  %v3038_v33 = vld [vmem:[#allocation2 + $0xc1] sm:$0xff] }
 0x21b   : > { %12519 = vmatprep.mubr.msk.bf16.mxu1 %vm593_vm1, %v14843_v32  ;;  %v3367_v32 = vld [vmem:[%s18008_s5 + $0x20] sm:$0xf]  ;;  %v15264_v57 = vld [vmem:[%s14427_s17 + $0x48] sm:$0xff] }
 0x222   : > { %12520 = vmatmul.mubr.msk.bf16.gmra.mrb[48].mxu1 %vm593_vm1, %v14847_v45  ;;  %v2763_v45 = vld [vmem:[#allocation2 + $0x198] sm:$0xff] }
 0x223   : > { %12523 = vmatprep.mubr.msk.bf16.mxu1 %vm593_vm1, %v14875_v20  ;;  %v2764_v20 = vld [vmem:[#allocation2 + $0x1a0] sm:$0xff] }
 0x22a   : > { %12524 = vmatmul.mubr.msk.bf16.gmra.mrb[52].mxu1 %vm593_vm1, %v14879_v30  ;;  %v2780_v30 = vpack.c.bf16 %v2764_v20, %v2763_v45  ;;  %v15276_v45 = vld [vmem:[%s14427_s17 + $0x58] sm:$0xff]  ;;  %v3041_v20 = vld [vmem:[#allocation2 + $0xe1] sm:$0xff] }
 0x22b   : > { %12527 = vmatprep.mubr.msk.bf16.mxu1 %vm593_vm1, %v14905_v60  ;;  %v3026_v60 = vld [vmem:[#allocation2 + $0x31] sm:$0xff] }
 0x232   : > { %12528 = vmatmul.mubr.msk.bf16.gmra.mrb[56].mxu1 %vm593_vm1, %v14907_v0  ;;  %v15209_v0 = vld [vmem:[%s14427_s17] sm:$0xff] }
 0x233   : > { %12531 = vmatprep.mubr.msk.bf16.mxu1 %vm593_vm1, %v14913_v21  ;;  %4202 = vrot.lane.b32.xlu1 %v15209_v0, %s14309_s26  ;;  %v3031_v21 = vld [vmem:[#allocation2 + $0x69] sm:$0xff] }
 0x23a   : > { %12532 = vmatmul.mubr.msk.bf16.gmra.mrb[60].mxu1 %vm593_vm1, %v15128_v62 }
 0x23b   : > { %12537 = vmatprep.mubr.msk.bf16.mxu1 %vm593_vm1, %v14988_v13  ;;  %v3124_v13 = vsel %vm730_vm0, %v3074_v28, 0 }
 0x242   : > { %12538 = vmatmul.mubr.msk.bf16.vlgmr.msra.gmra.mrb[32].mxu1 %vm593_vm1, %v14992_v5 }
 0x243   : > { %12570 = vmatpush3.bf16.msra.mxu1 %v2831_v3  ;;  %12541 = vmatprep.mubr.msk.bf16.mxu1 %vm593_vm1, %v15002_v53  ;;  %v3036_v3 = vld [vmem:[#allocation2 + $0xa9] sm:$0xff] }
 0x244   : > { %14095 = vmatprep.subr.msk.bf16.mxu1 %vm730_vm0, %v3074_v28  ;;  %v3063_v28 = vpack.c.bf16 %v3037_v36, %v3036_v3  ;;  %v3052_v3 = vld [vmem:[#allocation2 + $0x169] sm:$0xff] }
 0x24a   : > { %12542 = vmatmul.mubr.msk.bf16.gmra.mrb[36].mxu1 %vm593_vm1, %v15004_v54 }
 0x24b   : > { %12545 = vmatprep.mubr.msk.bf16.mxu1 %vm593_vm1, %v15010_v17 }
 0x252   : > { %12546 = vmatmul.mubr.msk.bf16.gmra.mrb[40].mxu1 %vm593_vm1, %v15012_v39 }
 0x253   : > { %12549 = vmatprep.mubr.msk.bf16.mxu1 %vm593_vm1, %v15018_v44 }
 0x25a   : > { %12550 = vmatmul.mubr.msk.bf16.gmra.mrb[44].mxu1 %vm593_vm1, %v15020_v37 }
 0x25b   : > { %12553 = vmatprep.mubr.msk.bf16.mxu1 %vm593_vm1, %v15026_v41 }
 0x262   : > { %12554 = vmatmul.mubr.msk.bf16.gmra.mrb[48].mxu1 %vm593_vm1, %v15028_v12 }
 0x263   : > { %12557 = vmatprep.mubr.msk.bf16.mxu1 %vm593_vm1, %v15034_v15 }
 0x26a   : > { %12558 = vmatmul.mubr.msk.bf16.gmra.mrb[52].mxu1 %vm593_vm1, %v15036_v14 }
 0x26b   : > { %12561 = vmatprep.mubr.msk.bf16.mxu1 %vm593_vm1, %v15042_v7 }
 0x272   : > { %12562 = vmatmul.mubr.msk.bf16.gmra.mrb[56].mxu1 %vm593_vm1, %v15044_v51 }
 0x273   : > { %12565 = vmatprep.mubr.msk.bf16.mxu1 %vm593_vm1, %v15050_v38 }
 0x27a   : > { %12566 = vmatmul.mubr.msk.bf16.gmra.mrb[60].mxu1 %vm593_vm1, %v15167_v1 }
 0x27b   : > { %12571 = vmatprep.mubr.msk.bf16.mxu1 %vm593_vm1, %v14922_v47  ;;  %v3028_v47 = vld [vmem:[#allocation2 + $0x49] sm:$0xff] }
 0x282   : > { %12572 = vmatmul.mubr.msk.bf16.vlgmr.msra.gmra.mrb[32].mxu1 %vm593_vm1, %v14935_v63  ;;  %v15219_v63 = vld [vmem:[%s14427_s17 + $0x8] sm:$0xff] }
 0x283   : > { %12604 = vmatpush3.bf16.msra.mxu1 %v3124_v13  ;;  %12575 = vmatprep.mubr.msk.bf16.mxu1 %vm593_vm1, %v14937_v4  ;;  %v15269_v13 = vld [vmem:[%s14427_s17 + $0x60] sm:$0xff] }
 0x284   : > { %14096 = vmatprep.subr.msk.bf16.mxu1 %vm730_vm0, %v3367_v32  ;;  %4204 = vrot.lane.b32.xlu1 %v15219_v63, %s14309_s26 }
 0x28a   : > { %12576 = vmatmul.mubr.msk.bf16.gmra.mrb[36].mxu1 %vm593_vm1, %v14943_v23  ;;  %v3417_v23 = vsel %vm730_vm0, %v3367_v32, 0  ;;  %v3064_v32 = vpack.c.bf16 %v3039_v42, %v3038_v33  ;;  %v3053_v42 = vld [vmem:[#allocation2 + $0x171] sm:$0xff] }
 0x28b   : > { %12579 = vmatprep.mubr.msk.bf16.mxu1 %vm593_vm1, %v14945_v29  ;;  %v3030_v29 = vld [vmem:[#allocation2 + $0x61] sm:$0xff]  ;;  %v15318_v33 = vld [vmem:[%s14427_s17 + $0x70] sm:$0xff] }
 0x292   : > { %12580 = vmatmul.mubr.msk.bf16.gmra.mrb[40].mxu1 %vm593_vm1, %v14951_v43  ;;  %v15225_v43 = vld [vmem:[%s14427_s17 + $0x20] sm:$0xff] }
 0x293   : > { %12583 = vmatprep.mubr.msk.bf16.mxu1 %vm593_vm1, %v14953_v2  ;;  %v3060_v2 = vpack.c.bf16 %v3031_v21, %v3030_v29 }
 0x29a   : > { %12584 = vmatmul.mubr.msk.bf16.gmra.mrb[44].mxu1 %vm593_vm1, %v14959_v25  ;;  %v15232_v25 = vld [vmem:[%s14427_s17 + $0x18] sm:$0xff] }
 0x29b   : > { %12587 = vmatprep.mubr.msk.bf16.mxu1 %vm593_vm1, %v14961_v49  ;;  %v3027_v49 = vld [vmem:[#allocation2 + $0x39] sm:$0xff]  ;;  %4208 = vrot.lane.b32.xlu1 %v15232_v25, %s14309_s26 }
 0x29f   : > { %4212 = vrot.lane.b32.xlu1 %v15242_v31, %s14309_s26 }
 0x2a2   : > { %12588 = vmatmul.mubr.msk.bf16.gmra.mrb[48].mxu1 %vm593_vm1, %v14967_v61  ;;  %v15237_v61 = vld [vmem:[%s14427_s17 + $0x30] sm:$0xff] }
 0x2a3   : > { %12591 = vmatprep.mubr.msk.bf16.mxu1 %vm593_vm1, %v14969_v58  ;;  %v3058_v58 = vpack.c.bf16 %v3027_v49, %v3026_v60  ;;  %4216 = vrot.lane.b32.xlu1 %v15254_v9, %s14309_s26  ;;  %v3040_v49 = vld [vmem:[#allocation2 + $0xd9] sm:$0xff] }
 0x2a4   : > { %v3065_v60 = vpack.c.bf16 %v3041_v20, %v3040_v49  ;;  %v3057_v20 = vld [vmem:[#allocation2 + $0x1a1] sm:$0xff] }
 0x2a7   : > { %4220 = vrot.lane.b32.xlu1 %v15264_v57, %s14309_s26 }
 0x2aa   : > { %12592 = vmatmul.mubr.msk.bf16.gmra.mrb[52].mxu1 %vm593_vm1, %v14975_v19  ;;  %v3033_v19 = vld [vmem:[#allocation2 + $0x81] sm:$0xff] }
 0x2ab   : > { %12595 = vmatprep.mubr.msk.bf16.mxu1 %vm593_vm1, %v14977_v59  ;;  %v3029_v59 = vld [vmem:[#allocation2 + $0x51] sm:$0xff]  ;;  %v3061_v55 = vpack.c.bf16 %v3033_v19, %v3032_v34  ;;  %4224 = vrot.lane.b32.xlu1 %v15276_v45, %s14309_s26  ;;  %v3051_v34 = vld [vmem:[#allocation2 + $0x159] sm:$0xff] }
 0x2ac   : > { %v3059_v4 = vpack.c.bf16 %v3029_v59, %v3028_v47  ;;  %v15283_v59 = vld [vmem:[%s14427_s17 + $0x68] sm:$0xff]  ;;  %v3045_v47 = vld [vmem:[#allocation2 + $0x111] sm:$0xff] }
 0x2af   : > { %4228 = vrot.lane.b32.xlu1 %v15283_v59, %s14309_s26 }
 0x2b2   : > { %12596 = vmatmul.mubr.msk.bf16.gmra.mrb[56].mxu1 %vm593_vm1, %v14983_v56  ;;  %v15214_v56 = vld [vmem:[%s14427_s17 + $0x10] sm:$0xff] }
 0x2b3   : > { %12599 = vmatprep.mubr.msk.bf16.mxu1 %vm593_vm1, %v15089_v35  ;;  %4206 = vrot.lane.b32.xlu0 %v15214_v56, %s14309_s26  ;;  %v3062_v35 = vpack.c.bf16 %v3035_v52, %v3034_v18  ;;  %v3049_v52 = vld [vmem:[#allocation2 + $0x141] sm:$0xff] }
 0x2b4   : > { %3948 = vrot.lane.b32.xlu1 %v15219_v63, %s14310_s15 }
 0x2b7   : > { %4210 = vrot.lane.b32.xlu0 %v15225_v43, %s14309_s26 }
 0x2b8   : > { %3952 = vrot.lane.b32.xlu1 %v15232_v25, %s14310_s15 }
 0x2ba   : > { %12600 = vmatmul.mubr.msk.bf16.gmra.mrb[60].mxu1 %vm593_vm1, %v2780_v30  ;;  %v3043_v30 = vld [vmem:[#allocation2 + $0xf9] sm:$0xff] }
 0x2bb   : > { %12605 = vmatprep.mubr.msk.bf16.mxu1 %vm593_vm1, %v3058_v58  ;;  %4214 = vrot.lane.b32.xlu0 %v15237_v61, %s14309_s26  ;;  %v3042_v58 = vld [vmem:[#allocation2 + $0xf1] sm:$0xff] }
 0x2bc   : > { %v3066_v21 = vpack.c.bf16 %v3043_v30, %v3042_v58  ;;  %3956 = vrot.lane.b32.xlu1 %v15242_v31, %s14310_s15  ;;  %v15328_v30 = vld [vmem:[%s14427_s17 + $0x80] sm:$0xff]  ;;  %v15346_v58 = vld [vmem:[%s14427_s17 + $0x88] sm:$0xff] }
 0x2bf   : > { %4218 = vrot.lane.b32.xlu0 %v15247_v40, %s14309_s26 }
 0x2c0   : > { %3960 = vrot.lane.b32.xlu1 %v15254_v9, %s14310_s15 }
 0x2c2   : > { %12606 = vmatmul.mubr.msk.bf16.vlgmr.msra.gmra.mrb[32].mxu1 %vm593_vm1, %v3059_v4  ;;  %v3047_v4 = vld [vmem:[#allocation2 + $0x129] sm:$0xff] }
 0x2c3   : > { %12638 = vmatpush3.bf16.msra.mxu1 %v3417_v23  ;;  %12609 = vmatprep.mubr.msk.bf16.mxu1 %vm593_vm1, %v3060_v2  ;;  %v3044_v23 = vld [vmem:[#allocation2 + $0x109] sm:$0xff]  ;;  %v3046_v2 = vld [vmem:[#allocation2 + $0x121] sm:$0xff] }
 0x2c4   : > { %4222 = vrot.lane.b32.xlu0 %v15259_v16, %s14309_s26  ;;  %v3067_v29 = vpack.c.bf16 %v3045_v47, %v3044_v23  ;;  %v3068_v19 = vpack.c.bf16 %v3047_v4, %v3046_v2  ;;  %3964 = vrot.lane.b32.xlu1 %v15264_v57, %s14310_s15  ;;  %v15356_v47 = vld [vmem:[%s14427_s17 + $0x98] sm:$0xff]  ;;  %v15361_v4 = vld [vmem:[%s14427_s17 + $0xb0] sm:$0xff] }
 0x2c5   : > { %v15375_v23 = vld [vmem:[%s14427_s17 + $0xc0] sm:$0xff] }
 0x2c6   : > { %v15399_v2 = vld [vmem:[%s14427_s17 + $0xe0] sm:$0xff] }
 0x2c8   : > { %4226 = vrot.lane.b32.xlu0 %v15269_v13, %s14309_s26  ;;  %3968 = vrot.lane.b32.xlu1 %v15276_v45, %s14310_s15 }
 0x2ca   : > { %12610 = vmatmul.mubr.msk.bf16.gmra.mrb[36].mxu1 %vm593_vm1, %v3061_v55  ;;  %v3048_v55 = vld [vmem:[#allocation2 + $0x139] sm:$0xff] }
 0x2cb   : > { %12613 = vmatprep.mubr.msk.bf16.mxu1 %vm593_vm1, %v3062_v35  ;;  %v3069_v18 = vpack.c.bf16 %v3049_v52, %v3048_v55  ;;  %v3050_v35 = vld [vmem:[#allocation2 + $0x151] sm:$0xff] }
 0x2cc   : > { %3946 = vrot.lane.b32.xlu0 %v15209_v0, %s14310_s15  ;;  %v3070_v36 = vpack.c.bf16 %v3051_v34, %v3050_v35  ;;  %3972 = vrot.lane.b32.xlu1 %v15283_v59, %s14310_s15  ;;  %v15467_v34 = vld [vmem:[%s18009_s6] ss:$0 sm:$0xff] }
 0x2cd   : > { %v15474_v35 = vld [vmem:[%s18010_s7] ss:$0 sm:$0xff] }
 0x2d0   : > { %3950 = vrot.lane.b32.xlu0 %v15214_v56, %s14310_s15 }
 0x2d2   : > { %12614 = vmatmul.mubr.msk.bf16.gmra.mrb[40].mxu1 %vm593_vm1, %v3063_v28  ;;  %v3071_v28 = vpack.c.bf16 %v3053_v42, %v3052_v3 }
 0x2d3   : > { %12617 = vmatprep.mubr.msk.bf16.mxu1 %vm593_vm1, %v3064_v32  ;;  %v3056_v32 = vld [vmem:[#allocation2 + $0x199] sm:$0xff] }
 0x2d4   : > { %3954 = vrot.lane.b32.xlu0 %v15225_v43, %s14310_s15  ;;  %v3073_v49 = vpack.c.bf16 %v3057_v20, %v3056_v32 }
 0x2d8   : > { %3958 = vrot.lane.b32.xlu0 %v15237_v61, %s14310_s15 }
 0x2da   : > { %12618 = vmatmul.mubr.msk.bf16.gmra.mrb[44].mxu1 %vm593_vm1, %v3065_v60  ;;  %v15333_v60 = vld [vmem:[%s14427_s17 + $0x78] sm:$0xff] }
 0x2db   : > { %12621 = vmatprep.mubr.msk.bf16.mxu1 %vm593_vm1, %v3066_v21  ;;  %3976 = vrot.lane.b32.xlu1 %v15333_v60, %s14310_s15  ;;  %v15351_v21 = vld [vmem:[%s14427_s17 + $0xa0] sm:$0xff] }
 0x2dc   : > { %3962 = vrot.lane.b32.xlu0 %v15247_v40, %s14310_s15  ;;  %18118 = vst [vmem:[#allocation28_spill] sm:$0xff] %v15351_v21 }
 0x2df   : > { %3980 = vrot.lane.b32.xlu1 %v15346_v58, %s14310_s15 }
 0x2e0   : > { %3966 = vrot.lane.b32.xlu0 %v15259_v16, %s14310_s15 }
 0x2e2   : > { %12622 = vmatmul.mubr.msk.bf16.gmra.mrb[48].mxu1 %vm593_vm1, %v3067_v29  ;;  %v15380_v29 = vld [vmem:[%s14427_s17 + $0xb8] sm:$0xff] }
 0x2e3   : > { %12625 = vmatprep.mubr.msk.bf16.mxu1 %vm593_vm1, %v3068_v19  ;;  %3984 = vrot.lane.b32.xlu1 %v15356_v47, %s14310_s15  ;;  %v15404_v19 = vld [vmem:[%s14427_s17 + $0xd8] sm:$0xff] }
 0x2e4   : > { %3970 = vrot.lane.b32.xlu0 %v15269_v13, %s14310_s15 }
 0x2e8   : > { %3974 = vrot.lane.b32.xlu0 %v15318_v33, %s14310_s15 }
 0x2ea   : > { %12626 = vmatmul.mubr.msk.bf16.gmra.mrb[52].mxu1 %vm593_vm1, %v3069_v18 }
 0x2eb   : > { %12629 = vmatprep.mubr.msk.bf16.mxu1 %vm593_vm1, %v3070_v36 }
 0x2ec   : > { %3978 = vrot.lane.b32.xlu0 %v15328_v30, %s14310_s15 }
 0x2f2   : > { %12630 = vmatmul.mubr.msk.bf16.gmra.mrb[56].mxu1 %vm593_vm1, %v3071_v28 }
 0x2f3   : > { %12633 = vmatprep.mubr.msk.bf16.mxu1 %vm593_vm1, %v15128_v62  ;;  %v15338_v62 = vld [vmem:[%s14427_s17 + $0x90] sm:$0xff] }
 0x2f4   : > { %3982 = vrot.lane.b32.xlu0 %v15338_v62, %s14310_s15 }
 0x2f8   : > { %3986 = vrot.lane.b32.xlu0 %v15351_v21, %s14310_s15 }
 0x2fa   : > { %12634 = vmatmul.mubr.msk.bf16.gmra.mrb[60].mxu1 %vm593_vm1, %v3073_v49 }
 0x2fb   : > { %12639 = vmatprep.mubr.msk.bf16.mxu1 %vm593_vm1, %v14992_v5  ;;  %v15370_v5 = vld [vmem:[%s14427_s17 + $0xa8] sm:$0xff] }
 0x2fc   : > { %3990 = vrot.lane.b32.xlu0 %v15361_v4, %s14310_s15  ;;  %18119 = vst [vmem:[#allocation29_spill] sm:$0xff] %v15370_v5  ;;  %3988 = vrot.lane.b32.xlu1 %v15370_v5, %s14310_s15 }
 0x300   : > { %3994 = vrot.lane.b32.xlu0 %v15375_v23, %s14310_s15  ;;  %3992 = vrot.lane.b32.xlu1 %v15380_v29, %s14310_s15 }
 0x302   : > { %12640 = vmatmul.mubr.msk.bf16.vlgmr.msra.gmra.mrb[32].mxu1 %vm593_vm1, %v15002_v53  ;;  %v15385_v53 = vld [vmem:[%s14427_s17 + $0xd0] sm:$0xff] }
 0x303   : > { %12643 = vmatprep.mubr.msk.bf16.mxu1 %vm593_vm1, %v15004_v54  ;;  %v15394_v54 = vld [vmem:[%s14427_s17 + $0xc8] sm:$0xff] }
 0x304   : > { %3998 = vrot.lane.b32.xlu0 %v15385_v53, %s14310_s15  ;;  %3996 = vrot.lane.b32.xlu1 %v15394_v54, %s14310_s15 }
 0x308   : > { %4002 = vrot.lane.b32.xlu0 %v15399_v2, %s14310_s15  ;;  %4000 = vrot.lane.b32.xlu1 %v15404_v19, %s14310_s15 }
 0x30a   : > { %12644 = vmatmul.mubr.msk.bf16.gmra.mrb[36].mxu1 %vm593_vm1, %v15010_v17 }
 0x30b   : > { %12647 = vmatprep.mubr.msk.bf16.mxu1 %vm593_vm1, %v15012_v39  ;;  %v15415_v39 = vld [vmem:[%s14427_s17 + $0xe8] sm:$0xff] }
 0x30c   : > { %4230 = vrot.lane.b32.xlu0 %v15318_v33, %s14309_s26  ;;  %4004 = vrot.lane.b32.xlu1 %v15415_v39, %s14310_s15 }
 0x310   : > { %4234 = vrot.lane.b32.xlu0 %v15328_v30, %s14309_s26  ;;  %4232 = vrot.lane.b32.xlu1 %v15333_v60, %s14309_s26 }
 0x312   : > { %12648 = vmatmul.mubr.msk.bf16.gmra.mrb[40].mxu1 %vm593_vm1, %v15018_v44 }
 0x313   : > { %12651 = vmatprep.mubr.msk.bf16.mxu1 %vm593_vm1, %v15020_v37  ;;  %v3350_v37 = vld [vmem:[#allocation2 + $0x1a2] sm:$0xff] }
 0x314   : > { %4238 = vrot.lane.b32.xlu0 %v15338_v62, %s14309_s26  ;;  %4236 = vrot.lane.b32.xlu1 %v15346_v58, %s14309_s26 }
 0x318   : > { %4240 = vrot.lane.b32.xlu1 %v15356_v47, %s14309_s26 }
 0x31a   : > { %12652 = vmatmul.mubr.msk.bf16.gmra.mrb[44].mxu1 %vm593_vm1, %v15026_v41 }
 0x31b   : > { %12655 = vmatprep.mubr.msk.bf16.mxu1 %vm593_vm1, %v15028_v12  ;;  %v3349_v12 = vld [vmem:[#allocation2 + $0x19a] sm:$0xff] }
 0x31c   : > { %v3366_v41 = vpack.c.bf16 %v3350_v37, %v3349_v12 }
 0x322   : > { %12656 = vmatmul.mubr.msk.bf16.gmra.mrb[48].mxu1 %vm593_vm1, %v15034_v15  ;;  %v15446_v15 = vpop.permute.xlu1 %4202 }
 0x323   : > { %12659 = vmatprep.mubr.msk.bf16.mxu1 %vm593_vm1, %v15036_v14 }
 0x325   : > { %v15450_v44 = vpop.permute.xlu0 %4206 }
 0x326   : > { %v15448_v14 = vpop.permute.xlu1 %4204 }
 0x32a   : > { %12660 = vmatmul.mubr.msk.bf16.gmra.mrb[52].mxu1 %vm593_vm1, %v15042_v7  ;;  %v15452_v7 = vpop.permute.xlu1 %4208 }
 0x32b   : > { %12663 = vmatprep.mubr.msk.bf16.mxu1 %vm593_vm1, %v15044_v51  ;;  %v15454_v51 = vpop.permute.xlu0 %4210 }
 0x32e   : > { %v15456_v17 = vpop.permute.xlu1 %4212 }
 0x332   : > { %12664 = vmatmul.mubr.msk.bf16.gmra.mrb[56].mxu1 %vm593_vm1, %v15050_v38  ;;  %v15458_v38 = vpop.permute.xlu0 %4214 }
 0x333   : > { %12667 = vmatprep.mubr.msk.bf16.mxu1 %vm593_vm1, %v15167_v1  ;;  %v15460_v1 = vpop.permute.xlu1 %4216 }
 0x336   : > { %v15462_v52 = vpop.permute.xlu0 %4218 }
 0x337   : > { %18120 = vst [vmem:[#allocation30_spill] sm:$0xff] %v15462_v52  ;;  %v15469_v55 = vpop.permute.xlu1 %4220 }
 0x338   : > { %18121 = vst [vmem:[#allocation31_spill] sm:$0xff] %v15469_v55 }
 0x33a   : > { %12668 = vmatmul.mubr.msk.bf16.gmra.mrb[60].mxu1 %vm593_vm1, %v3366_v41  ;;  %v15480_v12 = vpop.permute.xlu0 %4222 }
 0x33b   : > { %18122 = vst [vmem:[#allocation32_spill] sm:$0xff] %v15480_v12  ;;  %v15485_v48 = vpop.permute.xlu1 %4224 }
 0x3d5   : > { %v12641_v18 = vpop.f32.mrb[32].mxu1 }
 0x3d6   : > { %v3621_v36 = vmul.f32 %v12641_v18, %v15467_v34  ;;  %v3453_v42 = vpop.f32.mrb[33].mxu1 }
 0x3d7   : > { %v3619_v3 = vmul.f32 %v15467_v34, %v3453_v42  ;;  %v12642_v28 = vpop.f32.mrb[34].mxu1 }
 0x3d8   : > { %v3660_v32 = vadd.f32 %v15474_v35, %v3621_v36  ;;  %v3622_v20 = vmul.f32 %v12642_v28, %v15467_v34  ;;  %v3456_v49 = vpop.f32.mrb[35].mxu1 }
 0x3d9   : > { %v3658_v37 = vadd.f32 %v15474_v35, %v3619_v3  ;;  %v3620_v41 = vmul.f32 %v15467_v34, %v3456_v49 }
 0x3da   : > { %v3692_v55 = vmax.f32 %v3660_v32, 0.0  ;;  %v3661_v52 = vadd.f32 %v15474_v35, %v3622_v20  ;;  %v15497_v20 = vpop.permute.xlu0 %4226 }
 0x3db   : > { %v3690_v18 = vmax.f32 %v3658_v37, 0.0  ;;  %v3659_v42 = vadd.f32 %v15474_v35, %v3620_v41  ;;  %18125 = vst [vmem:[#allocation35_spill] sm:$0xff] %v15497_v20  ;;  %v15512_v41 = vpop.permute.xlu1 %4228 }
 0x3dc   : > { %v3693_v50 = vmax.f32 %v3661_v52, 0.0  ;;  %v15489_v36 = vadd.f32 %v15214_v56, %v3692_v55  ;;  %18128 = vst [vmem:[#allocation38_spill] sm:$0xff] %v15512_v41 }
 0x3dd   : > { %v3691_v28 = vmax.f32 %v3659_v42, 0.0  ;;  %v12645_v46 = vpop.f32.mrb[36].mxu1  ;;  %v15501_v52 = vadd.f32 %v15209_v0, %v3690_v18 }
 0x3de   : > { %18123 = vst [vmem:[#allocation33_spill] sm:$0xff] %v15489_v36  ;;  %v3625_v12 = vmul.f32 %v12645_v46, %v15467_v34  ;;  %4078 = vrot.lane.b32.xlu0 %v15489_v36, %s14309_s26  ;;  %v3469_v3 = vpop.f32.mrb[37].mxu1  ;;  %v15495_v32 = vadd.f32 %v15232_v25, %v3693_v50  ;;  %v15524_v50 = vpop.permute.xlu0 %3946 }
 0x3df   : > { %v3623_v49 = vmul.f32 %v15467_v34, %v3469_v3  ;;  %v12646_v37 = vpop.f32.mrb[38].mxu1  ;;  %18126 = vst [vmem:[#allocation36_spill] sm:$0xff] %v15501_v52  ;;  %v15504_v56 = vadd.f32 %v15219_v63, %v3691_v28 }
 0x3e0   : > { %18124 = vst [vmem:[#allocation34_spill] sm:$0xff] %v15495_v32  ;;  %v3664_v46 = vadd.f32 %v15474_v35, %v3625_v12  ;;  %v3626_v55 = vmul.f32 %v12646_v37, %v15467_v34  ;;  %4080 = vrot.lane.b32.xlu1 %v15495_v32, %s14309_s26  ;;  %v3472_v25 = vpop.f32.mrb[39].mxu1 }
 0x3e1   : > { %18127 = vst [vmem:[#allocation37_spill] sm:$0xff] %v15504_v56  ;;  %v3662_v42 = vadd.f32 %v15474_v35, %v3623_v49  ;;  %v3624_v0 = vmul.f32 %v15467_v34, %v3472_v25 }
 0x3e2   : > { %v3696_v18 = vmax.f32 %v3664_v46, 0.0  ;;  %v3665_v12 = vadd.f32 %v15474_v35, %v3626_v55  ;;  %3790 = vrot.lane.b32.xlu0 %v15489_v36, %s14310_s15 }
 0x3e3   : > { %v3694_v28 = vmax.f32 %v3662_v42, 0.0  ;;  %v3663_v3 = vadd.f32 %v15474_v35, %v3624_v0  ;;  %v15535_v0 = vpop.permute.xlu1 %3948 }
 0x3e4   : > { %v3697_v37 = vmax.f32 %v3665_v12, 0.0  ;;  %3792 = vrot.lane.b32.xlu1 %v15495_v32, %s14310_s15  ;;  %v15533_v42 = vadd.f32 %v15237_v61, %v3696_v18 }
 0x3e5   : > { %v3695_v49 = vmax.f32 %v3663_v3, 0.0  ;;  %v12649_v25 = vpop.f32.mrb[40].mxu1 }
 0x3e6   : > { %v3629_v20 = vmul.f32 %v12649_v25, %v15467_v34  ;;  %4074 = vrot.lane.b32.xlu0 %v15501_v52, %s14309_s26  ;;  %v3485_v46 = vpop.f32.mrb[41].mxu1  ;;  %v15530_v55 = vadd.f32 %v15254_v9, %v3697_v37  ;;  %18130 = vst [vmem:[#allocation40_spill] sm:$0xff] %v15533_v42  ;;  %v15542_v25 = vadd.f32 %v15225_v43, %v3694_v28 }
 0x3e7   : > { %v3627_v12 = vmul.f32 %v15467_v34, %v3485_v46  ;;  %v12650_v63 = vpop.f32.mrb[42].mxu1  ;;  %v15539_v3 = vadd.f32 %v15242_v31, %v3695_v49 }
 0x3e8   : > { %18129 = vst [vmem:[#allocation39_spill] sm:$0xff] %v15530_v55  ;;  %18132 = vst [vmem:[#allocation42_spill] sm:$0xff] %v15542_v25  ;;  %v3668_v36 = vadd.f32 %v15474_v35, %v3629_v20  ;;  %v3630_v32 = vmul.f32 %v12650_v63, %v15467_v34  ;;  %3788 = vrot.lane.b32.xlu1 %v15504_v56, %s14310_s15  ;;  %v3488_v61 = vpop.f32.mrb[43].mxu1  ;;  %v15557_v20 = vpop.permute.xlu0 %3950 }
 0x3e9   : > { %18131 = vst [vmem:[#allocation41_spill] sm:$0xff] %v15539_v3  ;;  %v3666_v18 = vadd.f32 %v15474_v35, %v3627_v12  ;;  %v3628_v37 = vmul.f32 %v15467_v34, %v3488_v61  ;;  %v15562_v12 = vpop.permute.xlu1 %3952 }
 0x3ea   : > { %v3700_v43 = vmax.f32 %v3668_v36, 0.0  ;;  %v3669_v28 = vadd.f32 %v15474_v35, %v3630_v32  ;;  %3786 = vrot.lane.b32.xlu0 %v15501_v52, %s14310_s15 }
 0x3eb   : > { %v3698_v63 = vmax.f32 %v3666_v18, 0.0  ;;  %v3667_v49 = vadd.f32 %v15474_v35, %v3628_v37 }
 0x3ec   : > { %v3701_v46 = vmax.f32 %v3669_v28, 0.0  ;;  %4088 = vrot.lane.b32.xlu1 %v15530_v55, %s14309_s26  ;;  %v15571_v18 = vadd.f32 %v15259_v16, %v3700_v43 }
 0x3ed   : > { %v3699_v61 = vmax.f32 %v3667_v49, 0.0  ;;  %v12653_v9 = vpop.f32.mrb[44].mxu1  ;;  %v15578_v49 = vadd.f32 %v15247_v40, %v3698_v63 }
 0x3ee   : > { %v3633_v36 = vmul.f32 %v12653_v9, %v15467_v34  ;;  %4076 = vrot.lane.b32.xlu0 %v15504_v56, %s14309_s26  ;;  %v3501_v32 = vpop.f32.mrb[45].mxu1  ;;  %v15568_v31 = vadd.f32 %v15276_v45, %v3701_v46  ;;  %18134 = vst [vmem:[#allocation44_spill] sm:$0xff] %v15571_v18  ;;  %v15584_v46 = vpop.permute.xlu0 %3954 }
 0x3ef   : > { %v3631_v37 = vmul.f32 %v15467_v34, %v3501_v32  ;;  %v12654_v28 = vpop.f32.mrb[46].mxu1  ;;  %v15575_v52 = vadd.f32 %v15264_v57, %v3699_v61  ;;  %18136 = vst [vmem:[#allocation46_spill] sm:$0xff] %v15578_v49 }
 0x3f0   : > { %18133 = vst [vmem:[#allocation43_spill] sm:$0xff] %v15568_v31  ;;  %v3672_v9 = vadd.f32 %v15474_v35, %v3633_v36  ;;  %v3634_v56 = vmul.f32 %v12654_v28, %v15467_v34  ;;  %3800 = vrot.lane.b32.xlu1 %v15530_v55, %s14310_s15  ;;  %v3504_v45 = vpop.f32.mrb[47].mxu1  ;;  %v15595_v36 = vpop.permute.xlu1 %3956 }
 0x3f1   : > { %18135 = vst [vmem:[#allocation45_spill] sm:$0xff] %v15575_v52  ;;  %v3670_v43 = vadd.f32 %v15474_v35, %v3631_v37  ;;  %v3632_v57 = vmul.f32 %v15467_v34, %v3504_v45 }
 0x3f2   : > { %v3704_v63 = vmax.f32 %v3672_v9, 0.0  ;;  %v3673_v61 = vadd.f32 %v15474_v35, %v3634_v56  ;;  %4086 = vrot.lane.b32.xlu0 %v15533_v42, %s14309_s26 }
 0x3f3   : > { %v3702_v32 = vmax.f32 %v3670_v43, 0.0  ;;  %v3671_v28 = vadd.f32 %v15474_v35, %v3632_v57  ;;  %v15609_v43 = vpop.permute.xlu0 %3958 }
 0x3f4   : > { %v3705_v55 = vmax.f32 %v3673_v61, 0.0  ;;  %4084 = vrot.lane.b32.xlu1 %v15539_v3, %s14309_s26  ;;  %v15607_v40 = vadd.f32 %v15318_v33, %v3704_v63 }
 0x3f5   : > { %v3703_v37 = vmax.f32 %v3671_v28, 0.0  ;;  %v12657_v45 = vpop.f32.mrb[48].mxu1 }
 0x3f6   : > { %v3637_v16 = vmul.f32 %v12657_v45, %v15467_v34  ;;  %3798 = vrot.lane.b32.xlu0 %v15533_v42, %s14310_s15  ;;  %v3517_v56 = vpop.f32.mrb[49].mxu1  ;;  %v15604_v9 = vadd.f32 %v15333_v60, %v3705_v55  ;;  %18138 = vst [vmem:[#allocation48_spill] sm:$0xff] %v15607_v40  ;;  %v15616_v45 = vadd.f32 %v15269_v13, %v3702_v32  ;;  %v15622_v60 = vpop.permute.xlu1 %3960 }
 0x3f7   : > { %v3635_v57 = vmul.f32 %v15467_v34, %v3517_v56  ;;  %v12658_v61 = vpop.f32.mrb[50].mxu1  ;;  %v15613_v28 = vadd.f32 %v15283_v59, %v3703_v37  ;;  %v15636_v55 = vpop.permute.xlu0 %3962 }
 0x3f8   : > { %18137 = vst [vmem:[#allocation47_spill] sm:$0xff] %v15604_v9  ;;  %18140 = vst [vmem:[#allocation50_spill] sm:$0xff] %v15616_v45  ;;  %v3676_v42 = vadd.f32 %v15474_v35, %v3637_v16  ;;  %v3638_v41 = vmul.f32 %v12658_v61, %v15467_v34  ;;  %3796 = vrot.lane.b32.xlu1 %v15539_v3, %s14310_s15  ;;  %v3520_v33 = vpop.f32.mrb[51].mxu1 }
 0x3f9   : > { %18139 = vst [vmem:[#allocation49_spill] sm:$0xff] %v15613_v28  ;;  %v3674_v63 = vadd.f32 %v15474_v35, %v3635_v57  ;;  %v3636_v59 = vmul.f32 %v15467_v34, %v3520_v33  ;;  %18141 = vst [vmem:[#allocation51_spill] sm:$0xff] %v15636_v55 }
 0x3fa   : > { %v3708_v32 = vmax.f32 %v3676_v42, 0.0  ;;  %v3677_v16 = vadd.f32 %v15474_v35, %v3638_v41  ;;  %4082 = vrot.lane.b32.xlu0 %v15542_v25, %s14309_s26  ;;  %v15641_v42 = vpop.permute.xlu1 %3964 }
 0x3fb   : > { %v3706_v37 = vmax.f32 %v3674_v63, 0.0  ;;  %v3675_v56 = vadd.f32 %v15474_v35, %v3636_v59  ;;  %18142 = vst [vmem:[#allocation52_spill] sm:$0xff] %v15641_v42 }
 0x3fc   : > { %v3709_v61 = vmax.f32 %v3677_v16, 0.0  ;;  %4096 = vrot.lane.b32.xlu1 %v15568_v31, %s14309_s26  ;;  %v15647_v59 = vadd.f32 %v15338_v62, %v3708_v32 }
 0x3fd   : > { %v3707_v57 = vmax.f32 %v3675_v56, 0.0  ;;  %v12661_v33 = vpop.f32.mrb[52].mxu1 }
 0x3fe   : > { %v3641_v3 = vmul.f32 %v12661_v33, %v15467_v34  ;;  %3794 = vrot.lane.b32.xlu0 %v15542_v25, %s14310_s15  ;;  %v3533_v41 = vpop.f32.mrb[53].mxu1  ;;  %v15644_v63 = vadd.f32 %v15356_v47, %v3709_v61  ;;  %18144 = vst [vmem:[#allocation54_spill] sm:$0xff] %v15647_v59  ;;  %v15654_v33 = vadd.f32 %v15328_v30, %v3706_v37 }
 0x3ff   : > { %v3639_v16 = vmul.f32 %v15467_v34, %v3533_v41  ;;  %v12662_v13 = vpop.f32.mrb[54].mxu1  ;;  %v15651_v56 = vadd.f32 %v15346_v58, %v3707_v57  ;;  %v15678_v57 = vpop.permute.xlu1 %3968 }
 0x400   : > { %18143 = vst [vmem:[#allocation53_spill] sm:$0xff] %v15644_v63  ;;  %18146 = vst [vmem:[#allocation56_spill] sm:$0xff] %v15654_v33  ;;  %v15657_v25 = vadd.f32 %v15474_v35, %v3641_v3  ;;  %v3642_v42 = vmul.f32 %v12662_v13, %v15467_v34  ;;  %3808 = vrot.lane.b32.xlu1 %v15568_v31, %s14310_s15  ;;  %v3536_v47 = vpop.f32.mrb[55].mxu1  ;;  %v15673_v3 = vpop.permute.xlu0 %3966 }
 0x401   : > { %18145 = vst [vmem:[#allocation55_spill] sm:$0xff] %v15651_v56  ;;  %v3678_v32 = vadd.f32 %v15474_v35, %v3639_v16  ;;  %v3640_v58 = vmul.f32 %v15467_v34, %v3536_v47 }
 0x402   : > { %v15669_v37 = vadd.f32 %v15474_v35, %v3642_v42  ;;  %4094 = vrot.lane.b32.xlu0 %v15571_v18, %s14309_s26 }
 0x403   : > { %v3710_v13 = vmax.f32 %v3678_v32, 0.0  ;;  %v3679_v61 = vadd.f32 %v15474_v35, %v3640_v58 }
 0x404   : > { %4092 = vrot.lane.b32.xlu1 %v15575_v52, %s14309_s26 }
 0x405   : > { %v3711_v41 = vmax.f32 %v3679_v61, 0.0  ;;  %v12665_v16 = vpop.f32.mrb[56].mxu1  ;;  %v15688_v58 = vadd.f32 %v15351_v21, %v3710_v13 }
 0x406   : > { %v3645_v47 = vmul.f32 %v12665_v16, %v15467_v34  ;;  %3806 = vrot.lane.b32.xlu0 %v15571_v18, %s14310_s15  ;;  %v3549_v42 = vpop.f32.mrb[57].mxu1  ;;  %v15696_v18 = vpop.permute.xlu0 %3970 }
 0x407   : > { %v3643_v62 = vmul.f32 %v15467_v34, %v3549_v42  ;;  %v12666_v30 = vpop.f32.mrb[58].mxu1  ;;  %v15685_v32 = vadd.f32 %v15370_v5, %v3711_v41  ;;  %18148 = vst [vmem:[#allocation58_spill] sm:$0xff] %v15688_v58  ;;  %18149 = vst [vmem:[#allocation59_spill] sm:$0xff] %v15696_v18 }
 0x408   : > { %v15691_v31 = vadd.f32 %v15474_v35, %v3645_v47  ;;  %v3646_v61 = vmul.f32 %v12666_v30, %v15467_v34  ;;  %3804 = vrot.lane.b32.xlu1 %v15575_v52, %s14310_s15  ;;  %v3552_v16 = vpop.f32.mrb[59].mxu1  ;;  %v15707_v30 = vpop.permute.xlu1 %3972 }
 0x409   : > { %18147 = vst [vmem:[#allocation57_spill] sm:$0xff] %v15685_v32  ;;  %v15699_v42 = vadd.f32 %v15474_v35, %v3643_v62  ;;  %v3644_v41 = vmul.f32 %v15467_v34, %v3552_v16  ;;  %18150 = vst [vmem:[#allocation60_spill] sm:$0xff] %v15707_v30 }
 0x40a   : > { %v3685_v5 = vadd.f32 %v15474_v35, %v3646_v61  ;;  %4090 = vrot.lane.b32.xlu0 %v15578_v49, %s14309_s26  ;;  %v15715_v13 = vpop.permute.xlu0 %3974 }
 0x40b   : > { %v3683_v47 = vadd.f32 %v15474_v35, %v3644_v41  ;;  %18151 = vst [vmem:[#allocation61_spill] sm:$0xff] %v15715_v13 }
 0x40c   : > { %3816 = vrot.lane.b32.xlu1 %v15604_v9, %s14310_s15  ;;  %v15724_v55 = vpop.permute.xlu1 %3976 }
 0x40d   : > { %v12669_v52 = vpop.f32.mrb[60].mxu1 }
 0x40e   : > { %v3649_v62 = vmul.f32 %v12669_v52, %v15467_v34  ;;  %3802 = vrot.lane.b32.xlu0 %v15578_v49, %s14310_s15  ;;  %v3565_v16 = vpop.f32.mrb[61].mxu1 }
 0x40f   : > { %v3647_v61 = vmul.f32 %v15467_v34, %v3565_v16  ;;  %v12670_v18 = vpop.f32.mrb[62].mxu1 }
 0x410   : > { %v15719_v21 = vadd.f32 %v15474_v35, %v3649_v62  ;;  %v3650_v41 = vmul.f32 %v12670_v18, %v15467_v34  ;;  %4104 = vrot.lane.b32.xlu1 %v15604_v9, %s14309_s26  ;;  %v3568_v30 = vpop.f32.mrb[63].mxu1  ;;  %v15736_v18 = vpop.permute.xlu0 %3978  ;;  %v3712_v9 = vmax.f32 %v15657_v25, 0.0 }
 0x411   : > { %v3686_v52 = vadd.f32 %v15474_v35, %v3647_v61  ;;  %v3648_v49 = vmul.f32 %v15467_v34, %v3568_v30  ;;  %v15740_v16 = vpop.permute.xlu1 %3980  ;;  %v3713_v61 = vmax.f32 %v15669_v37, 0.0 }
 0x412   : > { %18152 = vst [vmem:[#allocation62_spill] sm:$0xff] %v15719_v21  ;;  %v15729_v13 = vadd.f32 %v15474_v35, %v3650_v41  ;;  %3814 = vrot.lane.b32.xlu0 %v15607_v40, %s14310_s15 }
 0x413   : > { %v3687_v62 = vadd.f32 %v15474_v35, %v3648_v49 }
 0x414   : > { %18153 = vst [vmem:[#allocation63_spill] sm:$0xff] %v15729_v13  ;;  %4100 = vrot.lane.b32.xlu1 %v15613_v28, %s14309_s26  ;;  %v15746_v34 = vpop.permute.xlu0 %3982  ;;  %v3714_v13 = vmax.f32 %v15699_v42, 0.0 }
 0x415   : > { %v15750_v35 = vpop.permute.xlu1 %3984 }
 0x416   : > { %4102 = vrot.lane.b32.xlu0 %v15607_v40, %s14309_s26  ;;  %v15776_v40 = vadd.f32 %v15380_v29, %v3713_v61  ;;  %v3717_v61 = vmax.f32 %v3685_v5, 0.0 }
 0x418   : > { %3812 = vrot.lane.b32.xlu1 %v15613_v28, %s14310_s15  ;;  %v15756_v49 = vpop.permute.xlu0 %3986  ;;  %v15803_v28 = vadd.f32 %v15404_v19, %v3717_v61  ;;  %v3718_v61 = vmax.f32 %v3686_v52, 0.0 }
 0x419   : > { %v15760_v30 = vpop.permute.xlu1 %3988 }
 0x41a   : > { %4098 = vrot.lane.b32.xlu0 %v15616_v45, %s14309_s26 }
 0x41c   : > { %3824 = vrot.lane.b32.xlu1 %v15644_v63, %s14310_s15  ;;  %v15767_v41 = vpop.permute.xlu0 %3990 }
 0x41e   : > { %3810 = vrot.lane.b32.xlu0 %v15616_v45, %s14310_s15 }
 0x420   : > { %4112 = vrot.lane.b32.xlu1 %v15644_v63, %s14309_s26  ;;  %v15771_v63 = vpop.permute.xlu1 %3992  ;;  %v15781_v37 = vpop.permute.xlu0 %3994 }
 0x422   : > { %3822 = vrot.lane.b32.xlu0 %v15647_v59, %s14310_s15 }
 0x424   : > { %3820 = vrot.lane.b32.xlu1 %v15651_v56, %s14310_s15  ;;  %v15794_v25 = vpop.permute.xlu0 %3998 }
 0x426   : > { %4110 = vrot.lane.b32.xlu0 %v15647_v59, %s14309_s26  ;;  %v15785_v59 = vpop.permute.xlu1 %3996 }
 0x428   : > { %4108 = vrot.lane.b32.xlu1 %v15651_v56, %s14309_s26  ;;  %v15790_v56 = vadd.f32 %v15361_v4, %v3712_v9  ;;  %v3716_v9 = vmax.f32 %v15691_v31, 0.0  ;;  %v15808_v5 = vpop.permute.xlu0 %4002 }
 0x429   : > { %18154 = vst [vmem:[#allocation64_spill] sm:$0xff] %v15808_v5 }
 0x42a   : > { %3818 = vrot.lane.b32.xlu0 %v15654_v33, %s14310_s15  ;;  %v15798_v45 = vpop.permute.xlu1 %4000  ;;  %v15821_v19 = vadd.f32 %v15385_v53, %v3716_v9  ;;  %v15840_v53 = vadd.f32 %v15399_v2, %v3718_v61 }
 0x42c   : > { %3832 = vrot.lane.b32.xlu1 %v15776_v40, %s14310_s15 }
 0x42e   : > { %4106 = vrot.lane.b32.xlu0 %v15654_v33, %s14309_s26  ;;  %v3715_v33 = vmax.f32 %v3683_v47, 0.0  ;;  %v15815_v47 = vpop.permute.xlu1 %4004 }
 0x430   : > { %3828 = vrot.lane.b32.xlu1 %v15685_v32, %s14310_s15  ;;  %v15811_v21 = vadd.f32 %v15394_v54, %v3715_v33  ;;  %v15828_v33 = vpop.permute.xlu0 %4230 }
 0x431   : > { %18155 = vst [vmem:[#allocation65_spill] sm:$0xff] %v15828_v33 }
 0x432   : > { %3830 = vrot.lane.b32.xlu0 %v15790_v56, %s14310_s15  ;;  %v15835_v42 = vpop.permute.xlu1 %4232 }
 0x433   : > { %18156 = vst [vmem:[#allocation66_spill] sm:$0xff] %v15835_v42 }
 0x434   : > { %4116 = vrot.lane.b32.xlu1 %v15685_v32, %s14309_s26  ;;  %v3719_v32 = vmax.f32 %v3687_v62, 0.0  ;;  %v15831_v62 = vadd.f32 %v15375_v23, %v3714_v13 }
 0x436   : > { %3826 = vrot.lane.b32.xlu0 %v15688_v58, %s14310_s15  ;;  %v15824_v31 = vadd.f32 %v15415_v39, %v3719_v32  ;;  %v15842_v39 = vpop.permute.xlu0 %4234  ;;  %v15846_v32 = vpop.permute.xlu1 %4236 }
 0x437   : > { %18157 = vst [vmem:[#allocation67_spill] sm:$0xff] %v15842_v39  ;;  %18158 = vst [vmem:[#allocation68_spill] sm:$0xff] %v15846_v32 }
 0x438   : > { %3840 = vrot.lane.b32.xlu1 %v15803_v28, %s14310_s15 }
 0x43a   : > { %4114 = vrot.lane.b32.xlu0 %v15688_v58, %s14309_s26  ;;  %v15848_v13 = vpop.permute.xlu0 %4238  ;;  %v15850_v52 = vpop.permute.xlu1 %4240 }
 0x43b   : > { %18159 = vst [vmem:[#allocation69_spill] sm:$0xff] %v15848_v13  ;;  %18160 = vst [vmem:[#allocation70_spill] sm:$0xff] %v15850_v52 }
 0x43c   : > { %3836 = vrot.lane.b32.xlu1 %v15811_v21, %s14310_s15 }
 0x43e   : > { %3838 = vrot.lane.b32.xlu0 %v15821_v19, %s14310_s15 }
 0x440   : > { %3844 = vrot.lane.b32.xlu1 %v15824_v31, %s14310_s15 }
 0x442   : > { %3834 = vrot.lane.b32.xlu0 %v15831_v62, %s14310_s15 }
 0x446   : > { %3842 = vrot.lane.b32.xlu0 %v15840_v53, %s14310_s15 }
 0x450   : > { %v4079_v9 = vpop.permute.xlu0 %4078 }
 0x451   : > { %v4172_v58 = vmul.f32 %v4079_v9, %v14663_v6 }
 0x452   : > { %v4081_v33 = vpop.permute.xlu1 %4080 }
 0x453   : > { %v4300_v42 = vadd.f32 %v15450_v44, %v4172_v58  ;;  %v4173_v2 = vmul.f32 %v4081_v33, %v14671_v10 }
 0x454   : > { %v3791_v61 = vpop.permute.xlu0 %3790 }
 0x455   : > { %v4301_v39 = vadd.f32 %v15452_v7, %v4173_v2  ;;  %v3884_v5 = vmul.f32 %v3791_v61, %v14663_v6  ;;  %4526 = vrot.lane.b32.xlu0 %v4300_v42, %s14311_s18 }
 0x456   : > { %v3793_v32 = vpop.permute.xlu1 %3792 }
 0x457   : > { %v4044_v13 = vadd.f32 %v15557_v20, %v3884_v5  ;;  %v3885_v52 = vmul.f32 %v3793_v32, %v14671_v10  ;;  %4528 = vrot.lane.b32.xlu1 %v4301_v39, %s14311_s18  ;;  %v4749_v10 = vld [vmem:[%s18014_s11] sm:$0xf]  ;;  %v4700_v39 = vld [vmem:[#allocation2 + $0x1b0] sm:$0xff]  ;;  %v4701_v32 = vld [vmem:[#allocation2 + $0x1b8] sm:$0xff] }
 0x458   : > { %v4075_v9 = vpop.permute.xlu0 %4074  ;;  %14100 = vmatprep.subr.msk.bf16.mxu0 %vm730_vm0, %v4749_v10  ;;  %v15873_v5 = vsel %vm730_vm0, %v4749_v10, 0 }
 0x459   : > { %v4045_v44 = vadd.f32 %v15562_v12, %v3885_v52  ;;  %v4170_v58 = vmul.f32 %v4075_v9, %v14666_v8  ;;  %4366 = vrot.lane.b32.xlu0 %v4044_v13, %s14312_s19  ;;  %12774 = vmatpush3.bf16.msra.mxu0 %v15873_v5  ;;  %v4732_v13 = vpack.c.bf16 %v4701_v32, %v4700_v39  ;;  %v4846_v52 = vld [vmem:[%s18011_s8 + $0x4] sm:$0xf] }
 0x45a   : > { %v3789_v7 = vpop.permute.xlu1 %3788  ;;  %14097 = vmatprep.subr.msk.bf16.mxu1 %vm730_vm0, %v4846_v52  ;;  %v4897_v61 = vsel %vm730_vm0, %v4846_v52, 0 }
 0x45b   : > { %v4298_v6 = vadd.f32 %v15446_v15, %v4170_v58  ;;  %4368 = vrot.lane.b32.xlu1 %v4045_v44, %s14312_s19  ;;  %12775 = vmatprep.mubr.msk.bf16.mxu0 %vm593_vm1, %v4732_v13  ;;  %v4750_v58 = vld [vmem:[#allocation2 + $0x1] sm:$0xff] }
 0x45c   : > { %v3787_v33 = vpop.permute.xlu0 %3786  ;;  %12672 = vmatpush3.bf16.msra.mxu1 %v4897_v61 }
 0x45d   : > { %v3882_v20 = vmul.f32 %v3787_v33, %v14666_v8  ;;  %4522 = vrot.lane.b32.xlu0 %v4298_v6, %s14311_s18  ;;  %v4751_v6 = vld [vmem:[#allocation2 + $0x9] sm:$0xff] }
 0x45e   : > { %v4089_v12 = vpop.permute.xlu1 %4088 }
 0x45f   : > { %v4042_v42 = vadd.f32 %v15524_v50, %v3882_v20  ;;  %v3883_v50 = vmul.f32 %v3789_v7, %v14675_v11  ;;  %v4782_v20 = vpack.c.bf16 %v4751_v6, %v4750_v58  ;;  %v18162_v6 = vld [vmem:[#allocation6_spill] sm:$0xff] }
 0x460   : > { %v4077_v15 = vpop.permute.xlu0 %4076 }
 0x461   : > { %v4171_v8 = vmul.f32 %v4077_v15, %v14675_v11  ;;  %4362 = vrot.lane.b32.xlu0 %v4042_v42, %s14312_s19  ;;  %v4043_v42 = vadd.f32 %v15535_v0, %v3883_v50  ;;  %v4177_v15 = vmul.f32 %v4089_v12, %v14695_v26  ;;  %12673 = vmatprep.mubr.msk.bf16.mxu1 %vm593_vm1, %v4782_v20  ;;  %v18163_v20 = vld [vmem:[#allocation32_spill] sm:$0xff] }
 0x462   : > { %v3801_v2 = vpop.permute.xlu1 %3800 }
 0x463   : > { %v4299_v9 = vadd.f32 %v15448_v14, %v4171_v8  ;;  %v4305_v32 = vadd.f32 %v15460_v1, %v4177_v15  ;;  %v3889_v8 = vmul.f32 %v3801_v2, %v14695_v26 }
 0x464   : > { %v4087_v44 = vpop.permute.xlu0 %4086 }
 0x465   : > { %v4176_v33 = vmul.f32 %v4087_v44, %v14687_v22  ;;  %4524 = vrot.lane.b32.xlu1 %v4299_v9, %s14311_s18 }
 0x466   : > { %v4085_v10 = vpop.permute.xlu1 %4084 }
 0x467   : > { %v4304_v11 = vadd.f32 %v15458_v38, %v4176_v33  ;;  %v4175_v52 = vmul.f32 %v4085_v10, %v14699_v27 }
 0x468   : > { %v3799_v14 = vpop.permute.xlu0 %3798 }
 0x469   : > { %v3888_v7 = vmul.f32 %v3799_v14, %v14687_v22  ;;  %4534 = vrot.lane.b32.xlu0 %v4304_v11, %s14311_s18  ;;  %4364 = vrot.lane.b32.xlu1 %v4043_v42, %s14312_s19  ;;  %v4049_v22 = vadd.f32 %v15622_v60, %v3889_v8  ;;  %v18161_v60 = vld [vmem:[#allocation4_spill] sm:$0xff]  ;;  %v18165_v8 = vld [vmem:[#allocation7_spill] sm:$0xff] }
 0x46a   : > { %v3797_v39 = vpop.permute.xlu1 %3796 }
 0x46b   : > { %v4048_v0 = vadd.f32 %v15609_v43, %v3888_v7  ;;  %v4303_v43 = vadd.f32 %v15456_v17, %v4175_v52  ;;  %v3887_v2 = vmul.f32 %v3797_v39, %v14699_v27 }
 0x46c   : > { %v4083_v13 = vpop.permute.xlu0 %4082 }
 0x46d   : > { %v4174_v12 = vmul.f32 %v4083_v13, %v14690_v24  ;;  %4374 = vrot.lane.b32.xlu0 %v4048_v0, %s14312_s19  ;;  %4536 = vrot.lane.b32.xlu1 %v4305_v32, %s14311_s18  ;;  %v18166_v13 = vld [vmem:[#allocation30_spill] sm:$0xff] }
 0x46e   : > { %v4097_v38 = vpop.permute.xlu1 %4096 }
 0x46f   : > { %v4302_v61 = vadd.f32 %v15454_v51, %v4174_v12  ;;  %v4181_v33 = vmul.f32 %v4097_v38, %v18162_v6 }
 0x470   : > { %v3795_v50 = vpop.permute.xlu0 %3794 }
 0x471   : > { %v3886_v1 = vmul.f32 %v3795_v50, %v14690_v24  ;;  %4530 = vrot.lane.b32.xlu0 %v4302_v61, %s14311_s18  ;;  %4376 = vrot.lane.b32.xlu1 %v4049_v22, %s14312_s19  ;;  %v4047_v24 = vadd.f32 %v15595_v36, %v3887_v2  ;;  %v18164_v36 = vld [vmem:[#allocation5_spill] sm:$0xff]  ;;  %v18167_v22 = vld [vmem:[#allocation31_spill] sm:$0xff] }
 0x472   : > { %v3809_v26 = vpop.permute.xlu1 %3808  ;;  %v18168_v50 = vld [vmem:[#allocation51_spill] sm:$0xff] }
 0x473   : > { %v4046_v9 = vadd.f32 %v15584_v46, %v3886_v1  ;;  %v4309_v46 = vadd.f32 %v15485_v48, %v4181_v33  ;;  %v3893_v15 = vmul.f32 %v3809_v26, %v18162_v6  ;;  %v18169_v26 = vld [vmem:[#allocation8_spill] sm:$0xff] }
 0x474   : > { %v4095_v44 = vpop.permute.xlu0 %4094 }
 0x475   : > { %v4180_v58 = vmul.f32 %v4095_v44, %v18161_v60  ;;  %4370 = vrot.lane.b32.xlu0 %v4046_v9, %s14312_s19  ;;  %4532 = vrot.lane.b32.xlu1 %v4303_v43, %s14311_s18  ;;  %v4053_v32 = vadd.f32 %v15678_v57, %v3893_v15  ;;  %v18170_v9 = vld [vmem:[#allocation52_spill] sm:$0xff]  ;;  %v18175_v15 = vld [vmem:[#allocation38_spill] sm:$0xff] }
 0x476   : > { %v4093_v51 = vpop.permute.xlu1 %4092 }
 0x477   : > { %v4308_v10 = vadd.f32 %v18163_v20, %v4180_v58  ;;  %v4179_v0 = vmul.f32 %v4093_v51, %v18165_v8  ;;  %v18172_v51 = vld [vmem:[#allocation61_spill] sm:$0xff] }
 0x478   : > { %v3807_v42 = vpop.permute.xlu0 %3806 }
 0x479   : > { %v3892_v17 = vmul.f32 %v3807_v42, %v18161_v60  ;;  %4542 = vrot.lane.b32.xlu0 %v4308_v10, %s14311_s18  ;;  %4372 = vrot.lane.b32.xlu1 %v4047_v24, %s14312_s19  ;;  %v4307_v52 = vadd.f32 %v18167_v22, %v4179_v0  ;;  %v18171_v60 = vld [vmem:[#allocation10_spill] sm:$0xff]  ;;  %v18173_v10 = vld [vmem:[#allocation11_spill] sm:$0xff] }
 0x47a   : > { %v3805_v27 = vpop.permute.xlu1 %3804 }
 0x47b   : > { %v4052_v11 = vadd.f32 %v15673_v3, %v3892_v17  ;;  %v3891_v61 = vmul.f32 %v3805_v27, %v18165_v8  ;;  %v18174_v27 = vld [vmem:[#allocation9_spill] sm:$0xff] }
 0x47c   : > { %v4091_v14 = vpop.permute.xlu0 %4090 }
 0x47d   : > { %v4178_v7 = vmul.f32 %v4091_v14, %v18164_v36  ;;  %4382 = vrot.lane.b32.xlu0 %v4052_v11, %s14312_s19  ;;  %4544 = vrot.lane.b32.xlu1 %v4309_v46, %s14311_s18  ;;  %v4051_v44 = vadd.f32 %v18170_v9, %v3891_v61  ;;  %v18176_v14 = vld [vmem:[#allocation35_spill] sm:$0xff] }
 0x47e   : > { %v3817_v39 = vpop.permute.xlu1 %3816 }
 0x47f   : > { %v4306_v12 = vadd.f32 %v18166_v13, %v4178_v7  ;;  %v3897_v58 = vmul.f32 %v3817_v39, %v18171_v60  ;;  %v18177_v13 = vld [vmem:[#allocation28_spill] sm:$0xff] }
 0x480   : > { %v3803_v38 = vpop.permute.xlu0 %3802 }
 0x481   : > { %v3890_v48 = vmul.f32 %v3803_v38, %v18164_v36  ;;  %4538 = vrot.lane.b32.xlu0 %v4306_v12, %s14311_s18  ;;  %4384 = vrot.lane.b32.xlu1 %v4053_v32, %s14312_s19  ;;  %v4057_v20 = vadd.f32 %v15724_v55, %v3897_v58  ;;  %v15956_v32 = vld [vmem:[%s18011_s8 + $0x8] sm:$0xf]  ;;  %v18179_v38 = vld [vmem:[#allocation59_spill] sm:$0xff] }
 0x482   : > { %v15932_v3 = vpop.permute.xlu1 %4104  ;;  %14102 = vmatprep.subr.msk.bf16.mxu0 %vm730_vm0, %v15956_v32  ;;  %v18178_v12 = vld [vmem:[#allocation29_spill] sm:$0xff] }
 0x483   : > { %v4050_v1 = vadd.f32 %v18168_v50, %v3890_v48 }
 0x484   : > { %v3815_v57 = vpop.permute.xlu0 %3814 }
 0x485   : > { %v3896_v43 = vmul.f32 %v3815_v57, %v18169_v26  ;;  %4378 = vrot.lane.b32.xlu0 %v4050_v1, %s14312_s19  ;;  %4540 = vrot.lane.b32.xlu1 %v4307_v52, %s14311_s18 }
 0x486   : > { %v4101_v2 = vpop.permute.xlu1 %4100 }
 0x487   : > { %v4056_v24 = vadd.f32 %v18172_v51, %v3896_v43  ;;  %v4183_v42 = vmul.f32 %v4101_v2, %v18173_v10  ;;  %v18182_v51 = vld [vmem:[#allocation12_spill] sm:$0xff] }
 0x488   : > { %v15943_v6 = vpop.permute.xlu0 %4102 }
 0x489   : > { %4390 = vrot.lane.b32.xlu0 %v4056_v24, %s14312_s19  ;;  %4380 = vrot.lane.b32.xlu1 %v4051_v44, %s14312_s19  ;;  %v4311_v11 = vadd.f32 %v18175_v15, %v4183_v42 }
 0x48a   : > { %v3813_v33 = vpop.permute.xlu1 %3812 }
 0x48b   : > { %v3895_v2 = vmul.f32 %v3813_v33, %v18173_v10  ;;  %v18183_v10 = vld [vmem:[#allocation15_spill] sm:$0xff] }
 0x48c   : > { %v4099_v17 = vpop.permute.xlu0 %4098 }
 0x48d   : > { %v4182_v46 = vmul.f32 %v4099_v17, %v18174_v27  ;;  %4392 = vrot.lane.b32.xlu1 %v4057_v20, %s14312_s19  ;;  %v18184_v17 = vld [vmem:[#allocation13_spill] sm:$0xff] }
 0x48e   : > { %v3825_v7 = vpop.permute.xlu1 %3824 }
 0x48f   : > { %v4310_v36 = vadd.f32 %v18176_v14, %v4182_v46  ;;  %v18185_v14 = vld [vmem:[#allocation18_spill] sm:$0xff] }
 0x490   : > { %v3811_v39 = vpop.permute.xlu0 %3810 }
 0x491   : > { %4546 = vrot.lane.b32.xlu0 %v4310_v36, %s14311_s18  ;;  %4548 = vrot.lane.b32.xlu1 %v4311_v11, %s14311_s18  ;;  %v3894_v55 = vmul.f32 %v3811_v39, %v18174_v27 }
 0x492   : > { %v15963_v0 = vpop.permute.xlu1 %4112 }
 0x493   : > { %v4054_v48 = vadd.f32 %v18179_v38, %v3894_v55  ;;  %v18188_v38 = vld [vmem:[#allocation17_spill] sm:$0xff] }
 0x494   : > { %v3823_v8 = vpop.permute.xlu0 %3822 }
 0x495   : > { %4242 = vrot.lane.b32.xlu0 %v18177_v13, %s14309_s26  ;;  %4244 = vrot.lane.b32.xlu1 %v18178_v12, %s14309_s26  ;;  %v3900_v24 = vmul.f32 %v3823_v8, %v18182_v51  ;;  %v18187_v8 = vld [vmem:[#allocation19_spill] sm:$0xff] }
 0x496   : > { %v3821_v52 = vpop.permute.xlu1 %3820 }
 0x497   : > { %v4060_v20 = vadd.f32 %v15746_v34, %v3900_v24  ;;  %v3899_v42 = vmul.f32 %v3821_v52, %v18183_v10 }
 0x498   : > { %v15970_v22 = vpop.permute.xlu0 %4110 }
 0x499   : > { %4386 = vrot.lane.b32.xlu0 %v4054_v48, %s14312_s19  ;;  %4120 = vrot.lane.b32.xlu1 %v15776_v40, %s14309_s26  ;;  %v4059_v15 = vadd.f32 %v15740_v16, %v3899_v42 }
 0x49a   : > { %v15981_v1 = vpop.permute.xlu1 %4108 }
 0x49c   : > { %v3819_v61 = vpop.permute.xlu0 %3818 }
 0x49d   : > { %4118 = vrot.lane.b32.xlu0 %v15790_v56, %s14309_s26  ;;  %4124 = vrot.lane.b32.xlu1 %v15811_v21, %s14309_s26  ;;  %v3898_v27 = vmul.f32 %v3819_v61, %v18184_v17  ;;  %v18189_v61 = vld [vmem:[#allocation22_spill] sm:$0xff] }
 0x49e   : > { %v3833_v43 = vpop.permute.xlu1 %3832 }
 0x49f   : > { %v4058_v11 = vadd.f32 %v15736_v18, %v3898_v27  ;;  %v3905_v36 = vmul.f32 %v3833_v43, %v18185_v14  ;;  %v18194_v27 = vld [vmem:[#allocation25_spill] sm:$0xff] }
 0x4a0   : > { %v15979_v50 = vpop.permute.xlu0 %4106 }
 0x4a1   : > { %4122 = vrot.lane.b32.xlu0 %v15831_v62, %s14309_s26  ;;  %4248 = vrot.lane.b32.xlu1 %v15380_v29, %s14309_s26  ;;  %v4065_v55 = vadd.f32 %v15771_v63, %v3905_v36 }
 0x4a2   : > { %v3829_v44 = vpop.permute.xlu1 %3828 }
 0x4a3   : > { %v3903_v13 = vmul.f32 %v3829_v44, %v18187_v8 }
 0x4a4   : > { %v3831_v57 = vpop.permute.xlu0 %3830 }
 0x4a5   : > { %4246 = vrot.lane.b32.xlu0 %v15361_v4, %s14309_s26  ;;  %4252 = vrot.lane.b32.xlu1 %v15394_v54, %s14309_s26  ;;  %v18180_v4 = vld [vmem:[#allocation60_spill] sm:$0xff]  ;;  %v18181_v54 = vld [vmem:[#allocation14_spill] sm:$0xff]  ;;  %v4063_v18 = vadd.f32 %v15760_v30, %v3903_v13 }
 0x4a6   : > { %v4055_v29 = vadd.f32 %v18180_v4, %v3895_v2  ;;  %v3901_v58 = vmul.f32 %v3825_v7, %v18181_v54  ;;  %v16012_v46 = vpop.permute.xlu1 %4116  ;;  %v18186_v7 = vld [vmem:[#allocation16_spill] sm:$0xff] }
 0x4a7   : > { %v18190_v2 = vld [vmem:[#allocation20_spill] sm:$0xff] }
 0x4a8   : > { %v3827_v9 = vpop.permute.xlu0 %3826  ;;  %v4061_v33 = vadd.f32 %v15750_v35, %v3901_v58  ;;  %v3904_v35 = vmul.f32 %v3831_v57, %v18186_v7  ;;  %v4748_v13 = vld [vmem:[%s18011_s8] sm:$0xf] }
 0x4a9   : > { %4250 = vrot.lane.b32.xlu0 %v15375_v23, %s14309_s26  ;;  %4128 = vrot.lane.b32.xlu1 %v15803_v28, %s14309_s26  ;;  %v3902_v16 = vmul.f32 %v3827_v9, %v18188_v38  ;;  %v18191_v9 = vld [vmem:[#allocation23_spill] sm:$0xff] }
 0x4aa   : > { %v3841_v34 = vpop.permute.xlu1 %3840  ;;  %v4064_v12 = vadd.f32 %v15767_v41, %v3904_v35  ;;  %14098 = vmatprep.subr.msk.bf16.mxu1 %vm730_vm0, %v4748_v13 }
 0x4ab   : > { %v4062_v52 = vadd.f32 %v15756_v49, %v3902_v16  ;;  %v3909_v57 = vmul.f32 %v3841_v34, %v18189_v61 }
 0x4ac   : > { %v16003_v23 = vpop.permute.xlu0 %4114 }
 0x4ad   : > { %4126 = vrot.lane.b32.xlu0 %v15821_v19, %s14309_s26  ;;  %4132 = vrot.lane.b32.xlu1 %v15824_v31, %s14309_s26  ;;  %v4069_v41 = vadd.f32 %v15798_v45, %v3909_v57 }
 0x4ae   : > { %v3837_v43 = vpop.permute.xlu1 %3836 }
 0x4af   : > { %v3907_v44 = vmul.f32 %v3837_v43, %v18191_v9  ;;  %v18197_v43 = vld [vmem:[#allocation65_spill] sm:$0xff] }
 0x4b0   : > { %v3839_v39 = vpop.permute.xlu0 %3838 }
 0x4b1   : > { %4130 = vrot.lane.b32.xlu0 %v15840_v53, %s14309_s26  ;;  %4388 = vrot.lane.b32.xlu1 %v4055_v29, %s14312_s19  ;;  %v3908_v63 = vmul.f32 %v3839_v39, %v18190_v2  ;;  %v18192_v29 = vld [vmem:[#allocation21_spill] sm:$0xff]  ;;  %v4067_v24 = vadd.f32 %v15785_v59, %v3907_v44  ;;  %v18195_v39 = vld [vmem:[#allocation64_spill] sm:$0xff] }
 0x4b2   : > { %v3845_v49 = vpop.permute.xlu1 %3844  ;;  %v14293_v59 = vld [vmem:[%s14427_s17 + $0xd0] sm:$0xff]  ;;  %v18198_v44 = vld [vmem:[#allocation68_spill] sm:$0xff] }
 0x4b3   : > { %v4068_v4 = vadd.f32 %v15794_v25, %v3908_v63  ;;  %v18193_v25 = vld [vmem:[#allocation27_spill] sm:$0xff] }
 0x4b4   : > { %v3835_v48 = vpop.permute.xlu0 %3834  ;;  %v3911_v42 = vmul.f32 %v3845_v49, %v18193_v25 }
 0x4b5   : > { %4398 = vrot.lane.b32.xlu0 %v4060_v20, %s14312_s19  ;;  %4400 = vrot.lane.b32.xlu1 %v4061_v33, %s14312_s19  ;;  %v3906_v58 = vmul.f32 %v3835_v48, %v18192_v29  ;;  %v14295_v48 = vld [vmem:[%s14427_s17 + $0xe0] sm:$0xff] }
 0x4b6   : > { %v4071_v35 = vadd.f32 %v15815_v47, %v3911_v42  ;;  %v4184_v47 = vmul.f32 %v15943_v6, %v18169_v26  ;;  %v4188_v6 = vmul.f32 %v15970_v22, %v18182_v51  ;;  %v5843_v42 = vsel %vm730_vm0, %v15956_v32, 0 }
 0x4b7   : > { %v4066_v33 = vadd.f32 %v15781_v37, %v3906_v58  ;;  %v14294_v37 = vld [vmem:[%s14427_s17 + $0xd8] sm:$0xff] }
 0x4b8   : > { %v3843_v30 = vpop.permute.xlu0 %3842  ;;  %v4312_v63 = vadd.f32 %v18197_v43, %v4184_v47  ;;  %v18199_v58 = vld [vmem:[#allocation67_spill] sm:$0xff] }
 0x4b9   : > { %4394 = vrot.lane.b32.xlu0 %v4058_v11, %s14312_s19  ;;  %4396 = vrot.lane.b32.xlu1 %v4059_v15, %s14312_s19  ;;  %v3910_v15 = vmul.f32 %v3843_v30, %v18194_v27 }
 0x4bb   : > { %v4070_v34 = vadd.f32 %v18195_v39, %v3910_v15 }
 0x4bd   : > { %4406 = vrot.lane.b32.xlu0 %v4064_v12, %s14312_s19  ;;  %4408 = vrot.lane.b32.xlu1 %v4065_v55, %s14312_s19  ;;  %v4185_v12 = vmul.f32 %v15932_v3, %v18171_v60  ;;  %v4186_v3 = vmul.f32 %v15979_v50, %v18184_v17  ;;  %v4189_v60 = vmul.f32 %v15963_v0, %v18181_v54  ;;  %v18200_v17 = vld [vmem:[#allocation70_spill] sm:$0xff]  ;;  %v18201_v54 = vld [vmem:[#allocation69_spill] sm:$0xff] }
 0x4be   : > { %v4316_v49 = vadd.f32 %v18201_v54, %v4188_v6 }
 0x4bf   : > { %v4317_v0 = vadd.f32 %v18200_v17, %v4189_v60 }
 0x4c1   : > { %4402 = vrot.lane.b32.xlu0 %v4062_v52, %s14312_s19  ;;  %4404 = vrot.lane.b32.xlu1 %v4063_v18, %s14312_s19  ;;  %v14296_v18 = vld [vmem:[%s14427_s17 + $0xe8] sm:$0xff]  ;;  %v18196_v52 = vld [vmem:[#allocation66_spill] sm:$0xff] }
 0x4c2   : > { %v4313_v57 = vadd.f32 %v18196_v52, %v4185_v12 }
 0x4c5   : > { %4414 = vrot.lane.b32.xlu0 %v4068_v4, %s14312_s19  ;;  %4416 = vrot.lane.b32.xlu1 %v4069_v41, %s14312_s19  ;;  %v4187_v41 = vmul.f32 %v15981_v1, %v18183_v10  ;;  %v4314_v1 = vadd.f32 %v18199_v58, %v4186_v3 }
 0x4c7   : > { %v4527_v20 = vpop.permute.xlu0 %4526  ;;  %v4315_v4 = vadd.f32 %v18198_v44, %v4187_v41 }
 0x4c8   : > { %4621 = vst.msk [vmem:[#allocation2 + $0x1e1] sm:$0xff] %vm593_vm1, %v4527_v20 }
 0x4c9   : > { %4410 = vrot.lane.b32.xlu0 %v4066_v33, %s14312_s19  ;;  %4412 = vrot.lane.b32.xlu1 %v4067_v24, %s14312_s19  ;;  %v4529_v45 = vpop.permute.xlu1 %4528 }
 0x4ca   : > { %4622 = vst.msk [vmem:[#allocation2 + $0x1e9] sm:$0xff] %vm593_vm1, %v4529_v45 }
 0x4cb   : > { %v4367_v11 = vpop.permute.xlu0 %4366 }
 0x4cc   : > { %4460 = vst.msk [vmem:[#allocation2 + $0x31] sm:$0xff] %vm593_vm1, %v4367_v11  ;;  %v16102_v11 = vld [vmem:[%s18014_s11 + $0x8] sm:$0xf] }
 0x4cd   : > { %4254 = vrot.lane.b32.xlu0 %v14293_v59, %s14309_s26  ;;  %4256 = vrot.lane.b32.xlu1 %v14294_v37, %s14309_s26  ;;  %v4369_v36 = vpop.permute.xlu1 %4368 }
 0x4ce   : > { %4461 = vst.msk [vmem:[#allocation2 + $0x39] sm:$0xff] %vm593_vm1, %v4369_v36 }
 0x4cf   : > { %v4523_v55 = vpop.permute.xlu0 %4522  ;;  %v4704_v45 = vld [vmem:[#allocation2 + $0x1e0] sm:$0xff] }
 0x4d0   : > { %4619 = vst.msk [vmem:[#allocation2 + $0x1c9] sm:$0xff] %vm593_vm1, %v4523_v55  ;;  %v5109_v55 = vsel %vm730_vm0, %v4748_v13, 0 }
 0x4d1   : > { %4418 = vrot.lane.b32.xlu0 %v4070_v34, %s14312_s19  ;;  %4420 = vrot.lane.b32.xlu1 %v4071_v35, %s14312_s19  ;;  %v4705_v50 = vld [vmem:[#allocation2 + $0x1e8] sm:$0xff] }
 0x4d2   : > { %v4734_v15 = vpack.c.bf16 %v4705_v50, %v4704_v45 }
 0x4d3   : > { %v4363_v16 = vpop.permute.xlu0 %4362  ;;  %v4754_v34 = vld [vmem:[#allocation2 + $0x31] sm:$0xff] }
 0x4d4   : > { %4458 = vst.msk [vmem:[#allocation2 + $0x19] sm:$0xff] %vm593_vm1, %v4363_v16 }
 0x4d5   : > { %4258 = vrot.lane.b32.xlu0 %v14295_v48, %s14309_s26  ;;  %4260 = vrot.lane.b32.xlu1 %v14296_v18, %s14309_s26  ;;  %v4755_v59 = vld [vmem:[#allocation2 + $0x39] sm:$0xff] }
 0x4d6   : > { %v4784_v12 = vpack.c.bf16 %v4755_v59, %v4754_v34  ;;  %v4191_v34 = vmul.f32 %v16012_v46, %v18187_v8 }
 0x4d7   : > { %v4525_v26 = vpop.permute.xlu1 %4524  ;;  %v4702_v24 = vld [vmem:[#allocation2 + $0x1c8] sm:$0xff] }
 0x4d8   : > { %4620 = vst.msk [vmem:[#allocation2 + $0x1d1] sm:$0xff] %vm593_vm1, %v4525_v26 }
 0x4d9   : > { %4550 = vrot.lane.b32.xlu0 %v4312_v63, %s14311_s18  ;;  %4552 = vrot.lane.b32.xlu1 %v4313_v57, %s14311_s18 }
 0x4db   : > { %v4535_v10 = vpop.permute.xlu0 %4534  ;;  %v4365_v30 = vpop.permute.xlu1 %4364  ;;  %v4752_v35 = vld [vmem:[#allocation2 + $0x19] sm:$0xff] }
 0x4dc   : > { %4625 = vst.msk [vmem:[#allocation2 + $0x211] sm:$0xff] %vm593_vm1, %v4535_v10  ;;  %4459 = vst.msk [vmem:[#allocation2 + $0x21] sm:$0xff] %vm593_vm1, %v4365_v30 }
 0x4dd   : > { %4554 = vrot.lane.b32.xlu0 %v4314_v1, %s14311_s18  ;;  %4556 = vrot.lane.b32.xlu1 %v4315_v4, %s14311_s18 }
 0x4df   : > { %v4375_v22 = vpop.permute.xlu0 %4374  ;;  %v4537_v51 = vpop.permute.xlu1 %4536  ;;  %v4703_v33 = vld [vmem:[#allocation2 + $0x1d0] sm:$0xff] }
 0x4e0   : > { %4464 = vst.msk [vmem:[#allocation2 + $0x61] sm:$0xff] %vm593_vm1, %v4375_v22  ;;  %4626 = vst.msk [vmem:[#allocation2 + $0x219] sm:$0xff] %vm593_vm1, %v4537_v51  ;;  %v4733_v20 = vpack.c.bf16 %v4703_v33, %v4702_v24 }
 0x4e1   : > { %4558 = vrot.lane.b32.xlu0 %v4316_v49, %s14311_s18  ;;  %4560 = vrot.lane.b32.xlu1 %v4317_v0, %s14311_s18 }
 0x4e2   : > { %12776 = vmatmul.mubr.msk.bf16.vlgmr.msra.gmra.mrb[0].mxu0 %vm593_vm1, %v4733_v20 }
 0x4e3   : > { %v4531_v37 = vpop.permute.xlu0 %4530  ;;  %12779 = vmatprep.mubr.msk.bf16.mxu0 %vm593_vm1, %v4734_v15  ;;  %v4377_v36 = vpop.permute.xlu1 %4376  ;;  %v4753_v39 = vld [vmem:[#allocation2 + $0x21] sm:$0xff]  ;;  %12808 = vmatpush3.bf16.msra.mxu0 %v5843_v42  ;;  %v4708_v3 = vld [vmem:[#allocation2 + $0x210] sm:$0xff] }
 0x4e4   : > { %4623 = vst.msk [vmem:[#allocation2 + $0x1f9] sm:$0xff] %vm593_vm1, %v4531_v37  ;;  %4465 = vst.msk [vmem:[#allocation2 + $0x69] sm:$0xff] %vm593_vm1, %v4377_v36  ;;  %v4783_v32 = vpack.c.bf16 %v4753_v39, %v4752_v35  ;;  %14103 = vmatprep.subr.msk.bf16.mxu0 %vm730_vm0, %v16102_v11 }
 0x4e6   : > { %12674 = vmatmul.mubr.msk.bf16.vlgmr.msra.gmra.mrb[64].mxu1 %vm593_vm1, %v4783_v32 }
 0x4e7   : > { %v4371_v47 = vpop.permute.xlu0 %4370  ;;  %12677 = vmatprep.mubr.msk.bf16.mxu1 %vm593_vm1, %v4784_v12  ;;  %v4533_v16 = vpop.permute.xlu1 %4532  ;;  %12706 = vmatpush3.bf16.msra.mxu1 %v5109_v55  ;;  %v4709_v52 = vld [vmem:[#allocation2 + $0x218] sm:$0xff]  ;;  %v4758_v10 = vld [vmem:[#allocation2 + $0x61] sm:$0xff]  ;;  %v4190_v55 = vmul.f32 %v16003_v23, %v18188_v38 }
 0x4e8   : > { %4462 = vst.msk [vmem:[#allocation2 + $0x49] sm:$0xff] %vm593_vm1, %v4371_v47  ;;  %4624 = vst.msk [vmem:[#allocation2 + $0x201] sm:$0xff] %vm593_vm1, %v4533_v16  ;;  %v4736_v26 = vpack.c.bf16 %v4709_v52, %v4708_v3  ;;  %v5697_v52 = vld [vmem:[#allocation2 + $0xa] sm:$0xff]  ;;  %v5699_v3 = vld [vmem:[#allocation2 + $0x22] sm:$0xff] }
 0x4eb   : > { %v4543_v48 = vpop.permute.xlu0 %4542  ;;  %v4373_v18 = vpop.permute.xlu1 %4372  ;;  %v4706_v43 = vld [vmem:[#allocation2 + $0x1f8] sm:$0xff]  ;;  %v4759_v60 = vld [vmem:[#allocation2 + $0x69] sm:$0xff] }
 0x4ec   : > { %4629 = vst.msk [vmem:[#allocation2 + $0x241] sm:$0xff] %vm593_vm1, %v4543_v48  ;;  %4463 = vst.msk [vmem:[#allocation2 + $0x51] sm:$0xff] %vm593_vm1, %v4373_v18  ;;  %v4786_v30 = vpack.c.bf16 %v4759_v60, %v4758_v10  ;;  %v5696_v18 = vld [vmem:[#allocation2 + $0x2] sm:$0xff] }
 0x4ef   : > { %v4383_v13 = vpop.permute.xlu0 %4382  ;;  %v4545_v57 = vpop.permute.xlu1 %4544  ;;  %v4707_v63 = vld [vmem:[#allocation2 + $0x200] sm:$0xff]  ;;  %v4756_v4 = vld [vmem:[#allocation2 + $0x49] sm:$0xff] }
 0x4f0   : > { %4468 = vst.msk [vmem:[#allocation2 + $0x91] sm:$0xff] %vm593_vm1, %v4383_v13  ;;  %4630 = vst.msk [vmem:[#allocation2 + $0x249] sm:$0xff] %vm593_vm1, %v4545_v57  ;;  %v4735_v41 = vpack.c.bf16 %v4707_v63, %v4706_v43  ;;  %v5728_v43 = vpack.c.bf16 %v5697_v52, %v5696_v18 }
 0x4f2   : > { %12780 = vmatmul.mubr.msk.bf16.gmra.mrb[4].mxu0 %vm593_vm1, %v4735_v41  ;;  %v5698_v41 = vld [vmem:[#allocation2 + $0x1a] sm:$0xff] }
 0x4f3   : > { %v4539_v6 = vpop.permute.xlu0 %4538  ;;  %12783 = vmatprep.mubr.msk.bf16.mxu0 %vm593_vm1, %v4736_v26  ;;  %v4385_v44 = vpop.permute.xlu1 %4384  ;;  %v4757_v58 = vld [vmem:[#allocation2 + $0x51] sm:$0xff]  ;;  %v4712_v20 = vld [vmem:[#allocation2 + $0x240] sm:$0xff]  ;;  %v5729_v10 = vpack.c.bf16 %v5699_v3, %v5698_v41 }
 0x4f4   : > { %4627 = vst.msk [vmem:[#allocation2 + $0x229] sm:$0xff] %vm593_vm1, %v4539_v6  ;;  %4469 = vst.msk [vmem:[#allocation2 + $0x99] sm:$0xff] %vm593_vm1, %v4385_v44  ;;  %v4785_v1 = vpack.c.bf16 %v4757_v58, %v4756_v4  ;;  %v16148_v26 = vld [vmem:[%s18014_s11 + $0x4] sm:$0xf]  ;;  %v5700_v6 = vld [vmem:[#allocation2 + $0x32] sm:$0xff] }
 0x4f5   : > { %v5701_v44 = vld [vmem:[#allocation2 + $0x3a] sm:$0xff]  ;;  %14099 = vmatprep.subr.msk.bf16.mxu1 %vm730_vm0, %v16148_v26 }
 0x4f6   : > { %12678 = vmatmul.mubr.msk.bf16.gmra.mrb[68].mxu1 %vm593_vm1, %v4785_v1 }
 0x4f7   : > { %v4379_v50 = vpop.permute.xlu0 %4378  ;;  %12681 = vmatprep.mubr.msk.bf16.mxu1 %vm593_vm1, %v4786_v30  ;;  %v4541_v17 = vpop.permute.xlu1 %4540  ;;  %v4713_v49 = vld [vmem:[#allocation2 + $0x248] sm:$0xff]  ;;  %v4762_v39 = vld [vmem:[#allocation2 + $0x91] sm:$0xff]  ;;  %v6087_v30 = vsel %vm730_vm0, %v16102_v11, 0 }
 0x4f8   : > { %4466 = vst.msk [vmem:[#allocation2 + $0x79] sm:$0xff] %vm593_vm1, %v4379_v50  ;;  %4628 = vst.msk [vmem:[#allocation2 + $0x231] sm:$0xff] %vm593_vm1, %v4541_v17  ;;  %v4738_v45 = vpack.c.bf16 %v4713_v49, %v4712_v20  ;;  %v5730_v50 = vpack.c.bf16 %v5701_v44, %v5700_v6 }
 0x4fb   : > { %v4391_v0 = vpop.permute.xlu0 %4390  ;;  %v4381_v54 = vpop.permute.xlu1 %4380  ;;  %v4710_v51 = vld [vmem:[#allocation2 + $0x228] sm:$0xff]  ;;  %v4763_v42 = vld [vmem:[#allocation2 + $0x99] sm:$0xff] }
 0x4fc   : > { %4472 = vst.msk [vmem:[#allocation2 + $0xc1] sm:$0xff] %vm593_vm1, %v4391_v0  ;;  %4467 = vst.msk [vmem:[#allocation2 + $0x81] sm:$0xff] %vm593_vm1, %v4381_v54  ;;  %v4788_v32 = vpack.c.bf16 %v4763_v42, %v4762_v39  ;;  %v5709_v39 = vld [vmem:[#allocation2 + $0x9a] sm:$0xff] }
 0x4ff   : > { %v4393_v22 = vpop.permute.xlu1 %4392  ;;  %v4711_v24 = vld [vmem:[#allocation2 + $0x230] sm:$0xff]  ;;  %v4760_v37 = vld [vmem:[#allocation2 + $0x79] sm:$0xff] }
 0x500   : > { %4473 = vst.msk [vmem:[#allocation2 + $0xc9] sm:$0xff] %vm593_vm1, %v4393_v22  ;;  %v4737_v33 = vpack.c.bf16 %v4711_v24, %v4710_v51  ;;  %v5702_v51 = vld [vmem:[#allocation2 + $0x4a] sm:$0xff]  ;;  %v5703_v24 = vld [vmem:[#allocation2 + $0x52] sm:$0xff] }
 0x501   : > { %v5731_v42 = vpack.c.bf16 %v5703_v24, %v5702_v51 }
 0x502   : > { %12784 = vmatmul.mubr.msk.bf16.gmra.mrb[8].mxu0 %vm593_vm1, %v4737_v33 }
 0x503   : > { %v4547_v15 = vpop.permute.xlu0 %4546  ;;  %12787 = vmatprep.mubr.msk.bf16.mxu0 %vm593_vm1, %v4738_v45  ;;  %v4549_v59 = vpop.permute.xlu1 %4548  ;;  %v4761_v36 = vld [vmem:[#allocation2 + $0x81] sm:$0xff] }
 0x504   : > { %4631 = vst.msk [vmem:[#allocation2 + $0x259] sm:$0xff] %vm593_vm1, %v4547_v15  ;;  %4632 = vst.msk [vmem:[#allocation2 + $0x261] sm:$0xff] %vm593_vm1, %v4549_v59  ;;  %v4787_v35 = vpack.c.bf16 %v4761_v36, %v4760_v37  ;;  %v5706_v37 = vld [vmem:[#allocation2 + $0x7a] sm:$0xff]  ;;  %v5707_v36 = vld [vmem:[#allocation2 + $0x82] sm:$0xff] }
 0x505   : > { %v4766_v41 = vld [vmem:[#allocation2 + $0xc1] sm:$0xff] }
 0x506   : > { %12682 = vmatmul.mubr.msk.bf16.gmra.mrb[72].mxu1 %vm593_vm1, %v4787_v35  ;;  %v5708_v35 = vld [vmem:[#allocation2 + $0x92] sm:$0xff] }
 0x507   : > { %v4243_v12 = vpop.permute.xlu0 %4242  ;;  %12685 = vmatprep.mubr.msk.bf16.mxu1 %vm593_vm1, %v4788_v32  ;;  %v4245_v47 = vpop.permute.xlu1 %4244  ;;  %v5712_v52 = vld [vmem:[#allocation2 + $0xc2] sm:$0xff] }
 0x508   : > { %v4318_v16 = vadd.f32 %v4243_v12, %v4190_v55  ;;  %v4319_v48 = vadd.f32 %v4245_v47, %v4191_v34  ;;  %v5733_v55 = vpack.c.bf16 %v5707_v36, %v5706_v37  ;;  %v5734_v12 = vpack.c.bf16 %v5709_v39, %v5708_v35 }
 0x50a   : > { %4562 = vrot.lane.b32.xlu0 %v4318_v16, %s14311_s18  ;;  %4564 = vrot.lane.b32.xlu1 %v4319_v48, %s14311_s18  ;;  %v4767_v48 = vld [vmem:[#allocation2 + $0xc9] sm:$0xff] }
 0x50b   : > { %v4387_v13 = vpop.permute.xlu0 %4386  ;;  %v4121_v57 = vpop.permute.xlu1 %4120  ;;  %v4714_v46 = vld [vmem:[#allocation2 + $0x258] sm:$0xff]  ;;  %v4715_v8 = vld [vmem:[#allocation2 + $0x260] sm:$0xff]  ;;  %v4790_v3 = vpack.c.bf16 %v4767_v48, %v4766_v41 }
 0x50c   : > { %4470 = vst.msk [vmem:[#allocation2 + $0xa9] sm:$0xff] %vm593_vm1, %v4387_v13  ;;  %v4739_v23 = vpack.c.bf16 %v4715_v8, %v4714_v46  ;;  %v4193_v60 = vmul.f32 %v4121_v57, %v18185_v14  ;;  %v5713_v13 = vld [vmem:[#allocation2 + $0xca] sm:$0xff] }
 0x50e   : > { %12788 = vmatmul.mubr.msk.bf16.gmra.mrb[12].mxu0 %vm593_vm1, %v4739_v23 }
 0x50f   : > { %v4119_v38 = vpop.permute.xlu0 %4118  ;;  %v4125_v63 = vpop.permute.xlu1 %4124  ;;  %12809 = vmatprep.mubr.msk.bf16.mxu0 %vm593_vm1, %v5728_v43 }
 0x510   : > { %v4192_v17 = vmul.f32 %v4119_v38, %v18186_v7  ;;  %v4195_v0 = vmul.f32 %v4125_v63, %v18191_v9  ;;  %v5704_v7 = vld [vmem:[#allocation2 + $0x62] sm:$0xff]  ;;  %v5705_v9 = vld [vmem:[#allocation2 + $0x6a] sm:$0xff] }
 0x511   : > { %v5732_v15 = vpack.c.bf16 %v5705_v9, %v5704_v7 }
 0x513   : > { %v4123_v4 = vpop.permute.xlu0 %4122  ;;  %v4249_v58 = vpop.permute.xlu1 %4248  ;;  %v4764_v18 = vld [vmem:[#allocation2 + $0xa9] sm:$0xff] }
 0x514   : > { %v4321_v1 = vadd.f32 %v4249_v58, %v4193_v60  ;;  %v4194_v11 = vmul.f32 %v4123_v4, %v18192_v29  ;;  %v5736_v60 = vpack.c.bf16 %v5713_v13, %v5712_v52 }
 0x516   : > { %12810 = vmatmul.mubr.msk.bf16.vlgmr.msra.gmra.mrb[16].mxu0 %vm593_vm1, %v5729_v10  ;;  %4568 = vrot.lane.b32.xlu1 %v4321_v1, %s14311_s18 }
 0x517   : > { %v4247_v14 = vpop.permute.xlu0 %4246  ;;  %12813 = vmatprep.mubr.msk.bf16.mxu0 %vm593_vm1, %v5730_v50  ;;  %v4253_v54 = vpop.permute.xlu1 %4252  ;;  %12842 = vmatpush3.bf16.msra.mxu0 %v6087_v30 }
 0x518   : > { %v4320_v49 = vadd.f32 %v4247_v14, %v4192_v17  ;;  %v4323_v22 = vadd.f32 %v4253_v54, %v4195_v0 }
 0x51a   : > { %4566 = vrot.lane.b32.xlu0 %v4320_v49, %s14311_s18  ;;  %4572 = vrot.lane.b32.xlu1 %v4323_v22, %s14311_s18 }
 0x51b   : > { %v4251_v33 = vpop.permute.xlu0 %4250  ;;  %v16163_v20 = vpop.permute.xlu1 %4128 }
 0x51c   : > { %v4322_v45 = vadd.f32 %v4251_v33, %v4194_v11 }
 0x51e   : > { %4570 = vrot.lane.b32.xlu0 %v4322_v45, %s14311_s18  ;;  %12814 = vmatmul.mubr.msk.bf16.gmra.mrb[20].mxu0 %vm593_vm1, %v5731_v42 }
 0x51f   : > { %v16167_v59 = vpop.permute.xlu0 %4126  ;;  %12817 = vmatprep.mubr.msk.bf16.mxu0 %vm593_vm1, %v5732_v15  ;;  %v16170_v29 = vpop.permute.xlu1 %4132 }
 0x520   : > { %v4196_v48 = vmul.f32 %v16167_v59, %v18190_v2 }
 0x523   : > { %v16172_v32 = vpop.permute.xlu0 %4130  ;;  %v4389_v34 = vpop.permute.xlu1 %4388 }
 0x524   : > { %4471 = vst.msk [vmem:[#allocation2 + $0xb1] sm:$0xff] %vm593_vm1, %v4389_v34 }
 0x526   : > { %12818 = vmatmul.mubr.msk.bf16.gmra.mrb[24].mxu0 %vm593_vm1, %v5733_v55 }
 0x527   : > { %v4399_v47 = vpop.permute.xlu0 %4398  ;;  %12821 = vmatprep.mubr.msk.bf16.mxu0 %vm593_vm1, %v5734_v12  ;;  %v4401_v16 = vpop.permute.xlu1 %4400 }
 0x528   : > { %4476 = vst.msk [vmem:[#allocation2 + $0xf1] sm:$0xff] %vm593_vm1, %v4399_v47  ;;  %4477 = vst.msk [vmem:[#allocation2 + $0xf9] sm:$0xff] %vm593_vm1, %v4401_v16  ;;  %v4197_v16 = vmul.f32 %v16163_v20, %v18189_v61 }
 0x52b   : > { %v4395_v57 = vpop.permute.xlu0 %4394  ;;  %v4397_v46 = vpop.permute.xlu1 %4396  ;;  %v4765_v8 = vld [vmem:[#allocation2 + $0xb1] sm:$0xff] }
 0x52c   : > { %v5710_v43 = vld [vmem:[#allocation2 + $0xaa] sm:$0xff]  ;;  %v5711_v23 = vld [vmem:[#allocation2 + $0xb2] sm:$0xff]  ;;  %4474 = vst.msk [vmem:[#allocation2 + $0xd9] sm:$0xff] %vm593_vm1, %v4395_v57  ;;  %4475 = vst.msk [vmem:[#allocation2 + $0xe1] sm:$0xff] %vm593_vm1, %v4397_v46  ;;  %v4789_v38 = vpack.c.bf16 %v4765_v8, %v4764_v18 }
 0x52d   : > { %v5735_v63 = vpack.c.bf16 %v5711_v23, %v5710_v43  ;;  %v18202_v57 = vld [vmem:[#allocation63_spill] sm:$0xff] }
 0x52e   : > { %12686 = vmatmul.mubr.msk.bf16.gmra.mrb[76].mxu1 %vm593_vm1, %v4789_v38  ;;  %v3721_v46 = vmax.f32 %v18202_v57, 0.0  ;;  %v5748_v57 = vld [vmem:[#allocation2 + $0x1e2] sm:$0xff] }
 0x52f   : > { %12822 = vmatmul.mubr.msk.bf16.gmra.mrb[28].mxu0 %vm593_vm1, %v5735_v63  ;;  %v4407_v6 = vpop.permute.xlu0 %4406  ;;  %12689 = vmatprep.mubr.msk.bf16.mxu1 %vm593_vm1, %v4790_v3  ;;  %v4409_v44 = vpop.permute.xlu1 %4408  ;;  %v4770_v4 = vld [vmem:[#allocation2 + $0xf1] sm:$0xff]  ;;  %v4771_v58 = vld [vmem:[#allocation2 + $0xf9] sm:$0xff] }
 0x530   : > { %12825 = vmatprep.mubr.msk.bf16.mxu0 %vm593_vm1, %v5736_v60  ;;  %4480 = vst.msk [vmem:[#allocation2 + $0x121] sm:$0xff] %vm593_vm1, %v4407_v6  ;;  %4481 = vst.msk [vmem:[#allocation2 + $0x129] sm:$0xff] %vm593_vm1, %v4409_v44  ;;  %v5716_v1 = vld [vmem:[#allocation2 + $0xf2] sm:$0xff]  ;;  %v5717_v10 = vld [vmem:[#allocation2 + $0xfa] sm:$0xff]  ;;  %v4792_v51 = vpack.c.bf16 %v4771_v58, %v4770_v4 }
 0x531   : > { %v5738_v24 = vpack.c.bf16 %v5717_v10, %v5716_v1  ;;  %v16209_v60 = vld [vmem:[%s14427_s17 + $0xf8] sm:$0xff]  ;;  %v4199_v10 = vmul.f32 %v16170_v29, %v18193_v25  ;;  %v4652_v29 = vld [vmem:[#allocation2 + $0x8] sm:$0xff] }
 0x532   : > { %v16212_v6 = vadd.f32 %v16209_v60, %v3721_v46  ;;  %v5749_v46 = vld [vmem:[#allocation2 + $0x1ea] sm:$0xff] }
 0x533   : > { %v4403_v30 = vpop.permute.xlu0 %4402  ;;  %v4405_v50 = vpop.permute.xlu1 %4404  ;;  %v4768_v17 = vld [vmem:[#allocation2 + $0xd9] sm:$0xff]  ;;  %v4769_v0 = vld [vmem:[#allocation2 + $0xe1] sm:$0xff] }
 0x534   : > { %v5714_v14 = vld [vmem:[#allocation2 + $0xda] sm:$0xff]  ;;  %4478 = vst.msk [vmem:[#allocation2 + $0x109] sm:$0xff] %vm593_vm1, %v4403_v30  ;;  %4479 = vst.msk [vmem:[#allocation2 + $0x111] sm:$0xff] %vm593_vm1, %v4405_v50  ;;  %v4791_v54 = vpack.c.bf16 %v4769_v0, %v4768_v17  ;;  %v5715_v49 = vld [vmem:[#allocation2 + $0xe2] sm:$0xff]  ;;  %v4198_v30 = vmul.f32 %v16172_v32, %v18194_v27 }
 0x535   : > { %v5737_v22 = vpack.c.bf16 %v5715_v49, %v5714_v14  ;;  %v18203_v14 = vld [vmem:[#allocation62_spill] sm:$0xff]  ;;  %v4651_v27 = vld [vmem:[#allocation2] sm:$0xff] }
 0x536   : > { %12690 = vmatmul.mubr.msk.bf16.gmra.mrb[80].mxu1 %vm593_vm1, %v4791_v54  ;;  %v3720_v54 = vmax.f32 %v18203_v14, 0.0  ;;  %v5744_v32 = vld [vmem:[#allocation2 + $0x1b2] sm:$0xff]  ;;  %v5754_v14 = vld [vmem:[#allocation2 + $0x22a] sm:$0xff] }
 0x537   : > { %12826 = vmatmul.mubr.msk.bf16.gmra.mrb[32].mxu0 %vm593_vm1, %v5737_v22  ;;  %v4415_v11 = vpop.permute.xlu0 %4414  ;;  %12693 = vmatprep.mubr.msk.bf16.mxu1 %vm593_vm1, %v4792_v51  ;;  %v4417_v7 = vpop.permute.xlu1 %4416  ;;  %v4774_v9 = vld [vmem:[#allocation2 + $0x121] sm:$0xff]  ;;  %v4775_v33 = vld [vmem:[#allocation2 + $0x129] sm:$0xff] }
 0x538   : > { %4484 = vst.msk [vmem:[#allocation2 + $0x151] sm:$0xff] %vm593_vm1, %v4415_v11  ;;  %12829 = vmatprep.mubr.msk.bf16.mxu0 %vm593_vm1, %v5738_v24  ;;  %4485 = vst.msk [vmem:[#allocation2 + $0x159] sm:$0xff] %vm593_vm1, %v4417_v7  ;;  %v5720_v45 = vld [vmem:[#allocation2 + $0x122] sm:$0xff]  ;;  %v5721_v42 = vld [vmem:[#allocation2 + $0x12a] sm:$0xff]  ;;  %v4794_v47 = vpack.c.bf16 %v4775_v33, %v4774_v9 }
 0x539   : > { %v5740_v18 = vpack.c.bf16 %v5721_v42, %v5720_v45  ;;  %v5745_v22 = vld [vmem:[#allocation2 + $0x1ba] sm:$0xff]  ;;  %v16230_v33 = vld [vmem:[%s14427_s17 + $0xf0] sm:$0xff]  ;;  %s17783_s17 = scalar_lea.vmem %s18019_s16, %s14421_s28 }
 0x53a   : > { %v16233_v45 = vadd.f32 %v16230_v33, %v3720_v54  ;;  %v5755_v54 = vld [vmem:[#allocation2 + $0x232] sm:$0xff] }
 0x53b   : > { %v4411_v15 = vpop.permute.xlu0 %4410  ;;  %v4413_v37 = vpop.permute.xlu1 %4412  ;;  %v4772_v36 = vld [vmem:[#allocation2 + $0x109] sm:$0xff]  ;;  %v4773_v35 = vld [vmem:[#allocation2 + $0x111] sm:$0xff] }
 0x53c   : > { %v5718_v39 = vld [vmem:[#allocation2 + $0x10a] sm:$0xff]  ;;  %4482 = vst.msk [vmem:[#allocation2 + $0x139] sm:$0xff] %vm593_vm1, %v4411_v15  ;;  %4483 = vst.msk [vmem:[#allocation2 + $0x141] sm:$0xff] %vm593_vm1, %v4413_v37  ;;  %v4793_v34 = vpack.c.bf16 %v4773_v35, %v4772_v36  ;;  %v5719_v55 = vld [vmem:[#allocation2 + $0x112] sm:$0xff]  ;;  %v4683_v37 = vpack.c.bf16 %v4652_v29, %v4651_v27  ;;  %v5776_v36 = vpack.c.bf16 %v5745_v22, %v5744_v32 }
 0x53d   : > { %v5739_v12 = vpack.c.bf16 %v5719_v55, %v5718_v39  ;;  %v6378_v39 = vld [vmem:[%s18011_s8 + $0xc] sm:$0xf]  ;;  %v5756_v27 = vld [vmem:[#allocation2 + $0x242] sm:$0xff]  ;;  %v4663_v22 = vld [vmem:[#allocation2 + $0x90] sm:$0xff] }
 0x53e   : > { %12694 = vmatmul.mubr.msk.bf16.gmra.mrb[84].mxu1 %vm593_vm1, %v4793_v34  ;;  %14104 = vmatprep.subr.msk.bf16.mxu0 %vm730_vm0, %v6378_v39  ;;  %v5757_v29 = vld [vmem:[#allocation2 + $0x24a] sm:$0xff] }
 0x53f   : > { %12830 = vmatmul.mubr.msk.bf16.gmra.mrb[36].mxu0 %vm593_vm1, %v5739_v12  ;;  %v4255_v52 = vpop.permute.xlu0 %4254  ;;  %12697 = vmatprep.mubr.msk.bf16.mxu1 %vm593_vm1, %v4794_v47  ;;  %v4257_v13 = vpop.permute.xlu1 %4256  ;;  %v4778_v61 = vld [vmem:[#allocation2 + $0x151] sm:$0xff]  ;;  %v4779_v2 = vld [vmem:[#allocation2 + $0x159] sm:$0xff] }
 0x540   : > { %v4324_v8 = vadd.f32 %v4255_v52, %v4196_v48  ;;  %12833 = vmatprep.mubr.msk.bf16.mxu0 %vm593_vm1, %v5740_v18  ;;  %v4325_v43 = vadd.f32 %v4257_v13, %v4197_v16  ;;  %v5724_v20 = vld [vmem:[#allocation2 + $0x152] sm:$0xff]  ;;  %v5725_v59 = vld [vmem:[#allocation2 + $0x15a] sm:$0xff]  ;;  %v4796_v1 = vpack.c.bf16 %v4779_v2, %v4778_v61  ;;  %v5746_v47 = vld [vmem:[#allocation2 + $0x1ca] sm:$0xff] }
 0x541   : > { %v5742_v50 = vpack.c.bf16 %v5725_v59, %v5724_v20  ;;  %v4654_v12 = vld [vmem:[#allocation2 + $0x20] sm:$0xff]  ;;  %v5747_v16 = vld [vmem:[#allocation2 + $0x1d2] sm:$0xff]  ;;  %v5321_v20 = vsel %vm730_vm0, %v16148_v26, 0  ;;  %v5778_v59 = vpack.c.bf16 %v5749_v46, %v5748_v57 }
 0x542   : > { %4574 = vrot.lane.b32.xlu0 %v4324_v8, %s14311_s18  ;;  %4576 = vrot.lane.b32.xlu1 %v4325_v43, %s14311_s18  ;;  %v4656_v48 = vld [vmem:[#allocation2 + $0x38] sm:$0xff]  ;;  %v4655_v43 = vld [vmem:[#allocation2 + $0x30] sm:$0xff]  ;;  %v5777_v61 = vpack.c.bf16 %v5747_v16, %v5746_v47  ;;  %v14299_v26 = vld [vmem:[%s18014_s11] sm:$0xf] }
 0x543   : > { %v4419_v23 = vpop.permute.xlu0 %4418  ;;  %v4421_v38 = vpop.permute.xlu1 %4420  ;;  %v4776_v63 = vld [vmem:[#allocation2 + $0x139] sm:$0xff]  ;;  %v4777_v41 = vld [vmem:[#allocation2 + $0x141] sm:$0xff]  ;;  %v16257_v2 = vpack.c.bf16 %v4656_v48, %v4655_v43 }
 0x544   : > { %v5722_v3 = vld [vmem:[#allocation2 + $0x13a] sm:$0xff]  ;;  %4486 = vst.msk [vmem:[#allocation2 + $0x169] sm:$0xff] %vm593_vm1, %v4419_v23  ;;  %4487 = vst.msk [vmem:[#allocation2 + $0x171] sm:$0xff] %vm593_vm1, %v4421_v38  ;;  %v4795_v44 = vpack.c.bf16 %v4777_v41, %v4776_v63  ;;  %v5723_v4 = vld [vmem:[#allocation2 + $0x142] sm:$0xff]  ;;  %v6429_v23 = vsel %vm730_vm0, %v6378_v39, 0 }
 0x545   : > { %v5741_v58 = vpack.c.bf16 %v5723_v4, %v5722_v3  ;;  %v4653_v13 = vld [vmem:[#allocation2 + $0x18] sm:$0xff]  ;;  %v4658_v38 = vld [vmem:[#allocation2 + $0x50] sm:$0xff]  ;;  %v5751_v41 = vld [vmem:[#allocation2 + $0x202] sm:$0xff] }
 0x546   : > { %12698 = vmatmul.mubr.msk.bf16.gmra.mrb[88].mxu1 %vm593_vm1, %v4795_v44  ;;  %3848 = vrot.lane.b32.xlu1 %v16212_v6, %s14310_s15  ;;  %v16255_v8 = vpack.c.bf16 %v4654_v12, %v4653_v13  ;;  %v5750_v63 = vld [vmem:[#allocation2 + $0x1fa] sm:$0xff]  ;;  %v4660_v3 = vld [vmem:[#allocation2 + $0x68] sm:$0xff]  ;;  %v5752_v4 = vld [vmem:[#allocation2 + $0x212] sm:$0xff] }
 0x547   : > { %12834 = vmatmul.mubr.msk.bf16.gmra.mrb[40].mxu0 %vm593_vm1, %v5741_v58  ;;  %v4259_v17 = vpop.permute.xlu0 %4258  ;;  %12701 = vmatprep.mubr.msk.bf16.mxu1 %vm593_vm1, %v4796_v1  ;;  %v4261_v0 = vpop.permute.xlu1 %4260  ;;  %v4657_v44 = vld [vmem:[#allocation2 + $0x48] sm:$0xff]  ;;  %v5753_v58 = vld [vmem:[#allocation2 + $0x21a] sm:$0xff] }
 0x548   : > { %v4326_v49 = vadd.f32 %v4259_v17, %v4198_v30  ;;  %12837 = vmatprep.mubr.msk.bf16.mxu0 %vm593_vm1, %v5742_v50  ;;  %v4327_v25 = vadd.f32 %v4261_v0, %v4199_v10  ;;  %v16272_v1 = vpack.c.bf16 %v4658_v38, %v4657_v44  ;;  %v4659_v10 = vld [vmem:[#allocation2 + $0x60] sm:$0xff]  ;;  %v5779_v30 = vpack.c.bf16 %v5751_v41, %v5750_v63  ;;  %v4669_v16 = vld [vmem:[#allocation2 + $0xd8] sm:$0xff]  ;;  %v4673_v38 = vld [vmem:[#allocation2 + $0x108] sm:$0xff] }
 0x549   : > { %v16274_v50 = vpack.c.bf16 %v4660_v3, %v4659_v10  ;;  %v5780_v17 = vpack.c.bf16 %v5753_v58, %v5752_v4  ;;  %v4662_v0 = vld [vmem:[#allocation2 + $0x80] sm:$0xff]  ;;  %v4672_v57 = vld [vmem:[#allocation2 + $0xf8] sm:$0xff]  ;;  %v4676_v41 = vld [vmem:[#allocation2 + $0x128] sm:$0xff] }
 0x54a   : > { %4578 = vrot.lane.b32.xlu0 %v4326_v49, %s14311_s18  ;;  %4580 = vrot.lane.b32.xlu1 %v4327_v25, %s14311_s18  ;;  %v4664_v49 = vld [vmem:[#allocation2 + $0x98] sm:$0xff]  ;;  %v4670_v48 = vld [vmem:[#allocation2 + $0xe0] sm:$0xff] }
 0x54b   : > { %v4551_v51 = vpop.permute.xlu0 %4550  ;;  %v4553_v24 = vpop.permute.xlu1 %4552  ;;  %v4780_v11 = vld [vmem:[#allocation2 + $0x169] sm:$0xff]  ;;  %v4781_v7 = vld [vmem:[#allocation2 + $0x171] sm:$0xff]  ;;  %v4675_v63 = vld [vmem:[#allocation2 + $0x120] sm:$0xff] }
 0x54c   : > { %v5726_v9 = vld [vmem:[#allocation2 + $0x16a] sm:$0xff]  ;;  %4633 = vst.msk [vmem:[#allocation2 + $0x271] sm:$0xff] %vm593_vm1, %v4551_v51  ;;  %4634 = vst.msk [vmem:[#allocation2 + $0x279] sm:$0xff] %vm593_vm1, %v4553_v24  ;;  %v4797_v42 = vpack.c.bf16 %v4781_v7, %v4780_v11  ;;  %v5727_v15 = vld [vmem:[#allocation2 + $0x172] sm:$0xff]  ;;  %v5781_v51 = vpack.c.bf16 %v5755_v54, %v5754_v14  ;;  %v16284_v24 = vpack.c.bf16 %v4664_v49, %v4663_v22 }
 0x54d   : > { %v5743_v35 = vpack.c.bf16 %v5727_v15, %v5726_v9  ;;  %v4661_v25 = vld [vmem:[#allocation2 + $0x78] sm:$0xff]  ;;  %v5782_v11 = vpack.c.bf16 %v5757_v29, %v5756_v27  ;;  %v4666_v7 = vld [vmem:[#allocation2 + $0xb0] sm:$0xff]  ;;  %v4668_v15 = vld [vmem:[#allocation2 + $0xc8] sm:$0xff]  ;;  %v16316_v58 = vpack.c.bf16 %v4676_v41, %v4675_v63 }
 0x54e   : > { %3846 = vrot.lane.b32.xlu0 %v16233_v45, %s14310_s15  ;;  %12702 = vmatmul.mubr.msk.bf16.gmra.mrb[92].mxu1 %vm593_vm1, %v4797_v42  ;;  %v16282_v32 = vpack.c.bf16 %v4662_v0, %v4661_v25  ;;  %v5758_v9 = vld [vmem:[#allocation2 + $0x25a] sm:$0xff]  ;;  %v5759_v42 = vld [vmem:[#allocation2 + $0x262] sm:$0xff]  ;;  %v4798_v22 = vld [vmem:[#allocation2 + $0x1b1] sm:$0xff] }
 0x54f   : > { %12838 = vmatmul.mubr.msk.bf16.gmra.mrb[44].mxu0 %vm593_vm1, %v5743_v35  ;;  %4008 = vrot.lane.b32.xlu1 %v16209_v60, %s14310_s15  ;;  %v4555_v34 = vpop.permute.xlu0 %4554  ;;  %v4557_v55 = vpop.permute.xlu1 %4556  ;;  %v4677_v10 = vld [vmem:[#allocation2 + $0x138] sm:$0xff] }
 0x550   : > { %4635 = vst.msk [vmem:[#allocation2 + $0x289] sm:$0xff] %vm593_vm1, %v4555_v34  ;;  %4636 = vst.msk [vmem:[#allocation2 + $0x291] sm:$0xff] %vm593_vm1, %v4557_v55  ;;  %12707 = vmatprep.mubr.msk.bf16.mxu1 %vm593_vm1, %v4683_v37  ;;  %12843 = vmatprep.mubr.msk.bf16.mxu0 %vm593_vm1, %v5776_v36  ;;  %v4665_v37 = vld [vmem:[#allocation2 + $0xa8] sm:$0xff]  ;;  %v4667_v34 = vld [vmem:[#allocation2 + $0xc0] sm:$0xff]  ;;  %v5783_v55 = vpack.c.bf16 %v5759_v42, %v5758_v9 }
 0x551   : > { %v16292_v39 = vpack.c.bf16 %v4666_v7, %v4665_v37  ;;  %v16294_v12 = vpack.c.bf16 %v4668_v15, %v4667_v34  ;;  %v4680_v0 = vld [vmem:[#allocation2 + $0x158] sm:$0xff]  ;;  %v4682_v7 = vld [vmem:[#allocation2 + $0x170] sm:$0xff] }
 0x552   : > { %4006 = vrot.lane.b32.xlu0 %v16230_v33, %s14310_s15  ;;  %v4803_v34 = vld [vmem:[#allocation2 + $0x1e9] sm:$0xff]  ;;  %v4806_v41 = vld [vmem:[#allocation2 + $0x211] sm:$0xff] }
 0x553   : > { %v4559_v18 = vpop.permute.xlu0 %4558  ;;  %v4561_v52 = vpop.permute.xlu1 %4560  ;;  %v5760_v36 = vld [vmem:[#allocation2 + $0x272] sm:$0xff]  ;;  %v5761_v35 = vld [vmem:[#allocation2 + $0x27a] sm:$0xff] }
 0x554   : > { %4637 = vst.msk [vmem:[#allocation2 + $0x2a1] sm:$0xff] %vm593_vm1, %v4559_v18  ;;  %4638 = vst.msk [vmem:[#allocation2 + $0x2a9] sm:$0xff] %vm593_vm1, %v4561_v52  ;;  %v5784_v47 = vpack.c.bf16 %v5761_v35, %v5760_v36  ;;  %v4671_v18 = vld [vmem:[#allocation2 + $0xf0] sm:$0xff] }
 0x555   : > { %v4801_v35 = vld [vmem:[#allocation2 + $0x1d1] sm:$0xff] }
 0x556   : > { %12708 = vmatmul.mubr.msk.bf16.vlgmr.msra.gmra.mrb[64].mxu1 %vm593_vm1, %v16255_v8 }
 0x557   : > { %12844 = vmatmul.mubr.msk.bf16.vlgmr.msra.gmra.mrb[0].mxu0 %vm593_vm1, %v5777_v61  ;;  %12711 = vmatprep.mubr.msk.bf16.mxu1 %vm593_vm1, %v16257_v2  ;;  %v5762_v52 = vld [vmem:[#allocation2 + $0x28a] sm:$0xff]  ;;  %v5763_v13 = vld [vmem:[#allocation2 + $0x292] sm:$0xff]  ;;  %v16302_v61 = vpack.c.bf16 %v4670_v48, %v4669_v16  ;;  %v4802_v16 = vld [vmem:[#allocation2 + $0x1e1] sm:$0xff] }
 0x558   : > { %12847 = vmatprep.mubr.msk.bf16.mxu0 %vm593_vm1, %v5778_v59  ;;  %12740 = vmatpush3.bf16.msra.mxu1 %v5321_v20  ;;  %v5785_v20 = vpack.c.bf16 %v5763_v13, %v5762_v52  ;;  %v16304_v59 = vpack.c.bf16 %v4672_v57, %v4671_v18  ;;  %v4832_v52 = vpack.c.bf16 %v4803_v34, %v4802_v16  ;;  %v16344_v57 = vld [vmem:[%s18017_s14] sm:$0xf] }
 0x559   : > { %12876 = vmatpush3.bf16.msra.mxu0 %v6429_v23  ;;  %14101 = vmatprep.subr.msk.bf16.mxu1 %vm730_vm0, %v14299_v26  ;;  %v4674_v26 = vld [vmem:[#allocation2 + $0x110] sm:$0xff] }
 0x55a   : > { %v16312_v4 = vpack.c.bf16 %v4674_v26, %v4673_v38  ;;  %v4807_v38 = vld [vmem:[#allocation2 + $0x219] sm:$0xff] }
 0x55b   : > { %v5764_v46 = vld [vmem:[#allocation2 + $0x2a2] sm:$0xff]  ;;  %v5765_v43 = vld [vmem:[#allocation2 + $0x2aa] sm:$0xff]  ;;  %v4804_v26 = vld [vmem:[#allocation2 + $0x1f9] sm:$0xff] }
 0x55c   : > { %v5786_v23 = vpack.c.bf16 %v5765_v43, %v5764_v46 }
 0x55e   : > { %12712 = vmatmul.mubr.msk.bf16.gmra.mrb[68].mxu1 %vm593_vm1, %v16272_v1 }
 0x55f   : > { %12848 = vmatmul.mubr.msk.bf16.gmra.mrb[4].mxu0 %vm593_vm1, %v5779_v30  ;;  %12715 = vmatprep.mubr.msk.bf16.mxu1 %vm593_vm1, %v16274_v50  ;;  %v4678_v30 = vld [vmem:[#allocation2 + $0x140] sm:$0xff] }
 0x560   : > { %12851 = vmatprep.mubr.msk.bf16.mxu0 %vm593_vm1, %v5780_v17  ;;  %v4679_v17 = vld [vmem:[#allocation2 + $0x150] sm:$0xff]  ;;  %v16322_v14 = vpack.c.bf16 %v4678_v30, %v4677_v10 }
 0x561   : > { %v16324_v25 = vpack.c.bf16 %v4680_v0, %v4679_v17  ;;  %v4811_v10 = vld [vmem:[#allocation2 + $0x249] sm:$0xff]  ;;  %v4810_v17 = vld [vmem:[#allocation2 + $0x241] sm:$0xff] }
 0x562   : > { %v4808_v30 = vld [vmem:[#allocation2 + $0x229] sm:$0xff]  ;;  %v4836_v0 = vpack.c.bf16 %v4811_v10, %v4810_v17  ;;  %v18205_v17 = vld [vmem:[#allocation24_spill] sm:$0xff] }
 0x566   : > { %12716 = vmatmul.mubr.msk.bf16.gmra.mrb[72].mxu1 %vm593_vm1, %v16282_v32 }
 0x567   : > { %12852 = vmatmul.mubr.msk.bf16.gmra.mrb[8].mxu0 %vm593_vm1, %v5781_v51  ;;  %12719 = vmatprep.mubr.msk.bf16.mxu1 %vm593_vm1, %v16284_v24  ;;  %v4799_v51 = vld [vmem:[#allocation2 + $0x1b9] sm:$0xff] }
 0x568   : > { %12855 = vmatprep.mubr.msk.bf16.mxu0 %vm593_vm1, %v5782_v11  ;;  %v4681_v11 = vld [vmem:[#allocation2 + $0x168] sm:$0xff]  ;;  %v4830_v9 = vpack.c.bf16 %v4799_v51, %v4798_v22 }
 0x569   : > { %v16332_v37 = vpack.c.bf16 %v4682_v7, %v4681_v11  ;;  %v4816_v11 = vld [vmem:[#allocation2 + $0x289] sm:$0xff]  ;;  %v4817_v7 = vld [vmem:[#allocation2 + $0x291] sm:$0xff] }
 0x56e   : > { %12720 = vmatmul.mubr.msk.bf16.gmra.mrb[76].mxu1 %vm593_vm1, %v16292_v39 }
 0x56f   : > { %12856 = vmatmul.mubr.msk.bf16.gmra.mrb[12].mxu0 %vm593_vm1, %v5783_v55  ;;  %12723 = vmatprep.mubr.msk.bf16.mxu1 %vm593_vm1, %v16294_v12  ;;  %v4800_v55 = vld [vmem:[#allocation2 + $0x1c9] sm:$0xff] }
 0x570   : > { %12859 = vmatprep.mubr.msk.bf16.mxu0 %vm593_vm1, %v5784_v47  ;;  %v4831_v47 = vpack.c.bf16 %v4801_v35, %v4800_v55  ;;  %v4839_v35 = vpack.c.bf16 %v4817_v7, %v4816_v11 }
 0x576   : > { %12724 = vmatmul.mubr.msk.bf16.gmra.mrb[80].mxu1 %vm593_vm1, %v16302_v61 }
 0x577   : > { %12860 = vmatmul.mubr.msk.bf16.gmra.mrb[48].mxu0 %vm593_vm1, %v5785_v20  ;;  %12727 = vmatprep.mubr.msk.bf16.mxu1 %vm593_vm1, %v16304_v59 }
 0x578   : > { %12863 = vmatprep.mubr.msk.bf16.mxu0 %vm593_vm1, %v5786_v23  ;;  %v4805_v23 = vld [vmem:[#allocation2 + $0x201] sm:$0xff] }
 0x579   : > { %v4833_v63 = vpack.c.bf16 %v4805_v23, %v4804_v26  ;;  %v18204_v26 = vld [vmem:[#allocation26_spill] sm:$0xff] }
 0x57c   : > { %v4563_v3 = vpop.permute.xlu0 %4562  ;;  %v4565_v44 = vpop.permute.xlu1 %4564 }
 0x57d   : > { %4639 = vst.msk [vmem:[#allocation2 + $0x2b9] sm:$0xff] %vm593_vm1, %v4563_v3  ;;  %4640 = vst.msk [vmem:[#allocation2 + $0x2c1] sm:$0xff] %vm593_vm1, %v4565_v44  ;;  %v4834_v3 = vpack.c.bf16 %v4807_v38, %v4806_v41  ;;  %v4809_v44 = vld [vmem:[#allocation2 + $0x231] sm:$0xff] }
 0x57e   : > { %12728 = vmatmul.mubr.msk.bf16.gmra.mrb[84].mxu1 %vm593_vm1, %v16312_v4 }
 0x57f   : > { %12731 = vmatprep.mubr.msk.bf16.mxu1 %vm593_vm1, %v16316_v58 }
 0x584   : > { %v5766_v54 = vld [vmem:[#allocation2 + $0x2ba] sm:$0xff]  ;;  %v5767_v49 = vld [vmem:[#allocation2 + $0x2c2] sm:$0xff] }
 0x585   : > { %v5787_v27 = vpack.c.bf16 %v5767_v49, %v5766_v54  ;;  %v4812_v54 = vld [vmem:[#allocation2 + $0x259] sm:$0xff]  ;;  %v4813_v49 = vld [vmem:[#allocation2 + $0x261] sm:$0xff] }
 0x586   : > { %12732 = vmatmul.mubr.msk.bf16.gmra.mrb[88].mxu1 %vm593_vm1, %v16322_v14  ;;  %v4837_v22 = vpack.c.bf16 %v4813_v49, %v4812_v54  ;;  %v4821_v16 = vld [vmem:[#allocation2 + $0x2c1] sm:$0xff] }
 0x587   : > { %12735 = vmatprep.mubr.msk.bf16.mxu1 %vm593_vm1, %v16324_v25  ;;  %12864 = vmatmul.mubr.msk.bf16.gmra.mrb[52].mxu0 %vm593_vm1, %v5787_v27  ;;  %v4814_v27 = vld [vmem:[#allocation2 + $0x271] sm:$0xff] }
 0x588   : > { %v4569_v29 = vpop.permute.xlu1 %4568 }
 0x589   : > { %4642 = vst.msk [vmem:[#allocation2 + $0x2d9] sm:$0xff] %vm593_vm1, %v4569_v29  ;;  %v4815_v29 = vld [vmem:[#allocation2 + $0x279] sm:$0xff] }
 0x58a   : > { %v4838_v51 = vpack.c.bf16 %v4815_v29, %v4814_v27 }
 0x58c   : > { %v4567_v42 = vpop.permute.xlu0 %4566  ;;  %v4573_v15 = vpop.permute.xlu1 %4572 }
 0x58d   : > { %4641 = vst.msk [vmem:[#allocation2 + $0x2d1] sm:$0xff] %vm593_vm1, %v4567_v42  ;;  %4644 = vst.msk [vmem:[#allocation2 + $0x2f1] sm:$0xff] %vm593_vm1, %v4573_v15  ;;  %v4819_v42 = vld [vmem:[#allocation2 + $0x2a9] sm:$0xff] }
 0x58e   : > { %12736 = vmatmul.mubr.msk.bf16.gmra.mrb[92].mxu1 %vm593_vm1, %v16332_v37 }
 0x58f   : > { %12741 = vmatprep.mubr.msk.bf16.mxu1 %vm593_vm1, %v4830_v9  ;;  %v4818_v9 = vld [vmem:[#allocation2 + $0x2a1] sm:$0xff] }
 0x590   : > { %v4571_v36 = vpop.permute.xlu0 %4570  ;;  %v5769_v18 = vld [vmem:[#allocation2 + $0x2da] sm:$0xff]  ;;  %v4840_v34 = vpack.c.bf16 %v4819_v42, %v4818_v9  ;;  %v6379_v9 = vld [vmem:[%s18014_s11 + $0xc] sm:$0xf] }
 0x591   : > { %4643 = vst.msk [vmem:[#allocation2 + $0x2e9] sm:$0xff] %vm593_vm1, %v4571_v36  ;;  %14105 = vmatprep.subr.msk.bf16.mxu0 %vm730_vm0, %v6379_v9 }
 0x594   : > { %v5768_v48 = vld [vmem:[#allocation2 + $0x2d2] sm:$0xff] }
 0x595   : > { %v5788_v13 = vpack.c.bf16 %v5769_v18, %v5768_v48  ;;  %v5771_v43 = vld [vmem:[#allocation2 + $0x2f2] sm:$0xff] }
 0x596   : > { %12742 = vmatmul.mubr.msk.bf16.vlgmr.msra.gmra.mrb[96].mxu1 %vm593_vm1, %v4831_v47  ;;  %v4820_v47 = vld [vmem:[#allocation2 + $0x2b9] sm:$0xff]  ;;  %v4822_v48 = vld [vmem:[#allocation2 + $0x2d1] sm:$0xff] }
 0x597   : > { %12745 = vmatprep.mubr.msk.bf16.mxu1 %vm593_vm1, %v4832_v52  ;;  %12867 = vmatprep.mubr.msk.bf16.mxu0 %vm593_vm1, %v5788_v13  ;;  %v16362_v13 = vpack.c.bf16 %v4821_v16, %v4820_v47  ;;  %v4825_v54 = vld [vmem:[#allocation2 + $0x2f1] sm:$0xff]  ;;  %v4720_v16 = vld [vmem:[#allocation2 + $0x2a0] sm:$0xff] }
 0x598   : > { %v5770_v46 = vld [vmem:[#allocation2 + $0x2ea] sm:$0xff]  ;;  %13318 = vmatpush3.bf16.msra.mxu1 %v15873_v5  ;;  %v4835_v5 = vpack.c.bf16 %v4809_v44, %v4808_v30 }
 0x599   : > { %v5789_v20 = vpack.c.bf16 %v5771_v43, %v5770_v46  ;;  %14116 = vmatprep.subr.msk.bf16.mxu1 %vm730_vm0, %v16344_v57  ;;  %v4823_v46 = vld [vmem:[#allocation2 + $0x2d9] sm:$0xff]  ;;  %v4824_v44 = vld [vmem:[#allocation2 + $0x2e9] sm:$0xff] }
 0x59a   : > { %v16366_v23 = vpack.c.bf16 %v4823_v46, %v4822_v48  ;;  %v16376_v27 = vpack.c.bf16 %v4825_v54, %v4824_v44  ;;  %v4719_v47 = vld [vmem:[#allocation2 + $0x290] sm:$0xff]  ;;  %v4721_v48 = vld [vmem:[#allocation2 + $0x2a8] sm:$0xff] }
 0x59b   : > { %12868 = vmatmul.mubr.msk.bf16.gmra.mrb[56].mxu0 %vm593_vm1, %v5789_v20  ;;  %v4724_v46 = vld [vmem:[#allocation2 + $0x2d0] sm:$0xff] }
 0x59c   : > { %v18212_v54 = vld [vmem:[#allocation41_spill] sm:$0xff] }
 0x59e   : > { %12746 = vmatmul.mubr.msk.bf16.gmra.mrb[100].mxu1 %vm593_vm1, %v4833_v63 }
 0x59f   : > { %12749 = vmatprep.mubr.msk.bf16.mxu1 %vm593_vm1, %v4834_v3 }
 0x5a6   : > { %12750 = vmatmul.mubr.msk.bf16.gmra.mrb[104].mxu1 %vm593_vm1, %v4835_v5 }
 0x5a7   : > { %12753 = vmatprep.mubr.msk.bf16.mxu1 %vm593_vm1, %v4836_v0 }
 0x5ae   : > { %12754 = vmatmul.mubr.msk.bf16.gmra.mrb[108].mxu1 %vm593_vm1, %v4837_v22 }
 0x5af   : > { %12757 = vmatprep.mubr.msk.bf16.mxu1 %vm593_vm1, %v4838_v51 }
 0x5b4   : > { %v4575_v15 = vpop.permute.xlu0 %4574  ;;  %v4577_v36 = vpop.permute.xlu1 %4576 }
 0x5b5   : > { %4645 = vst.msk [vmem:[#allocation2 + $0x301] sm:$0xff] %vm593_vm1, %v4575_v15  ;;  %4646 = vst.msk [vmem:[#allocation2 + $0x309] sm:$0xff] %vm593_vm1, %v4577_v36  ;;  %v4716_v36 = vld [vmem:[#allocation2 + $0x270] sm:$0xff] }
 0x5b6   : > { %12758 = vmatmul.mubr.msk.bf16.gmra.mrb[112].mxu1 %vm593_vm1, %v4839_v35  ;;  %v4717_v35 = vld [vmem:[#allocation2 + $0x278] sm:$0xff] }
 0x5b7   : > { %12761 = vmatprep.mubr.msk.bf16.mxu1 %vm593_vm1, %v4840_v34 }
 0x5b8   : > { %v3849_v55 = vpop.permute.xlu1 %3848 }
 0x5b9   : > { %v3913_v63 = vmul.f32 %v3849_v55, %v18204_v26  ;;  %v16400_v55 = vpack.c.bf16 %v4717_v35, %v4716_v36  ;;  %v18224_v36 = vld [vmem:[#allocation49_spill] sm:$0xff]  ;;  %v18225_v35 = vld [vmem:[#allocation50_spill] sm:$0xff] }
 0x5bc   : > { %v4579_v18 = vpop.permute.xlu0 %4578  ;;  %v4581_v52 = vpop.permute.xlu1 %4580  ;;  %v5772_v43 = vld [vmem:[#allocation2 + $0x302] sm:$0xff]  ;;  %v5773_v20 = vld [vmem:[#allocation2 + $0x30a] sm:$0xff] }
 0x5bd   : > { %4647 = vst.msk [vmem:[#allocation2 + $0x319] sm:$0xff] %vm593_vm1, %v4579_v18  ;;  %4648 = vst.msk [vmem:[#allocation2 + $0x321] sm:$0xff] %vm593_vm1, %v4581_v52  ;;  %v5790_v38 = vpack.c.bf16 %v5773_v20, %v5772_v43  ;;  %v4826_v30 = vld [vmem:[#allocation2 + $0x301] sm:$0xff]  ;;  %v4827_v5 = vld [vmem:[#allocation2 + $0x309] sm:$0xff]  ;;  %v10092_v52 = vsel %vm730_vm0, %v16344_v57, 0 }
 0x5be   : > { %12762 = vmatmul.mubr.msk.bf16.gmra.mrb[116].mxu1 %vm593_vm1, %v16362_v13  ;;  %v16378_v11 = vpack.c.bf16 %v4827_v5, %v4826_v30  ;;  %v4725_v43 = vld [vmem:[#allocation2 + $0x2d8] sm:$0xff]  ;;  %v18207_v30 = vld [vmem:[#allocation36_spill] sm:$0xff] }
 0x5bf   : > { %12765 = vmatprep.mubr.msk.bf16.mxu1 %vm593_vm1, %v16366_v23  ;;  %12871 = vmatprep.mubr.msk.bf16.mxu0 %vm593_vm1, %v5790_v38  ;;  %v16429_v20 = vpack.c.bf16 %v4725_v43, %v4724_v46  ;;  %v4728_v38 = vld [vmem:[#allocation2 + $0x300] sm:$0xff]  ;;  %v18236_v46 = vld [vmem:[#allocation57_spill] sm:$0xff]  ;;  %v18237_v43 = vld [vmem:[#allocation58_spill] sm:$0xff] }
 0x5c0   : > { %v3847_v41 = vpop.permute.xlu0 %3846 }
 0x5c1   : > { %v4009_v3 = vpop.permute.xlu1 %4008  ;;  %v3912_v0 = vmul.f32 %v3847_v41, %v18205_v17 }
 0x5c2   : > { %v4073_v10 = vadd.f32 %v4009_v3, %v3913_v63  ;;  %v4729_v63 = vld [vmem:[#allocation2 + $0x308] sm:$0xff] }
 0x5c3   : > { %v16441_v3 = vpack.c.bf16 %v4729_v63, %v4728_v38  ;;  %v10031_v38 = vpack.c.bf16 %v15811_v21, %v15831_v62  ;;  %v10032_v63 = vpack.c.bf16 %v15803_v28, %v15821_v19  ;;  %v10034_v62 = vpack.c.bf16 %v16212_v6, %v16233_v45 }
 0x5c4   : > { %4424 = vrot.lane.b32.xlu1 %v4073_v10, %s14312_s19  ;;  %v4007_v49 = vpop.permute.xlu0 %4006  ;;  %v5774_v29 = vld [vmem:[#allocation2 + $0x31a] sm:$0xff]  ;;  %v5775_v22 = vld [vmem:[#allocation2 + $0x322] sm:$0xff] }
 0x5c5   : > { %v4072_v51 = vadd.f32 %v4007_v49, %v3912_v0  ;;  %v5791_v7 = vpack.c.bf16 %v5775_v22, %v5774_v29  ;;  %v4828_v42 = vld [vmem:[#allocation2 + $0x319] sm:$0xff]  ;;  %v4829_v15 = vld [vmem:[#allocation2 + $0x321] sm:$0xff]  ;;  %v18206_v10 = vld [vmem:[#allocation37_spill] sm:$0xff] }
 0x5c6   : > { %12766 = vmatmul.mubr.msk.bf16.gmra.mrb[120].mxu1 %vm593_vm1, %v16376_v27  ;;  %v16398_v34 = vpack.c.bf16 %v4829_v15, %v4828_v42  ;;  %v18208_v5 = vpack.c.bf16 %v18206_v10, %v18207_v30  ;;  %v18213_v49 = vld [vmem:[#allocation42_spill] sm:$0xff]  ;;  %v18216_v22 = vld [vmem:[#allocation40_spill] sm:$0xff] }
 0x5c7   : > { %4422 = vrot.lane.b32.xlu0 %v4072_v51, %s14312_s19  ;;  %12769 = vmatprep.mubr.msk.bf16.mxu1 %vm593_vm1, %v16378_v11  ;;  %v18214_v29 = vpack.c.bf16 %v18212_v54, %v18213_v49  ;;  %v18222_v42 = vld [vmem:[#allocation44_spill] sm:$0xff] }
 0x5c8   : > { %12872 = vmatmul.mubr.msk.bf16.gmra.mrb[60].mxu0 %vm593_vm1, %v5791_v7  ;;  %4136 = vrot.lane.b32.xlu1 %v16212_v6, %s14309_s26  ;;  %v18219_v7 = vld [vmem:[#allocation46_spill] sm:$0xff] }
 0x5c9   : > { %12877 = vmatprep.mubr.msk.bf16.mxu0 %vm593_vm1, %v16255_v8  ;;  %v6673_v8 = vsel %vm730_vm0, %v6379_v9, 0 }
 0x5cb   : > { %4134 = vrot.lane.b32.xlu0 %v16233_v45, %s14309_s26 }
 0x5cc   : > { %4264 = vrot.lane.b32.xlu1 %v16209_v60, %s14309_s26  ;;  %v4718_v60 = vld [vmem:[#allocation2 + $0x288] sm:$0xff] }
 0x5cd   : > { %v16413_v18 = vpack.c.bf16 %v4719_v47, %v4718_v60  ;;  %v18230_v47 = vld [vmem:[#allocation55_spill] sm:$0xff] }
 0x5ce   : > { %12770 = vmatmul.mubr.msk.bf16.gmra.mrb[124].mxu1 %vm593_vm1, %v16398_v34 }
 0x5cf   : > { %4262 = vrot.lane.b32.xlu0 %v16230_v33, %s14309_s26  ;;  %12791 = vmatprep.mubr.msk.bf16.mxu1 %vm593_vm1, %v16400_v55  ;;  %v16417_v33 = vpack.c.bf16 %v4721_v48, %v4720_v16  ;;  %v18231_v16 = vld [vmem:[#allocation56_spill] sm:$0xff] }
 0x5d0   : > { %12878 = vmatmul.mubr.msk.bf16.vlgmr.msra.gmra.mrb[16].mxu0 %vm593_vm1, %v16257_v2  ;;  %v4722_v2 = vld [vmem:[#allocation2 + $0x2b8] sm:$0xff]  ;;  %v18232_v48 = vpack.c.bf16 %v18230_v47, %v18231_v16 }
 0x5d1   : > { %12881 = vmatprep.mubr.msk.bf16.mxu0 %vm593_vm1, %v16272_v1  ;;  %12910 = vmatpush3.bf16.msra.mxu0 %v6673_v8  ;;  %v4723_v1 = vld [vmem:[#allocation2 + $0x2c0] sm:$0xff]  ;;  %v18226_v8 = vpack.c.bf16 %v18224_v36, %v18225_v35  ;;  %v6330_v36 = vld [vmem:[#allocation2 + $0x1c8] sm:$0xff] }
 0x5d2   : > { %v16427_v57 = vpack.c.bf16 %v4723_v1, %v4722_v2  ;;  %v18234_v2 = vld [vmem:[#allocation54_spill] sm:$0xff] }
 0x5d6   : > { %12792 = vmatmul.mubr.msk.bf16.vlgmr.msra.gmra.mrb[112].mxu1 %vm593_vm1, %v16413_v18 }
 0x5d7   : > { %12795 = vmatprep.mubr.msk.bf16.mxu1 %vm593_vm1, %v16417_v33  ;;  %13284 = vmatpush3.bf16.msra.mxu1 %v10092_v52  ;;  %v18233_v52 = vld [vmem:[#allocation53_spill] sm:$0xff] }
 0x5d8   : > { %12882 = vmatmul.mubr.msk.bf16.gmra.mrb[20].mxu0 %vm593_vm1, %v16274_v50  ;;  %v4726_v50 = vld [vmem:[#allocation2 + $0x2e8] sm:$0xff]  ;;  %v18235_v1 = vpack.c.bf16 %v18233_v52, %v18234_v2 }
 0x5d9   : > { %12885 = vmatprep.mubr.msk.bf16.mxu0 %vm593_vm1, %v16282_v32  ;;  %v4727_v32 = vld [vmem:[#allocation2 + $0x2f0] sm:$0xff] }
 0x5da   : > { %v16439_v41 = vpack.c.bf16 %v4727_v32, %v4726_v50  ;;  %v18238_v50 = vpack.c.bf16 %v18236_v46, %v18237_v43  ;;  %v10030_v32 = vpack.c.bf16 %v15776_v40, %v15790_v56  ;;  %v16584_v46 = vld [vmem:[%s18014_s11 + $0x10] sm:$0xf] }
 0x5de   : > { %12796 = vmatmul.mubr.msk.bf16.gmra.mrb[116].mxu1 %vm593_vm1, %v16427_v57 }
 0x5df   : > { %12799 = vmatprep.mubr.msk.bf16.mxu1 %vm593_vm1, %v16429_v20 }
 0x5e0   : > { %12886 = vmatmul.mubr.msk.bf16.gmra.mrb[24].mxu0 %vm593_vm1, %v16284_v24  ;;  %v4730_v24 = vld [vmem:[#allocation2 + $0x318] sm:$0xff] }
 0x5e1   : > { %12889 = vmatprep.mubr.msk.bf16.mxu0 %vm593_vm1, %v16292_v39  ;;  %v4731_v39 = vld [vmem:[#allocation2 + $0x320] sm:$0xff] }
 0x5e2   : > { %v16451_v44 = vpack.c.bf16 %v4731_v39, %v4730_v24  ;;  %v10033_v24 = vpack.c.bf16 %v15824_v31, %v15840_v53 }
 0x5e6   : > { %12800 = vmatmul.mubr.msk.bf16.gmra.mrb[120].mxu1 %vm593_vm1, %v16439_v41 }
 0x5e7   : > { %12803 = vmatprep.mubr.msk.bf16.mxu1 %vm593_vm1, %v16441_v3 }
 0x5e8   : > { %12890 = vmatmul.mubr.msk.bf16.gmra.mrb[28].mxu0 %vm593_vm1, %v16294_v12  ;;  %v18209_v12 = vld [vmem:[#allocation34_spill] sm:$0xff] }
 0x5e9   : > { %12893 = vmatprep.mubr.msk.bf16.mxu0 %vm593_vm1, %v16302_v61  ;;  %v18210_v61 = vld [vmem:[#allocation33_spill] sm:$0xff] }
 0x5ea   : > { %v18211_v0 = vpack.c.bf16 %v18209_v12, %v18210_v61 }
 0x5ee   : > { %12804 = vmatmul.mubr.msk.bf16.gmra.mrb[124].mxu1 %vm593_vm1, %v16451_v44 }
 0x5ef   : > { %13285 = vmatprep.mubr.msk.bf16.mxu1 %vm593_vm1, %v18208_v5 }
 0x5f0   : > { %12894 = vmatmul.mubr.msk.bf16.gmra.mrb[32].mxu0 %vm593_vm1, %v16304_v59  ;;  %v18215_v59 = vld [vmem:[#allocation39_spill] sm:$0xff] }
 0x5f1   : > { %12897 = vmatprep.mubr.msk.bf16.mxu0 %vm593_vm1, %v16312_v4  ;;  %v18217_v51 = vpack.c.bf16 %v18215_v59, %v18216_v22  ;;  %v18218_v4 = vld [vmem:[#allocation45_spill] sm:$0xff] }
 0x5f2   : > { %v18220_v9 = vpack.c.bf16 %v18218_v4, %v18219_v7  ;;  %v6331_v22 = vld [vmem:[#allocation2 + $0x1d0] sm:$0xff] }
 0x5f6   : > { %13286 = vmatmul.mubr.msk.bf16.vlgmr.msra.gmra.mrb[128].mxu1 %vm593_vm1, %v18211_v0 }
 0x5f7   : > { %13289 = vmatprep.mubr.msk.bf16.mxu1 %vm593_vm1, %v18214_v29 }
 0x5f8   : > { %12898 = vmatmul.mubr.msk.bf16.gmra.mrb[36].mxu0 %vm593_vm1, %v16316_v58  ;;  %v16490_v58 = vld [vmem:[%s18011_s8 + $0x10] sm:$0xf] }
 0x5f9   : > { %12901 = vmatprep.mubr.msk.bf16.mxu0 %vm593_vm1, %v16322_v14  ;;  %14106 = vmatprep.subr.msk.bf16.mxu0 %vm730_vm0, %v16490_v58  ;;  %v18221_v14 = vld [vmem:[#allocation43_spill] sm:$0xff]  ;;  %v7015_v52 = vsel %vm730_vm0, %v16490_v58, 0  ;;  %v6339_v58 = vld [vmem:[#allocation2 + $0x230] sm:$0xff] }
 0x5fa   : > { %v18223_v15 = vpack.c.bf16 %v18221_v14, %v18222_v42 }
 0x5fe   : > { %13290 = vmatmul.mubr.msk.bf16.gmra.mrb[132].mxu1 %vm593_vm1, %v18217_v51 }
 0x5ff   : > { %13293 = vmatprep.mubr.msk.bf16.mxu1 %vm593_vm1, %v18220_v9 }
 0x600   : > { %12902 = vmatmul.mubr.msk.bf16.gmra.mrb[40].mxu0 %vm593_vm1, %v16324_v25  ;;  %v18227_v25 = vld [vmem:[#allocation47_spill] sm:$0xff] }
 0x601   : > { %12905 = vmatprep.mubr.msk.bf16.mxu0 %vm593_vm1, %v16332_v37  ;;  %v18228_v37 = vld [vmem:[#allocation48_spill] sm:$0xff] }
 0x602   : > { %v18229_v60 = vpack.c.bf16 %v18227_v25, %v18228_v37  ;;  %v6335_v25 = vld [vmem:[#allocation2 + $0x200] sm:$0xff] }
 0x606   : > { %13294 = vmatmul.mubr.msk.bf16.gmra.mrb[136].mxu1 %vm593_vm1, %v18223_v15 }
 0x607   : > { %13297 = vmatprep.mubr.msk.bf16.mxu1 %vm593_vm1, %v18226_v8 }
 0x60e   : > { %13298 = vmatmul.mubr.msk.bf16.gmra.mrb[140].mxu1 %vm593_vm1, %v18229_v60  ;;  %v6332_v60 = vld [vmem:[#allocation2 + $0x1e0] sm:$0xff] }
 0x60f   : > { %13301 = vmatprep.mubr.msk.bf16.mxu1 %vm593_vm1, %v18232_v48  ;;  %v6334_v48 = vld [vmem:[#allocation2 + $0x1f8] sm:$0xff] }
 0x616   : > { %13302 = vmatmul.mubr.msk.bf16.gmra.mrb[144].mxu1 %vm593_vm1, %v18235_v1  ;;  %v6364_v1 = vpack.c.bf16 %v6335_v25, %v6334_v48 }
 0x617   : > { %13305 = vmatprep.mubr.msk.bf16.mxu1 %vm593_vm1, %v18238_v50  ;;  %v6337_v50 = vld [vmem:[#allocation2 + $0x218] sm:$0xff] }
 0x61e   : > { %13306 = vmatmul.mubr.msk.bf16.gmra.mrb[148].mxu1 %vm593_vm1, %v10030_v32 }
 0x61f   : > { %13309 = vmatprep.mubr.msk.bf16.mxu1 %vm593_vm1, %v10031_v38  ;;  %v6336_v38 = vld [vmem:[#allocation2 + $0x210] sm:$0xff] }
 0x626   : > { %13310 = vmatmul.mubr.msk.bf16.gmra.mrb[152].mxu1 %vm593_vm1, %v10032_v63 }
 0x627   : > { %13313 = vmatprep.mubr.msk.bf16.mxu1 %vm593_vm1, %v10033_v24  ;;  %v6365_v24 = vpack.c.bf16 %v6337_v50, %v6336_v38 }
 0x629   : > { %v16530_v39 = vpop.f32.mrb[64].mxu1 }
 0x62a   : > { %v16532_v40 = vpop.f32.mrb[65].mxu1 }
 0x62b   : > { %v16534_v56 = vpop.f32.mrb[66].mxu1 }
 0x62c   : > { %v16536_v21 = vpop.f32.mrb[67].mxu1 }
 0x62e   : > { %13314 = vmatmul.mubr.msk.bf16.gmra.mrb[156].mxu1 %vm593_vm1, %v10034_v62  ;;  %v6338_v62 = vld [vmem:[#allocation2 + $0x228] sm:$0xff] }
 0x631   : > { %v16541_v28 = vpop.f32.mrb[68].mxu1 }
 0x632   : > { %v16543_v19 = vpop.f32.mrb[69].mxu1 }
 0x633   : > { %v16545_v31 = vpop.f32.mrb[70].mxu1 }
 0x634   : > { %v16547_v53 = vpop.f32.mrb[71].mxu1 }
 0x636   : > { %v4425_v10 = vpop.permute.xlu1 %4424 }
 0x637   : > { %4489 = vst.msk [vmem:[#allocation2 + $0x189] sm:$0xff] %vm593_vm1, %v4425_v10 }
 0x639   : > { %v4423_v30 = vpop.permute.xlu0 %4422  ;;  %v16550_v5 = vpop.f32.mrb[72].mxu1 }
 0x63a   : > { %4488 = vst.msk [vmem:[#allocation2 + $0x181] sm:$0xff] %vm593_vm1, %v4423_v30  ;;  %v4137_v12 = vpop.permute.xlu1 %4136  ;;  %v16553_v6 = vpop.f32.mrb[73].mxu1  ;;  %v6366_v30 = vpack.c.bf16 %v6339_v58, %v6338_v62 }
 0x63b   : > { %v16555_v45 = vpop.f32.mrb[74].mxu1  ;;  %v4201_v0 = vmul.f32 %v4137_v12, %v18204_v26  ;;  %v6362_v26 = vpack.c.bf16 %v6331_v22, %v6330_v36 }
 0x63c   : > { %v16557_v61 = vpop.f32.mrb[75].mxu1 }
 0x63d   : > { %18239 = vst [vmem:[#allocation4_spill] sm:$0xff] %v16557_v61  ;;  %v4135_v54 = vpop.permute.xlu0 %4134 }
 0x63e   : > { %v4265_v49 = vpop.permute.xlu1 %4264  ;;  %v4200_v59 = vmul.f32 %v4135_v54, %v18205_v17  ;;  %v6333_v17 = vld [vmem:[#allocation2 + $0x1e8] sm:$0xff]  ;;  %v6342_v54 = vld [vmem:[#allocation2 + $0x258] sm:$0xff] }
 0x63f   : > { %v4329_v29 = vadd.f32 %v4265_v49, %v4201_v0  ;;  %v6363_v16 = vpack.c.bf16 %v6333_v17, %v6332_v60  ;;  %v6341_v0 = vld [vmem:[#allocation2 + $0x248] sm:$0xff]  ;;  %v6343_v49 = vld [vmem:[#allocation2 + $0x260] sm:$0xff] }
 0x641   : > { %4584 = vrot.lane.b32.xlu1 %v4329_v29, %s14311_s18  ;;  %v4263_v51 = vpop.permute.xlu0 %4262  ;;  %v16562_v4 = vpop.f32.mrb[76].mxu1  ;;  %v6312_v7 = vld [vmem:[#allocation2 + $0x180] sm:$0xff]  ;;  %v6313_v9 = vld [vmem:[#allocation2 + $0x188] sm:$0xff] }
 0x642   : > { %18240 = vst [vmem:[#allocation6_spill] sm:$0xff] %v16562_v4  ;;  %v4328_v14 = vadd.f32 %v4263_v51, %v4200_v59  ;;  %v16564_v42 = vpop.f32.mrb[77].mxu1  ;;  %v6329_v15 = vpack.c.bf16 %v6313_v9, %v6312_v7  ;;  %v6340_v59 = vld [vmem:[#allocation2 + $0x240] sm:$0xff]  ;;  %v6368_v9 = vpack.c.bf16 %v6343_v49, %v6342_v54 }
 0x643   : > { %18241 = vst [vmem:[#allocation32_spill] sm:$0xff] %v16564_v42  ;;  %v16566_v35 = vpop.f32.mrb[78].mxu1  ;;  %v6367_v51 = vpack.c.bf16 %v6341_v0, %v6340_v59 }
 0x644   : > { %18242 = vst [vmem:[#allocation5_spill] sm:$0xff] %v16566_v35  ;;  %4582 = vrot.lane.b32.xlu0 %v4328_v14, %s14311_s18  ;;  %v16569_v8 = vpop.f32.mrb[79].mxu1  ;;  %12906 = vmatmul.mubr.msk.bf16.gmra.mrb[44].mxu0 %vm593_vm1, %v6329_v15 }
 0x645   : > { %18243 = vst [vmem:[#allocation7_spill] sm:$0xff] %v16569_v8  ;;  %12911 = vmatprep.mubr.msk.bf16.mxu0 %vm593_vm1, %v6362_v26 }
 0x649   : > { %v16573_v37 = vpop.f32.mrb[80].mxu1 }
 0x64a   : > { %18244 = vst [vmem:[#allocation30_spill] sm:$0xff] %v16573_v37  ;;  %v16575_v47 = vpop.f32.mrb[81].mxu1 }
 0x64b   : > { %18245 = vst [vmem:[#allocation31_spill] sm:$0xff] %v16575_v47  ;;  %v16579_v2 = vpop.f32.mrb[82].mxu1 }
 0x64c   : > { %18246 = vst [vmem:[#allocation51_spill] sm:$0xff] %v16579_v2  ;;  %v16586_v43 = vpop.f32.mrb[83].mxu1  ;;  %12912 = vmatmul.mubr.msk.bf16.vlgmr.msra.gmra.mrb[0].mxu0 %vm593_vm1, %v6363_v16  ;;  %v8110_v2 = vld [vmem:[#allocation2 + $0x2d8] sm:$0xff] }
 0x64d   : > { %18247 = vst [vmem:[#allocation8_spill] sm:$0xff] %v16586_v43  ;;  %12915 = vmatprep.mubr.msk.bf16.mxu0 %vm593_vm1, %v6364_v1  ;;  %12944 = vmatpush3.bf16.msra.mxu0 %v7015_v52  ;;  %v8109_v43 = vld [vmem:[#allocation2 + $0x2d0] sm:$0xff] }
 0x64e   : > { %14107 = vmatprep.subr.msk.bf16.mxu0 %vm730_vm0, %v16584_v46 }
 0x651   : > { %v16592_v32 = vpop.f32.mrb[84].mxu1 }
 0x652   : > { %18248 = vst [vmem:[#allocation52_spill] sm:$0xff] %v16592_v32  ;;  %v16594_v63 = vpop.f32.mrb[85].mxu1  ;;  %v10259_v32 = vld [vmem:[%s16989_s21 + $0x20] sm:$0xff] }
 0x653   : > { %18249 = vst [vmem:[#allocation10_spill] sm:$0xff] %v16594_v63  ;;  %v16596_v10 = vpop.f32.mrb[86].mxu1  ;;  %v7471_v63 = vld [vmem:[#allocation2 + $0xe2] sm:$0xff] }
 0x654   : > { %18250 = vst [vmem:[#allocation61_spill] sm:$0xff] %v16596_v10  ;;  %v16598_v12 = vpop.f32.mrb[87].mxu1  ;;  %12916 = vmatmul.mubr.msk.bf16.gmra.mrb[4].mxu0 %vm593_vm1, %v6365_v24  ;;  %v7470_v10 = vld [vmem:[#allocation2 + $0xda] sm:$0xff] }
 0x655   : > { %18251 = vst [vmem:[#allocation11_spill] sm:$0xff] %v16598_v12  ;;  %12919 = vmatprep.mubr.msk.bf16.mxu0 %vm593_vm1, %v6366_v30  ;;  %v7469_v12 = vld [vmem:[#allocation2 + $0xca] sm:$0xff] }
 0x659   : > { %v16602_v29 = vpop.f32.mrb[88].mxu1 }
 0x65a   : > { %18252 = vst [vmem:[#allocation9_spill] sm:$0xff] %v16602_v29  ;;  %v16604_v22 = vpop.f32.mrb[89].mxu1  ;;  %v16902_v29 = vld [vmem:[%s18011_s8 + $0x18] sm:$0xf] }
 0x65b   : > { %18253 = vst [vmem:[#allocation38_spill] sm:$0xff] %v16604_v22  ;;  %v16606_v7 = vpop.f32.mrb[90].mxu1 }
 0x65c   : > { %18254 = vst [vmem:[#allocation35_spill] sm:$0xff] %v16606_v7  ;;  %v16608_v14 = vpop.f32.mrb[91].mxu1  ;;  %12920 = vmatmul.mubr.msk.bf16.gmra.mrb[8].mxu0 %vm593_vm1, %v6367_v51 }
 0x65d   : > { %18255 = vst [vmem:[#allocation28_spill] sm:$0xff] %v16608_v14  ;;  %12923 = vmatprep.mubr.msk.bf16.mxu0 %vm593_vm1, %v6368_v9 }
 0x661   : > { %v16612_v15 = vpop.f32.mrb[92].mxu1 }
 0x662   : > { %18256 = vst [vmem:[#allocation29_spill] sm:$0xff] %v16612_v15  ;;  %v16614_v36 = vpop.f32.mrb[93].mxu1 }
 0x663   : > { %18257 = vst [vmem:[#allocation59_spill] sm:$0xff] %v16614_v36  ;;  %v16616_v26 = vpop.f32.mrb[94].mxu1 }
 0x664   : > { %18258 = vst [vmem:[#allocation60_spill] sm:$0xff] %v16616_v26  ;;  %v16618_v17 = vpop.f32.mrb[95].mxu1  ;;  %12924 = vmatmul.mubr.msk.bf16.gmra.mrb[12].mxu0 %vm593_vm1, %v16400_v55  ;;  %v6918_v26 = vld [vmem:[#allocation2 + $0x1e1] sm:$0xff] }
 0x665   : > { %18259 = vst [vmem:[#allocation14_spill] sm:$0xff] %v16618_v17  ;;  %12927 = vmatprep.mubr.msk.bf16.mxu0 %vm593_vm1, %v16413_v18  ;;  %v6921_v17 = vld [vmem:[#allocation2 + $0x201] sm:$0xff] }
 0x669   : > { %v16624_v25 = vpop.f32.mrb[96].mxu1 }
 0x66a   : > { %18260 = vst [vmem:[#allocation12_spill] sm:$0xff] %v16624_v25  ;;  %v16626_v60 = vpop.f32.mrb[97].mxu1 }
 0x66b   : > { %18261 = vst [vmem:[#allocation15_spill] sm:$0xff] %v16626_v60  ;;  %v16628_v16 = vpop.f32.mrb[98].mxu1  ;;  %v6917_v60 = vld [vmem:[#allocation2 + $0x1d1] sm:$0xff] }
 0x66c   : > { %18262 = vst [vmem:[#allocation13_spill] sm:$0xff] %v16628_v16  ;;  %v16630_v48 = vpop.f32.mrb[99].mxu1  ;;  %12928 = vmatmul.mubr.msk.bf16.gmra.mrb[48].mxu0 %vm593_vm1, %v16417_v33  ;;  %v6898_v16 = vld [vmem:[#allocation2 + $0x181] sm:$0xff] }
 0x66d   : > { %18263 = vst [vmem:[#allocation18_spill] sm:$0xff] %v16630_v48  ;;  %12931 = vmatprep.mubr.msk.bf16.mxu0 %vm593_vm1, %v16427_v57  ;;  %v6895_v48 = vld [vmem:[#allocation2 + $0x159] sm:$0xff] }
 0x671   : > { %v16636_v52 = vpop.f32.mrb[100].mxu1 }
 0x672   : > { %18264 = vst [vmem:[#allocation16_spill] sm:$0xff] %v16636_v52  ;;  %v16638_v55 = vpop.f32.mrb[101].mxu1  ;;  %v6894_v52 = vld [vmem:[#allocation2 + $0x151] sm:$0xff] }
 0x673   : > { %18265 = vst [vmem:[#allocation19_spill] sm:$0xff] %v16638_v55  ;;  %v16640_v1 = vpop.f32.mrb[102].mxu1  ;;  %v6891_v55 = vld [vmem:[#allocation2 + $0x129] sm:$0xff] }
 0x674   : > { %18266 = vst [vmem:[#allocation17_spill] sm:$0xff] %v16640_v1  ;;  %v16642_v18 = vpop.f32.mrb[103].mxu1  ;;  %12932 = vmatmul.mubr.msk.bf16.gmra.mrb[52].mxu0 %vm593_vm1, %v16429_v20  ;;  %v6890_v1 = vld [vmem:[#allocation2 + $0x121] sm:$0xff] }
 0x675   : > { %18267 = vst [vmem:[#allocation22_spill] sm:$0xff] %v16642_v18  ;;  %12935 = vmatprep.mubr.msk.bf16.mxu0 %vm593_vm1, %v16439_v41  ;;  %v6887_v18 = vld [vmem:[#allocation2 + $0xf9] sm:$0xff] }
 0x679   : > { %v16648_v50 = vpop.f32.mrb[104].mxu1 }
 0x67a   : > { %18268 = vst [vmem:[#allocation20_spill] sm:$0xff] %v16648_v50  ;;  %v16650_v33 = vpop.f32.mrb[105].mxu1  ;;  %v6886_v50 = vld [vmem:[#allocation2 + $0xf1] sm:$0xff] }
 0x67b   : > { %18269 = vst [vmem:[#allocation23_spill] sm:$0xff] %v16650_v33  ;;  %v16652_v58 = vpop.f32.mrb[106].mxu1  ;;  %v6882_v33 = vld [vmem:[#allocation2 + $0xc1] sm:$0xff] }
 0x67c   : > { %18270 = vst [vmem:[#allocation21_spill] sm:$0xff] %v16652_v58  ;;  %v16654_v57 = vpop.f32.mrb[107].mxu1  ;;  %12936 = vmatmul.mubr.msk.bf16.gmra.mrb[56].mxu0 %vm593_vm1, %v16441_v3  ;;  %v6883_v58 = vld [vmem:[#allocation2 + $0xc9] sm:$0xff] }
 0x67d   : > { %18271 = vst [vmem:[#allocation27_spill] sm:$0xff] %v16654_v57  ;;  %12939 = vmatprep.mubr.msk.bf16.mxu0 %vm593_vm1, %v16451_v44 }
 0x681   : > { %v16660_v38 = vpop.f32.mrb[108].mxu1 }
 0x682   : > { %18272 = vst [vmem:[#allocation25_spill] sm:$0xff] %v16660_v38  ;;  %v16662_v20 = vpop.f32.mrb[109].mxu1  ;;  %v6879_v38 = vld [vmem:[#allocation2 + $0x99] sm:$0xff] }
 0x683   : > { %18273 = vst [vmem:[#allocation64_spill] sm:$0xff] %v16662_v20  ;;  %v16664_v24 = vpop.f32.mrb[110].mxu1 }
 0x684   : > { %18274 = vst [vmem:[#allocation66_spill] sm:$0xff] %v16664_v24  ;;  %v16666_v41 = vpop.f32.mrb[111].mxu1 }
 0x685   : > { %18275 = vst [vmem:[#allocation65_spill] sm:$0xff] %v16666_v41 }
 0x6a9   : > { %v16668_v62 = vpop.f32.mrb[112].mxu1 }
 0x6aa   : > { %18276 = vst [vmem:[#allocation68_spill] sm:$0xff] %v16668_v62  ;;  %v16670_v30 = vpop.f32.mrb[113].mxu1 }
 0x6ab   : > { %18277 = vst [vmem:[#allocation67_spill] sm:$0xff] %v16670_v30  ;;  %v16672_v0 = vpop.f32.mrb[114].mxu1 }
 0x6ac   : > { %18278 = vst [vmem:[#allocation70_spill] sm:$0xff] %v16672_v0  ;;  %v16674_v54 = vpop.f32.mrb[115].mxu1 }
 0x6ad   : > { %18279 = vst [vmem:[#allocation69_spill] sm:$0xff] %v16674_v54 }
 0x6b1   : > { %v16676_v3 = vpop.f32.mrb[116].mxu1 }
 0x6b2   : > { %18280 = vst [vmem:[#allocation63_spill] sm:$0xff] %v16676_v3  ;;  %v16678_v49 = vpop.f32.mrb[117].mxu1  ;;  %v6869_v3 = vld [vmem:[#allocation2 + $0x21] sm:$0xff] }
 0x6b3   : > { %18281 = vst [vmem:[#allocation62_spill] sm:$0xff] %v16678_v49  ;;  %v4585_v44 = vpop.permute.xlu1 %4584  ;;  %v16680_v59 = vpop.f32.mrb[118].mxu1 }
 0x6b4   : > { %18282 = vst [vmem:[#allocation26_spill] sm:$0xff] %v16680_v59  ;;  %4650 = vst.msk [vmem:[#allocation2 + $0x339] sm:$0xff] %vm593_vm1, %v4585_v44  ;;  %v16683_v51 = vpop.f32.mrb[119].mxu1  ;;  %v6868_v59 = vld [vmem:[#allocation2 + $0x19] sm:$0xff] }
 0x6b5   : > { %18283 = vst [vmem:[#allocation24_spill] sm:$0xff] %v16683_v51  ;;  %v6900_v44 = vpack.c.bf16 %v6869_v3, %v6868_v59  ;;  %v6870_v51 = vld [vmem:[#allocation2 + $0x31] sm:$0xff]  ;;  %v7259_v3 = vsel %vm730_vm0, %v16584_v46, 0 }
 0x6b6   : > { %v4583_v9 = vpop.permute.xlu0 %4582 }
 0x6b7   : > { %4649 = vst.msk [vmem:[#allocation2 + $0x331] sm:$0xff] %vm593_vm1, %v4583_v9 }
 0x6b9   : > { %v16686_v62 = vpop.f32.mrb[120].mxu1 }
 0x6ba   : > { %18284 = vst [vmem:[#allocation37_spill] sm:$0xff] %v16686_v62  ;;  %v16688_v30 = vpop.f32.mrb[121].mxu1  ;;  %v6873_v62 = vld [vmem:[#allocation2 + $0x51] sm:$0xff] }
 0x6bb   : > { %18285 = vst [vmem:[#allocation36_spill] sm:$0xff] %v16688_v30  ;;  %v16690_v0 = vpop.f32.mrb[122].mxu1 }
 0x6bc   : > { %18286 = vst [vmem:[#allocation34_spill] sm:$0xff] %v16690_v0  ;;  %v16692_v54 = vpop.f32.mrb[123].mxu1 }
 0x6bd   : > { %18287 = vst [vmem:[#allocation33_spill] sm:$0xff] %v16692_v54  ;;  %v6871_v54 = vld [vmem:[#allocation2 + $0x39] sm:$0xff] }
 0x6be   : > { %v6360_v49 = vld [vmem:[#allocation2 + $0x330] sm:$0xff]  ;;  %v6361_v41 = vld [vmem:[#allocation2 + $0x338] sm:$0xff] }
 0x6bf   : > { %v16694_v24 = vpack.c.bf16 %v6361_v41, %v6360_v49  ;;  %v16707_v41 = vpack.c.bf16 %v6871_v54, %v6870_v51  ;;  %v6872_v49 = vld [vmem:[#allocation2 + $0x49] sm:$0xff] }
 0x6c0   : > { %v16711_v59 = vpack.c.bf16 %v6873_v62, %v6872_v49  ;;  %v6875_v51 = vld [vmem:[#allocation2 + $0x69] sm:$0xff]  ;;  %v6877_v49 = vld [vmem:[#allocation2 + $0x81] sm:$0xff] }
 0x6c1   : > { %v16696_v20 = vpop.f32.mrb[124].mxu1  ;;  %12940 = vmatmul.mubr.msk.bf16.gmra.mrb[60].mxu0 %vm593_vm1, %v16694_v24 }
 0x6c2   : > { %18288 = vst [vmem:[#allocation41_spill] sm:$0xff] %v16696_v20  ;;  %v16700_v9 = vpop.f32.mrb[125].mxu1  ;;  %12945 = vmatprep.mubr.msk.bf16.mxu0 %vm593_vm1, %v6900_v44  ;;  %v6876_v20 = vld [vmem:[#allocation2 + $0x79] sm:$0xff] }
 0x6c3   : > { %18289 = vst [vmem:[#allocation42_spill] sm:$0xff] %v16700_v9  ;;  %v16703_v30 = vpop.f32.mrb[126].mxu1  ;;  %v16716_v9 = vld [vmem:[%s18011_s8 + $0x14] sm:$0xf] }
 0x6c4   : > { %18290 = vst [vmem:[#allocation39_spill] sm:$0xff] %v16703_v30  ;;  %v16705_v0 = vpop.f32.mrb[127].mxu1 }
 0x6c5   : > { %18291 = vst [vmem:[#allocation40_spill] sm:$0xff] %v16705_v0  ;;  %v6874_v0 = vld [vmem:[#allocation2 + $0x61] sm:$0xff] }
 0x6c6   : > { %v16732_v30 = vpack.c.bf16 %v6875_v51, %v6874_v0  ;;  %v6881_v0 = vld [vmem:[#allocation2 + $0xb1] sm:$0xff] }
 0x6c7   : > { %v6878_v51 = vld [vmem:[#allocation2 + $0x91] sm:$0xff] }
 0x6c8   : > { %v16748_v57 = vpack.c.bf16 %v6879_v38, %v6878_v51  ;;  %v6884_v38 = vld [vmem:[#allocation2 + $0xd9] sm:$0xff]  ;;  %v6885_v51 = vld [vmem:[#allocation2 + $0xe1] sm:$0xff] }
 0x6c9   : > { %12946 = vmatmul.mubr.msk.bf16.vlgmr.msra.gmra.mrb[16].mxu0 %vm593_vm1, %v16707_v41  ;;  %v16720_v44 = vpop.f32.mrb[128].mxu1 }
 0x6ca   : > { %18292 = vst [vmem:[#allocation45_spill] sm:$0xff] %v16720_v44  ;;  %12978 = vmatpush3.bf16.msra.mxu0 %v7259_v3  ;;  %12949 = vmatprep.mubr.msk.bf16.mxu0 %vm593_vm1, %v16711_v59  ;;  %v16724_v54 = vpop.f32.mrb[129].mxu1  ;;  %v16734_v44 = vpack.c.bf16 %v6877_v49, %v6876_v20  ;;  %v6880_v20 = vld [vmem:[#allocation2 + $0xa9] sm:$0xff] }
 0x6cb   : > { %18293 = vst [vmem:[#allocation46_spill] sm:$0xff] %v16724_v54  ;;  %v16726_v46 = vpop.f32.mrb[130].mxu1  ;;  %14108 = vmatprep.subr.msk.bf16.mxu0 %vm730_vm0, %v16716_v9  ;;  %v16750_v49 = vpack.c.bf16 %v6881_v0, %v6880_v20  ;;  %v16764_v0 = vpack.c.bf16 %v6883_v58, %v6882_v33  ;;  %v16766_v20 = vpack.c.bf16 %v6885_v51, %v6884_v38  ;;  %v6888_v33 = vld [vmem:[#allocation2 + $0x109] sm:$0xff]  ;;  %v6889_v58 = vld [vmem:[#allocation2 + $0x111] sm:$0xff] }
 0x6cc   : > { %18294 = vst [vmem:[#allocation43_spill] sm:$0xff] %v16726_v46  ;;  %v16730_v62 = vpop.f32.mrb[131].mxu1  ;;  %v16780_v38 = vpack.c.bf16 %v6887_v18, %v6886_v50  ;;  %v16782_v51 = vpack.c.bf16 %v6889_v58, %v6888_v33  ;;  %v6892_v18 = vld [vmem:[#allocation2 + $0x139] sm:$0xff]  ;;  %v6893_v50 = vld [vmem:[#allocation2 + $0x141] sm:$0xff]  ;;  %v16796_v33 = vpack.c.bf16 %v6891_v55, %v6890_v1  ;;  %v6896_v55 = vld [vmem:[#allocation2 + $0x169] sm:$0xff] }
 0x6cd   : > { %18295 = vst [vmem:[#allocation44_spill] sm:$0xff] %v16730_v62  ;;  %v16798_v58 = vpack.c.bf16 %v6893_v50, %v6892_v18  ;;  %v6897_v1 = vld [vmem:[#allocation2 + $0x171] sm:$0xff]  ;;  %v16812_v18 = vpack.c.bf16 %v6895_v48, %v6894_v52  ;;  %v6899_v48 = vld [vmem:[#allocation2 + $0x189] sm:$0xff] }
 0x6ce   : > { %v16814_v50 = vpack.c.bf16 %v6897_v1, %v6896_v55  ;;  %v16828_v52 = vpack.c.bf16 %v6899_v48, %v6898_v16  ;;  %v6916_v55 = vld [vmem:[#allocation2 + $0x1c9] sm:$0xff]  ;;  %v6920_v48 = vld [vmem:[#allocation2 + $0x1f9] sm:$0xff] }
 0x6cf   : > { %v6948_v1 = vpack.c.bf16 %v6917_v60, %v6916_v55  ;;  %v7601_v60 = vsel %vm730_vm0, %v16716_v9, 0  ;;  %v16845_v55 = vpack.c.bf16 %v6921_v17, %v6920_v48  ;;  %v6924_v17 = vld [vmem:[#allocation2 + $0x229] sm:$0xff] }
 0x6d1   : > { %12950 = vmatmul.mubr.msk.bf16.gmra.mrb[20].mxu0 %vm593_vm1, %v16732_v30  ;;  %v16738_v3 = vpop.f32.mrb[132].mxu1 }
 0x6d2   : > { %18296 = vst [vmem:[#allocation49_spill] sm:$0xff] %v16738_v3  ;;  %12953 = vmatprep.mubr.msk.bf16.mxu0 %vm593_vm1, %v16734_v44  ;;  %v16742_v54 = vpop.f32.mrb[133].mxu1 }
 0x6d3   : > { %18297 = vst [vmem:[#allocation50_spill] sm:$0xff] %v16742_v54  ;;  %v16744_v46 = vpop.f32.mrb[134].mxu1 }
 0x6d4   : > { %18298 = vst [vmem:[#allocation47_spill] sm:$0xff] %v16744_v46  ;;  %v16746_v62 = vpop.f32.mrb[135].mxu1 }
 0x6d5   : > { %18299 = vst [vmem:[#allocation48_spill] sm:$0xff] %v16746_v62 }
 0x6d9   : > { %12954 = vmatmul.mubr.msk.bf16.gmra.mrb[24].mxu0 %vm593_vm1, %v16748_v57  ;;  %v16754_v3 = vpop.f32.mrb[136].mxu1 }
 0x6da   : > { %18300 = vst [vmem:[#allocation55_spill] sm:$0xff] %v16754_v3  ;;  %12957 = vmatprep.mubr.msk.bf16.mxu0 %vm593_vm1, %v16750_v49  ;;  %v16758_v54 = vpop.f32.mrb[137].mxu1 }
 0x6db   : > { %18301 = vst [vmem:[#allocation56_spill] sm:$0xff] %v16758_v54  ;;  %v16760_v46 = vpop.f32.mrb[138].mxu1 }
 0x6dc   : > { %18302 = vst [vmem:[#allocation53_spill] sm:$0xff] %v16760_v46  ;;  %v16762_v62 = vpop.f32.mrb[139].mxu1 }
 0x6dd   : > { %18303 = vst [vmem:[#allocation54_spill] sm:$0xff] %v16762_v62 }
 0x6e1   : > { %12958 = vmatmul.mubr.msk.bf16.gmra.mrb[28].mxu0 %vm593_vm1, %v16764_v0  ;;  %v16770_v3 = vpop.f32.mrb[140].mxu1 }
 0x6e2   : > { %18304 = vst [vmem:[#allocation57_spill] sm:$0xff] %v16770_v3  ;;  %12961 = vmatprep.mubr.msk.bf16.mxu0 %vm593_vm1, %v16766_v20  ;;  %v16774_v54 = vpop.f32.mrb[141].mxu1 }
 0x6e3   : > { %18305 = vst [vmem:[#allocation58_spill] sm:$0xff] %v16774_v54  ;;  %v16776_v46 = vpop.f32.mrb[142].mxu1 }
 0x6e4   : > { %18306 = vst [vmem:[#allocation71_spill] sm:$0xff] %v16776_v46  ;;  %v16778_v62 = vpop.f32.mrb[143].mxu1 }
 0x6e5   : > { %18307 = vst [vmem:[#allocation72_spill] sm:$0xff] %v16778_v62 }
 0x6e9   : > { %12962 = vmatmul.mubr.msk.bf16.gmra.mrb[32].mxu0 %vm593_vm1, %v16780_v38  ;;  %v16786_v3 = vpop.f32.mrb[144].mxu1 }
 0x6ea   : > { %18308 = vst [vmem:[#allocation73_spill] sm:$0xff] %v16786_v3  ;;  %12965 = vmatprep.mubr.msk.bf16.mxu0 %vm593_vm1, %v16782_v51  ;;  %v16790_v54 = vpop.f32.mrb[145].mxu1 }
 0x6eb   : > { %18309 = vst [vmem:[#allocation74_spill] sm:$0xff] %v16790_v54  ;;  %v16792_v46 = vpop.f32.mrb[146].mxu1 }
 0x6ec   : > { %18310 = vst [vmem:[#allocation75_spill] sm:$0xff] %v16792_v46  ;;  %v16794_v62 = vpop.f32.mrb[147].mxu1 }
 0x6ed   : > { %18311 = vst [vmem:[#allocation76_spill] sm:$0xff] %v16794_v62 }
 0x6f1   : > { %12966 = vmatmul.mubr.msk.bf16.gmra.mrb[36].mxu0 %vm593_vm1, %v16796_v33  ;;  %v16802_v3 = vpop.f32.mrb[148].mxu1 }
 0x6f2   : > { %18312 = vst [vmem:[#allocation77_spill] sm:$0xff] %v16802_v3  ;;  %12969 = vmatprep.mubr.msk.bf16.mxu0 %vm593_vm1, %v16798_v58  ;;  %v16806_v54 = vpop.f32.mrb[149].mxu1 }
 0x6f3   : > { %18313 = vst [vmem:[#allocation78_spill] sm:$0xff] %v16806_v54  ;;  %v16808_v46 = vpop.f32.mrb[150].mxu1 }
 0x6f4   : > { %18314 = vst [vmem:[#allocation79_spill] sm:$0xff] %v16808_v46  ;;  %v16810_v62 = vpop.f32.mrb[151].mxu1 }
 0x6f5   : > { %18315 = vst [vmem:[#allocation80_spill] sm:$0xff] %v16810_v62 }
 0x6f9   : > { %12970 = vmatmul.mubr.msk.bf16.gmra.mrb[40].mxu0 %vm593_vm1, %v16812_v18  ;;  %v16818_v3 = vpop.f32.mrb[152].mxu1 }
 0x6fa   : > { %18316 = vst [vmem:[#allocation81_spill] sm:$0xff] %v16818_v3  ;;  %12973 = vmatprep.mubr.msk.bf16.mxu0 %vm593_vm1, %v16814_v50  ;;  %v16822_v54 = vpop.f32.mrb[153].mxu1 }
 0x6fb   : > { %18317 = vst [vmem:[#allocation82_spill] sm:$0xff] %v16822_v54  ;;  %v16824_v46 = vpop.f32.mrb[154].mxu1 }
 0x6fc   : > { %18318 = vst [vmem:[#allocation83_spill] sm:$0xff] %v16824_v46  ;;  %v16826_v62 = vpop.f32.mrb[155].mxu1 }
 0x6fd   : > { %18319 = vst [vmem:[#allocation84_spill] sm:$0xff] %v16826_v62  ;;  %v6919_v62 = vld [vmem:[#allocation2 + $0x1e9] sm:$0xff] }
 0x6fe   : > { %v16841_v16 = vpack.c.bf16 %v6919_v62, %v6918_v26  ;;  %v6923_v26 = vld [vmem:[#allocation2 + $0x219] sm:$0xff]  ;;  %v6925_v62 = vld [vmem:[#allocation2 + $0x231] sm:$0xff] }
 0x6ff   : > { %v16857_v48 = vpack.c.bf16 %v6925_v62, %v6924_v17  ;;  %v6932_v62 = vld [vmem:[#allocation2 + $0x289] sm:$0xff]  ;;  %v6933_v17 = vld [vmem:[#allocation2 + $0x291] sm:$0xff] }
 0x700   : > { %v16873_v7 = vpack.c.bf16 %v6933_v17, %v6932_v62  ;;  %v6947_v62 = vld [vmem:[#allocation2 + $0x339] sm:$0xff] }
 0x701   : > { %12974 = vmatmul.mubr.msk.bf16.gmra.mrb[44].mxu0 %vm593_vm1, %v16828_v52  ;;  %v16832_v3 = vpop.f32.mrb[156].mxu1 }
 0x702   : > { %18320 = vst [vmem:[#allocation85_spill] sm:$0xff] %v16832_v3  ;;  %12979 = vmatprep.mubr.msk.bf16.mxu0 %vm593_vm1, %v6948_v1  ;;  %v16835_v25 = vpop.f32.mrb[157].mxu1  ;;  %v7551_v1 = vld [vmem:[%s18014_s11 + $0x14] sm:$0xf]  ;;  %v6926_v3 = vld [vmem:[#allocation2 + $0x241] sm:$0xff] }
 0x703   : > { %18321 = vst [vmem:[#allocation86_spill] sm:$0xff] %v16835_v25  ;;  %v16837_v54 = vpop.f32.mrb[158].mxu1  ;;  %v6928_v25 = vld [vmem:[#allocation2 + $0x259] sm:$0xff]  ;;  %v7845_v22 = vsel %vm730_vm0, %v7551_v1, 0 }
 0x704   : > { %18322 = vst [vmem:[#allocation87_spill] sm:$0xff] %v16837_v54  ;;  %v16839_v46 = vpop.f32.mrb[159].mxu1  ;;  %v6929_v54 = vld [vmem:[#allocation2 + $0x261] sm:$0xff] }
 0x705   : > { %18323 = vst [vmem:[#allocation88_spill] sm:$0xff] %v16839_v46  ;;  %v6922_v46 = vld [vmem:[#allocation2 + $0x211] sm:$0xff]  ;;  %v16865_v15 = vpack.c.bf16 %v6929_v54, %v6928_v25  ;;  %v6934_v25 = vld [vmem:[#allocation2 + $0x2a1] sm:$0xff]  ;;  %v6935_v54 = vld [vmem:[#allocation2 + $0x2a9] sm:$0xff] }
 0x706   : > { %v16855_v9 = vpack.c.bf16 %v6923_v26, %v6922_v46  ;;  %v6930_v46 = vld [vmem:[#allocation2 + $0x271] sm:$0xff]  ;;  %v6931_v26 = vld [vmem:[#allocation2 + $0x279] sm:$0xff] }
 0x707   : > { %v16871_v14 = vpack.c.bf16 %v6931_v26, %v6930_v46  ;;  %v7454_v46 = vld [vmem:[#allocation2 + $0x1a] sm:$0xff]  ;;  %v7455_v26 = vld [vmem:[#allocation2 + $0x22] sm:$0xff] }
 0x709   : > { %12980 = vmatmul.mubr.msk.bf16.vlgmr.msra.gmra.mrb[0].mxu0 %vm593_vm1, %v16841_v16 }
 0x70a   : > { %13012 = vmatpush3.bf16.msra.mxu0 %v7601_v60  ;;  %12983 = vmatprep.mubr.msk.bf16.mxu0 %vm593_vm1, %v16845_v55  ;;  %v6927_v60 = vld [vmem:[#allocation2 + $0x249] sm:$0xff] }
 0x70b   : > { %14109 = vmatprep.subr.msk.bf16.mxu0 %vm730_vm0, %v7551_v1  ;;  %v16863_v36 = vpack.c.bf16 %v6927_v60, %v6926_v3  ;;  %v16879_v3 = vpack.c.bf16 %v6935_v54, %v6934_v25  ;;  %v6946_v60 = vld [vmem:[#allocation2 + $0x331] sm:$0xff]  ;;  %v7486_v25 = vpack.c.bf16 %v7455_v26, %v7454_v46  ;;  %v7462_v26 = vld [vmem:[#allocation2 + $0x7a] sm:$0xff] }
 0x70c   : > { %v16893_v17 = vpack.c.bf16 %v6947_v62, %v6946_v60  ;;  %v7459_v54 = vld [vmem:[#allocation2 + $0x52] sm:$0xff]  ;;  %v7460_v60 = vld [vmem:[#allocation2 + $0x62] sm:$0xff]  ;;  %v7461_v46 = vld [vmem:[#allocation2 + $0x6a] sm:$0xff] }
 0x70d   : > { %v7463_v62 = vld [vmem:[#allocation2 + $0x82] sm:$0xff] }
 0x70e   : > { %v7490_v1 = vpack.c.bf16 %v7463_v62, %v7462_v26  ;;  %v7472_v26 = vld [vmem:[#allocation2 + $0xf2] sm:$0xff]  ;;  %v7473_v62 = vld [vmem:[#allocation2 + $0xfa] sm:$0xff] }
 0x711   : > { %12984 = vmatmul.mubr.msk.bf16.gmra.mrb[4].mxu0 %vm593_vm1, %v16855_v9 }
 0x712   : > { %12987 = vmatprep.mubr.msk.bf16.mxu0 %vm593_vm1, %v16857_v48 }
 0x719   : > { %12988 = vmatmul.mubr.msk.bf16.gmra.mrb[8].mxu0 %vm593_vm1, %v16863_v36 }
 0x71a   : > { %12991 = vmatprep.mubr.msk.bf16.mxu0 %vm593_vm1, %v16865_v15 }
 0x721   : > { %12992 = vmatmul.mubr.msk.bf16.gmra.mrb[12].mxu0 %vm593_vm1, %v16871_v14 }
 0x722   : > { %12995 = vmatprep.mubr.msk.bf16.mxu0 %vm593_vm1, %v16873_v7 }
 0x729   : > { %12996 = vmatmul.mubr.msk.bf16.gmra.mrb[48].mxu0 %vm593_vm1, %v16879_v3 }
 0x72a   : > { %12999 = vmatprep.mubr.msk.bf16.mxu0 %vm593_vm1, %v16362_v13  ;;  %v7456_v13 = vld [vmem:[#allocation2 + $0x32] sm:$0xff] }
 0x731   : > { %13000 = vmatmul.mubr.msk.bf16.gmra.mrb[52].mxu0 %vm593_vm1, %v16366_v23  ;;  %v7457_v23 = vld [vmem:[#allocation2 + $0x3a] sm:$0xff] }
 0x732   : > { %13003 = vmatprep.mubr.msk.bf16.mxu0 %vm593_vm1, %v16376_v27  ;;  %v7458_v27 = vld [vmem:[#allocation2 + $0x4a] sm:$0xff] }
 0x739   : > { %13004 = vmatmul.mubr.msk.bf16.gmra.mrb[56].mxu0 %vm593_vm1, %v16378_v11  ;;  %v7487_v11 = vpack.c.bf16 %v7457_v23, %v7456_v13  ;;  %v7464_v13 = vld [vmem:[#allocation2 + $0x92] sm:$0xff]  ;;  %v7465_v23 = vld [vmem:[#allocation2 + $0x9a] sm:$0xff] }
 0x73a   : > { %13007 = vmatprep.mubr.msk.bf16.mxu0 %vm593_vm1, %v16398_v34  ;;  %v7488_v34 = vpack.c.bf16 %v7459_v54, %v7458_v27  ;;  %v7466_v27 = vld [vmem:[#allocation2 + $0xaa] sm:$0xff]  ;;  %v7467_v54 = vld [vmem:[#allocation2 + $0xb2] sm:$0xff] }
 0x741   : > { %13008 = vmatmul.mubr.msk.bf16.gmra.mrb[60].mxu0 %vm593_vm1, %v16893_v17 }
 0x742   : > { %13013 = vmatprep.mubr.msk.bf16.mxu0 %vm593_vm1, %v7486_v25  ;;  %v7489_v25 = vpack.c.bf16 %v7461_v46, %v7460_v60  ;;  %v7494_v46 = vpack.c.bf16 %v7471_v63, %v7470_v10  ;;  %v7480_v10 = vld [vmem:[#allocation2 + $0x152] sm:$0xff] }
 0x749   : > { %13014 = vmatmul.mubr.msk.bf16.vlgmr.msra.gmra.mrb[16].mxu0 %vm593_vm1, %v7487_v11  ;;  %v7492_v11 = vpack.c.bf16 %v7467_v54, %v7466_v27  ;;  %v7476_v27 = vld [vmem:[#allocation2 + $0x122] sm:$0xff]  ;;  %v7477_v54 = vld [vmem:[#allocation2 + $0x12a] sm:$0xff] }
 0x74a   : > { %13046 = vmatpush3.bf16.msra.mxu0 %v7845_v22  ;;  %13017 = vmatprep.mubr.msk.bf16.mxu0 %vm593_vm1, %v7488_v34  ;;  %v7491_v22 = vpack.c.bf16 %v7465_v23, %v7464_v13  ;;  %v7468_v34 = vld [vmem:[#allocation2 + $0xc2] sm:$0xff]  ;;  %v7495_v13 = vpack.c.bf16 %v7473_v62, %v7472_v26 }
 0x74b   : > { %14110 = vmatprep.subr.msk.bf16.mxu0 %vm730_vm0, %v16902_v29  ;;  %v7493_v60 = vpack.c.bf16 %v7469_v12, %v7468_v34  ;;  %v7497_v12 = vpack.c.bf16 %v7477_v54, %v7476_v27  ;;  %v7481_v34 = vld [vmem:[#allocation2 + $0x15a] sm:$0xff] }
 0x74c   : > { %v7499_v26 = vpack.c.bf16 %v7481_v34, %v7480_v10  ;;  %v8188_v34 = vsel %vm730_vm0, %v16902_v29, 0 }
 0x751   : > { %13018 = vmatmul.mubr.msk.bf16.gmra.mrb[20].mxu0 %vm593_vm1, %v7489_v25  ;;  %v7474_v25 = vld [vmem:[#allocation2 + $0x10a] sm:$0xff] }
 0x752   : > { %13021 = vmatprep.mubr.msk.bf16.mxu0 %vm593_vm1, %v7490_v1  ;;  %v7475_v1 = vld [vmem:[#allocation2 + $0x112] sm:$0xff] }
 0x753   : > { %v7496_v23 = vpack.c.bf16 %v7475_v1, %v7474_v25  ;;  %v7484_v25 = vld [vmem:[#allocation2 + $0x182] sm:$0xff]  ;;  %v7502_v1 = vld [vmem:[#allocation2 + $0x1ca] sm:$0xff] }
 0x759   : > { %13022 = vmatmul.mubr.msk.bf16.gmra.mrb[24].mxu0 %vm593_vm1, %v7491_v22  ;;  %v7478_v22 = vld [vmem:[#allocation2 + $0x13a] sm:$0xff] }
 0x75a   : > { %13025 = vmatprep.mubr.msk.bf16.mxu0 %vm593_vm1, %v7492_v11  ;;  %v7479_v11 = vld [vmem:[#allocation2 + $0x142] sm:$0xff] }
 0x75b   : > { %v7498_v63 = vpack.c.bf16 %v7479_v11, %v7478_v22  ;;  %v7504_v22 = vld [vmem:[#allocation2 + $0x1e2] sm:$0xff]  ;;  %v7505_v11 = vld [vmem:[#allocation2 + $0x1ea] sm:$0xff] }
 0x75c   : > { %v7535_v10 = vpack.c.bf16 %v7505_v11, %v7504_v22  ;;  %v7515_v22 = vld [vmem:[#allocation2 + $0x262] sm:$0xff] }
 0x761   : > { %13026 = vmatmul.mubr.msk.bf16.gmra.mrb[28].mxu0 %vm593_vm1, %v7493_v60  ;;  %v7482_v60 = vld [vmem:[#allocation2 + $0x16a] sm:$0xff] }
 0x762   : > { %13029 = vmatprep.mubr.msk.bf16.mxu0 %vm593_vm1, %v7494_v46  ;;  %v7483_v46 = vld [vmem:[#allocation2 + $0x172] sm:$0xff] }
 0x763   : > { %v7500_v62 = vpack.c.bf16 %v7483_v46, %v7482_v60  ;;  %v16927_v46 = vld [vmem:[%s18014_s11 + $0x18] sm:$0xf] }
 0x769   : > { %13030 = vmatmul.mubr.msk.bf16.gmra.mrb[32].mxu0 %vm593_vm1, %v7495_v13  ;;  %v7503_v13 = vld [vmem:[#allocation2 + $0x1d2] sm:$0xff] }
 0x76a   : > { %13033 = vmatprep.mubr.msk.bf16.mxu0 %vm593_vm1, %v7496_v23  ;;  %v7485_v23 = vld [vmem:[#allocation2 + $0x18a] sm:$0xff]  ;;  %v7534_v54 = vpack.c.bf16 %v7503_v13, %v7502_v1  ;;  %v7511_v1 = vld [vmem:[#allocation2 + $0x232] sm:$0xff] }
 0x76b   : > { %v7501_v27 = vpack.c.bf16 %v7485_v23, %v7484_v25  ;;  %v7510_v25 = vld [vmem:[#allocation2 + $0x22a] sm:$0xff]  ;;  %v7512_v23 = vld [vmem:[#allocation2 + $0x242] sm:$0xff] }
 0x76c   : > { %v7538_v29 = vpack.c.bf16 %v7511_v1, %v7510_v25  ;;  %v7520_v25 = vld [vmem:[#allocation2 + $0x2a2] sm:$0xff]  ;;  %v7521_v1 = vld [vmem:[#allocation2 + $0x2aa] sm:$0xff] }
 0x771   : > { %13034 = vmatmul.mubr.msk.bf16.gmra.mrb[36].mxu0 %vm593_vm1, %v7497_v12  ;;  %v7506_v12 = vld [vmem:[#allocation2 + $0x1fa] sm:$0xff] }
 0x772   : > { %13037 = vmatprep.mubr.msk.bf16.mxu0 %vm593_vm1, %v7498_v63  ;;  %v7507_v63 = vld [vmem:[#allocation2 + $0x202] sm:$0xff] }
 0x773   : > { %v7536_v60 = vpack.c.bf16 %v7507_v63, %v7506_v12  ;;  %v7516_v63 = vld [vmem:[#allocation2 + $0x272] sm:$0xff] }
 0x779   : > { %13038 = vmatmul.mubr.msk.bf16.gmra.mrb[40].mxu0 %vm593_vm1, %v7499_v26  ;;  %v7508_v26 = vld [vmem:[#allocation2 + $0x212] sm:$0xff] }
 0x77a   : > { %13041 = vmatprep.mubr.msk.bf16.mxu0 %vm593_vm1, %v7500_v62  ;;  %v7509_v62 = vld [vmem:[#allocation2 + $0x21a] sm:$0xff] }
 0x77b   : > { %v7537_v13 = vpack.c.bf16 %v7509_v62, %v7508_v26 }
 0x781   : > { %13042 = vmatmul.mubr.msk.bf16.gmra.mrb[44].mxu0 %vm593_vm1, %v7501_v27  ;;  %v7513_v27 = vld [vmem:[#allocation2 + $0x24a] sm:$0xff] }
 0x782   : > { %13047 = vmatprep.mubr.msk.bf16.mxu0 %vm593_vm1, %v7534_v54  ;;  %v7514_v54 = vld [vmem:[#allocation2 + $0x25a] sm:$0xff]  ;;  %v7539_v11 = vpack.c.bf16 %v7513_v27, %v7512_v23  ;;  %v7543_v23 = vpack.c.bf16 %v7521_v1, %v7520_v25 }
 0x783   : > { %v7540_v12 = vpack.c.bf16 %v7515_v22, %v7514_v54  ;;  %v7524_v54 = vld [vmem:[#allocation2 + $0x2d2] sm:$0xff]  ;;  %v7526_v22 = vld [vmem:[#allocation2 + $0x2ea] sm:$0xff] }
 0x789   : > { %13048 = vmatmul.mubr.msk.bf16.vlgmr.msra.gmra.mrb[0].mxu0 %vm593_vm1, %v7535_v10  ;;  %v7517_v10 = vld [vmem:[#allocation2 + $0x27a] sm:$0xff] }
 0x78a   : > { %13080 = vmatpush3.bf16.msra.mxu0 %v8188_v34  ;;  %13051 = vmatprep.mubr.msk.bf16.mxu0 %vm593_vm1, %v7536_v60  ;;  %v7518_v34 = vld [vmem:[#allocation2 + $0x28a] sm:$0xff]  ;;  %v7519_v60 = vld [vmem:[#allocation2 + $0x292] sm:$0xff]  ;;  %v7541_v26 = vpack.c.bf16 %v7517_v10, %v7516_v63 }
 0x78b   : > { %14111 = vmatprep.subr.msk.bf16.mxu0 %vm730_vm0, %v16927_v46  ;;  %v7542_v62 = vpack.c.bf16 %v7519_v60, %v7518_v34  ;;  %v7527_v63 = vld [vmem:[#allocation2 + $0x2f2] sm:$0xff]  ;;  %v7528_v34 = vld [vmem:[#allocation2 + $0x302] sm:$0xff]  ;;  %v7529_v60 = vld [vmem:[#allocation2 + $0x30a] sm:$0xff] }
 0x78c   : > { %v7546_v10 = vpack.c.bf16 %v7527_v63, %v7526_v22  ;;  %v7547_v25 = vpack.c.bf16 %v7529_v60, %v7528_v34  ;;  %v8042_v63 = vld [vmem:[#allocation2 + $0x48] sm:$0xff]  ;;  %v8432_v34 = vsel %vm730_vm0, %v16927_v46, 0  ;;  %v8044_v60 = vld [vmem:[#allocation2 + $0x60] sm:$0xff]  ;;  %v8048_v46 = vld [vmem:[#allocation2 + $0x90] sm:$0xff] }
 0x791   : > { %13052 = vmatmul.mubr.msk.bf16.gmra.mrb[4].mxu0 %vm593_vm1, %v7537_v13  ;;  %v7522_v13 = vld [vmem:[#allocation2 + $0x2ba] sm:$0xff] }
 0x792   : > { %13055 = vmatprep.mubr.msk.bf16.mxu0 %vm593_vm1, %v7538_v29  ;;  %v7523_v29 = vld [vmem:[#allocation2 + $0x2c2] sm:$0xff] }
 0x793   : > { %v7544_v27 = vpack.c.bf16 %v7523_v29, %v7522_v13  ;;  %v7532_v13 = vld [vmem:[#allocation2 + $0x332] sm:$0xff] }
 0x794   : > { %v8041_v29 = vld [vmem:[#allocation2 + $0x38] sm:$0xff] }
 0x799   : > { %13056 = vmatmul.mubr.msk.bf16.gmra.mrb[8].mxu0 %vm593_vm1, %v7539_v11  ;;  %v7525_v11 = vld [vmem:[#allocation2 + $0x2da] sm:$0xff] }
 0x79a   : > { %13059 = vmatprep.mubr.msk.bf16.mxu0 %vm593_vm1, %v7540_v12  ;;  %v7545_v12 = vpack.c.bf16 %v7525_v11, %v7524_v54  ;;  %v8040_v54 = vld [vmem:[#allocation2 + $0x30] sm:$0xff] }
 0x79b   : > { %v8072_v22 = vpack.c.bf16 %v8041_v29, %v8040_v54  ;;  %v8043_v11 = vld [vmem:[#allocation2 + $0x50] sm:$0xff]  ;;  %v8053_v54 = vld [vmem:[#allocation2 + $0xc8] sm:$0xff] }
 0x7a1   : > { %13060 = vmatmul.mubr.msk.bf16.gmra.mrb[12].mxu0 %vm593_vm1, %v7541_v26  ;;  %v7530_v26 = vld [vmem:[#allocation2 + $0x31a] sm:$0xff] }
 0x7a2   : > { %13063 = vmatprep.mubr.msk.bf16.mxu0 %vm593_vm1, %v7542_v62  ;;  %v7531_v62 = vld [vmem:[#allocation2 + $0x322] sm:$0xff] }
 0x7a3   : > { %v7548_v1 = vpack.c.bf16 %v7531_v62, %v7530_v26  ;;  %v16952_v62 = vld [vmem:[%s18011_s8 + $0x1c] sm:$0xf] }
 0x7a9   : > { %13064 = vmatmul.mubr.msk.bf16.gmra.mrb[48].mxu0 %vm593_vm1, %v7543_v23  ;;  %v7533_v23 = vld [vmem:[#allocation2 + $0x33a] sm:$0xff] }
 0x7aa   : > { %13067 = vmatprep.mubr.msk.bf16.mxu0 %vm593_vm1, %v7544_v27  ;;  %v7549_v27 = vpack.c.bf16 %v7533_v23, %v7532_v13  ;;  %v8046_v13 = vld [vmem:[#allocation2 + $0x78] sm:$0xff] }
 0x7b1   : > { %13068 = vmatmul.mubr.msk.bf16.gmra.mrb[52].mxu0 %vm593_vm1, %v7545_v12  ;;  %v8045_v12 = vld [vmem:[#allocation2 + $0x68] sm:$0xff] }
 0x7b2   : > { %13071 = vmatprep.mubr.msk.bf16.mxu0 %vm593_vm1, %v7546_v10  ;;  %v8073_v10 = vpack.c.bf16 %v8043_v11, %v8042_v63  ;;  %v8074_v26 = vpack.c.bf16 %v8045_v12, %v8044_v60  ;;  %v8052_v12 = vld [vmem:[#allocation2 + $0xc0] sm:$0xff]  ;;  %v8056_v60 = vld [vmem:[#allocation2 + $0xf0] sm:$0xff] }
 0x7b3   : > { %v8078_v63 = vpack.c.bf16 %v8053_v54, %v8052_v12  ;;  %v8064_v12 = vld [vmem:[#allocation2 + $0x150] sm:$0xff] }
 0x7b9   : > { %13072 = vmatmul.mubr.msk.bf16.gmra.mrb[56].mxu0 %vm593_vm1, %v7547_v25  ;;  %v8047_v25 = vld [vmem:[#allocation2 + $0x80] sm:$0xff] }
 0x7ba   : > { %13075 = vmatprep.mubr.msk.bf16.mxu0 %vm593_vm1, %v7548_v1  ;;  %v8049_v1 = vld [vmem:[#allocation2 + $0x98] sm:$0xff]  ;;  %v8075_v29 = vpack.c.bf16 %v8047_v25, %v8046_v13  ;;  %v8058_v13 = vld [vmem:[#allocation2 + $0x108] sm:$0xff] }
 0x7bb   : > { %v8076_v23 = vpack.c.bf16 %v8049_v1, %v8048_v46  ;;  %v8060_v46 = vld [vmem:[#allocation2 + $0x120] sm:$0xff] }
 0x7c1   : > { %13076 = vmatmul.mubr.msk.bf16.gmra.mrb[60].mxu0 %vm593_vm1, %v7549_v27  ;;  %v8051_v27 = vld [vmem:[#allocation2 + $0xb0] sm:$0xff] }
 0x7c2   : > { %13081 = vmatprep.mubr.msk.bf16.mxu0 %vm593_vm1, %v8072_v22  ;;  %v8050_v22 = vld [vmem:[#allocation2 + $0xa8] sm:$0xff] }
 0x7c3   : > { %v8077_v11 = vpack.c.bf16 %v8051_v27, %v8050_v22  ;;  %v8062_v22 = vld [vmem:[#allocation2 + $0x138] sm:$0xff] }
 0x7c9   : > { %13082 = vmatmul.mubr.msk.bf16.vlgmr.msra.gmra.mrb[16].mxu0 %vm593_vm1, %v8073_v10  ;;  %v8054_v10 = vld [vmem:[#allocation2 + $0xd8] sm:$0xff] }
 0x7ca   : > { %13114 = vmatpush3.bf16.msra.mxu0 %v8432_v34  ;;  %13085 = vmatprep.mubr.msk.bf16.mxu0 %vm593_vm1, %v8074_v26  ;;  %v8055_v34 = vld [vmem:[#allocation2 + $0xe0] sm:$0xff]  ;;  %v8057_v26 = vld [vmem:[#allocation2 + $0xf8] sm:$0xff] }
 0x7cb   : > { %14112 = vmatprep.subr.msk.bf16.mxu0 %vm730_vm0, %v16952_v62  ;;  %v8079_v25 = vpack.c.bf16 %v8055_v34, %v8054_v10  ;;  %v8080_v1 = vpack.c.bf16 %v8057_v26, %v8056_v60  ;;  %v8066_v60 = vld [vmem:[#allocation2 + $0x168] sm:$0xff]  ;;  %v8067_v26 = vld [vmem:[#allocation2 + $0x170] sm:$0xff] }
 0x7d1   : > { %13086 = vmatmul.mubr.msk.bf16.gmra.mrb[20].mxu0 %vm593_vm1, %v8075_v29  ;;  %v8059_v29 = vld [vmem:[#allocation2 + $0x110] sm:$0xff] }
 0x7d2   : > { %13089 = vmatprep.mubr.msk.bf16.mxu0 %vm593_vm1, %v8076_v23  ;;  %v8061_v23 = vld [vmem:[#allocation2 + $0x128] sm:$0xff]  ;;  %v8081_v27 = vpack.c.bf16 %v8059_v29, %v8058_v13  ;;  %v8085_v13 = vpack.c.bf16 %v8067_v26, %v8066_v60  ;;  %v8774_v60 = vsel %vm730_vm0, %v16952_v62, 0  ;;  %v8093_v26 = vld [vmem:[#allocation2 + $0x210] sm:$0xff] }
 0x7d3   : > { %v8082_v54 = vpack.c.bf16 %v8061_v23, %v8060_v46  ;;  %v8070_v46 = vld [vmem:[#allocation2 + $0x198] sm:$0xff]  ;;  %v8071_v23 = vld [vmem:[#allocation2 + $0x1a0] sm:$0xff] }
 0x7d9   : > { %13090 = vmatmul.mubr.msk.bf16.gmra.mrb[24].mxu0 %vm593_vm1, %v8077_v11  ;;  %v8063_v11 = vld [vmem:[#allocation2 + $0x140] sm:$0xff] }
 0x7da   : > { %13093 = vmatprep.mubr.msk.bf16.mxu0 %vm593_vm1, %v8078_v63  ;;  %v8065_v63 = vld [vmem:[#allocation2 + $0x158] sm:$0xff]  ;;  %v8083_v10 = vpack.c.bf16 %v8063_v11, %v8062_v22  ;;  %v8089_v22 = vld [vmem:[#allocation2 + $0x1e0] sm:$0xff] }
 0x7db   : > { %v8084_v34 = vpack.c.bf16 %v8065_v63, %v8064_v12  ;;  %v8092_v12 = vld [vmem:[#allocation2 + $0x200] sm:$0xff]  ;;  %v8094_v63 = vld [vmem:[#allocation2 + $0x218] sm:$0xff] }
 0x7e1   : > { %13094 = vmatmul.mubr.msk.bf16.gmra.mrb[28].mxu0 %vm593_vm1, %v8079_v25  ;;  %v8068_v25 = vld [vmem:[#allocation2 + $0x180] sm:$0xff] }
 0x7e2   : > { %13097 = vmatprep.mubr.msk.bf16.mxu0 %vm593_vm1, %v8080_v1  ;;  %v8069_v1 = vld [vmem:[#allocation2 + $0x188] sm:$0xff] }
 0x7e3   : > { %v8086_v29 = vpack.c.bf16 %v8069_v1, %v8068_v25  ;;  %v8123_v25 = vpack.c.bf16 %v8094_v63, %v8093_v26  ;;  %v16977_v1 = vld [vmem:[%s18014_s11 + $0x1c] sm:$0xf]  ;;  %v14313_v26 = vmov 0  }
 0x7e4   : > { %14134 = vset.pattern.permute.xlu1 %v14313_v26  ;;  %14133 = vset.pattern.permute.xlu0 %v14313_v26  ;;  %v8108_v26 = vld [vmem:[#allocation2 + $0x2c0] sm:$0xff] }
 0x7e9   : > { %13098 = vmatmul.mubr.msk.bf16.gmra.mrb[32].mxu0 %vm593_vm1, %v8081_v27  ;;  %v8087_v27 = vpack.c.bf16 %v8071_v23, %v8070_v46  ;;  %v8095_v46 = vld [vmem:[#allocation2 + $0x228] sm:$0xff]  ;;  %v8097_v23 = vld [vmem:[#allocation2 + $0x240] sm:$0xff] }
 0x7ea   : > { %13101 = vmatprep.mubr.msk.bf16.mxu0 %vm593_vm1, %v8082_v54  ;;  %v8090_v54 = vld [vmem:[#allocation2 + $0x1e8] sm:$0xff] }
 0x7eb   : > { %v8121_v11 = vpack.c.bf16 %v8090_v54, %v8089_v22  ;;  %v8099_v54 = vld [vmem:[#allocation2 + $0x258] sm:$0xff]  ;;  %v8100_v22 = vld [vmem:[#allocation2 + $0x260] sm:$0xff] }
 0x7ec   : > { %v8126_v63 = vpack.c.bf16 %v8100_v22, %v8099_v54  ;;  %v10258_v22 = vld [vmem:[%s16989_s21 + $0x18] sm:$0xff] }
 0x7f1   : > { %13102 = vmatmul.mubr.msk.bf16.gmra.mrb[36].mxu0 %vm593_vm1, %v8083_v10  ;;  %v8091_v10 = vld [vmem:[#allocation2 + $0x1f8] sm:$0xff] }
 0x7f2   : > { %13105 = vmatprep.mubr.msk.bf16.mxu0 %vm593_vm1, %v8084_v34  ;;  %v8122_v34 = vpack.c.bf16 %v8092_v12, %v8091_v10  ;;  %v8102_v12 = vld [vmem:[#allocation2 + $0x278] sm:$0xff] }
 0x7f9   : > { %13106 = vmatmul.mubr.msk.bf16.gmra.mrb[40].mxu0 %vm593_vm1, %v8085_v13  ;;  %v8096_v13 = vld [vmem:[#allocation2 + $0x230] sm:$0xff] }
 0x7fa   : > { %13109 = vmatprep.mubr.msk.bf16.mxu0 %vm593_vm1, %v8086_v29  ;;  %v8098_v29 = vld [vmem:[#allocation2 + $0x248] sm:$0xff]  ;;  %v8124_v62 = vpack.c.bf16 %v8096_v13, %v8095_v46  ;;  %v8104_v46 = vld [vmem:[#allocation2 + $0x290] sm:$0xff] }
 0x801   : > { %13110 = vmatmul.mubr.msk.bf16.gmra.mrb[44].mxu0 %vm593_vm1, %v8087_v27  ;;  %v8125_v27 = vpack.c.bf16 %v8098_v29, %v8097_v23  ;;  %v8103_v29 = vld [vmem:[#allocation2 + $0x288] sm:$0xff] }
 0x802   : > { %13115 = vmatprep.mubr.msk.bf16.mxu0 %vm593_vm1, %v8121_v11  ;;  %v8101_v11 = vld [vmem:[#allocation2 + $0x270] sm:$0xff]  ;;  %v8106_v23 = vld [vmem:[#allocation2 + $0x2a8] sm:$0xff] }
 0x803   : > { %v8127_v10 = vpack.c.bf16 %v8102_v12, %v8101_v11  ;;  %v10257_v11 = vld [vmem:[%s16989_s21 + $0x10] sm:$0xff]  ;;  %v10260_v12 = vld [vmem:[%s16989_s21 + $0x28] sm:$0xff] }
 0x809   : > { %13116 = vmatmul.mubr.msk.bf16.vlgmr.msra.gmra.mrb[0].mxu0 %vm593_vm1, %v8122_v34  ;;  %v10255_v34 = vld [vmem:[%s16989_s21] sm:$0xff] }
 0x80a   : > { %13148 = vmatpush3.bf16.msra.mxu0 %v8774_v60  ;;  %13119 = vmatprep.mubr.msk.bf16.mxu0 %vm593_vm1, %v8123_v25  ;;  %v10256_v60 = vld [vmem:[%s16989_s21 + $0x8] sm:$0xff]  ;;  %v11801_v25 = vmul.f32 -1.442695, %v10255_v34  ;;  %v11806_v34 = vmul.f32 -1.442695, %v10260_v12 }
 0x80b   : > { %14113 = vmatprep.subr.msk.bf16.mxu0 %vm730_vm0, %v16977_v1  ;;  %v11802_v13 = vmul.f32 -1.442695, %v10256_v60  ;;  %v8107_v60 = vld [vmem:[#allocation2 + $0x2b8] sm:$0xff] }
 0x80c   : > { %14135 = vpow2.f32 %v11801_v25  ;;  %v11805_v25 = vmul.f32 -1.442695, %v10259_v32 }
 0x80d   : > { %14137 = vpow2.f32 %v11802_v13 }
 0x811   : > { %13120 = vmatmul.mubr.msk.bf16.gmra.mrb[4].mxu0 %vm593_vm1, %v8124_v62  ;;  %v8105_v62 = vld [vmem:[#allocation2 + $0x2a0] sm:$0xff] }
 0x812   : > { %13123 = vmatprep.mubr.msk.bf16.mxu0 %vm593_vm1, %v8125_v27  ;;  %v8128_v27 = vpack.c.bf16 %v8104_v46, %v8103_v29  ;;  %v8129_v54 = vpack.c.bf16 %v8106_v23, %v8105_v62  ;;  %v8130_v29 = vpack.c.bf16 %v8108_v26, %v8107_v60  ;;  %v8131_v62 = vpack.c.bf16 %v8110_v2, %v8109_v43  ;;  %v10263_v60 = vld [vmem:[%s16989_s21 + $0x40] sm:$0xff]  ;;  %v8114_v43 = vld [vmem:[#allocation2 + $0x308] sm:$0xff] }
 0x813   : > { %v8113_v2 = vld [vmem:[#allocation2 + $0x300] sm:$0xff]  ;;  %v11809_v26 = vmul.f32 -1.442695, %v10263_v60 }
 0x814   : > { %v10267_v60 = vld [vmem:[%s16989_s21 + $0x60] sm:$0xff] }
 0x816   : > { %v14136_v13 = vpop.eup %14135 }
 0x817   : > { %v14138_v46 = vpop.eup %14137  ;;  %v10383_v23 = vadd.f32 1.0, %v14136_v13 }
 0x819   : > { %13124 = vmatmul.mubr.msk.bf16.gmra.mrb[8].mxu0 %vm593_vm1, %v8126_v63  ;;  %v11804_v63 = vmul.f32 -1.442695, %v10258_v22  ;;  %v10261_v22 = vld [vmem:[%s16989_s21 + $0x30] sm:$0xff] }
 0x81a   : > { %13127 = vmatprep.mubr.msk.bf16.mxu0 %vm593_vm1, %v8127_v10  ;;  %v11803_v10 = vmul.f32 -1.442695, %v10257_v11  ;;  %v10264_v11 = vld [vmem:[%s16989_s21 + $0x48] sm:$0xff]  ;;  %v11807_v12 = vmul.f32 -1.442695, %v10261_v22 }
 0x81b   : > { %14139 = vpow2.f32 %v11804_v63  ;;  %v11810_v63 = vmul.f32 -1.442695, %v10264_v11  ;;  %v10266_v11 = vld [vmem:[%s16989_s21 + $0x58] sm:$0xff] }
 0x81c   : > { %14141 = vpow2.f32 %v11803_v10  ;;  %v8111_v10 = vld [vmem:[#allocation2 + $0x2e8] sm:$0xff] }
 0x81d   : > { %14143 = vpow2.f32 %v11806_v34  ;;  %v8112_v34 = vld [vmem:[#allocation2 + $0x2f0] sm:$0xff] }
 0x81e   : > { %14145 = vpow2.f32 %v11805_v25  ;;  %v8132_v13 = vpack.c.bf16 %v8112_v34, %v8111_v10 }
 0x81f   : > { %14147 = vrcp.f32 %v10383_v23 }
 0x821   : > { %13128 = vmatmul.mubr.msk.bf16.gmra.mrb[12].mxu0 %vm593_vm1, %v8128_v27  ;;  %v10384_v27 = vadd.f32 1.0, %v14138_v46  ;;  %v8133_v46 = vpack.c.bf16 %v8114_v43, %v8113_v2  ;;  %v8115_v43 = vld [vmem:[#allocation2 + $0x318] sm:$0xff] }
 0x822   : > { %13131 = vmatprep.mubr.msk.bf16.mxu0 %vm593_vm1, %v8129_v54  ;;  %v10262_v54 = vld [vmem:[%s16989_s21 + $0x38] sm:$0xff] }
 0x823   : > { %14149 = vrcp.f32 %v10384_v27  ;;  %v11808_v32 = vmul.f32 -1.442695, %v10262_v54 }
 0x825   : > { %14151 = vpow2.f32 %v11808_v32  ;;  %v14140_v25 = vpop.eup %14139  ;;  %v10265_v32 = vld [vmem:[%s16989_s21 + $0x50] sm:$0xff] }
 0x826   : > { %14153 = vpow2.f32 %v11807_v12  ;;  %v10268_v12 = vld [vmem:[%s16989_s21 + $0x68] sm:$0xff]  ;;  %v11811_v34 = vmul.f32 -1.442695, %v10265_v32 }
 0x827   : > { %14155 = vpow2.f32 %v11810_v63  ;;  %v11812_v63 = vmul.f32 -1.442695, %v10266_v11  ;;  %v8120_v11 = vld [vmem:[#allocation2 + $0x350] sm:$0xff] }
 0x828   : > { %14157 = vpow2.f32 %v11809_v26  ;;  %v8116_v26 = vld [vmem:[#allocation2 + $0x320] sm:$0xff] }
 0x829   : > { %13132 = vmatmul.mubr.msk.bf16.gmra.mrb[48].mxu0 %vm593_vm1, %v8130_v29  ;;  %v14142_v29 = vpop.eup %14141 }
 0x82a   : > { %13135 = vmatprep.mubr.msk.bf16.mxu0 %vm593_vm1, %v8131_v62  ;;  %v10386_v62 = vadd.f32 1.0, %v14140_v25  ;;  %v14144_v23 = vpop.eup %14143  ;;  %v10385_v27 = vadd.f32 1.0, %v14142_v29  ;;  %v11814_v25 = vmul.f32 -1.442695, %v10268_v12  ;;  %v11813_v29 = vmul.f32 -1.442695, %v10267_v60 }
 0x82b   : > { %v14146_v54 = vpop.eup %14145  ;;  %v10388_v22 = vadd.f32 1.0, %v14144_v23  ;;  %v10272_v60 = vld [vmem:[%s16989_s21 + $0x88] sm:$0xff] }
 0x82c   : > { %14159 = vrcp.f32 %v10386_v62  ;;  %v10387_v10 = vadd.f32 1.0, %v14146_v54  ;;  %v17013_v2 = vpop.eup %14147  ;;  %v8134_v62 = vpack.c.bf16 %v8116_v26, %v8115_v43  ;;  %v11818_v47 = vmul.f32 -1.442695, %v10272_v60 }
 0x82d   : > { %14161 = vrcp.f32 %v10385_v27  ;;  %10481 = vperm.xlu0 %14133, %v17013_v2  }
 0x82e   : > { %14163 = vrcp.f32 %v10388_v22  ;;  %v8119_v22 = vld [vmem:[#allocation2 + $0x348] sm:$0xff] }
 0x82f   : > { %14165 = vrcp.f32 %v10387_v10 }
 0x830   : > { %14167 = vpow2.f32 %v11812_v63  ;;  %v10270_v63 = vld [vmem:[%s16989_s21 + $0x78] sm:$0xff] }
 0x831   : > { %13136 = vmatmul.mubr.msk.bf16.gmra.mrb[52].mxu0 %vm593_vm1, %v8132_v13  ;;  %v17015_v13 = vpop.eup %14149  ;;  %14169 = vpow2.f32 %v11811_v34  ;;  %v10269_v34 = vld [vmem:[%s16989_s21 + $0x70] sm:$0xff]  ;;  %v11816_v26 = vmul.f32 -1.442695, %v10270_v63  ;;  %v10274_v63 = vld [vmem:[%s16989_s21 + $0x98] sm:$0xff] }
 0x832   : > { %13139 = vmatprep.mubr.msk.bf16.mxu0 %vm593_vm1, %v8133_v46  ;;  %10486 = vperm.xlu1 %14134, %v17015_v13   ;;  %v14152_v46 = vpop.eup %14151  ;;  %14171 = vpow2.f32 %v11814_v25  ;;  %v11815_v25 = vmul.f32 -1.442695, %v10269_v34  ;;  %v10273_v34 = vld [vmem:[%s16989_s21 + $0x90] sm:$0xff] }
 0x833   : > { %v14154_v23 = vpop.eup %14153  ;;  %v10390_v27 = vadd.f32 1.0, %v14152_v46  ;;  %14173 = vpow2.f32 %v11813_v29  ;;  %v10271_v46 = vld [vmem:[%s16989_s21 + $0x80] sm:$0xff]  ;;  %v8136_v29 = vpack.c.bf16 %v8120_v11, %v8119_v22 }
 0x834   : > { %v14156_v54 = vpop.eup %14155  ;;  %v10389_v32 = vadd.f32 1.0, %v14154_v23 }
 0x835   : > { %v14158_v12 = vpop.eup %14157  ;;  %14175 = vrcp.f32 %v10390_v27  ;;  %v10392_v10 = vadd.f32 1.0, %v14156_v54 }
 0x836   : > { %14177 = vrcp.f32 %v10389_v32  ;;  %v10391_v43 = vadd.f32 1.0, %v14158_v12 }
 0x837   : > { %14179 = vrcp.f32 %v10392_v10 }
 0x838   : > { %14181 = vrcp.f32 %v10391_v43  ;;  %v11820_v43 = vmul.f32 -1.442695, %v10274_v63 }
 0x839   : > { %13140 = vmatmul.mubr.msk.bf16.gmra.mrb[56].mxu0 %vm593_vm1, %v8134_v62  ;;  %v17026_v62 = vpop.eup %14159  ;;  %14183 = vpow2.f32 %v11816_v26  ;;  %v10276_v26 = vld [vmem:[%s16989_s21 + $0xa8] sm:$0xff] }
 0x83a   : > { %13143 = vmatprep.mubr.msk.bf16.mxu0 %vm593_vm1, %v16694_v24  ;;  %v17028_v23 = vpop.eup %14161  ;;  %10496 = vperm.xlu0 %14133, %v17026_v62   ;;  %v11817_v24 = vmul.f32 -1.442695, %v10271_v46  ;;  %14185 = vpow2.f32 %v11815_v25 }
 0x83b   : > { %v17031_v27 = vpop.eup %14163  ;;  %10491 = vperm.xlu1 %14134, %v17028_v23   ;;  %14187 = vpow2.f32 %v11818_v47 }
 0x83c   : > { %v17034_v54 = vpop.eup %14165  ;;  %14189 = vpow2.f32 %v11817_v24  ;;  %v10275_v24 = vld [vmem:[%s16989_s21 + $0xa0] sm:$0xff] }
 0x83d   : > { %v14168_v32 = vpop.eup %14167 }
 0x83e   : > { %v14170_v12 = vpop.eup %14169  ;;  %10506 = vperm.xlu0 %14133, %v17031_v27   ;;  %v10394_v22 = vadd.f32 1.0, %v14168_v32 }
 0x83f   : > { %v14172_v11 = vpop.eup %14171  ;;  %10501 = vperm.xlu1 %14134, %v17034_v54   ;;  %v10393_v10 = vadd.f32 1.0, %v14170_v12 }
 0x840   : > { %v14174_v60 = vpop.eup %14173  ;;  %14191 = vrcp.f32 %v10394_v22  ;;  %v10396_v47 = vadd.f32 1.0, %v14172_v11  ;;  %v11821_v22 = vmul.f32 -1.442695, %v10275_v24  ;;  %v10280_v24 = vld [vmem:[%s16989_s21 + $0xc8] sm:$0xff] }
 0x841   : > { %13144 = vmatmul.mubr.msk.bf16.gmra.mrb[60].mxu0 %vm593_vm1, %v8136_v29  ;;  %v17044_v25 = vpop.eup %14175  ;;  %14193 = vrcp.f32 %v10393_v10  ;;  %v10395_v46 = vadd.f32 1.0, %v14174_v60  ;;  %v11819_v29 = vmul.f32 -1.442695, %v10273_v34  ;;  %v9018_v10 = vsel %vm730_vm0, %v16977_v1, 0  ;;  %v17060_v34 = vld [vmem:[%s18011_s8 + $0x20] sm:$0xf] }
 0x842   : > { %13149 = vmatprep.mubr.msk.bf16.mxu0 %vm593_vm1, %v16707_v41  ;;  %v17047_v32 = vpop.eup %14177  ;;  %10516 = vperm.xlu0 %14133, %v17044_v25   ;;  %14195 = vrcp.f32 %v10396_v47  ;;  %v11822_v41 = vmul.f32 -1.442695, %v10276_v26  ;;  %v10278_v26 = vld [vmem:[%s16989_s21 + $0xb8] sm:$0xff] }
 0x843   : > { %v17050_v12 = vpop.eup %14179  ;;  %10511 = vperm.xlu1 %14134, %v17047_v32   ;;  %14197 = vrcp.f32 %v10395_v46  ;;  %v10277_v46 = vld [vmem:[%s16989_s21 + $0xb0] sm:$0xff] }
 0x844   : > { %v17053_v11 = vpop.eup %14181  ;;  %14199 = vpow2.f32 %v11820_v43  ;;  %v11823_v37 = vmul.f32 -1.442695, %v10277_v46  ;;  %v10282_v46 = vld [vmem:[%s16989_s21 + $0xd8] sm:$0xff] }
 0x845   : > { %v14184_v63 = vpop.eup %14183  ;;  %14201 = vpow2.f32 %v11819_v29 }
 0x846   : > { %v14186_v60 = vpop.eup %14185  ;;  %10526 = vperm.xlu0 %14133, %v17050_v12   ;;  %v10398_v47 = vadd.f32 1.0, %v14184_v63  ;;  %14203 = vpow2.f32 %v11822_v41  ;;  %v11824_v63 = vmul.f32 -1.442695, %v10278_v26  ;;  %v10279_v41 = vld [vmem:[%s16989_s21 + $0xc0] sm:$0xff] }
 0x847   : > { %v14188_v1 = vpop.eup %14187  ;;  %v10397_v43 = vadd.f32 1.0, %v14186_v60  ;;  %14205 = vpow2.f32 %v11821_v22  ;;  %10521 = vperm.xlu1 %14134, %v17053_v11   ;;  %v11825_v60 = vmul.f32 -1.442695, %v10279_v41  ;;  %v11828_v41 = vmul.f32 -1.442695, %v10282_v46 }
 0x848   : > { %v14190_v29 = vpop.eup %14189  ;;  %14207 = vrcp.f32 %v10398_v47 }
 0x849   : > { %13150 = vmatmul.mubr.msk.bf16.vlgmr.msra.gmra.mrb[16].mxu0 %vm593_vm1, %v16711_v59  ;;  %v10400_v59 = vadd.f32 1.0, %v14188_v1  ;;  %14209 = vrcp.f32 %v10397_v43 }
 0x84a   : > { %13182 = vmatpush3.bf16.msra.mxu0 %v9018_v10  ;;  %13153 = vmatprep.mubr.msk.bf16.mxu0 %vm593_vm1, %v16732_v30  ;;  %v10399_v10 = vadd.f32 1.0, %v14190_v29  ;;  %v17074_v8 = vpop.eup %14191  ;;  %v11826_v30 = vmul.f32 -1.442695, %v10280_v24  ;;  %v10281_v24 = vld [vmem:[%s16989_s21 + $0xd0] sm:$0xff] }
 0x84b   : > { %14114 = vmatprep.subr.msk.bf16.mxu0 %vm730_vm0, %v17060_v34  ;;  %14211 = vrcp.f32 %v10400_v59  ;;  %v17076_v22 = vpop.eup %14193  ;;  %10536 = vperm.xlu0 %14133, %v17074_v8   ;;  %v10284_v59 = vld [vmem:[%s16989_s21 + $0xe8] sm:$0xff]  ;;  %v11827_v42 = vmul.f32 -1.442695, %v10281_v24 }
 0x84c   : > { %14213 = vrcp.f32 %v10399_v10  ;;  %v17079_v35 = vpop.eup %14195  ;;  %10531 = vperm.xlu1 %14134, %v17076_v22   ;;  %v10283_v10 = vld [vmem:[%s16989_s21 + $0xe0] sm:$0xff] }
 0x84d   : > { %14215 = vpow2.f32 %v11824_v63  ;;  %v17082_v47 = vpop.eup %14197 }
 0x84e   : > { %14217 = vpow2.f32 %v11823_v37  ;;  %v14200_v1 = vpop.eup %14199 }
 0x84f   : > { %14219 = vpow2.f32 %v11826_v30  ;;  %v14202_v43 = vpop.eup %14201  ;;  %10546 = vperm.xlu0 %14133, %v17079_v35   ;;  %v10402_v26 = vadd.f32 1.0, %v14200_v1 }
 0x850   : > { %14221 = vpow2.f32 %v11825_v60  ;;  %v14204_v29 = vpop.eup %14203  ;;  %10541 = vperm.xlu1 %14134, %v17082_v47   ;;  %v10401_v37 = vadd.f32 1.0, %v14202_v43  ;;  %v11830_v60 = vmul.f32 -1.442695, %v10284_v59  ;;  %v11829_v43 = vmul.f32 -1.442695, %v10283_v10  ;;  %v10285_v59 = vld [vmem:[%s16989_s21 + $0xf0] sm:$0xff] }
 0x851   : > { %13154 = vmatmul.mubr.msk.bf16.gmra.mrb[20].mxu0 %vm593_vm1, %v16734_v44  ;;  %v14206_v63 = vpop.eup %14205  ;;  %14223 = vrcp.f32 %v10402_v26  ;;  %v10404_v44 = vadd.f32 1.0, %v14204_v29 }
 0x852   : > { %13157 = vmatprep.mubr.msk.bf16.mxu0 %vm593_vm1, %v16748_v57  ;;  %v17094_v30 = vpop.eup %14207  ;;  %14225 = vrcp.f32 %v10401_v37  ;;  %v10403_v57 = vadd.f32 1.0, %v14206_v63  ;;  %v10286_v37 = vld [vmem:[%s16989_s21 + $0xf8] sm:$0xff]  ;;  %s14315_s21 = smov 5  }
 0x853   : > { %v17096_v4 = vpop.eup %14209  ;;  %10556 = vperm.xlu0 %14133, %v17094_v30   ;;  %14227 = vrcp.f32 %v10404_v44 }
 0x854   : > { %10551 = vperm.xlu1 %14134, %v17096_v4   ;;  %14229 = vrcp.f32 %v10403_v57  ;;  %v11831_v57 = vmul.f32 -1.442695, %v10285_v59 }
 0x855   : > { %v17099_v1 = vpop.eup %14211  ;;  %14231 = vpow2.f32 %v11828_v41 }
 0x856   : > { %v17102_v26 = vpop.eup %14213  ;;  %14233 = vpow2.f32 %v11827_v42 }
 0x857   : > { %v14216_v46 = vpop.eup %14215  ;;  %10566 = vperm.xlu0 %14133, %v17099_v1   ;;  %14235 = vpow2.f32 %v11830_v60 }
 0x858   : > { %v14218_v24 = vpop.eup %14217  ;;  %v10406_v29 = vadd.f32 1.0, %v14216_v46  ;;  %10561 = vperm.xlu1 %14134, %v17102_v26   ;;  %14237 = vpow2.f32 %v11829_v43 }
 0x859   : > { %13158 = vmatmul.mubr.msk.bf16.gmra.mrb[24].mxu0 %vm593_vm1, %v16750_v49  ;;  %v14220_v63 = vpop.eup %14219  ;;  %v10405_v44 = vadd.f32 1.0, %v14218_v24  ;;  %v11832_v49 = vmul.f32 -1.442695, %v10286_v37 }
 0x85a   : > { %13161 = vmatprep.mubr.msk.bf16.mxu0 %vm593_vm1, %v16764_v0  ;;  %v14222_v41 = vpop.eup %14221  ;;  %14239 = vrcp.f32 %v10406_v29  ;;  %v10408_v10 = vadd.f32 1.0, %v14220_v63 }
 0x85b   : > { %14241 = vrcp.f32 %v10405_v44  ;;  %v10407_v42 = vadd.f32 1.0, %v14222_v41  ;;  %v17112_v61 = vpop.eup %14223 }
 0x85c   : > { %14243 = vrcp.f32 %v10408_v10  ;;  %v17114_v0 = vpop.eup %14225  ;;  %10576 = vperm.xlu0 %14133, %v17112_v61  }
 0x85d   : > { %14245 = vrcp.f32 %v10407_v42  ;;  %v17117_v60 = vpop.eup %14227  ;;  %10571 = vperm.xlu1 %14134, %v17114_v0  }
 0x85e   : > { %14247 = vpow2.f32 %v11832_v49  ;;  %v17120_v43 = vpop.eup %14229 }
 0x85f   : > { %14249 = vpow2.f32 %v11831_v57  ;;  %v14232_v46 = vpop.eup %14231 }
 0x860   : > { %v14234_v24 = vpop.eup %14233  ;;  %10586 = vperm.xlu0 %14133, %v17117_v60   ;;  %v10410_v29 = vadd.f32 1.0, %v14232_v46 }
 0x861   : > { %13162 = vmatmul.mubr.msk.bf16.gmra.mrb[28].mxu0 %vm593_vm1, %v16766_v20  ;;  %v14236_v37 = vpop.eup %14235  ;;  %10581 = vperm.xlu1 %14134, %v17120_v43   ;;  %v10409_v59 = vadd.f32 1.0, %v14234_v24 }
 0x862   : > { %13165 = vmatprep.mubr.msk.bf16.mxu0 %vm593_vm1, %v16780_v38  ;;  %v14238_v63 = vpop.eup %14237  ;;  %14251 = vrcp.f32 %v10410_v29  ;;  %v10412_v44 = vadd.f32 1.0, %v14236_v37 }
 0x863   : > { %14253 = vrcp.f32 %v10409_v59  ;;  %v10411_v20 = vadd.f32 1.0, %v14238_v63 }
 0x864   : > { %v17128_v41 = vpop.eup %14239  ;;  %14255 = vrcp.f32 %v10412_v44  ;;  %v10672_v44 = vsub.f32 1.0, %v17015_v13  ;;  %v10676_v13 = vsub.f32 1.0, %v17031_v27  ;;  %v10680_v27 = vsub.f32 1.0, %v17050_v12 }
 0x865   : > { %v17130_v10 = vpop.eup %14241  ;;  %10596 = vperm.xlu0 %14133, %v17128_v41   ;;  %14257 = vrcp.f32 %v10411_v20  ;;  %v8658_v20 = vld [vmem:[#allocation2 + $0x1a1] sm:$0xff]  ;;  %v10688_v12 = vsub.f32 1.0, %v17099_v1 }
 0x866   : > { %v17133_v38 = vpop.eup %14243  ;;  %10591 = vperm.xlu1 %14134, %v17130_v10  }
 0x867   : > { %v17136_v49 = vpop.eup %14245 }
 0x868   : > { %v14248_v42 = vpop.eup %14247 }
 0x869   : > { %13166 = vmatmul.mubr.msk.bf16.gmra.mrb[32].mxu0 %vm593_vm1, %v16782_v51  ;;  %v14250_v57 = vpop.eup %14249  ;;  %10606 = vperm.xlu0 %14133, %v17133_v38   ;;  %v10414_v46 = vadd.f32 1.0, %v14248_v42  ;;  %v10674_v42 = vsub.f32 1.0, %v17026_v62  ;;  %v9360_v62 = vsel %vm730_vm0, %v17060_v34, 0  ;;  %v8695_v34 = vld [vmem:[#allocation2 + $0x2d1] sm:$0xff] }
 0x86a   : > { %13169 = vmatprep.mubr.msk.bf16.mxu0 %vm593_vm1, %v16796_v33  ;;  %10601 = vperm.xlu1 %14134, %v17136_v49   ;;  %v10413_v24 = vadd.f32 1.0, %v14250_v57 }
 0x86b   : > { %14259 = vrcp.f32 %v10414_v46  ;;  %v10673_v46 = vsub.f32 1.0, %v17028_v23  ;;  %v17186_v23 = vld [vmem:[%s18014_s11 + $0x20] sm:$0xf] }
 0x86c   : > { %14261 = vrcp.f32 %v10413_v24  ;;  %v17144_v29 = vpop.eup %14251 }
 0x86d   : > { %v17146_v37 = vpop.eup %14253  ;;  %10616 = vperm.xlu0 %14133, %v17144_v29  }
 0x86e   : > { %v17149_v51 = vpop.eup %14255  ;;  %10611 = vperm.xlu1 %14134, %v17146_v37  }
 0x86f   : > { %v17154_v33 = vpop.eup %14257 }
 0x871   : > { %13170 = vmatmul.mubr.msk.bf16.gmra.mrb[36].mxu0 %vm593_vm1, %v16798_v58  ;;  %10626 = vperm.xlu0 %14133, %v17149_v51   ;;  %v10671_v58 = vsub.f32 1.0, %v17013_v2  ;;  %v10677_v2 = vsub.f32 1.0, %v17047_v32  ;;  %v10684_v32 = vsub.f32 1.0, %v17079_v35  ;;  %v10687_v35 = vsub.f32 1.0, %v17102_v26  ;;  %v8697_v26 = vld [vmem:[#allocation2 + $0x2e9] sm:$0xff] }
 0x872   : > { %13173 = vmatprep.mubr.msk.bf16.mxu0 %vm593_vm1, %v16812_v18  ;;  %10621 = vperm.xlu1 %14134, %v17154_v33   ;;  %v8657_v18 = vld [vmem:[#allocation2 + $0x199] sm:$0xff] }
 0x873   : > { %v8674_v57 = vpack.c.bf16 %v8658_v20, %v8657_v18 }
 0x875   : > { %v17160_v59 = vpop.eup %14259 }
 0x876   : > { %v17162_v63 = vpop.eup %14261  ;;  %10636 = vperm.xlu0 %14133, %v17160_v59   ;;  %v10702_v18 = vsub.f32 1.0, %v17160_v59  ;;  %v9215_v59 = vld [vmem:[#allocation2 + $0x4a] sm:$0xff] }
 0x877   : > { %10631 = vperm.xlu1 %14134, %v17162_v63  }
 0x879   : > { %13174 = vmatmul.mubr.msk.bf16.gmra.mrb[40].mxu0 %vm593_vm1, %v16814_v50  ;;  %v10675_v50 = vsub.f32 1.0, %v17034_v54  ;;  %v10682_v54 = vsub.f32 1.0, %v17074_v8  ;;  %v10685_v8 = vsub.f32 1.0, %v17096_v4  ;;  %v10692_v4 = vsub.f32 1.0, %v17117_v60  ;;  %v8699_v60 = vld [vmem:[#allocation2 + $0x301] sm:$0xff] }
 0x87a   : > { %13177 = vmatprep.mubr.msk.bf16.mxu0 %vm593_vm1, %v16828_v52  ;;  %10710 = vperm.xlu0 %14133, %v10672_v44   ;;  %v10678_v52 = vsub.f32 1.0, %v17044_v25  ;;  %v10681_v25 = vsub.f32 1.0, %v17076_v22  ;;  %v10693_v22 = vsub.f32 1.0, %v17130_v10  ;;  %v8698_v10 = vld [vmem:[#allocation2 + $0x2f1] sm:$0xff] }
 0x87b   : > { %10705 = vperm.xlu1 %14134, %v10671_v58   ;;  %v8718_v24 = vpack.c.bf16 %v8698_v10, %v8697_v26  ;;  %v8701_v58 = vld [vmem:[#allocation2 + $0x319] sm:$0xff]  ;;  %v9236_v26 = vld [vmem:[#allocation2 + $0x142] sm:$0xff]  ;;  %v9239_v10 = vld [vmem:[#allocation2 + $0x16a] sm:$0xff] }
 0x87e   : > { %10720 = vperm.xlu0 %14133, %v10674_v42  }
 0x87f   : > { %10715 = vperm.xlu1 %14134, %v10673_v46   ;;  %v9214_v46 = vld [vmem:[#allocation2 + $0x3a] sm:$0xff] }
 0x881   : > { %13178 = vmatmul.mubr.msk.bf16.gmra.mrb[44].mxu0 %vm593_vm1, %v8674_v57  ;;  %v9213_v57 = vld [vmem:[#allocation2 + $0x32] sm:$0xff] }
 0x882   : > { %13183 = vmatprep.mubr.msk.bf16.mxu0 %vm593_vm1, %v16841_v16  ;;  %10730 = vperm.xlu0 %14133, %v10676_v13   ;;  %v10679_v16 = vsub.f32 1.0, %v17053_v11  ;;  %v8693_v11 = vld [vmem:[#allocation2 + $0x2b9] sm:$0xff]  ;;  %v9245_v13 = vpack.c.bf16 %v9214_v46, %v9213_v57  ;;  %v9264_v57 = vld [vmem:[#allocation2 + $0x202] sm:$0xff] }
 0x883   : > { %10725 = vperm.xlu1 %14134, %v10675_v50   ;;  %v9217_v50 = vld [vmem:[#allocation2 + $0x62] sm:$0xff]  ;;  %v9265_v46 = vld [vmem:[#allocation2 + $0x212] sm:$0xff] }
 0x886   : > { %10740 = vperm.xlu0 %14133, %v10678_v52   ;;  %v9218_v52 = vld [vmem:[#allocation2 + $0x6a] sm:$0xff] }
 0x887   : > { %10735 = vperm.xlu1 %14134, %v10677_v2  }
 0x889   : > { %13184 = vmatmul.mubr.msk.bf16.vlgmr.msra.gmra.mrb[0].mxu0 %vm593_vm1, %v16845_v55  ;;  %v10683_v55 = vsub.f32 1.0, %v17082_v47 }
 0x88a   : > { %13216 = vmatpush3.bf16.msra.mxu0 %v9360_v62  ;;  %13187 = vmatprep.mubr.msk.bf16.mxu0 %vm593_vm1, %v16855_v9  ;;  %v10686_v9 = vsub.f32 1.0, %v17094_v30  ;;  %v8696_v30 = vld [vmem:[#allocation2 + $0x2d9] sm:$0xff]  ;;  %v9604_v62 = vsel %vm730_vm0, %v17186_v23, 0 }
 0x88b   : > { %14115 = vmatprep.subr.msk.bf16.mxu0 %vm730_vm0, %v17186_v23  ;;  %10750 = vperm.xlu0 %14133, %v10680_v27   ;;  %v8717_v1 = vpack.c.bf16 %v8696_v30, %v8695_v34  ;;  %v9247_v27 = vpack.c.bf16 %v9218_v52, %v9217_v50  ;;  %v9226_v23 = vld [vmem:[#allocation2 + $0xca] sm:$0xff]  ;;  %v9268_v52 = vld [vmem:[#allocation2 + $0x232] sm:$0xff] }
 0x88c   : > { %10745 = vperm.xlu1 %14134, %v10679_v16   ;;  %v9220_v16 = vld [vmem:[#allocation2 + $0x82] sm:$0xff]  ;;  %v9231_v34 = vld [vmem:[#allocation2 + $0x10a] sm:$0xff] }
 0x88d   : > { %v9234_v30 = vld [vmem:[#allocation2 + $0x12a] sm:$0xff] }
 0x88e   : > { %v9267_v50 = vld [vmem:[#allocation2 + $0x22a] sm:$0xff] }
 0x88f   : > { %10760 = vperm.xlu0 %14133, %v10682_v54   ;;  %v9221_v54 = vld [vmem:[#allocation2 + $0x92] sm:$0xff] }
 0x890   : > { %10755 = vperm.xlu1 %14134, %v10681_v25   ;;  %v9222_v25 = vld [vmem:[#allocation2 + $0x9a] sm:$0xff] }
 0x891   : > { %13188 = vmatmul.mubr.msk.bf16.gmra.mrb[4].mxu0 %vm593_vm1, %v16857_v48  ;;  %v10689_v48 = vsub.f32 1.0, %v17114_v0  ;;  %v10698_v0 = vsub.f32 1.0, %v17144_v29  ;;  %v8702_v29 = vld [vmem:[#allocation2 + $0x321] sm:$0xff] }
 0x892   : > { %13191 = vmatprep.mubr.msk.bf16.mxu0 %vm593_vm1, %v16863_v36  ;;  %v10690_v36 = vsub.f32 1.0, %v17112_v61  ;;  %v10694_v61 = vsub.f32 1.0, %v17128_v41  ;;  %v10697_v41 = vsub.f32 1.0, %v17146_v37  ;;  %v10701_v37 = vsub.f32 1.0, %v17162_v63  ;;  %v9216_v63 = vld [vmem:[#allocation2 + $0x52] sm:$0xff] }
 0x893   : > { %10770 = vperm.xlu0 %14133, %v10684_v32   ;;  %v8720_v20 = vpack.c.bf16 %v8702_v29, %v8701_v58  ;;  %v9246_v2 = vpack.c.bf16 %v9216_v63, %v9215_v59  ;;  %v9243_v29 = vld [vmem:[#allocation2 + $0x19a] sm:$0xff] }
 0x894   : > { %10765 = vperm.xlu1 %14134, %v10683_v55   ;;  %v9249_v55 = vpack.c.bf16 %v9222_v25, %v9221_v54  ;;  %v9272_v54 = vld [vmem:[#allocation2 + $0x262] sm:$0xff]  ;;  %v9273_v25 = vld [vmem:[#allocation2 + $0x272] sm:$0xff] }
 0x897   : > { %10780 = vperm.xlu0 %14133, %v10686_v9   ;;  %v9223_v9 = vld [vmem:[#allocation2 + $0xaa] sm:$0xff] }
 0x898   : > { %10775 = vperm.xlu1 %14134, %v10685_v8   ;;  %v9224_v8 = vld [vmem:[#allocation2 + $0xb2] sm:$0xff] }
 0x899   : > { %13192 = vmatmul.mubr.msk.bf16.gmra.mrb[8].mxu0 %vm593_vm1, %v16865_v15  ;;  %v10691_v15 = vsub.f32 1.0, %v17120_v43  ;;  %v8700_v43 = vld [vmem:[#allocation2 + $0x309] sm:$0xff] }
 0x89a   : > { %13195 = vmatprep.mubr.msk.bf16.mxu0 %vm593_vm1, %v16871_v14  ;;  %v8694_v14 = vld [vmem:[#allocation2 + $0x2c1] sm:$0xff]  ;;  %v8719_v44 = vpack.c.bf16 %v8700_v43, %v8699_v60 }
 0x89b   : > { %10790 = vperm.xlu0 %14133, %v10688_v12   ;;  %v8716_v47 = vpack.c.bf16 %v8694_v14, %v8693_v11  ;;  %v9225_v12 = vld [vmem:[#allocation2 + $0xc2] sm:$0xff]  ;;  %v9230_v11 = vld [vmem:[#allocation2 + $0xfa] sm:$0xff] }
 0x89c   : > { %10785 = vperm.xlu1 %14134, %v10687_v35   ;;  %v9250_v35 = vpack.c.bf16 %v9224_v8, %v9223_v9  ;;  %v9238_v60 = vld [vmem:[#allocation2 + $0x15a] sm:$0xff]  ;;  %v9275_v8 = vld [vmem:[#allocation2 + $0x28a] sm:$0xff] }
 0x89f   : > { %10800 = vperm.xlu0 %14133, %v10690_v36   ;;  %v9251_v36 = vpack.c.bf16 %v9226_v23, %v9225_v12  ;;  %v9276_v12 = vld [vmem:[#allocation2 + $0x292] sm:$0xff]  ;;  %v9277_v23 = vld [vmem:[#allocation2 + $0x2a2] sm:$0xff] }
 0x8a0   : > { %10795 = vperm.xlu1 %14134, %v10689_v48   ;;  %v9227_v48 = vld [vmem:[#allocation2 + $0xda] sm:$0xff] }
 0x8a1   : > { %13196 = vmatmul.mubr.msk.bf16.gmra.mrb[12].mxu0 %vm593_vm1, %v16873_v7  ;;  %v10696_v7 = vsub.f32 1.0, %v17133_v38  ;;  %v10700_v38 = vsub.f32 1.0, %v17149_v51  ;;  %v8705_v51 = vld [vmem:[#allocation2 + $0x349] sm:$0xff] }
 0x8a2   : > { %13199 = vmatprep.mubr.msk.bf16.mxu0 %vm593_vm1, %v16879_v3  ;;  %v10695_v3 = vsub.f32 1.0, %v17136_v49  ;;  %v10699_v49 = vsub.f32 1.0, %v17154_v33  ;;  %v8706_v33 = vld [vmem:[#allocation2 + $0x351] sm:$0xff] }
 0x8a3   : > { %10810 = vperm.xlu0 %14133, %v10692_v4   ;;  %v8722_v42 = vpack.c.bf16 %v8706_v33, %v8705_v51  ;;  %v9228_v4 = vld [vmem:[#allocation2 + $0xe2] sm:$0xff]  ;;  %v9262_v51 = vld [vmem:[#allocation2 + $0x1ea] sm:$0xff] }
 0x8a4   : > { %10805 = vperm.xlu1 %14134, %v10691_v15   ;;  %v9229_v15 = vld [vmem:[#allocation2 + $0xf2] sm:$0xff]  ;;  %v9252_v14 = vpack.c.bf16 %v9228_v4, %v9227_v48  ;;  %v9279_v4 = vld [vmem:[#allocation2 + $0x2ba] sm:$0xff] }
 0x8a7   : > { %10820 = vperm.xlu0 %14133, %v10694_v61   ;;  %v9253_v61 = vpack.c.bf16 %v9230_v11, %v9229_v15  ;;  %v9280_v15 = vld [vmem:[#allocation2 + $0x2c2] sm:$0xff]  ;;  %v9281_v11 = vld [vmem:[#allocation2 + $0x2d2] sm:$0xff] }
 0x8a8   : > { %10815 = vperm.xlu1 %14134, %v10693_v22   ;;  %v9232_v22 = vld [vmem:[#allocation2 + $0x112] sm:$0xff] }
 0x8a9   : > { %13200 = vmatmul.mubr.msk.bf16.gmra.mrb[48].mxu0 %vm593_vm1, %v8716_v47  ;;  %v9233_v47 = vld [vmem:[#allocation2 + $0x122] sm:$0xff] }
 0x8aa   : > { %13203 = vmatprep.mubr.msk.bf16.mxu0 %vm593_vm1, %v8717_v1  ;;  %v9254_v1 = vpack.c.bf16 %v9232_v22, %v9231_v34  ;;  %v9283_v22 = vld [vmem:[#allocation2 + $0x2ea] sm:$0xff] }
 0x8ab   : > { %10830 = vperm.xlu0 %14133, %v10696_v7   ;;  %v9255_v7 = vpack.c.bf16 %v9234_v30, %v9233_v47  ;;  %v9285_v47 = vld [vmem:[#allocation2 + $0x302] sm:$0xff]  ;;  %v9286_v30 = vld [vmem:[#allocation2 + $0x30a] sm:$0xff] }
 0x8ac   : > { %10825 = vperm.xlu1 %14134, %v10695_v3   ;;  %v9235_v3 = vld [vmem:[#allocation2 + $0x13a] sm:$0xff] }
 0x8ad   : > { %v9256_v43 = vpack.c.bf16 %v9236_v26, %v9235_v3  ;;  %v9305_v3 = vpack.c.bf16 %v9286_v30, %v9285_v47  ;;  %v9287_v26 = vld [vmem:[#allocation2 + $0x31a] sm:$0xff] }
 0x8af   : > { %10840 = vperm.xlu0 %14133, %v10698_v0   ;;  %v9237_v0 = vld [vmem:[#allocation2 + $0x152] sm:$0xff] }
 0x8b0   : > { %10835 = vperm.xlu1 %14134, %v10697_v41   ;;  %v9257_v41 = vpack.c.bf16 %v9238_v60, %v9237_v0  ;;  %v9288_v0 = vld [vmem:[#allocation2 + $0x322] sm:$0xff]  ;;  %v9289_v60 = vld [vmem:[#allocation2 + $0x332] sm:$0xff] }
 0x8b1   : > { %13204 = vmatmul.mubr.msk.bf16.gmra.mrb[52].mxu0 %vm593_vm1, %v8718_v24  ;;  %v9240_v24 = vld [vmem:[#allocation2 + $0x172] sm:$0xff] }
 0x8b2   : > { %13207 = vmatprep.mubr.msk.bf16.mxu0 %vm593_vm1, %v8719_v44  ;;  %v9241_v44 = vld [vmem:[#allocation2 + $0x182] sm:$0xff] }
 0x8b3   : > { %10850 = vperm.xlu0 %14133, %v10700_v38   ;;  %v9258_v38 = vpack.c.bf16 %v9240_v24, %v9239_v10  ;;  %v9291_v24 = vld [vmem:[#allocation2 + $0x34a] sm:$0xff] }
 0x8b4   : > { %10845 = vperm.xlu1 %14134, %v10699_v49   ;;  %v9242_v49 = vld [vmem:[#allocation2 + $0x18a] sm:$0xff] }
 0x8b5   : > { %v9259_v58 = vpack.c.bf16 %v9242_v49, %v9241_v44  ;;  %v9292_v44 = vld [vmem:[#allocation2 + $0x352] sm:$0xff]  ;;  %v17272_v49 = vpop.permute.xlu1 %10486 }
 0x8b7   : > { %10860 = vperm.xlu0 %14133, %v10702_v18   ;;  %v9244_v18 = vld [vmem:[#allocation2 + $0x1a2] sm:$0xff] }
 0x8b8   : > { %10855 = vperm.xlu1 %14134, %v10701_v37   ;;  %v9260_v37 = vpack.c.bf16 %v9244_v18, %v9243_v29 }
 0x8b9   : > { %13208 = vmatmul.mubr.msk.bf16.gmra.mrb[56].mxu0 %vm593_vm1, %v8720_v20  ;;  %v9261_v20 = vld [vmem:[#allocation2 + $0x1e2] sm:$0xff] }
 0x8ba   : > { %13211 = vmatprep.mubr.msk.bf16.mxu0 %vm593_vm1, %v16893_v17  ;;  %v9219_v17 = vld [vmem:[#allocation2 + $0x7a] sm:$0xff]  ;;  %v9293_v33 = vpack.c.bf16 %v9262_v51, %v9261_v20  ;;  %v10492_v29 = vpop.permute.xlu1 %10491 }
 0x8bb   : > { %v9248_v32 = vpack.c.bf16 %v9220_v16, %v9219_v17  ;;  %v9271_v16 = vld [vmem:[#allocation2 + $0x25a] sm:$0xff] }
 0x8c1   : > { %13212 = vmatmul.mubr.msk.bf16.gmra.mrb[60].mxu0 %vm593_vm1, %v8722_v42  ;;  %v9263_v42 = vld [vmem:[#allocation2 + $0x1fa] sm:$0xff] }
 0x8c2   : > { %13217 = vmatprep.mubr.msk.bf16.mxu0 %vm593_vm1, %v9245_v13  ;;  %v9266_v13 = vld [vmem:[#allocation2 + $0x21a] sm:$0xff]  ;;  %v9294_v59 = vpack.c.bf16 %v9264_v57, %v9263_v42 }
 0x8c3   : > { %v9295_v63 = vpack.c.bf16 %v9266_v13, %v9265_v46 }
 0x8c9   : > { %13218 = vmatmul.mubr.msk.bf16.vlgmr.msra.gmra.mrb[16].mxu0 %vm593_vm1, %v9246_v2  ;;  %v9269_v2 = vld [vmem:[#allocation2 + $0x242] sm:$0xff] }
 0x8ca   : > { %13250 = vmatpush3.bf16.msra.mxu0 %v9604_v62  ;;  %13221 = vmatprep.mubr.msk.bf16.mxu0 %vm593_vm1, %v9247_v27  ;;  %v9270_v62 = vld [vmem:[#allocation2 + $0x24a] sm:$0xff]  ;;  %v9296_v27 = vpack.c.bf16 %v9268_v52, %v9267_v50 }
 0x8cb   : > { %v9297_v17 = vpack.c.bf16 %v9270_v62, %v9269_v2 }
 0x8d1   : > { %13222 = vmatmul.mubr.msk.bf16.gmra.mrb[20].mxu0 %vm593_vm1, %v9248_v32  ;;  %v9274_v32 = vld [vmem:[#allocation2 + $0x27a] sm:$0xff] }
 0x8d2   : > { %13225 = vmatprep.mubr.msk.bf16.mxu0 %vm593_vm1, %v9249_v55  ;;  %v9298_v55 = vpack.c.bf16 %v9272_v54, %v9271_v16  ;;  %v9299_v9 = vpack.c.bf16 %v9274_v32, %v9273_v25  ;;  %v17313_v32 = vld [vmem:[%s18012_s9] ss:$0 sm:$0xff] }
 0x8d9   : > { %13226 = vmatmul.mubr.msk.bf16.gmra.mrb[24].mxu0 %vm593_vm1, %v9250_v35  ;;  %v9278_v35 = vld [vmem:[#allocation2 + $0x2aa] sm:$0xff] }
 0x8da   : > { %13229 = vmatprep.mubr.msk.bf16.mxu0 %vm593_vm1, %v9251_v36  ;;  %v9300_v36 = vpack.c.bf16 %v9276_v12, %v9275_v8  ;;  %v9301_v48 = vpack.c.bf16 %v9278_v35, %v9277_v23  ;;  %v17321_v12 = vld [vmem:[%s18013_s10] ss:$0 sm:$0xff] }
 0x8e1   : > { %13230 = vmatmul.mubr.msk.bf16.gmra.mrb[28].mxu0 %vm593_vm1, %v9252_v14  ;;  %v9302_v14 = vpack.c.bf16 %v9280_v15, %v9279_v4 }
 0x8e2   : > { %13233 = vmatprep.mubr.msk.bf16.mxu0 %vm593_vm1, %v9253_v61  ;;  %v9282_v61 = vld [vmem:[#allocation2 + $0x2da] sm:$0xff] }
 0x8e3   : > { %v9303_v34 = vpack.c.bf16 %v9282_v61, %v9281_v11 }
 0x8e9   : > { %13234 = vmatmul.mubr.msk.bf16.gmra.mrb[32].mxu0 %vm593_vm1, %v9254_v1  ;;  %v9284_v1 = vld [vmem:[#allocation2 + $0x2f2] sm:$0xff] }
 0x8ea   : > { %13237 = vmatprep.mubr.msk.bf16.mxu0 %vm593_vm1, %v9255_v7  ;;  %v9304_v7 = vpack.c.bf16 %v9284_v1, %v9283_v22 }
 0x8f1   : > { %13238 = vmatmul.mubr.msk.bf16.gmra.mrb[36].mxu0 %vm593_vm1, %v9256_v43  ;;  %v9306_v43 = vpack.c.bf16 %v9288_v0, %v9287_v26 }
 0x8f2   : > { %13241 = vmatprep.mubr.msk.bf16.mxu0 %vm593_vm1, %v9257_v41  ;;  %v9290_v41 = vld [vmem:[#allocation2 + $0x33a] sm:$0xff] }
 0x8f3   : > { %v9307_v10 = vpack.c.bf16 %v9290_v41, %v9289_v60 }
 0x8f9   : > { %13242 = vmatmul.mubr.msk.bf16.gmra.mrb[40].mxu0 %vm593_vm1, %v9258_v38  ;;  %v9308_v38 = vpack.c.bf16 %v9292_v44, %v9291_v24 }
 0x8fa   : > { %13245 = vmatprep.mubr.msk.bf16.mxu0 %vm593_vm1, %v9259_v58  ;;  %v10482_v58 = vpop.permute.xlu0 %10481 }
 0x8fe   : > { %v10497_v18 = vpop.permute.xlu0 %10496 }
 0x901   : > { %13246 = vmatmul.mubr.msk.bf16.gmra.mrb[44].mxu0 %vm593_vm1, %v9260_v37  ;;  %v17274_v37 = vpop.permute.xlu1 %10501 }
 0x902   : > { %13251 = vmatprep.mubr.msk.bf16.mxu0 %vm593_vm1, %v9293_v33  ;;  %v17276_v20 = vpop.permute.xlu0 %10506 }
 0x905   : > { %v17278_v51 = vpop.permute.xlu1 %10511 }
 0x906   : > { %v17280_v33 = vpop.permute.xlu0 %10516 }
 0x909   : > { %13252 = vmatmul.mubr.msk.bf16.vlgmr.msra.gmra.mrb[0].mxu0 %vm593_vm1, %v9294_v59  ;;  %v17282_v42 = vpop.permute.xlu1 %10521 }
 0x90a   : > { %13255 = vmatprep.mubr.msk.bf16.mxu0 %vm593_vm1, %v9295_v63  ;;  %v17284_v57 = vpop.permute.xlu0 %10526 }
 0x90d   : > { %v17286_v46 = vpop.permute.xlu1 %10531 }
 0x90e   : > { %v17288_v13 = vpop.permute.xlu0 %10536 }
 0x911   : > { %13256 = vmatmul.mubr.msk.bf16.gmra.mrb[4].mxu0 %vm593_vm1, %v9296_v27  ;;  %v17290_v59 = vpop.permute.xlu1 %10541 }
 0x912   : > { %13259 = vmatprep.mubr.msk.bf16.mxu0 %vm593_vm1, %v9297_v17  ;;  %v17292_v63 = vpop.permute.xlu0 %10546 }
 0x915   : > { %v17294_v50 = vpop.permute.xlu1 %10551 }
 0x916   : > { %v17296_v52 = vpop.permute.xlu0 %10556 }
 0x919   : > { %13260 = vmatmul.mubr.msk.bf16.gmra.mrb[8].mxu0 %vm593_vm1, %v9298_v55  ;;  %v17298_v2 = vpop.permute.xlu1 %10561 }
 0x91a   : > { %13263 = vmatprep.mubr.msk.bf16.mxu0 %vm593_vm1, %v9299_v9  ;;  %v17300_v62 = vpop.permute.xlu0 %10566 }
 0x91d   : > { %v17302_v27 = vpop.permute.xlu1 %10571 }
 0x91e   : > { %v17304_v17 = vpop.permute.xlu0 %10576 }
 0x921   : > { %13264 = vmatmul.mubr.msk.bf16.gmra.mrb[12].mxu0 %vm593_vm1, %v9300_v36  ;;  %v17306_v16 = vpop.permute.xlu1 %10581 }
 0x922   : > { %13267 = vmatprep.mubr.msk.bf16.mxu0 %vm593_vm1, %v9301_v48  ;;  %v17308_v54 = vpop.permute.xlu0 %10586 }
 0x925   : > { %v17315_v55 = vpop.permute.xlu1 %10591 }
 0x926   : > { %v17324_v36 = vpop.permute.xlu0 %10596 }
 0x929   : > { %13268 = vmatmul.mubr.msk.bf16.gmra.mrb[48].mxu0 %vm593_vm1, %v9302_v14  ;;  %v17334_v22 = vpop.permute.xlu1 %10601 }
 0x92a   : > { %13271 = vmatprep.mubr.msk.bf16.mxu0 %vm593_vm1, %v9303_v34 }
 0x931   : > { %13272 = vmatmul.mubr.msk.bf16.gmra.mrb[52].mxu0 %vm593_vm1, %v9304_v7  ;;  %v17338_v7 = vpop.permute.xlu0 %10606 }
 0x932   : > { %13275 = vmatprep.mubr.msk.bf16.mxu0 %vm593_vm1, %v9305_v3 }
 0x939   : > { %13276 = vmatmul.mubr.msk.bf16.gmra.mrb[56].mxu0 %vm593_vm1, %v9306_v43 }
 0x93a   : > { %13279 = vmatprep.mubr.msk.bf16.mxu0 %vm593_vm1, %v9307_v10 }
 0x941   : > { %13280 = vmatmul.mubr.msk.bf16.gmra.mrb[60].mxu0 %vm593_vm1, %v9308_v38 }
 0x99c   : > { %v13219_v25 = vpop.f32.mrb[16].mxu0 }
 0x99d   : > { %v13319_v9 = vadd.f32 %v13219_v25, %v16530_v39  ;;  %v9396_v8 = vpop.f32.mrb[17].mxu0 }
 0x99e   : > { %v13320_v23 = vadd.f32 %v9396_v8, %v16532_v40  ;;  %v13220_v35 = vpop.f32.mrb[18].mxu0  ;;  %v17347_v8 = vpop.permute.xlu1 %10611 }
 0x99f   : > { %v9808_v48 = vmul.f32 %v13319_v9, %v17313_v32  ;;  %v13321_v4 = vadd.f32 %v13220_v35, %v16534_v56  ;;  %v9399_v15 = vpop.f32.mrb[19].mxu0  ;;  %v17354_v35 = vpop.permute.xlu0 %10616 }
 0x9a0   : > { %v9806_v11 = vmul.f32 %v13320_v23, %v17313_v32  ;;  %v13322_v39 = vadd.f32 %v9399_v15, %v16536_v21 }
 0x9a1   : > { %v9847_v14 = vadd.f32 %v17321_v12, %v9808_v48  ;;  %v9809_v61 = vmul.f32 %v13321_v4, %v17313_v32 }
 0x9a2   : > { %v9845_v34 = vadd.f32 %v17321_v12, %v9806_v11  ;;  %v9807_v40 = vmul.f32 %v13322_v39, %v17313_v32 }
 0x9a3   : > { %v9879_v47 = vmax.f32 %v9847_v14, 0.0  ;;  %v9848_v30 = vadd.f32 %v17321_v12, %v9809_v61 }
 0x9a4   : > { %v9846_v56 = vadd.f32 %v17321_v12, %v9807_v40  ;;  %v13223_v1 = vpop.f32.mrb[20].mxu0  ;;  %v9877_v21 = vmax.f32 %v9845_v34, 0.0 }
 0x9a5   : > { %v10641_v3 = vmul.f32 %v10492_v29, %v9879_v47  ;;  %v9880_v26 = vmax.f32 %v9848_v30, 0.0  ;;  %v13323_v0 = vadd.f32 %v13223_v1, %v16541_v28  ;;  %v9412_v60 = vpop.f32.mrb[21].mxu0  ;;  %v17364_v47 = vpop.permute.xlu1 %10621 }
 0x9a6   : > { %v13324_v43 = vadd.f32 %v9412_v60, %v16543_v19  ;;  %v13224_v41 = vpop.f32.mrb[22].mxu0  ;;  %v9878_v24 = vmax.f32 %v9846_v56, 0.0  ;;  %v10639_v28 = vmul.f32 %v10482_v58, %v9877_v21  ;;  %v18324_v21 = vld [vmem:[#allocation4_spill] sm:$0xff] }
 0x9a7   : > { %v10642_v10 = vmul.f32 %v10497_v18, %v9880_v26  ;;  %v9812_v44 = vmul.f32 %v13323_v0, %v17313_v32  ;;  %v13325_v38 = vadd.f32 %v13224_v41, %v16545_v31  ;;  %v9415_v25 = vpop.f32.mrb[23].mxu0  ;;  %10931 = vrot.lane.b32.xlu1 %v10641_v3, %s14314_s0  ;;  %v17372_v0 = vpop.permute.xlu0 %10626 }
 0x9a8   : > { %v9810_v29 = vmul.f32 %v13324_v43, %v17313_v32  ;;  %v13326_v9 = vadd.f32 %v9415_v25, %v16547_v53  ;;  %v10640_v48 = vmul.f32 %v17272_v49, %v9878_v24 }
 0x9a9   : > { %v9851_v19 = vadd.f32 %v17321_v12, %v9812_v44  ;;  %v9813_v18 = vmul.f32 %v13325_v38, %v17313_v32  ;;  %10933 = vrot.lane.b32.xlu0 %v10642_v10, %s14314_s0  ;;  %v17384_v38 = vpop.permute.xlu1 %10631 }
 0x9aa   : > { %v9849_v23 = vadd.f32 %v17321_v12, %v9810_v29  ;;  %v9811_v31 = vmul.f32 %v13326_v9, %v17313_v32 }
 0x9ab   : > { %v9883_v4 = vmax.f32 %v9851_v19, 0.0  ;;  %v9852_v53 = vadd.f32 %v17321_v12, %v9813_v18  ;;  %10927 = vrot.lane.b32.xlu1 %v10639_v28, %s14314_s0  ;;  %v18325_v28 = vld [vmem:[#allocation6_spill] sm:$0xff] }
 0x9ac   : > { %v9850_v58 = vadd.f32 %v17321_v12, %v9811_v31  ;;  %v13227_v15 = vpop.f32.mrb[24].mxu0  ;;  %v9881_v39 = vmax.f32 %v9849_v23, 0.0 }
 0x9ad   : > { %v10645_v11 = vmul.f32 %v17278_v51, %v9883_v4  ;;  %v9884_v14 = vmax.f32 %v9852_v53, 0.0  ;;  %v13327_v61 = vadd.f32 %v13227_v15, %v16550_v5  ;;  %v9428_v34 = vpop.f32.mrb[25].mxu0  ;;  %10929 = vrot.lane.b32.xlu0 %v10640_v48, %s14314_s0  ;;  %v17390_v48 = vpop.permute.xlu0 %10636  ;;  %v18327_v15 = vld [vmem:[#allocation5_spill] sm:$0xff] }
 0x9ae   : > { %v13328_v40 = vadd.f32 %v9428_v34, %v16553_v6  ;;  %v13228_v49 = vpop.f32.mrb[26].mxu0  ;;  %v9882_v56 = vmax.f32 %v9850_v58, 0.0  ;;  %v10643_v6 = vmul.f32 %v17274_v37, %v9881_v39 }
 0x9af   : > { %v10646_v30 = vmul.f32 %v17280_v33, %v9884_v14  ;;  %v9816_v1 = vmul.f32 %v13327_v61, %v17313_v32  ;;  %v13329_v3 = vadd.f32 %v13228_v49, %v16555_v45  ;;  %v9431_v51 = vpop.f32.mrb[27].mxu0  ;;  %10939 = vrot.lane.b32.xlu1 %v10645_v11, %s14314_s0  ;;  %v18328_v14 = vld [vmem:[#allocation7_spill] sm:$0xff] }
 0x9b0   : > { %v9814_v5 = vmul.f32 %v13328_v40, %v17313_v32  ;;  %v13330_v26 = vadd.f32 %v9431_v51, %v18324_v21  ;;  %v10644_v41 = vmul.f32 %v17276_v20, %v9882_v56  ;;  %v18326_v20 = vld [vmem:[#allocation32_spill] sm:$0xff]  ;;  %v17404_v56 = vpop.permute.xlu1 %10705 }
 0x9b1   : > { %v9855_v60 = vadd.f32 %v17321_v12, %v9816_v1  ;;  %v9817_v33 = vmul.f32 %v13329_v3, %v17313_v32  ;;  %10941 = vrot.lane.b32.xlu0 %v10646_v30, %s14314_s0  ;;  %v17410_v21 = vpop.permute.xlu0 %10710 }
 0x9b2   : > { %v9853_v43 = vadd.f32 %v17321_v12, %v9814_v5  ;;  %v9815_v45 = vmul.f32 %v13330_v26, %v17313_v32 }
 0x9b3   : > { %v9887_v10 = vmax.f32 %v9855_v60, 0.0  ;;  %v9856_v24 = vadd.f32 %v17321_v12, %v9817_v33  ;;  %10935 = vrot.lane.b32.xlu1 %v10643_v6, %s14314_s0  ;;  %v18329_v33 = vld [vmem:[#allocation30_spill] sm:$0xff] }
 0x9b4   : > { %v9854_v44 = vadd.f32 %v17321_v12, %v9815_v45  ;;  %v13231_v37 = vpop.f32.mrb[28].mxu0  ;;  %v9885_v29 = vmax.f32 %v9853_v43, 0.0 }
 0x9b5   : > { %v10649_v25 = vmul.f32 %v17286_v46, %v9887_v10  ;;  %v9888_v9 = vmax.f32 %v9856_v24, 0.0  ;;  %v13331_v19 = vadd.f32 %v13231_v37, %v18325_v28  ;;  %v9444_v18 = vpop.f32.mrb[29].mxu0  ;;  %10937 = vrot.lane.b32.xlu0 %v10644_v41, %s14314_s0  ;;  %v18332_v28 = vld [vmem:[#allocation8_spill] sm:$0xff] }
 0x9b6   : > { %v13332_v23 = vadd.f32 %v9444_v18, %v18326_v20  ;;  %v13232_v31 = vpop.f32.mrb[30].mxu0  ;;  %v9886_v53 = vmax.f32 %v9854_v44, 0.0  ;;  %v10647_v34 = vmul.f32 %v17282_v42, %v9885_v29  ;;  %v17422_v18 = vpop.permute.xlu1 %10715 }
 0x9b7   : > { %v10650_v4 = vmul.f32 %v17288_v13, %v9888_v9  ;;  %v9820_v58 = vmul.f32 %v13331_v19, %v17313_v32  ;;  %v13333_v11 = vadd.f32 %v13232_v31, %v18327_v15  ;;  %v9447_v46 = vpop.f32.mrb[31].mxu0  ;;  %10947 = vrot.lane.b32.xlu1 %v10649_v25, %s14314_s0  ;;  %v18331_v25 = vld [vmem:[#allocation51_spill] sm:$0xff] }
 0x9b8   : > { %v9818_v39 = vmul.f32 %v13332_v23, %v17313_v32  ;;  %v13334_v61 = vadd.f32 %v9447_v46, %v18328_v14  ;;  %v10648_v1 = vmul.f32 %v17284_v57, %v9886_v53  ;;  %v18330_v57 = vld [vmem:[#allocation31_spill] sm:$0xff]  ;;  %v17430_v53 = vpop.permute.xlu0 %10720 }
 0x9b9   : > { %v9859_v40 = vadd.f32 %v17321_v12, %v9820_v58  ;;  %v9821_v49 = vmul.f32 %v13333_v11, %v17313_v32  ;;  %10949 = vrot.lane.b32.xlu0 %v10650_v4, %s14314_s0 }
 0x9ba   : > { %v9857_v13 = vadd.f32 %v17321_v12, %v9818_v39  ;;  %v9819_v30 = vmul.f32 %v13334_v61, %v17313_v32 }
 0x9bb   : > { %v9891_v3 = vmax.f32 %v9859_v40, 0.0  ;;  %v9860_v51 = vadd.f32 %v17321_v12, %v9821_v49  ;;  %10943 = vrot.lane.b32.xlu1 %v10647_v34, %s14314_s0  ;;  %v18333_v34 = vld [vmem:[#allocation52_spill] sm:$0xff] }
 0x9bc   : > { %v9858_v42 = vadd.f32 %v17321_v12, %v9819_v30  ;;  %v13235_v5 = vpop.f32.mrb[32].mxu0  ;;  %v9889_v6 = vmax.f32 %v9857_v13, 0.0  ;;  %v18334_v13 = vld [vmem:[#allocation10_spill] sm:$0xff] }
 0x9bd   : > { %v10653_v26 = vmul.f32 %v17294_v50, %v9891_v3  ;;  %v9892_v60 = vmax.f32 %v9860_v51, 0.0  ;;  %v13335_v43 = vadd.f32 %v13235_v5, %v18329_v33  ;;  %v9460_v45 = vpop.f32.mrb[33].mxu0  ;;  %10945 = vrot.lane.b32.xlu0 %v10648_v1, %s14314_s0  ;;  %v17440_v1 = vpop.permute.xlu1 %10725  ;;  %v18335_v5 = vld [vmem:[#allocation61_spill] sm:$0xff] }
 0x9be   : > { %v13336_v41 = vadd.f32 %v9460_v45, %v18330_v57  ;;  %v13236_v10 = vpop.f32.mrb[34].mxu0  ;;  %v9890_v44 = vmax.f32 %v9858_v42, 0.0  ;;  %v10651_v20 = vmul.f32 %v17290_v59, %v9889_v6 }
 0x9bf   : > { %v10654_v24 = vmul.f32 %v17296_v52, %v9892_v60  ;;  %v9824_v37 = vmul.f32 %v13335_v43, %v17313_v32  ;;  %v13337_v29 = vadd.f32 %v13236_v10, %v18331_v25  ;;  %v9463_v9 = vpop.f32.mrb[35].mxu0  ;;  %10955 = vrot.lane.b32.xlu1 %v10653_v26, %s14314_s0  ;;  %v18336_v60 = vld [vmem:[#allocation11_spill] sm:$0xff]  ;;  %v17448_v43 = vpop.permute.xlu0 %10730 }
 0x9c0   : > { %v9822_v50 = vmul.f32 %v13336_v41, %v17313_v32  ;;  %v13338_v19 = vadd.f32 %v9463_v9, %v18332_v28  ;;  %v10652_v58 = vmul.f32 %v17292_v63, %v9890_v44 }
 0x9c1   : > { %v9863_v23 = vadd.f32 %v17321_v12, %v9824_v37  ;;  %v9825_v52 = vmul.f32 %v13337_v29, %v17313_v32  ;;  %10957 = vrot.lane.b32.xlu0 %v10654_v24, %s14314_s0  ;;  %v17460_v29 = vpop.permute.xlu1 %10735 }
 0x9c2   : > { %v9861_v31 = vadd.f32 %v17321_v12, %v9822_v50  ;;  %v9823_v4 = vmul.f32 %v13338_v19, %v17313_v32  ;;  %v18337_v19 = vld [vmem:[#allocation9_spill] sm:$0xff] }
 0x9c3   : > { %v9895_v15 = vmax.f32 %v9863_v23, 0.0  ;;  %v9864_v11 = vadd.f32 %v17321_v12, %v9825_v52  ;;  %10951 = vrot.lane.b32.xlu1 %v10651_v20, %s14314_s0 }
 0x9c4   : > { %v9862_v59 = vadd.f32 %v17321_v12, %v9823_v4  ;;  %v13239_v46 = vpop.f32.mrb[36].mxu0  ;;  %v9893_v14 = vmax.f32 %v9861_v31, 0.0  ;;  %v17466_v4 = vpop.permute.xlu0 %10740 }
 0x9c5   : > { %v10657_v39 = vmul.f32 %v17302_v27, %v9895_v15  ;;  %v9896_v61 = vmax.f32 %v9864_v11, 0.0  ;;  %v13339_v40 = vadd.f32 %v13239_v46, %v18333_v34  ;;  %v9476_v49 = vpop.f32.mrb[37].mxu0  ;;  %10953 = vrot.lane.b32.xlu0 %v10652_v58, %s14314_s0 }
 0x9c6   : > { %v13340_v30 = vadd.f32 %v9476_v49, %v18334_v13  ;;  %v13240_v63 = vpop.f32.mrb[38].mxu0  ;;  %v9894_v51 = vmax.f32 %v9862_v59, 0.0  ;;  %v10655_v45 = vmul.f32 %v17298_v2, %v9893_v14  ;;  %v18339_v59 = vld [vmem:[#allocation35_spill] sm:$0xff]  ;;  %v18340_v14 = vld [vmem:[#allocation28_spill] sm:$0xff] }
 0x9c7   : > { %v10658_v3 = vmul.f32 %v17304_v17, %v9896_v61  ;;  %v9828_v42 = vmul.f32 %v13339_v40, %v17313_v32  ;;  %v13341_v26 = vadd.f32 %v13240_v63, %v18335_v5  ;;  %v9479_v27 = vpop.f32.mrb[39].mxu0  ;;  %10963 = vrot.lane.b32.xlu1 %v10657_v39, %s14314_s0 }
 0x9c8   : > { %v9826_v6 = vmul.f32 %v13340_v30, %v17313_v32  ;;  %v13342_v33 = vadd.f32 %v9479_v27, %v18336_v60  ;;  %v10656_v24 = vmul.f32 %v17300_v62, %v9894_v51  ;;  %v18338_v62 = vld [vmem:[#allocation38_spill] sm:$0xff]  ;;  %v17480_v30 = vpop.permute.xlu1 %10745  ;;  %v17486_v5 = vpop.permute.xlu0 %10750  ;;  %v18341_v60 = vld [vmem:[#allocation29_spill] sm:$0xff] }
 0x9c9   : > { %v9867_v57 = vadd.f32 %v17321_v12, %v9828_v42  ;;  %v9829_v17 = vmul.f32 %v13341_v26, %v17313_v32  ;;  %10965 = vrot.lane.b32.xlu0 %v10658_v3, %s14314_s0 }
 0x9ca   : > { %v9865_v41 = vadd.f32 %v17321_v12, %v9826_v6  ;;  %v9827_v10 = vmul.f32 %v13342_v33, %v17313_v32 }
 0x9cb   : > { %v9899_v44 = vmax.f32 %v9867_v57, 0.0  ;;  %v9868_v37 = vadd.f32 %v17321_v12, %v9829_v17  ;;  %10959 = vrot.lane.b32.xlu1 %v10655_v45, %s14314_s0 }
 0x9cc   : > { %v9866_v25 = vadd.f32 %v17321_v12, %v9827_v10  ;;  %v13243_v2 = vpop.f32.mrb[40].mxu0  ;;  %v9897_v50 = vmax.f32 %v9865_v41, 0.0 }
 0x9cd   : > { %v10661_v9 = vmul.f32 %v17315_v55, %v9899_v44  ;;  %v9900_v28 = vmax.f32 %v9868_v37, 0.0  ;;  %v13343_v20 = vadd.f32 %v13243_v2, %v18337_v19  ;;  %v9492_v23 = vpop.f32.mrb[41].mxu0  ;;  %10961 = vrot.lane.b32.xlu0 %v10656_v24, %s14314_s0  ;;  %v18343_v44 = vld [vmem:[#allocation60_spill] sm:$0xff]  ;;  %v18344_v2 = vld [vmem:[#allocation14_spill] sm:$0xff] }
 0x9ce   : > { %v13344_v52 = vadd.f32 %v9492_v23, %v18338_v62  ;;  %v13244_v31 = vpop.f32.mrb[42].mxu0  ;;  %v9898_v15 = vmax.f32 %v9866_v25, 0.0  ;;  %v10659_v34 = vmul.f32 %v17306_v16, %v9897_v50  ;;  %v17498_v50 = vpop.permute.xlu1 %10755 }
 0x9cf   : > { %v10662_v58 = vmul.f32 %v17324_v36, %v9900_v28  ;;  %v9832_v11 = vmul.f32 %v13343_v20, %v17313_v32  ;;  %v13345_v46 = vadd.f32 %v13244_v31, %v18339_v59  ;;  %v9495_v55 = vpop.f32.mrb[43].mxu0  ;;  %10971 = vrot.lane.b32.xlu1 %v10661_v9, %s14314_s0  ;;  %v17506_v62 = vpop.permute.xlu0 %10760 }
 0x9d0   : > { %v9830_v39 = vmul.f32 %v13344_v52, %v17313_v32  ;;  %v13346_v61 = vadd.f32 %v9495_v55, %v18340_v14  ;;  %v10660_v63 = vmul.f32 %v17308_v54, %v9898_v15  ;;  %v18342_v54 = vld [vmem:[#allocation59_spill] sm:$0xff]  ;;  %v18345_v55 = vld [vmem:[#allocation12_spill] sm:$0xff] }
 0x9d1   : > { %v9871_v40 = vadd.f32 %v17321_v12, %v9832_v11  ;;  %v9833_v49 = vmul.f32 %v13345_v46, %v17313_v32  ;;  %10973 = vrot.lane.b32.xlu0 %v10662_v58, %s14314_s0  ;;  %v17515_v11 = vld [vmem:[%s18015_s12] ss:$0 sm:$0xff] }
 0x9d2   : > { %v9869_v36 = vadd.f32 %v17321_v12, %v9830_v39  ;;  %v9831_v13 = vmul.f32 %v13346_v61, %v17313_v32  ;;  %v17523_v14 = vld [vmem:[%s18016_s13] ss:$0 sm:$0xff] }
 0x9d3   : > { %v9903_v3 = vmax.f32 %v9871_v40, 0.0  ;;  %v9872_v51 = vadd.f32 %v17321_v12, %v9833_v49  ;;  %10967 = vrot.lane.b32.xlu1 %v10659_v34, %s14314_s0  ;;  %v17526_v40 = vpop.permute.xlu1 %10765 }
 0x9d4   : > { %v9870_v16 = vadd.f32 %v17321_v12, %v9831_v13  ;;  %v13247_v42 = vpop.f32.mrb[44].mxu0  ;;  %v9901_v27 = vmax.f32 %v9869_v36, 0.0  ;;  %v18347_v13 = vld [vmem:[#allocation13_spill] sm:$0xff] }
 0x9d5   : > { %v10665_v26 = vmul.f32 %v17347_v8, %v9903_v3  ;;  %v9904_v6 = vmax.f32 %v9872_v51, 0.0  ;;  %v13347_v33 = vadd.f32 %v13247_v42, %v18341_v60  ;;  %v9508_v45 = vpop.f32.mrb[45].mxu0  ;;  %10969 = vrot.lane.b32.xlu0 %v10660_v63, %s14314_s0 }
 0x9d6   : > { %v13348_v57 = vadd.f32 %v9508_v45, %v18342_v54  ;;  %v13248_v17 = vpop.f32.mrb[46].mxu0  ;;  %v9902_v10 = vmax.f32 %v9870_v16, 0.0  ;;  %v10663_v28 = vmul.f32 %v17334_v22, %v9901_v27  ;;  %v18348_v16 = vld [vmem:[#allocation18_spill] sm:$0xff] }
 0x9d7   : > { %v10666_v41 = vmul.f32 %v17354_v35, %v9904_v6  ;;  %v9836_v24 = vmul.f32 %v13347_v33, %v17313_v32  ;;  %v13349_v37 = vadd.f32 %v13248_v17, %v18343_v44  ;;  %v9511_v25 = vpop.f32.mrb[47].mxu0  ;;  %10979 = vrot.lane.b32.xlu1 %v10665_v26, %s14314_s0  ;;  %v17534_v26 = vpop.permute.xlu0 %10770 }
 0x9d8   : > { %v9834_v8 = vmul.f32 %v13348_v57, %v17313_v32  ;;  %v13350_v9 = vadd.f32 %v9511_v25, %v18344_v2  ;;  %v10664_v52 = vmul.f32 %v17338_v7, %v9902_v10 }
 0x9d9   : > { %v9875_v19 = vadd.f32 %v17321_v12, %v9836_v24  ;;  %v9837_v35 = vmul.f32 %v13349_v37, %v17313_v32  ;;  %10981 = vrot.lane.b32.xlu0 %v10666_v41, %s14314_s0  ;;  %v17546_v41 = vpop.permute.xlu1 %10775  ;;  %v18349_v37 = vld [vmem:[#allocation16_spill] sm:$0xff] }
 0x9da   : > { %v9873_v20 = vadd.f32 %v17321_v12, %v9834_v8  ;;  %v9835_v23 = vmul.f32 %v13350_v9, %v17313_v32 }
 0x9db   : > { %v9907_v31 = vmax.f32 %v9875_v19, 0.0  ;;  %v9876_v58 = vadd.f32 %v17321_v12, %v9837_v35  ;;  %10975 = vrot.lane.b32.xlu1 %v10663_v28, %s14314_s0  ;;  %v17552_v28 = vpop.permute.xlu0 %10780 }
 0x9dc   : > { %v9874_v22 = vadd.f32 %v17321_v12, %v9835_v23  ;;  %v13253_v15 = vpop.f32.mrb[0].mxu0  ;;  %v9905_v32 = vmax.f32 %v9873_v20, 0.0  ;;  %v18346_v12 = vld [vmem:[#allocation15_spill] sm:$0xff]  ;;  %v18351_v23 = vld [vmem:[#allocation17_spill] sm:$0xff] }
 0x9dd   : > { %v10669_v59 = vmul.f32 %v17384_v38, %v9907_v31  ;;  %v9908_v46 = vmax.f32 %v9876_v58, 0.0  ;;  %v13351_v39 = vadd.f32 %v13253_v15, %v18345_v55  ;;  %v9640_v7 = vpop.f32.mrb[1].mxu0  ;;  %10977 = vrot.lane.b32.xlu0 %v10664_v52, %s14314_s0  ;;  %v18352_v58 = vld [vmem:[#allocation22_spill] sm:$0xff]  ;;  %v17566_v55 = vpop.permute.xlu1 %10785 }
 0x9de   : > { %v13352_v61 = vadd.f32 %v9640_v7, %v18346_v12  ;;  %v13254_v34 = vpop.f32.mrb[2].mxu0  ;;  %v9906_v38 = vmax.f32 %v9874_v22, 0.0  ;;  %v10667_v27 = vmul.f32 %v17364_v47, %v9905_v32 }
 0x9df   : > { %v10670_v49 = vmul.f32 %v17390_v48, %v9908_v46  ;;  %v9918_v36 = vmul.f32 %v13351_v39, %v17515_v11  ;;  %v13353_v63 = vadd.f32 %v13254_v34, %v18347_v13  ;;  %v9643_v3 = vpop.f32.mrb[3].mxu0  ;;  %10987 = vrot.lane.b32.xlu1 %v10669_v59, %s14314_s0  ;;  %v17572_v34 = vpop.permute.xlu0 %10790  ;;  %v18353_v13 = vld [vmem:[#allocation20_spill] sm:$0xff] }
 0x9e0   : > { %v9916_v51 = vmul.f32 %v13352_v61, %v17515_v11  ;;  %v13354_v42 = vadd.f32 %v9643_v3, %v18348_v16  ;;  %v10668_v45 = vmul.f32 %v17372_v0, %v9906_v38  ;;  %v18350_v0 = vld [vmem:[#allocation19_spill] sm:$0xff] }
 0x9e1   : > { %v9957_v6 = vadd.f32 %v17523_v14, %v9918_v36  ;;  %v9919_v48 = vmul.f32 %v13353_v63, %v17515_v11  ;;  %10989 = vrot.lane.b32.xlu0 %v10670_v49, %s14314_s0 }
 0x9e2   : > { %v9955_v60 = vadd.f32 %v17523_v14, %v9916_v51  ;;  %v9917_v33 = vmul.f32 %v13354_v42, %v17515_v11 }
 0x9e3   : > { %v9989_v54 = vmax.f32 %v9957_v6, 0.0  ;;  %v9958_v57 = vadd.f32 %v17523_v14, %v9919_v48  ;;  %10983 = vrot.lane.b32.xlu1 %v10667_v27, %s14314_s0  ;;  %v18355_v48 = vld [vmem:[#allocation21_spill] sm:$0xff] }
 0x9e4   : > { %v9956_v17 = vadd.f32 %v17523_v14, %v9917_v33  ;;  %v13257_v47 = vpop.f32.mrb[4].mxu0  ;;  %v9987_v24 = vmax.f32 %v9955_v60, 0.0 }
 0x9e5   : > { %v10865_v10 = vmul.f32 %v17422_v18, %v9989_v54  ;;  %v9990_v44 = vmax.f32 %v9958_v57, 0.0  ;;  %v13355_v25 = vadd.f32 %v13257_v47, %v18349_v37  ;;  %v9656_v8 = vpop.f32.mrb[5].mxu0  ;;  %10985 = vrot.lane.b32.xlu0 %v10668_v45, %s14314_s0  ;;  %v18356_v45 = vld [vmem:[#allocation27_spill] sm:$0xff]  ;;  %v17584_v57 = vpop.permute.xlu1 %10795 }
 0x9e6   : > { %v13356_v2 = vadd.f32 %v9656_v8, %v18350_v0  ;;  %v13258_v9 = vpop.f32.mrb[6].mxu0  ;;  %v9988_v35 = vmax.f32 %v9956_v17, 0.0  ;;  %v10863_v15 = vmul.f32 %v17404_v56, %v9987_v24 }
 0x9e7   : > { %v10866_v19 = vmul.f32 %v17430_v53, %v9990_v44  ;;  %v9922_v20 = vmul.f32 %v13355_v25, %v17515_v11  ;;  %v13357_v52 = vadd.f32 %v13258_v9, %v18351_v23  ;;  %v9659_v18 = vpop.f32.mrb[7].mxu0  ;;  %11059 = vrot.lane.b32.xlu1 %v10865_v10, %s14315_s21  ;;  %v17592_v44 = vpop.permute.xlu0 %10800 }
 0x9e8   : > { %v9920_v31 = vmul.f32 %v13356_v2, %v17515_v11  ;;  %v13358_v22 = vadd.f32 %v9659_v18, %v18352_v58  ;;  %v10864_v39 = vmul.f32 %v17410_v21, %v9988_v35  ;;  %v18354_v21 = vld [vmem:[#allocation23_spill] sm:$0xff]  ;;  %v18357_v35 = vld [vmem:[#allocation25_spill] sm:$0xff] }
 0x9e9   : > { %v9961_v59 = vadd.f32 %v17523_v14, %v9922_v20  ;;  %v9923_v32 = vmul.f32 %v13357_v52, %v17515_v11  ;;  %11061 = vrot.lane.b32.xlu0 %v10866_v19, %s14315_s21  ;;  %v18358_v52 = vld [vmem:[#allocation64_spill] sm:$0xff] }
 0x9ea   : > { %v9959_v53 = vadd.f32 %v17523_v14, %v9920_v31  ;;  %v9921_v46 = vmul.f32 %v13358_v22, %v17515_v11  ;;  %v17602_v31 = vpop.permute.xlu1 %10805 }
 0x9eb   : > { %v9993_v7 = vmax.f32 %v9961_v59, 0.0  ;;  %v9962_v12 = vadd.f32 %v17523_v14, %v9923_v32  ;;  %11055 = vrot.lane.b32.xlu1 %v10863_v15, %s14315_s21  ;;  %v18359_v59 = vld [vmem:[#allocation66_spill] sm:$0xff] }
 0x9ec   : > { %v9960_v56 = vadd.f32 %v17523_v14, %v9921_v46  ;;  %v13261_v61 = vpop.f32.mrb[8].mxu0  ;;  %v9991_v38 = vmax.f32 %v9959_v53, 0.0  ;;  %v18360_v46 = vld [vmem:[#allocation65_spill] sm:$0xff] }
 0x9ed   : > { %v10869_v49 = vmul.f32 %v17460_v29, %v9993_v7  ;;  %v9994_v36 = vmax.f32 %v9962_v12, 0.0  ;;  %v13359_v63 = vadd.f32 %v13261_v61, %v18353_v13  ;;  %v9672_v3 = vpop.f32.mrb[9].mxu0  ;;  %11057 = vrot.lane.b32.xlu0 %v10864_v39, %s14315_s21  ;;  %v17610_v7 = vpop.permute.xlu0 %10810 }
 0x9ee   : > { %v13360_v51 = vadd.f32 %v9672_v3, %v18354_v21  ;;  %v13262_v16 = vpop.f32.mrb[10].mxu0  ;;  %v9992_v27 = vmax.f32 %v9960_v56, 0.0  ;;  %v10867_v17 = vmul.f32 %v17440_v1, %v9991_v38  ;;  %v10816_v3 = vpop.permute.xlu1 %10815 }
 0x9ef   : > { %v10870_v42 = vmul.f32 %v17466_v4, %v9994_v36  ;;  %v9926_v6 = vmul.f32 %v13359_v63, %v17515_v11  ;;  %v13361_v60 = vadd.f32 %v13262_v16, %v18355_v48  ;;  %v9675_v33 = vpop.f32.mrb[11].mxu0  ;;  %11067 = vrot.lane.b32.xlu1 %v10869_v49, %s14315_s21  ;;  %v18362_v48 = vld [vmem:[#allocation67_spill] sm:$0xff] }
 0x9f0   : > { %v9924_v29 = vmul.f32 %v13360_v51, %v17515_v11  ;;  %v13362_v54 = vadd.f32 %v9675_v33, %v18356_v45  ;;  %v10868_v37 = vmul.f32 %v17448_v43, %v9992_v27 }
 0x9f1   : > { %v9965_v47 = vadd.f32 %v17523_v14, %v9926_v6  ;;  %v9927_v4 = vmul.f32 %v13361_v60, %v17515_v11  ;;  %11069 = vrot.lane.b32.xlu0 %v10870_v42, %s14315_s21  ;;  %v18361_v42 = vld [vmem:[#allocation68_spill] sm:$0xff]  ;;  %v10821_v33 = vpop.permute.xlu0 %10820 }
 0x9f2   : > { %v9963_v10 = vadd.f32 %v17523_v14, %v9924_v29  ;;  %v9925_v24 = vmul.f32 %v13362_v54, %v17515_v11 }
 0x9f3   : > { %v9997_v25 = vmax.f32 %v9965_v47, 0.0  ;;  %v9966_v8 = vadd.f32 %v17523_v14, %v9927_v4  ;;  %11063 = vrot.lane.b32.xlu1 %v10867_v17, %s14315_s21  ;;  %v18363_v17 = vld [vmem:[#allocation70_spill] sm:$0xff] }
 0x9f4   : > { %v9964_v1 = vadd.f32 %v17523_v14, %v9925_v24  ;;  %v13265_v0 = vpop.f32.mrb[12].mxu0  ;;  %v9995_v9 = vmax.f32 %v9963_v10, 0.0  ;;  %v18364_v10 = vld [vmem:[#allocation69_spill] sm:$0xff] }
 0x9f5   : > { %v10873_v2 = vmul.f32 %v17498_v50, %v9997_v25  ;;  %v9998_v19 = vmax.f32 %v9966_v8, 0.0  ;;  %v13363_v20 = vadd.f32 %v13265_v0, %v18357_v35  ;;  %v9688_v23 = vpop.f32.mrb[13].mxu0  ;;  %11065 = vrot.lane.b32.xlu0 %v10868_v37, %s14315_s21  ;;  %v17638_v0 = vpop.permute.xlu1 %10825 }
 0x9f6   : > { %v13364_v18 = vadd.f32 %v9688_v23, %v18358_v52  ;;  %v13266_v43 = vpop.f32.mrb[14].mxu0  ;;  %v9996_v22 = vmax.f32 %v9964_v1, 0.0  ;;  %v10871_v12 = vmul.f32 %v17480_v30, %v9995_v9 }
 0x9f7   : > { %v10874_v58 = vmul.f32 %v17506_v62, %v9998_v19  ;;  %v9930_v15 = vmul.f32 %v13363_v20, %v17515_v11  ;;  %v13365_v32 = vadd.f32 %v13266_v43, %v18359_v59  ;;  %v9691_v50 = vpop.f32.mrb[15].mxu0  ;;  %11075 = vrot.lane.b32.xlu1 %v10873_v2, %s14315_s21  ;;  %v17644_v20 = vpop.permute.xlu0 %10830  ;;  %v18365_v43 = vld [vmem:[#allocation63_spill] sm:$0xff] }
 0x9f8   : > { %v9928_v53 = vmul.f32 %v13364_v18, %v17515_v11  ;;  %v13366_v39 = vadd.f32 %v9691_v50, %v18360_v46  ;;  %v10872_v38 = vmul.f32 %v17486_v5, %v9996_v22  ;;  %v18367_v46 = vld [vmem:[#allocation26_spill] sm:$0xff] }
 0x9f9   : > { %v9969_v56 = vadd.f32 %v17523_v14, %v9930_v15  ;;  %v9931_v62 = vmul.f32 %v13365_v32, %v17515_v11  ;;  %11077 = vrot.lane.b32.xlu0 %v10874_v58, %s14315_s21 }
 0x9fa   : > { %v9967_v61 = vadd.f32 %v17523_v14, %v9928_v53  ;;  %v9929_v49 = vmul.f32 %v13366_v39, %v17515_v11 }
 0x9fb   : > { %v10001_v36 = vmax.f32 %v9969_v56, 0.0  ;;  %v9970_v13 = vadd.f32 %v17523_v14, %v9931_v62  ;;  %11071 = vrot.lane.b32.xlu1 %v10871_v12, %s14315_s21  ;;  %v18368_v56 = vld [vmem:[#allocation24_spill] sm:$0xff] }
 0x9fc   : > { %v9968_v63 = vadd.f32 %v17523_v14, %v9929_v49  ;;  %v13269_v30 = vpop.f32.mrb[48].mxu0  ;;  %v9999_v51 = vmax.f32 %v9967_v61, 0.0  ;;  %v10836_v61 = vpop.permute.xlu1 %10835 }
 0x9fd   : > { %v10877_v21 = vmul.f32 %v17546_v41, %v10001_v36  ;;  %v10002_v16 = vmax.f32 %v9970_v13, 0.0  ;;  %v13367_v27 = vadd.f32 %v13269_v30, %v18361_v42  ;;  %v9704_v6 = vpop.f32.mrb[49].mxu0  ;;  %11073 = vrot.lane.b32.xlu0 %v10872_v38, %s14315_s21 }
 0x9fe   : > { %v13368_v5 = vadd.f32 %v9704_v6, %v18362_v48  ;;  %v13270_v60 = vpop.f32.mrb[50].mxu0  ;;  %v10000_v45 = vmax.f32 %v9968_v63, 0.0  ;;  %v10875_v37 = vmul.f32 %v17526_v40, %v9999_v51  ;;  %v10841_v63 = vpop.permute.xlu0 %10840  ;;  %v18369_v48 = vld [vmem:[#allocation37_spill] sm:$0xff] }
 0x9ff   : > { %v10878_v29 = vmul.f32 %v17552_v28, %v10002_v16  ;;  %v9934_v54 = vmul.f32 %v13367_v27, %v17515_v11  ;;  %v13369_v47 = vadd.f32 %v13270_v60, %v18363_v17  ;;  %v9707_v4 = vpop.f32.mrb[51].mxu0  ;;  %11083 = vrot.lane.b32.xlu1 %v10877_v21, %s14315_s21 }
 0xa00   : > { %v9932_v41 = vmul.f32 %v13368_v5, %v17515_v11  ;;  %v13370_v24 = vadd.f32 %v9707_v4, %v18364_v10  ;;  %v10876_v2 = vmul.f32 %v17534_v26, %v10000_v45  ;;  %v18366_v26 = vld [vmem:[#allocation62_spill] sm:$0xff] }
 0xa01   : > { %v9973_v25 = vadd.f32 %v17523_v14, %v9934_v54  ;;  %v9935_v8 = vmul.f32 %v13369_v47, %v17515_v11  ;;  %11085 = vrot.lane.b32.xlu0 %v10878_v29, %s14315_s21  ;;  %v18370_v29 = vld [vmem:[#allocation36_spill] sm:$0xff] }
 0xa02   : > { %v9971_v28 = vadd.f32 %v17523_v14, %v9932_v41  ;;  %v9933_v1 = vmul.f32 %v13370_v24, %v17515_v11  ;;  %v18371_v41 = vld [vmem:[#allocation34_spill] sm:$0xff] }
 0xa03   : > { %v10005_v9 = vmax.f32 %v9973_v25, 0.0  ;;  %v9974_v19 = vadd.f32 %v17523_v14, %v9935_v8  ;;  %11079 = vrot.lane.b32.xlu1 %v10875_v37, %s14315_s21  ;;  %v18372_v37 = vld [vmem:[#allocation33_spill] sm:$0xff]  ;;  %v10851_v8 = vpop.permute.xlu0 %10850 }
 0xa04   : > { %v9972_v40 = vadd.f32 %v17523_v14, %v9933_v1  ;;  %v13273_v35 = vpop.f32.mrb[52].mxu0  ;;  %v10003_v52 = vmax.f32 %v9971_v28, 0.0 }
 0xa05   : > { %v10881_v23 = vmul.f32 %v17584_v57, %v10005_v9  ;;  %v10006_v18 = vmax.f32 %v9974_v19, 0.0  ;;  %v13371_v58 = vadd.f32 %v13273_v35, %v18365_v43  ;;  %v9720_v22 = vpop.f32.mrb[53].mxu0  ;;  %11081 = vrot.lane.b32.xlu0 %v10876_v2, %s14315_s21 }
 0xa06   : > { %v13372_v15 = vadd.f32 %v9720_v22, %v18366_v26  ;;  %v13274_v59 = vpop.f32.mrb[54].mxu0  ;;  %v10004_v50 = vmax.f32 %v9972_v40, 0.0  ;;  %v10879_v49 = vmul.f32 %v17566_v55, %v10003_v52  ;;  %v18373_v22 = vld [vmem:[#allocation41_spill] sm:$0xff] }
 0xa07   : > { %v10882_v32 = vmul.f32 %v17592_v44, %v10006_v18  ;;  %v9938_v53 = vmul.f32 %v13371_v58, %v17515_v11  ;;  %v13373_v39 = vadd.f32 %v13274_v59, %v18367_v46  ;;  %v9723_v12 = vpop.f32.mrb[55].mxu0  ;;  %11091 = vrot.lane.b32.xlu1 %v10881_v23, %s14315_s21  ;;  %v18374_v59 = vld [vmem:[#allocation42_spill] sm:$0xff] }
 0xa08   : > { %v9936_v57 = vmul.f32 %v13372_v15, %v17515_v11  ;;  %v13374_v62 = vadd.f32 %v9723_v12, %v18368_v56  ;;  %v10880_v30 = vmul.f32 %v17572_v34, %v10004_v50  ;;  %v10846_v34 = vpop.permute.xlu1 %10845  ;;  %v10861_v50 = vpop.permute.xlu0 %10860  ;;  %v18375_v12 = vld [vmem:[#allocation39_spill] sm:$0xff] }
 0xa09   : > { %v9977_v38 = vadd.f32 %v17523_v14, %v9938_v53  ;;  %v9939_v36 = vmul.f32 %v13373_v39, %v17515_v11  ;;  %11093 = vrot.lane.b32.xlu0 %v10882_v32, %s14315_s21 }
 0xa0a   : > { %v9975_v44 = vadd.f32 %v17523_v14, %v9936_v57  ;;  %v9937_v13 = vmul.f32 %v13374_v62, %v17515_v11 }
 0xa0b   : > { %v10009_v21 = vmax.f32 %v9977_v38, 0.0  ;;  %v9978_v51 = vadd.f32 %v17523_v14, %v9939_v36  ;;  %11087 = vrot.lane.b32.xlu1 %v10879_v49, %s14315_s21 }
 0xa0c   : > { %v9976_v55 = vadd.f32 %v17523_v14, %v9937_v13  ;;  %v13277_v16 = vpop.f32.mrb[56].mxu0  ;;  %v10007_v27 = vmax.f32 %v9975_v44, 0.0  ;;  %v10856_v52 = vpop.permute.xlu1 %10855 }
 0xa0d   : > { %v10885_v42 = vmul.f32 %v10816_v3, %v10009_v21  ;;  %v10010_v6 = vmax.f32 %v9978_v51, 0.0  ;;  %v13375_v5 = vadd.f32 %v13277_v16, %v18369_v48  ;;  %v9736_v60 = vpop.f32.mrb[57].mxu0  ;;  %11089 = vrot.lane.b32.xlu0 %v10880_v30, %s14315_s21 }
 0xa0e   : > { %v13376_v45 = vadd.f32 %v9736_v60, %v18370_v29  ;;  %v13278_v54 = vpop.f32.mrb[58].mxu0  ;;  %v10008_v47 = vmax.f32 %v9976_v55, 0.0  ;;  %v10883_v28 = vmul.f32 %v17602_v31, %v10007_v27 }
 0xa0f   : > { %v10886_v17 = vmul.f32 %v10821_v33, %v10010_v6  ;;  %v9942_v4 = vmul.f32 %v13375_v5, %v17515_v11  ;;  %v13377_v10 = vadd.f32 %v13278_v54, %v18371_v41  ;;  %v9739_v24 = vpop.f32.mrb[59].mxu0  ;;  %11099 = vrot.lane.b32.xlu1 %v10885_v42, %s14315_s21 }
 0xa10   : > { %v9940_v3 = vmul.f32 %v13376_v45, %v17515_v11  ;;  %v13378_v25 = vadd.f32 %v9739_v24, %v18372_v37  ;;  %v10884_v19 = vmul.f32 %v17610_v7, %v10008_v47 }
 0xa11   : > { %v9981_v1 = vadd.f32 %v17523_v14, %v9942_v4  ;;  %v9943_v2 = vmul.f32 %v13377_v10, %v17515_v11  ;;  %11101 = vrot.lane.b32.xlu0 %v10886_v17, %s14315_s21 }
 0xa12   : > { %v9979_v33 = vadd.f32 %v17523_v14, %v9940_v3  ;;  %v9941_v9 = vmul.f32 %v13378_v25, %v17515_v11 }
 0xa13   : > { %v10013_v40 = vmax.f32 %v9981_v1, 0.0  ;;  %v9982_v35 = vadd.f32 %v17523_v14, %v9943_v2  ;;  %11095 = vrot.lane.b32.xlu1 %v10883_v28, %s14315_s21 }
 0xa14   : > { %v9980_v23 = vadd.f32 %v17523_v14, %v9941_v9  ;;  %v13281_v31 = vpop.f32.mrb[60].mxu0  ;;  %v10011_v43 = vmax.f32 %v9979_v33, 0.0 }
 0xa15   : > { %v10889_v18 = vmul.f32 %v10836_v61, %v10013_v40  ;;  %v10014_v58 = vmax.f32 %v9982_v35, 0.0  ;;  %v13379_v26 = vadd.f32 %v13281_v31, %v18373_v22  ;;  %v9752_v15 = vpop.f32.mrb[61].mxu0  ;;  %11097 = vrot.lane.b32.xlu0 %v10884_v19, %s14315_s21  ;;  %v18376_v61 = vld [vmem:[#allocation40_spill] sm:$0xff]  ;;  %v17759_v31 = vld [vmem:[#allocation3] ss:$0 sm:$0xff] }
 0xa16   : > { %v13380_v32 = vadd.f32 %v9752_v15, %v18374_v59  ;;  %v13282_v7 = vpop.f32.mrb[62].mxu0  ;;  %v10012_v46 = vmax.f32 %v9980_v23, 0.0  ;;  %v10887_v38 = vmul.f32 %v17638_v0, %v10011_v43  ;;  %v18378_v22 = vld [vmem:[#allocation87_spill] sm:$0xff] }
 0xa17   : > { %v10890_v53 = vmul.f32 %v10841_v63, %v10014_v58  ;;  %v9946_v39 = vmul.f32 %v13379_v26, %v17515_v11  ;;  %v13381_v57 = vadd.f32 %v13282_v7, %v18375_v12  ;;  %v9755_v56 = vpop.f32.mrb[63].mxu0  ;;  %11107 = vrot.lane.b32.xlu1 %v10889_v18, %s14315_s21  ;;  %v18377_v18 = vld [vmem:[#allocation85_spill] sm:$0xff]  ;;  %v10252_v26 = vadd.f32 %v18378_v22, %v17759_v31  ;;  %v18386_v22 = vld [vmem:[#allocation48_spill] sm:$0xff] }
 0xa18   : > { %v9944_v62 = vmul.f32 %v13380_v32, %v17515_v11  ;;  %v13382_v49 = vadd.f32 %v9755_v56, %v18376_v61  ;;  %v10888_v21 = vmul.f32 %v17644_v20, %v10012_v46  ;;  %v10249_v43 = vadd.f32 %v18377_v18, %v17759_v31  ;;  %v18381_v61 = vld [vmem:[#allocation46_spill] sm:$0xff] }
 0xa19   : > { %v9947_v36 = vmul.f32 %v13381_v57, %v17515_v11  ;;  %11109 = vrot.lane.b32.xlu0 %v10890_v53, %s14315_s21  ;;  %v17695_v44 = vpop.permute.xlu1 %10931  ;;  %v9985_v13 = vadd.f32 %v17523_v14, %v9946_v39  ;;  %v18380_v39 = vld [vmem:[#allocation43_spill] sm:$0xff] }
 0xa1a   : > { %v9983_v63 = vadd.f32 %v17523_v14, %v9944_v62  ;;  %v9945_v30 = vmul.f32 %v13382_v49, %v17515_v11  ;;  %v10140_v12 = vadd.f32 %v18380_v39, %v17759_v31  ;;  %v10129_v49 = vadd.f32 %v17759_v31, %v18381_v61 }
 0xa1b   : > { %v17701_v51 = vpop.permute.xlu0 %10933  ;;  %11103 = vrot.lane.b32.xlu1 %v10887_v38, %s14315_s21  ;;  %v9986_v0 = vadd.f32 %v17523_v14, %v9947_v36  ;;  %v10017_v27 = vmax.f32 %v9985_v13, 0.0 }
 0xa1c   : > { %v10015_v55 = vmax.f32 %v9983_v63, 0.0  ;;  %v9984_v16 = vadd.f32 %v17523_v14, %v9945_v30  ;;  %v11155_v38 = vsel %vm11151_vm4, %v10140_v12, %v17701_v51  ;;  %v18382_v63 = vld [vmem:[#allocation44_spill] sm:$0xff] }
 0xa1d   : > { %11105 = vrot.lane.b32.xlu0 %v10888_v21, %s14315_s21  ;;  %v10928_v42 = vpop.permute.xlu1 %10927  ;;  %v10018_v11 = vmax.f32 %v9986_v0, 0.0  ;;  %v10893_v29 = vmul.f32 %v10856_v52, %v10017_v27  ;;  %v10132_v30 = vadd.f32 %v17759_v31, %v18382_v63  ;;  %v18383_v0 = vld [vmem:[#allocation49_spill] sm:$0xff] }
 0xa1e   : > { %v10891_v6 = vmul.f32 %v10846_v34, %v10015_v55  ;;  %v10016_v48 = vmax.f32 %v9984_v16, 0.0  ;;  %v10153_v51 = vadd.f32 %v18383_v0, %v17759_v31 }
 0xa1f   : > { %v17707_v5 = vpop.permute.xlu0 %10929  ;;  %v10894_v14 = vmul.f32 %v10861_v50, %v10018_v11  ;;  %v18379_v50 = vld [vmem:[#allocation45_spill] sm:$0xff] }
 0xa20   : > { %v10892_v60 = vmul.f32 %v10851_v8, %v10016_v48  ;;  %11111 = vrot.lane.b32.xlu1 %v10891_v6, %s14315_s21  ;;  %v10137_v53 = vadd.f32 %v18379_v50, %v17759_v31  ;;  %v11153_v16 = vsel %vm11151_vm4, %v10132_v30, %v17707_v5  ;;  %v18390_v30 = vld [vmem:[#allocation54_spill] sm:$0xff] }
 0xa21   : > { %v17710_v20 = vpop.permute.xlu1 %10939 }
 0xa22   : > { %11113 = vrot.lane.b32.xlu0 %v10892_v60, %s14315_s21  ;;  %v11154_v57 = vsel %vm11151_vm4, %v10137_v53, %v17695_v44  ;;  %v11152_v44 = vsel %vm11151_vm4, %v10129_v49, %v10928_v42  ;;  %v18384_v42 = vld [vmem:[#allocation47_spill] sm:$0xff]  ;;  %v11158_v11 = vsel %vm11151_vm4, %v10153_v51, %v17710_v20  ;;  %v10148_v20 = vadd.f32 %v17759_v31, %v18386_v22 }
 0xa23   : > { %v17713_v45 = vpop.permute.xlu0 %10941  ;;  %v10156_v48 = vadd.f32 %v18384_v42, %v17759_v31 }
 0xa24   : > { %11115 = vrot.lane.b32.xlu1 %v10893_v29, %s14315_s21 }
 0xa25   : > { %v17716_v54 = vpop.permute.xlu1 %10935  ;;  %v11159_v18 = vsel %vm11151_vm4, %v10156_v48, %v17713_v45  ;;  %v18387_v45 = vld [vmem:[#allocation55_spill] sm:$0xff] }
 0xa26   : > { %11117 = vrot.lane.b32.xlu0 %v10894_v14, %s14315_s21  ;;  %v18385_v14 = vld [vmem:[#allocation50_spill] sm:$0xff]  ;;  %v10169_v53 = vadd.f32 %v18387_v45, %v17759_v31 }
 0xa27   : > { %v17719_v34 = vpop.permute.xlu0 %10937  ;;  %v10145_v5 = vadd.f32 %v17759_v31, %v18385_v14 }
 0xa28   : > { %v11157_v39 = vsel %vm11151_vm4, %v10148_v20, %v17719_v34 }
 0xa29   : > { %v17721_v17 = vpop.permute.xlu1 %10947 }
 0xa2b   : > { %v17723_v47 = vpop.permute.xlu0 %10949 }
 0xa2d   : > { %v17725_v4 = vpop.permute.xlu1 %10943 }
 0xa2f   : > { %v17727_v41 = vpop.permute.xlu0 %10945 }
 0xa31   : > { %v17729_v10 = vpop.permute.xlu1 %10955 }
 0xa33   : > { %v17731_v24 = vpop.permute.xlu0 %10957 }
 0xa35   : > { %v17733_v3 = vpop.permute.xlu1 %10951 }
 0xa37   : > { %v17735_v37 = vpop.permute.xlu0 %10953 }
 0xa39   : > { %v17737_v25 = vpop.permute.xlu1 %10963 }
 0xa3b   : > { %v17739_v8 = vpop.permute.xlu0 %10965 }
 0xa3d   : > { %v17741_v28 = vpop.permute.xlu1 %10959 }
 0xa3f   : > { %v17743_v1 = vpop.permute.xlu0 %10961 }
 0xa41   : > { %v17745_v2 = vpop.permute.xlu1 %10971 }
 0xa43   : > { %v17747_v33 = vpop.permute.xlu0 %10973 }
 0xa45   : > { %v17749_v9 = vpop.permute.xlu1 %10967 }
 0xa47   : > { %v17751_v19 = vpop.permute.xlu0 %10969 }
 0xa49   : > { %v17753_v40 = vpop.permute.xlu1 %10979 }
 0xa4b   : > { %v17755_v35 = vpop.permute.xlu0 %10981 }
 0xa4d   : > { %v17757_v23 = vpop.permute.xlu1 %10975 }
 0xa4f   : > { %v17761_v52 = vpop.permute.xlu0 %10977 }
 0xa51   : > { %v10988_v58 = vpop.permute.xlu1 %10987 }
 0xa52   : > { %v17768_v15 = vsel %vm11151_vm4, %v10249_v43, %v10988_v58 }
 0xa53   : > { %v10990_v59 = vpop.permute.xlu0 %10989 }
 0xa54   : > { %v17771_v32 = vsel %vm11151_vm4, %v10252_v26, %v10990_v59  ;;  %v11156_v26 = vsel %vm11151_vm4, %v10145_v5, %v17716_v54  ;;  %v18388_v54 = vld [vmem:[#allocation53_spill] sm:$0xff] }
 0xa55   : > { %v17773_v7 = vpop.permute.xlu1 %10983 }
 0xa57   : > { %v17777_v46 = vpop.permute.xlu0 %10985 }
 0xa59   : > { %v11060_v56 = vpop.permute.xlu1 %11059 }
 0xa5a   : > { %v11187_v62 = vsel %vm11184_vm5, %v11154_v57, %v11060_v56  ;;  %v10172_v56 = vadd.f32 %v18388_v54, %v17759_v31 }
 0xa5b   : > { %11220 = vst.msk [vmem:[%s17783_s17 + $0x10] sm:$0xff] %vm11217_vm6, %v11187_v62  ;;  %v11062_v36 = vpop.permute.xlu0 %11061  ;;  %v11162_v62 = vsel %vm11151_vm4, %v10169_v53, %v17721_v17  ;;  %v10164_v17 = vadd.f32 %v17759_v31, %v18390_v30 }
 0xa5c   : > { %v11188_v13 = vsel %vm11184_vm5, %v11155_v38, %v11062_v36  ;;  %v18389_v38 = vld [vmem:[#allocation56_spill] sm:$0xff]  ;;  %v11163_v36 = vsel %vm11151_vm4, %v10172_v56, %v17723_v47  ;;  %v18391_v47 = vld [vmem:[#allocation57_spill] sm:$0xff] }
 0xa5d   : > { %11221 = vst.msk [vmem:[%s17783_s17 + $0x18] sm:$0xff] %vm11217_vm6, %v11188_v13  ;;  %v11056_v21 = vpop.permute.xlu1 %11055  ;;  %v10161_v34 = vadd.f32 %v17759_v31, %v18389_v38  ;;  %v10185_v0 = vadd.f32 %v18391_v47, %v17759_v31  ;;  %v11161_v51 = vsel %vm11151_vm4, %v10164_v17, %v17727_v41  ;;  %v18401_v47 = vld [vmem:[#allocation78_spill] sm:$0xff] }
 0xa5e   : > { %v11185_v55 = vsel %vm11184_vm5, %v11152_v44, %v11056_v21 }
 0xa5f   : > { %11218 = vst.msk [vmem:[%s17783_s17] sm:$0xff] %vm11217_vm6, %v11185_v55  ;;  %v11058_v27 = vpop.permute.xlu0 %11057  ;;  %v11160_v44 = vsel %vm11151_vm4, %v10161_v34, %v17725_v4  ;;  %v18392_v4 = vld [vmem:[#allocation71_spill] sm:$0xff]  ;;  %v11166_v42 = vsel %vm11151_vm4, %v10185_v0, %v17729_v10 }
 0xa60   : > { %v11186_v6 = vsel %vm11184_vm5, %v11153_v16, %v11058_v27 }
 0xa61   : > { %11219 = vst.msk [vmem:[%s17783_s17 + $0x8] sm:$0xff] %vm11217_vm6, %v11186_v6  ;;  %v11068_v60 = vpop.permute.xlu1 %11067  ;;  %v10188_v6 = vadd.f32 %v18392_v4, %v17759_v31 }
 0xa62   : > { %v11191_v29 = vsel %vm11184_vm5, %v11158_v11, %v11068_v60  ;;  %v18393_v60 = vld [vmem:[#allocation58_spill] sm:$0xff] }
 0xa63   : > { %11224 = vst.msk [vmem:[%s17783_s17 + $0x30] sm:$0xff] %vm11217_vm6, %v11191_v29  ;;  %v11070_v43 = vpop.permute.xlu0 %11069  ;;  %v10177_v41 = vadd.f32 %v17759_v31, %v18393_v60  ;;  %v11167_v29 = vsel %vm11151_vm4, %v10188_v6, %v17731_v24  ;;  %v18395_v24 = vld [vmem:[#allocation73_spill] sm:$0xff] }
 0xa64   : > { %v11192_v58 = vsel %vm11184_vm5, %v11159_v18, %v11070_v43  ;;  %v18394_v18 = vld [vmem:[#allocation72_spill] sm:$0xff]  ;;  %v10201_v20 = vadd.f32 %v18395_v24, %v17759_v31 }
 0xa65   : > { %11225 = vst.msk [vmem:[%s17783_s17 + $0x38] sm:$0xff] %vm11217_vm6, %v11192_v58  ;;  %v11064_v59 = vpop.permute.xlu1 %11063  ;;  %v10180_v10 = vadd.f32 %v17759_v31, %v18394_v18  ;;  %v11164_v43 = vsel %vm11151_vm4, %v10177_v41, %v17733_v3  ;;  %v18396_v3 = vld [vmem:[#allocation75_spill] sm:$0xff]  ;;  %v18406_v24 = vld [vmem:[#allocation84_spill] sm:$0xff] }
 0xa66   : > { %v11189_v50 = vsel %vm11184_vm5, %v11156_v26, %v11064_v59  ;;  %v10204_v45 = vadd.f32 %v18396_v3, %v17759_v31  ;;  %v11170_v53 = vsel %vm11151_vm4, %v10201_v20, %v17737_v25  ;;  %v18407_v3 = vld [vmem:[#allocation86_spill] sm:$0xff] }
 0xa67   : > { %11222 = vst.msk [vmem:[%s17783_s17 + $0x20] sm:$0xff] %vm11217_vm6, %v11189_v50  ;;  %v11066_v12 = vpop.permute.xlu0 %11065  ;;  %v11165_v26 = vsel %vm11151_vm4, %v10180_v10, %v17735_v37  ;;  %v18405_v10 = vld [vmem:[#allocation82_spill] sm:$0xff] }
 0xa68   : > { %v11190_v57 = vsel %vm11184_vm5, %v11157_v39, %v11066_v12  ;;  %v11171_v54 = vsel %vm11151_vm4, %v10204_v45, %v17739_v8  ;;  %v18399_v8 = vld [vmem:[#allocation77_spill] sm:$0xff]  ;;  %v10241_v45 = vadd.f32 %v17759_v31, %v18407_v3 }
 0xa69   : > { %11223 = vst.msk [vmem:[%s17783_s17 + $0x28] sm:$0xff] %vm11217_vm6, %v11190_v57  ;;  %v11076_v61 = vpop.permute.xlu1 %11075  ;;  %v18397_v57 = vld [vmem:[#allocation74_spill] sm:$0xff] }
 0xa6a   : > { %v11195_v49 = vsel %vm11184_vm5, %v11162_v62, %v11076_v61  ;;  %v10193_v37 = vadd.f32 %v17759_v31, %v18397_v57  ;;  %v18398_v61 = vld [vmem:[#allocation76_spill] sm:$0xff] }
 0xa6b   : > { %11228 = vst.msk [vmem:[%s17783_s17 + $0x50] sm:$0xff] %vm11217_vm6, %v11195_v49  ;;  %v11078_v13 = vpop.permute.xlu0 %11077  ;;  %v10196_v25 = vadd.f32 %v17759_v31, %v18398_v61 }
 0xa6c   : > { %v11196_v63 = vsel %vm11184_vm5, %v11163_v36, %v11078_v13  ;;  %v11168_v49 = vsel %vm11151_vm4, %v10193_v37, %v17741_v28  ;;  %v10217_v36 = vadd.f32 %v18399_v8, %v17759_v31  ;;  %v18400_v28 = vld [vmem:[#allocation79_spill] sm:$0xff] }
 0xa6d   : > { %11229 = vst.msk [vmem:[%s17783_s17 + $0x58] sm:$0xff] %vm11217_vm6, %v11196_v63  ;;  %v11072_v21 = vpop.permute.xlu1 %11071  ;;  %v11169_v13 = vsel %vm11151_vm4, %v10196_v25, %v17743_v1  ;;  %v10220_v17 = vadd.f32 %v18400_v28, %v17759_v31  ;;  %v10209_v1 = vadd.f32 %v17759_v31, %v18401_v47 }
 0xa6e   : > { %v11193_v55 = vsel %vm11184_vm5, %v11160_v44, %v11072_v21  ;;  %v11174_v44 = vsel %vm11151_vm4, %v10217_v36, %v17745_v2 }
 0xa6f   : > { %11226 = vst.msk [vmem:[%s17783_s17 + $0x40] sm:$0xff] %vm11217_vm6, %v11193_v55  ;;  %v11074_v16 = vpop.permute.xlu0 %11073  ;;  %v11175_v0 = vsel %vm11151_vm4, %v10220_v17, %v17747_v33  ;;  %v11172_v4 = vsel %vm11151_vm4, %v10209_v1, %v17749_v9  ;;  %v18403_v33 = vld [vmem:[#allocation81_spill] sm:$0xff]  ;;  %v18404_v9 = vld [vmem:[#allocation83_spill] sm:$0xff] }
 0xa70   : > { %v11194_v27 = vsel %vm11184_vm5, %v11161_v51, %v11074_v16 }
 0xa71   : > { %11227 = vst.msk [vmem:[%s17783_s17 + $0x48] sm:$0xff] %vm11217_vm6, %v11194_v27  ;;  %v11084_v48 = vpop.permute.xlu1 %11083  ;;  %v18402_v27 = vld [vmem:[#allocation80_spill] sm:$0xff] }
 0xa72   : > { %v11199_v11 = vsel %vm11184_vm5, %v11166_v42, %v11084_v48  ;;  %v10212_v2 = vadd.f32 %v17759_v31, %v18402_v27  ;;  %v10233_v48 = vadd.f32 %v18403_v33, %v17759_v31 }
 0xa73   : > { %11232 = vst.msk [vmem:[%s17783_s17 + $0x70] sm:$0xff] %vm11217_vm6, %v11199_v11  ;;  %v11086_v14 = vpop.permute.xlu0 %11085 }
 0xa74   : > { %v11200_v5 = vsel %vm11184_vm5, %v11167_v29, %v11086_v14  ;;  %v11173_v11 = vsel %vm11151_vm4, %v10212_v2, %v17751_v19  ;;  %v10236_v29 = vadd.f32 %v18404_v9, %v17759_v31  ;;  %v11178_v14 = vsel %vm11151_vm4, %v10233_v48, %v17753_v40 }
 0xa75   : > { %11233 = vst.msk [vmem:[%s17783_s17 + $0x78] sm:$0xff] %vm11217_vm6, %v11200_v5  ;;  %v11080_v58 = vpop.permute.xlu1 %11079  ;;  %v10225_v19 = vadd.f32 %v17759_v31, %v18405_v10  ;;  %v10228_v40 = vadd.f32 %v17759_v31, %v18406_v24 }
 0xa76   : > { %v11197_v22 = vsel %vm11184_vm5, %v11164_v43, %v11080_v58  ;;  %v11179_v43 = vsel %vm11151_vm4, %v10236_v29, %v17755_v35 }
 0xa77   : > { %11230 = vst.msk [vmem:[%s17783_s17 + $0x60] sm:$0xff] %vm11217_vm6, %v11197_v22  ;;  %v11082_v59 = vpop.permute.xlu0 %11081  ;;  %v11176_v20 = vsel %vm11151_vm4, %v10225_v19, %v17757_v23  ;;  %v11177_v35 = vsel %vm11151_vm4, %v10228_v40, %v17761_v52  ;;  %v18408_v23 = vld [vmem:[#allocation88_spill] sm:$0xff] }
 0xa78   : > { %v11198_v50 = vsel %vm11184_vm5, %v11165_v26, %v11082_v59 }
 0xa79   : > { %11231 = vst.msk [vmem:[%s17783_s17 + $0x68] sm:$0xff] %vm11217_vm6, %v11198_v50  ;;  %v11092_v39 = vpop.permute.xlu1 %11091 }
 0xa7a   : > { %v11203_v12 = vsel %vm11184_vm5, %v11170_v53, %v11092_v39  ;;  %v10244_v39 = vadd.f32 %v17759_v31, %v18408_v23 }
 0xa7b   : > { %11236 = vst.msk [vmem:[%s17783_s17 + $0x90] sm:$0xff] %vm11217_vm6, %v11203_v12  ;;  %v11094_v56 = vpop.permute.xlu0 %11093  ;;  %v11180_v12 = vsel %vm11151_vm4, %v10241_v45, %v17773_v7 }
 0xa7c   : > { %v11204_v62 = vsel %vm11184_vm5, %v11171_v54, %v11094_v56  ;;  %v11181_v37 = vsel %vm11151_vm4, %v10244_v39, %v17777_v46 }
 0xa7d   : > { %11237 = vst.msk [vmem:[%s17783_s17 + $0x98] sm:$0xff] %vm11217_vm6, %v11204_v62  ;;  %v11088_v38 = vpop.permute.xlu1 %11087 }
 0xa7e   : > { %v11201_v34 = vsel %vm11184_vm5, %v11168_v49, %v11088_v38 }
 0xa7f   : > { %11234 = vst.msk [vmem:[%s17783_s17 + $0x80] sm:$0xff] %vm11217_vm6, %v11201_v34  ;;  %v11090_v63 = vpop.permute.xlu0 %11089 }
 0xa80   : > { %v11202_v30 = vsel %vm11184_vm5, %v11169_v13, %v11090_v63 }
 0xa81   : > { %11235 = vst.msk [vmem:[%s17783_s17 + $0x88] sm:$0xff] %vm11217_vm6, %v11202_v30  ;;  %v11100_v21 = vpop.permute.xlu1 %11099 }
 0xa82   : > { %v11207_v55 = vsel %vm11184_vm5, %v11174_v44, %v11100_v21 }
 0xa83   : > { %11240 = vst.msk [vmem:[%s17783_s17 + $0xb0] sm:$0xff] %vm11217_vm6, %v11207_v55  ;;  %v11102_v51 = vpop.permute.xlu0 %11101 }
 0xa84   : > { %v11208_v16 = vsel %vm11184_vm5, %v11175_v0, %v11102_v51 }
 0xa85   : > { %11241 = vst.msk [vmem:[%s17783_s17 + $0xb8] sm:$0xff] %vm11217_vm6, %v11208_v16  ;;  %v11096_v6 = vpop.permute.xlu1 %11095 }
 0xa86   : > { %v11205_v42 = vsel %vm11184_vm5, %v11172_v4, %v11096_v6 }
 0xa87   : > { %11238 = vst.msk [vmem:[%s17783_s17 + $0xa0] sm:$0xff] %vm11217_vm6, %v11205_v42  ;;  %v11098_v60 = vpop.permute.xlu0 %11097 }
 0xa88   : > { %v11206_v41 = vsel %vm11184_vm5, %v11173_v11, %v11098_v60 }
 0xa89   : > { %11239 = vst.msk [vmem:[%s17783_s17 + $0xa8] sm:$0xff] %vm11217_vm6, %v11206_v41  ;;  %v11108_v5 = vpop.permute.xlu1 %11107 }
 0xa8a   : > { %v11211_v18 = vsel %vm11184_vm5, %v11178_v14, %v11108_v5 }
 0xa8b   : > { %11244 = vst.msk [vmem:[%s17783_s17 + $0xd0] sm:$0xff] %vm11217_vm6, %v11211_v18  ;;  %v11110_v58 = vpop.permute.xlu0 %11109 }
 0xa8c   : > { %v11212_v22 = vsel %vm11184_vm5, %v11179_v43, %v11110_v58 }
 0xa8d   : > { %11245 = vst.msk [vmem:[%s17783_s17 + $0xd8] sm:$0xff] %vm11217_vm6, %v11212_v22  ;;  %v11104_v26 = vpop.permute.xlu1 %11103 }
 0xa8e   : > { %v11209_v59 = vsel %vm11184_vm5, %v11176_v20, %v11104_v26 }
 0xa8f   : > { %11242 = vst.msk [vmem:[%s17783_s17 + $0xc0] sm:$0xff] %vm11217_vm6, %v11209_v59  ;;  %v11106_v50 = vpop.permute.xlu0 %11105 }
 0xa90   : > { %v11210_v53 = vsel %vm11184_vm5, %v11177_v35, %v11106_v50 }
 0xa91   : > { %11243 = vst.msk [vmem:[%s17783_s17 + $0xc8] sm:$0xff] %vm11217_vm6, %v11210_v53 }
 0xa92   : > { %v11112_v57 = vpop.permute.xlu1 %11111 }
 0xa93   : > { %v11213_v52 = vsel %vm11184_vm5, %v11180_v12, %v11112_v57 }
 0xa94   : > { %11246 = vst.msk [vmem:[%s17783_s17 + $0xe0] sm:$0xff] %vm11217_vm6, %v11213_v52  ;;  %v11114_v54 = vpop.permute.xlu0 %11113 }
 0xa95   : > { %v11214_v56 = vsel %vm11184_vm5, %v11181_v37, %v11114_v54 }
 0xa96   : > { %11247 = vst.msk [vmem:[%s17783_s17 + $0xe8] sm:$0xff] %vm11217_vm6, %v11214_v56  ;;  %v11116_v62 = vpop.permute.xlu1 %11115 }
 0xa97   : > { %v11215_v31 = vsel %vm11184_vm5, %v17768_v15, %v11116_v62 }
 0xa98   : > { %11248 = vst.msk [vmem:[%s17783_s17 + $0xf0] sm:$0xff] %vm11217_vm6, %v11215_v31  ;;  %v11118_v7 = vpop.permute.xlu0 %11117 }
 0xa99   : > { %v11216_v61 = vsel %vm11184_vm5, %v17771_v32, %v11118_v7 }
 0xa9a   : > { %11249 = vst.msk [vmem:[%s17783_s17 + $0xf8] sm:$0xff] %vm11217_vm6, %v11216_v61 }
 0xa9b PF: > { %s28_s23 = sadd.s32 1, %s14306_s23  }
 0xa9c   : > { %p25_p4 = scmp.ge.s32.totalorder %s28_s23, 4  }
 0xa9e   :  { %27 = sbr.rel (!%p25_p4) target bundleno = 3 (0x3), region = 123 }

</bundles_post_ra>
